<compile_context>
chip_gen: v5e
topology: v5e:2x2
jax: 0.10.0
libtpu: 0.0.40
codegen_flags: <defaults>
</compile_context>

<pallas_src>
import jax
import jax.numpy as jnp
from jax.experimental import pallas as pl
from jax.experimental.pallas import tpu as pltpu


def bidir_cross_attn_kernel(
    x_ref, ctx_ref,
    wqk_ref, wv_ref, wcqk_ref, wcv_ref,
    wout_ref, bout_ref, wcout_ref, bcout_ref,
    out_ref, ctx_out_ref,
    cqk_s, cv_s, mcol_s, lcol_s, acc_s,
):
    f32 = jnp.float32
    H = wqk_ref.shape[0]
    ti = pl.program_id(1)
    n_ti = pl.num_programs(1)

    # ---- per-batch init: context projections + column-softmax state ------
    @pl.when(ti == 0)
    def _():
        ctx = ctx_ref[0]                                       # (J, CDIM) bf16
        J, CDIM = ctx.shape
        ctx_b = jnp.broadcast_to(ctx[None], (H, J, CDIM))
        cqk_s[...] = jnp.einsum("hjc,hcd->hjd", ctx_b, wcqk_ref[...],
                                preferred_element_type=f32).astype(cqk_s.dtype)
        cv_s[...] = jnp.einsum("hjc,hcd->hjd", ctx_b, wcv_ref[...],
                               preferred_element_type=f32).astype(cv_s.dtype)
        mcol_s[...] = jnp.full_like(mcol_s, -jnp.inf)
        lcol_s[...] = jnp.zeros_like(lcol_s)
        acc_s[...] = jnp.zeros_like(acc_s)

    # ---- per-tile projections (head-batched, bf16 on the MXU) ------------
    x = x_ref[0]                                               # (TI, DIM) bf16
    TI, DIM = x.shape
    x_b = jnp.broadcast_to(x[None], (H, TI, DIM))
    qk = jnp.einsum("hik,hkd->hid", x_b, wqk_ref[...],         # scale pre-folded
                    preferred_element_type=f32).astype(jnp.bfloat16)
    v = jnp.einsum("hik,hkd->hid", x_b, wv_ref[...],
                   preferred_element_type=f32).astype(jnp.bfloat16)
    cqk = cqk_s[...]                                           # (H, J, D) bf16
    cv = cv_s[...]

    # ---- row softmax (over context positions J, fully resident) ----------
    sim = jnp.einsum("hid,hjd->hij", qk, cqk, preferred_element_type=f32)
    m_r = jnp.max(sim, axis=-1, keepdims=True)
    p_r = jnp.exp(sim - m_r)
    l_r = jnp.sum(p_r, axis=-1, keepdims=True)
    attn = (p_r * pl.reciprocal(l_r, approx=True)).astype(jnp.bfloat16)

    out_h = jnp.einsum("hij,hjd->hid", attn, cv, preferred_element_type=f32)
    out_pp = jnp.einsum("hid,hdm->him", out_h.astype(jnp.bfloat16),
                        wout_ref[...], preferred_element_type=f32)
    out = jnp.sum(out_pp, axis=0) + bout_ref[...]              # (TI, DIM) f32
    out_ref[0] = out.astype(out_ref.dtype)

    # ---- column softmax (over x positions I): online across I tiles ------
    simT = jnp.einsum("hjd,hid->hji", cqk, qk, preferred_element_type=f32)
    m_prev = mcol_s[...]                                       # (H, J, 1)
    m_new = jnp.maximum(m_prev, jnp.max(simT, axis=-1, keepdims=True))
    alpha = jnp.exp(m_prev - m_new)
    p_c = jnp.exp(simT - m_new)                                # (H, J, TI) f32
    lcol_s[...] = alpha * lcol_s[...] + jnp.sum(p_c, axis=-1, keepdims=True)
    acc_s[...] = alpha * acc_s[...] + jnp.einsum(
        "hji,hid->hjd", p_c.astype(jnp.bfloat16), v, preferred_element_type=f32)
    mcol_s[...] = m_new

    # ---- finalize context output on the last I tile -----------------------
    @pl.when(ti == n_ti - 1)
    def _():
        ctx_inner = acc_s[...] * pl.reciprocal(lcol_s[...], approx=True)
        ctx_pp = jnp.einsum("hjd,hdm->hjm", ctx_inner.astype(jnp.bfloat16),
                            wcout_ref[...], preferred_element_type=f32)
        ctx_out = jnp.sum(ctx_pp, axis=0) + bcout_ref[...]     # (J, CDIM) f32
        ctx_out_ref[0] = ctx_out.astype(ctx_out_ref.dtype)


def bidirectional_cross_attention(x, context, params, *, num_heads, dim_head,
                                  block_i=None):
    B, I, DIM = x.shape
    _, J, CDIM = context.shape
    scale = dim_head ** -0.5

    if block_i is None:
        block_i = I if I <= 256 else 256
    assert I % block_i == 0, "I must be divisible by block_i"
    assert block_i == I or block_i % 8 == 0

    cdt = jnp.bfloat16  # MXU operand dtype

    def head_major_in(w, d_in):   # (d_in, H*D) -> (H, d_in, D)
        return w.reshape(d_in, num_heads, dim_head).transpose(1, 0, 2).astype(cdt)

    def head_major_out(w, d_out):  # (H*D, d_out) -> (H, D, d_out)
        return w.reshape(num_heads, dim_head, d_out).astype(cdt)

    w_qk = head_major_in(params["w_qk"] * scale, DIM)   # scale folded here
    w_v = head_major_in(params["w_v"], DIM)
    w_cqk = head_major_in(params["w_cqk"], CDIM)
    w_cv = head_major_in(params["w_cv"], CDIM)
    w_out = head_major_out(params["w_out"], DIM)
    w_cout = head_major_out(params["w_cout"], CDIM)
    b_out = params["b_out"].reshape(1, DIM).astype(jnp.float32)
    b_cout = params["b_cout"].reshape(1, CDIM).astype(jnp.float32)

    def const3(shape):
        return pl.BlockSpec(shape, lambda b, i: (0, 0, 0))

    def const2(shape):
        return pl.BlockSpec(shape, lambda b, i: (0, 0))

    out_shapes = (
        jax.ShapeDtypeStruct((B, I, DIM), jnp.float32),
        jax.ShapeDtypeStruct((B, J, CDIM), jnp.float32),
    )

    return pl.pallas_call(
        bidir_cross_attn_kernel,
        out_shape=out_shapes,
        grid_spec=pltpu.PrefetchScalarGridSpec(
            num_scalar_prefetch=0,
            grid=(B, I // block_i),
            in_specs=[
                pl.BlockSpec((1, block_i, DIM), lambda b, i: (b, i, 0)),  # x tile
                pl.BlockSpec((1, J, CDIM), lambda b, i: (b, 0, 0)),       # context
                const3((num_heads, DIM, dim_head)),    # w_qk  (head-major, scaled)
                const3((num_heads, DIM, dim_head)),    # w_v
                const3((num_heads, CDIM, dim_head)),   # w_cqk
                const3((num_heads, CDIM, dim_head)),   # w_cv
                const3((num_heads, dim_head, DIM)),    # w_out
                const2((1, DIM)),                      # b_out
                const3((num_heads, dim_head, CDIM)),   # w_cout
                const2((1, CDIM)),                     # b_cout
            ],
            out_specs=[
                pl.BlockSpec((1, block_i, DIM), lambda b, i: (b, i, 0)),
                pl.BlockSpec((1, J, CDIM), lambda b, i: (b, 0, 0)),  # accum over i
            ],
            scratch_shapes=[
                pltpu.VMEM((num_heads, J, dim_head), cdt),         # cqk (resident)
                pltpu.VMEM((num_heads, J, dim_head), cdt),         # cv  (resident)
                pltpu.VMEM((num_heads, J, 1), jnp.float32),        # col running max
                pltpu.VMEM((num_heads, J, 1), jnp.float32),        # col running sum
                pltpu.VMEM((num_heads, J, dim_head), jnp.float32), # col accumulator
            ],
        ),
        compiler_params=pltpu.CompilerParams(
            dimension_semantics=("parallel", "arbitrary"),
            vmem_limit_bytes=48 * 1024 * 1024,
        ),
    )(
        x.astype(cdt), context.astype(cdt),
        w_qk, w_v, w_cqk, w_cv, w_out, b_out, w_cout, b_cout,
    )


def reference(x, context, params, *, num_heads, dim_head):
    """Pure-JAX (f32) mirror of the PyTorch forward (default config)."""
    scale = dim_head ** -0.5
    qk = x @ params["w_qk"]
    v = x @ params["w_v"]
    cqk = context @ params["w_cqk"]
    cv = context @ params["w_cv"]

    def split(t):  # b n (h d) -> b h n d
        b, n, _ = t.shape
        return t.reshape(b, n, num_heads, dim_head).transpose(0, 2, 1, 3)

    qk, v, cqk, cv = map(split, (qk, v, cqk, cv))
    sim = jnp.einsum("bhid,bhjd->bhij", qk, cqk) * scale
    attn = jax.nn.softmax(sim, axis=-1)
    cattn = jax.nn.softmax(sim, axis=-2)
    out = jnp.einsum("bhij,bhjd->bhid", attn, cv)
    ctx_out = jnp.einsum("bhji,bhjd->bhid", cattn, v)

    def merge(t):  # b h n d -> b n (h d)
        b, h, n, d = t.shape
        return t.transpose(0, 2, 1, 3).reshape(b, n, h * d)

    out = merge(out) @ params["w_out"] + params["b_out"][0]
    ctx_out = merge(ctx_out) @ params["w_cout"] + params["b_cout"][0]
    return out, ctx_out


if __name__ == "__main__":
    B, I, J = 2, 128, 96
    DIM, CDIM = 64, 48
    NUM_HEADS, DIM_HEAD = 4, 16
    INNER = NUM_HEADS * DIM_HEAD

    key = jax.random.PRNGKey(0)
    keys = jax.random.split(key, 10)

    x = jax.random.normal(keys[0], (B, I, DIM), dtype=jnp.float32)
    context = jax.random.normal(keys[1], (B, J, CDIM), dtype=jnp.float32)

    s = 0.02
    params = {
        "w_qk": s * jax.random.normal(keys[2], (DIM, INNER), jnp.float32),
        "w_v": s * jax.random.normal(keys[3], (DIM, INNER), jnp.float32),
        "w_cqk": s * jax.random.normal(keys[4], (CDIM, INNER), jnp.float32),
        "w_cv": s * jax.random.normal(keys[5], (CDIM, INNER), jnp.float32),
        "w_out": s * jax.random.normal(keys[6], (INNER, DIM), jnp.float32),
        "b_out": s * jax.random.normal(keys[7], (1, DIM), jnp.float32),
        "w_cout": s * jax.random.normal(keys[8], (INNER, CDIM), jnp.float32),
        "b_cout": s * jax.random.normal(keys[9], (1, CDIM), jnp.float32),
    }

    out, ctx_out = bidirectional_cross_attention(
        x, context, params, num_heads=NUM_HEADS, dim_head=DIM_HEAD, block_i=64
    )
    jax.block_until_ready((out, ctx_out))

    ref_out, ref_ctx_out = reference(
        x, context, params, num_heads=NUM_HEADS, dim_head=DIM_HEAD
    )
    # bf16 MXU operands + approx reciprocal -> loosen tolerances vs pure-f32 ref.
    assert jnp.allclose(out, ref_out, atol=5e-3, rtol=5e-2), \
        float(jnp.max(jnp.abs(out - ref_out)))
    assert jnp.allclose(ctx_out, ref_ctx_out, atol=5e-3, rtol=5e-2), \
        float(jnp.max(jnp.abs(ctx_out - ref_ctx_out)))

    print("KERNEL_OK")
</pallas_src>

<mosaic_0001>
module attributes {stable_mosaic.version = 11 : i64} {
  func.func @bidir_cross_attn_kernel(%arg0: i32, %arg1: i32, %arg2: memref<1x64x64xbf16, #tpu.memory_space<vmem>>, %arg3: memref<1x96x48xbf16, #tpu.memory_space<vmem>>, %arg4: memref<4x64x16xbf16, #tpu.memory_space<vmem>>, %arg5: memref<4x64x16xbf16, #tpu.memory_space<vmem>>, %arg6: memref<4x48x16xbf16, #tpu.memory_space<vmem>>, %arg7: memref<4x48x16xbf16, #tpu.memory_space<vmem>>, %arg8: memref<4x16x64xbf16, #tpu.memory_space<vmem>>, %arg9: memref<1x64xf32, #tpu.memory_space<vmem>>, %arg10: memref<4x16x48xbf16, #tpu.memory_space<vmem>>, %arg11: memref<1x48xf32, #tpu.memory_space<vmem>>, %arg12: memref<1x64x64xf32, #tpu.memory_space<vmem>>, %arg13: memref<1x96x48xf32, #tpu.memory_space<vmem>>, %arg14: memref<4x96x16xbf16, #tpu.memory_space<vmem>>, %arg15: memref<4x96x16xbf16, #tpu.memory_space<vmem>>, %arg16: memref<4x96x1xf32, #tpu.memory_space<vmem>>, %arg17: memref<4x96x1xf32, #tpu.memory_space<vmem>>, %arg18: memref<4x96x16xf32, #tpu.memory_space<vmem>>) attributes {dimension_semantics = [#tpu.dimension_semantics<parallel>, #tpu.dimension_semantics<arbitrary>], iteration_bounds = array<i64: 2, 2>, scalar_prefetch = 0 : i64, scratch_operands = 5 : i64, tpu.core_type = #tpu.core_type<tc>, window_params = [{transform_indices = @transform_0, window_bounds = array<i64: 1, 64, 64>}, {transform_indices = @transform_1, window_bounds = array<i64: 1, 96, 48>}, {pipeline_mode = #tpu.pipeline_mode<synchronous>, transform_indices = @transform_2, window_bounds = array<i64: 4, 64, 16>}, {pipeline_mode = #tpu.pipeline_mode<synchronous>, transform_indices = @transform_3, window_bounds = array<i64: 4, 64, 16>}, {pipeline_mode = #tpu.pipeline_mode<synchronous>, transform_indices = @transform_4, window_bounds = array<i64: 4, 48, 16>}, {pipeline_mode = #tpu.pipeline_mode<synchronous>, transform_indices = @transform_5, window_bounds = array<i64: 4, 48, 16>}, {pipeline_mode = #tpu.pipeline_mode<synchronous>, transform_indices = @transform_6, window_bounds = array<i64: 4, 16, 64>}, {pipeline_mode = #tpu.pipeline_mode<synchronous>, transform_indices = @transform_7, window_bounds = array<i64: 1, 64>}, {pipeline_mode = #tpu.pipeline_mode<synchronous>, transform_indices = @transform_8, window_bounds = array<i64: 4, 16, 48>}, {pipeline_mode = #tpu.pipeline_mode<synchronous>, transform_indices = @transform_9, window_bounds = array<i64: 1, 48>}, {transform_indices = @transform_10, window_bounds = array<i64: 1, 64, 64>}, {transform_indices = @transform_11, window_bounds = array<i64: 1, 96, 48>}]} {
    %c0_i32 = arith.constant 0 : i32
    %0 = arith.cmpi eq, %arg1, %c0_i32 : i32
    %1 = arith.extui %0 : i1 to i32
    %c0_i32_0 = arith.constant 0 : i32
    %2 = arith.cmpi ne, %1, %c0_i32_0 : i32
    scf.if %2 {
      %c0_53 = arith.constant 0 : index
      %c0_54 = arith.constant 0 : index
      %c0_55 = arith.constant 0 : index
      %66 = vector.load %arg3[%c0_53, %c0_54, %c0_55] : memref<1x96x48xbf16, #tpu.memory_space<vmem>>, vector<1x96x48xbf16>
      %67 = vector.shape_cast %66 : vector<1x96x48xbf16> to vector<96x48xbf16>
      %68 = vector.shape_cast %67 : vector<96x48xbf16> to vector<1x96x48xbf16>
      %69 = vector.shape_cast %68 : vector<1x96x48xbf16> to vector<1x96x48xbf16>
      %70 = vector.broadcast %69 : vector<1x96x48xbf16> to vector<4x96x48xbf16>
      %c0_56 = arith.constant 0 : index
      %c0_57 = arith.constant 0 : index
      %c0_58 = arith.constant 0 : index
      %71 = vector.load %arg6[%c0_56, %c0_57, %c0_58] : memref<4x48x16xbf16, #tpu.memory_space<vmem>>, vector<4x48x16xbf16>
      "tpu.trace_start"() <{level = 10 : i32, message = "hjc,hcd->hjd"}> : () -> ()
      %cst_59 = arith.constant dense<0.000000e+00> : vector<4x96x16xf32>
      %72 = tpu.matmul %70, %71, %cst_59 {dimension_numbers = #tpu.dot_dimension_numbers<[2], [1], [1], [2], [0, 0, 0, 1, 1, 2], [0], [0]>} : vector<4x96x48xbf16>, vector<4x48x16xbf16>, vector<4x96x16xf32> -> vector<4x96x16xf32>
      "tpu.trace_stop"() : () -> ()
      %73 = arith.truncf %72 : vector<4x96x16xf32> to vector<4x96x16xbf16>
      %c0_60 = arith.constant 0 : index
      %c0_61 = arith.constant 0 : index
      %c0_62 = arith.constant 0 : index
      %74 = vector.load %arg14[%c0_60, %c0_61, %c0_62] : memref<4x96x16xbf16, #tpu.memory_space<vmem>>, vector<4x96x16xbf16>
      tpu.vector_store %arg14[%c0_60, %c0_61, %c0_62], %73 {strides = array<i32>} : memref<4x96x16xbf16, #tpu.memory_space<vmem>>, vector<4x96x16xbf16>,
      %c0_63 = arith.constant 0 : index
      %c0_64 = arith.constant 0 : index
      %c0_65 = arith.constant 0 : index
      %75 = vector.load %arg7[%c0_63, %c0_64, %c0_65] : memref<4x48x16xbf16, #tpu.memory_space<vmem>>, vector<4x48x16xbf16>
      "tpu.trace_start"() <{level = 10 : i32, message = "hjc,hcd->hjd"}> : () -> ()
      %cst_66 = arith.constant dense<0.000000e+00> : vector<4x96x16xf32>
      %76 = tpu.matmul %70, %75, %cst_66 {dimension_numbers = #tpu.dot_dimension_numbers<[2], [1], [1], [2], [0, 0, 0, 1, 1, 2], [0], [0]>} : vector<4x96x48xbf16>, vector<4x48x16xbf16>, vector<4x96x16xf32> -> vector<4x96x16xf32>
      "tpu.trace_stop"() : () -> ()
      %77 = arith.truncf %76 : vector<4x96x16xf32> to vector<4x96x16xbf16>
      %c0_67 = arith.constant 0 : index
      %c0_68 = arith.constant 0 : index
      %c0_69 = arith.constant 0 : index
      %78 = vector.load %arg15[%c0_67, %c0_68, %c0_69] : memref<4x96x16xbf16, #tpu.memory_space<vmem>>, vector<4x96x16xbf16>
      tpu.vector_store %arg15[%c0_67, %c0_68, %c0_69], %77 {strides = array<i32>} : memref<4x96x16xbf16, #tpu.memory_space<vmem>>, vector<4x96x16xbf16>,
      %cst_70 = arith.constant 0xFF800000 : f32
      %79 = vector.broadcast %cst_70 : f32 to vector<4x96x1xf32>
      %c0_71 = arith.constant 0 : index
      %c0_72 = arith.constant 0 : index
      %c0_73 = arith.constant 0 : index
      %80 = vector.load %arg16[%c0_71, %c0_72, %c0_73] : memref<4x96x1xf32, #tpu.memory_space<vmem>>, vector<4x96x1xf32>
      tpu.vector_store %arg16[%c0_71, %c0_72, %c0_73], %79 {strides = array<i32>} : memref<4x96x1xf32, #tpu.memory_space<vmem>>, vector<4x96x1xf32>,
      %cst_74 = arith.constant 0.000000e+00 : f32
      %81 = vector.broadcast %cst_74 : f32 to vector<4x96x1xf32>
      %c0_75 = arith.constant 0 : index
      %c0_76 = arith.constant 0 : index
      %c0_77 = arith.constant 0 : index
      %82 = vector.load %arg17[%c0_75, %c0_76, %c0_77] : memref<4x96x1xf32, #tpu.memory_space<vmem>>, vector<4x96x1xf32>
      tpu.vector_store %arg17[%c0_75, %c0_76, %c0_77], %81 {strides = array<i32>} : memref<4x96x1xf32, #tpu.memory_space<vmem>>, vector<4x96x1xf32>,
      %cst_78 = arith.constant 0.000000e+00 : f32
      %83 = vector.broadcast %cst_78 : f32 to vector<4x96x16xf32>
      %c0_79 = arith.constant 0 : index
      %c0_80 = arith.constant 0 : index
      %c0_81 = arith.constant 0 : index
      %84 = vector.load %arg18[%c0_79, %c0_80, %c0_81] : memref<4x96x16xf32, #tpu.memory_space<vmem>>, vector<4x96x16xf32>
      tpu.vector_store %arg18[%c0_79, %c0_80, %c0_81], %83 {strides = array<i32>} : memref<4x96x16xf32, #tpu.memory_space<vmem>>, vector<4x96x16xf32>,
    } else {
    }
    %c0 = arith.constant 0 : index
    %c0_1 = arith.constant 0 : index
    %c0_2 = arith.constant 0 : index
    %3 = vector.load %arg2[%c0, %c0_1, %c0_2] : memref<1x64x64xbf16, #tpu.memory_space<vmem>>, vector<1x64x64xbf16>
    %4 = vector.shape_cast %3 : vector<1x64x64xbf16> to vector<64x64xbf16>
    %5 = vector.shape_cast %4 : vector<64x64xbf16> to vector<1x64x64xbf16>
    %6 = vector.shape_cast %5 : vector<1x64x64xbf16> to vector<1x64x64xbf16>
    %7 = vector.broadcast %6 : vector<1x64x64xbf16> to vector<4x64x64xbf16>
    %c0_3 = arith.constant 0 : index
    %c0_4 = arith.constant 0 : index
    %c0_5 = arith.constant 0 : index
    %8 = vector.load %arg4[%c0_3, %c0_4, %c0_5] : memref<4x64x16xbf16, #tpu.memory_space<vmem>>, vector<4x64x16xbf16>
    "tpu.trace_start"() <{level = 10 : i32, message = "hik,hkd->hid"}> : () -> ()
    %cst = arith.constant dense<0.000000e+00> : vector<4x64x16xf32>
    %9 = tpu.matmul %7, %8, %cst {dimension_numbers = #tpu.dot_dimension_numbers<[2], [1], [1], [2], [0, 0, 0, 1, 1, 2], [0], [0]>} : vector<4x64x64xbf16>, vector<4x64x16xbf16>, vector<4x64x16xf32> -> vector<4x64x16xf32>
    "tpu.trace_stop"() : () -> ()
    %10 = arith.truncf %9 : vector<4x64x16xf32> to vector<4x64x16xbf16>
    %c0_6 = arith.constant 0 : index
    %c0_7 = arith.constant 0 : index
    %c0_8 = arith.constant 0 : index
    %11 = vector.load %arg5[%c0_6, %c0_7, %c0_8] : memref<4x64x16xbf16, #tpu.memory_space<vmem>>, vector<4x64x16xbf16>
    "tpu.trace_start"() <{level = 10 : i32, message = "hik,hkd->hid"}> : () -> ()
    %cst_9 = arith.constant dense<0.000000e+00> : vector<4x64x16xf32>
    %12 = tpu.matmul %7, %11, %cst_9 {dimension_numbers = #tpu.dot_dimension_numbers<[2], [1], [1], [2], [0, 0, 0, 1, 1, 2], [0], [0]>} : vector<4x64x64xbf16>, vector<4x64x16xbf16>, vector<4x64x16xf32> -> vector<4x64x16xf32>
    "tpu.trace_stop"() : () -> ()
    %13 = arith.truncf %12 : vector<4x64x16xf32> to vector<4x64x16xbf16>
    %c0_10 = arith.constant 0 : index
    %c0_11 = arith.constant 0 : index
    %c0_12 = arith.constant 0 : index
    %14 = vector.load %arg14[%c0_10, %c0_11, %c0_12] : memref<4x96x16xbf16, #tpu.memory_space<vmem>>, vector<4x96x16xbf16>
    %c0_13 = arith.constant 0 : index
    %c0_14 = arith.constant 0 : index
    %c0_15 = arith.constant 0 : index
    %15 = vector.load %arg15[%c0_13, %c0_14, %c0_15] : memref<4x96x16xbf16, #tpu.memory_space<vmem>>, vector<4x96x16xbf16>
    "tpu.trace_start"() <{level = 10 : i32, message = "hid,hjd->hij"}> : () -> ()
    %cst_16 = arith.constant dense<0.000000e+00> : vector<4x64x96xf32>
    %16 = tpu.matmul %10, %14, %cst_16 {dimension_numbers = #tpu.dot_dimension_numbers<[2], [2], [1], [1], [0, 0, 0, 1, 1, 1], [0], [0]>} : vector<4x64x16xbf16>, vector<4x96x16xbf16>, vector<4x64x96xf32> -> vector<4x64x96xf32>
    "tpu.trace_stop"() : () -> ()
    %cst_17 = arith.constant dense<0xFF800000> : vector<4x64xf32>
    %17 = vector.multi_reduction <maximumf>, %16, %cst_17 [2] : vector<4x64x96xf32> to vector<4x64xf32>
    %18 = vector.shape_cast %17 : vector<4x64xf32> to vector<4x64x1xf32>
    %19 = vector.broadcast %18 : vector<4x64x1xf32> to vector<4x64x96xf32>
    %20 = arith.subf %16, %19 : vector<4x64x96xf32>
    %21 = math.exp %20 : vector<4x64x96xf32>
    %cst_18 = arith.constant dense<0.000000e+00> : vector<4x64xf32>
    %22 = vector.multi_reduction <add>, %21, %cst_18 [2] : vector<4x64x96xf32> to vector<4x64xf32>
    %23 = vector.shape_cast %22 : vector<4x64xf32> to vector<4x64x1xf32>
    %24 = tpu.reciprocal %23 {approx = true} : vector<4x64x1xf32> -> vector<4x64x1xf32>
    %25 = vector.broadcast %24 : vector<4x64x1xf32> to vector<4x64x96xf32>
    %26 = arith.mulf %21, %25 : vector<4x64x96xf32>
    %27 = arith.truncf %26 : vector<4x64x96xf32> to vector<4x64x96xbf16>
    "tpu.trace_start"() <{level = 10 : i32, message = "hij,hjd->hid"}> : () -> ()
    %cst_19 = arith.constant dense<0.000000e+00> : vector<4x64x16xf32>
    %28 = tpu.matmul %27, %15, %cst_19 {dimension_numbers = #tpu.dot_dimension_numbers<[2], [1], [1], [2], [0, 0, 0, 1, 1, 2], [0], [0]>} : vector<4x64x96xbf16>, vector<4x96x16xbf16>, vector<4x64x16xf32> -> vector<4x64x16xf32>
    "tpu.trace_stop"() : () -> ()
    %29 = arith.truncf %28 : vector<4x64x16xf32> to vector<4x64x16xbf16>
    %c0_20 = arith.constant 0 : index
    %c0_21 = arith.constant 0 : index
    %c0_22 = arith.constant 0 : index
    %30 = vector.load %arg8[%c0_20, %c0_21, %c0_22] : memref<4x16x64xbf16, #tpu.memory_space<vmem>>, vector<4x16x64xbf16>
    "tpu.trace_start"() <{level = 10 : i32, message = "hid,hdm->him"}> : () -> ()
    %cst_23 = arith.constant dense<0.000000e+00> : vector<4x64x64xf32>
    %31 = tpu.matmul %29, %30, %cst_23 {dimension_numbers = #tpu.dot_dimension_numbers<[2], [1], [1], [2], [0, 0, 0, 1, 1, 2], [0], [0]>} : vector<4x64x16xbf16>, vector<4x16x64xbf16>, vector<4x64x64xf32> -> vector<4x64x64xf32>
    "tpu.trace_stop"() : () -> ()
    %cst_24 = arith.constant dense<0.000000e+00> : vector<64x64xf32>
    %32 = vector.multi_reduction <add>, %31, %cst_24 [0] : vector<4x64x64xf32> to vector<64x64xf32>
    %c0_25 = arith.constant 0 : index
    %c0_26 = arith.constant 0 : index
    %33 = vector.load %arg9[%c0_25, %c0_26] : memref<1x64xf32, #tpu.memory_space<vmem>>, vector<1x64xf32>
    %34 = vector.broadcast %33 : vector<1x64xf32> to vector<64x64xf32>
    %35 = arith.addf %32, %34 : vector<64x64xf32>
    %c0_27 = arith.constant 0 : index
    %c0_28 = arith.constant 0 : index
    %c0_29 = arith.constant 0 : index
    %36 = vector.load %arg12[%c0_27, %c0_28, %c0_29] : memref<1x64x64xf32, #tpu.memory_space<vmem>>, vector<1x64x64xf32>
    %37 = vector.shape_cast %36 : vector<1x64x64xf32> to vector<64x64xf32>
    %38 = vector.shape_cast %35 : vector<64x64xf32> to vector<1x64x64xf32>
    tpu.vector_store %arg12[%c0_27, %c0_28, %c0_29], %38 {strides = array<i32>} : memref<1x64x64xf32, #tpu.memory_space<vmem>>, vector<1x64x64xf32>,
    "tpu.trace_start"() <{level = 10 : i32, message = "hjd,hid->hji"}> : () -> ()
    %cst_30 = arith.constant dense<0.000000e+00> : vector<4x96x64xf32>
    %39 = tpu.matmul %14, %10, %cst_30 {dimension_numbers = #tpu.dot_dimension_numbers<[2], [2], [1], [1], [0, 0, 0, 1, 1, 1], [0], [0]>} : vector<4x96x16xbf16>, vector<4x64x16xbf16>, vector<4x96x64xf32> -> vector<4x96x64xf32>
    "tpu.trace_stop"() : () -> ()
    %c0_31 = arith.constant 0 : index
    %c0_32 = arith.constant 0 : index
    %c0_33 = arith.constant 0 : index
    %40 = vector.load %arg16[%c0_31, %c0_32, %c0_33] : memref<4x96x1xf32, #tpu.memory_space<vmem>>, vector<4x96x1xf32>
    %cst_34 = arith.constant dense<0xFF800000> : vector<4x96xf32>
    %41 = vector.multi_reduction <maximumf>, %39, %cst_34 [2] : vector<4x96x64xf32> to vector<4x96xf32>
    %42 = vector.shape_cast %41 : vector<4x96xf32> to vector<4x96x1xf32>
    %43 = arith.maximumf %40, %42 : vector<4x96x1xf32>
    %44 = arith.subf %40, %43 : vector<4x96x1xf32>
    %45 = math.exp %44 : vector<4x96x1xf32>
    %46 = vector.broadcast %43 : vector<4x96x1xf32> to vector<4x96x64xf32>
    %47 = arith.subf %39, %46 : vector<4x96x64xf32>
    %48 = math.exp %47 : vector<4x96x64xf32>
    %c0_35 = arith.constant 0 : index
    %c0_36 = arith.constant 0 : index
    %c0_37 = arith.constant 0 : index
    %49 = vector.load %arg17[%c0_35, %c0_36, %c0_37] : memref<4x96x1xf32, #tpu.memory_space<vmem>>, vector<4x96x1xf32>
    %50 = arith.mulf %45, %49 : vector<4x96x1xf32>
    %cst_38 = arith.constant dense<0.000000e+00> : vector<4x96xf32>
    %51 = vector.multi_reduction <add>, %48, %cst_38 [2] : vector<4x96x64xf32> to vector<4x96xf32>
    %52 = vector.shape_cast %51 : vector<4x96xf32> to vector<4x96x1xf32>
    %53 = arith.addf %50, %52 : vector<4x96x1xf32>
    %c0_39 = arith.constant 0 : index
    %c0_40 = arith.constant 0 : index
    %c0_41 = arith.constant 0 : index
    %54 = vector.load %arg17[%c0_39, %c0_40, %c0_41] : memref<4x96x1xf32, #tpu.memory_space<vmem>>, vector<4x96x1xf32>
    tpu.vector_store %arg17[%c0_39, %c0_40, %c0_41], %53 {strides = array<i32>} : memref<4x96x1xf32, #tpu.memory_space<vmem>>, vector<4x96x1xf32>,
    %c0_42 = arith.constant 0 : index
    %c0_43 = arith.constant 0 : index
    %c0_44 = arith.constant 0 : index
    %55 = vector.load %arg18[%c0_42, %c0_43, %c0_44] : memref<4x96x16xf32, #tpu.memory_space<vmem>>, vector<4x96x16xf32>
    %56 = vector.broadcast %45 : vector<4x96x1xf32> to vector<4x96x16xf32>
    %57 = arith.mulf %56, %55 : vector<4x96x16xf32>
    %58 = arith.truncf %48 : vector<4x96x64xf32> to vector<4x96x64xbf16>
    "tpu.trace_start"() <{level = 10 : i32, message = "hji,hid->hjd"}> : () -> ()
    %cst_45 = arith.constant dense<0.000000e+00> : vector<4x96x16xf32>
    %59 = tpu.matmul %58, %13, %cst_45 {dimension_numbers = #tpu.dot_dimension_numbers<[2], [1], [1], [2], [0, 0, 0, 1, 1, 2], [0], [0]>} : vector<4x96x64xbf16>, vector<4x64x16xbf16>, vector<4x96x16xf32> -> vector<4x96x16xf32>
    "tpu.trace_stop"() : () -> ()
    %60 = arith.addf %57, %59 : vector<4x96x16xf32>
    %c0_46 = arith.constant 0 : index
    %c0_47 = arith.constant 0 : index
    %c0_48 = arith.constant 0 : index
    %61 = vector.load %arg18[%c0_46, %c0_47, %c0_48] : memref<4x96x16xf32, #tpu.memory_space<vmem>>, vector<4x96x16xf32>
    tpu.vector_store %arg18[%c0_46, %c0_47, %c0_48], %60 {strides = array<i32>} : memref<4x96x16xf32, #tpu.memory_space<vmem>>, vector<4x96x16xf32>,
    %c0_49 = arith.constant 0 : index
    %c0_50 = arith.constant 0 : index
    %c0_51 = arith.constant 0 : index
    %62 = vector.load %arg16[%c0_49, %c0_50, %c0_51] : memref<4x96x1xf32, #tpu.memory_space<vmem>>, vector<4x96x1xf32>
    tpu.vector_store %arg16[%c0_49, %c0_50, %c0_51], %43 {strides = array<i32>} : memref<4x96x1xf32, #tpu.memory_space<vmem>>, vector<4x96x1xf32>,
    %c1_i32 = arith.constant 1 : i32
    %63 = arith.cmpi eq, %arg1, %c1_i32 : i32
    %64 = arith.extui %63 : i1 to i32
    %c0_i32_52 = arith.constant 0 : i32
    %65 = arith.cmpi ne, %64, %c0_i32_52 : i32
    scf.if %65 {
      %c0_53 = arith.constant 0 : index
      %c0_54 = arith.constant 0 : index
      %c0_55 = arith.constant 0 : index
      %66 = vector.load %arg18[%c0_53, %c0_54, %c0_55] : memref<4x96x16xf32, #tpu.memory_space<vmem>>, vector<4x96x16xf32>
      %c0_56 = arith.constant 0 : index
      %c0_57 = arith.constant 0 : index
      %c0_58 = arith.constant 0 : index
      %67 = vector.load %arg17[%c0_56, %c0_57, %c0_58] : memref<4x96x1xf32, #tpu.memory_space<vmem>>, vector<4x96x1xf32>
      %68 = tpu.reciprocal %67 {approx = true} : vector<4x96x1xf32> -> vector<4x96x1xf32>
      %69 = vector.broadcast %68 : vector<4x96x1xf32> to vector<4x96x16xf32>
      %70 = arith.mulf %66, %69 : vector<4x96x16xf32>
      %71 = arith.truncf %70 : vector<4x96x16xf32> to vector<4x96x16xbf16>
      %c0_59 = arith.constant 0 : index
      %c0_60 = arith.constant 0 : index
      %c0_61 = arith.constant 0 : index
      %72 = vector.load %arg10[%c0_59, %c0_60, %c0_61] : memref<4x16x48xbf16, #tpu.memory_space<vmem>>, vector<4x16x48xbf16>
      "tpu.trace_start"() <{level = 10 : i32, message = "hjd,hdm->hjm"}> : () -> ()
      %cst_62 = arith.constant dense<0.000000e+00> : vector<4x96x48xf32>
      %73 = tpu.matmul %71, %72, %cst_62 {dimension_numbers = #tpu.dot_dimension_numbers<[2], [1], [1], [2], [0, 0, 0, 1, 1, 2], [0], [0]>} : vector<4x96x16xbf16>, vector<4x16x48xbf16>, vector<4x96x48xf32> -> vector<4x96x48xf32>
      "tpu.trace_stop"() : () -> ()
      %cst_63 = arith.constant dense<0.000000e+00> : vector<96x48xf32>
      %74 = vector.multi_reduction <add>, %73, %cst_63 [0] : vector<4x96x48xf32> to vector<96x48xf32>
      %c0_64 = arith.constant 0 : index
      %c0_65 = arith.constant 0 : index
      %75 = vector.load %arg11[%c0_64, %c0_65] : memref<1x48xf32, #tpu.memory_space<vmem>>, vector<1x48xf32>
      %76 = vector.broadcast %75 : vector<1x48xf32> to vector<96x48xf32>
      %77 = arith.addf %74, %76 : vector<96x48xf32>
      %c0_66 = arith.constant 0 : index
      %c0_67 = arith.constant 0 : index
      %c0_68 = arith.constant 0 : index
      %78 = vector.load %arg13[%c0_66, %c0_67, %c0_68] : memref<1x96x48xf32, #tpu.memory_space<vmem>>, vector<1x96x48xf32>
      %79 = vector.shape_cast %78 : vector<1x96x48xf32> to vector<96x48xf32>
      %80 = vector.shape_cast %77 : vector<96x48xf32> to vector<1x96x48xf32>
      tpu.vector_store %arg13[%c0_66, %c0_67, %c0_68], %80 {strides = array<i32>} : memref<1x96x48xf32, #tpu.memory_space<vmem>>, vector<1x96x48xf32>,
    } else {
    }
    return
  }
  func.func @transform_0(%arg0: i32, %arg1: i32) -> (i32, i32, i32) {
    %c0_i32 = arith.constant 0 : i32
    %c0_i32_0 = arith.constant 0 : i32
    return %arg0, %arg1, %c0_i32 : i32, i32, i32
  }
  func.func @transform_1(%arg0: i32, %arg1: i32) -> (i32, i32, i32) {
    %c0_i32 = arith.constant 0 : i32
    %c0_i32_0 = arith.constant 0 : i32
    %c0_i32_1 = arith.constant 0 : i32
    return %arg0, %c0_i32, %c0_i32_0 : i32, i32, i32
  }
  func.func @transform_2(%arg0: i32, %arg1: i32) -> (i32, i32, i32) {
    %c0_i32 = arith.constant 0 : i32
    %c0_i32_0 = arith.constant 0 : i32
    %c0_i32_1 = arith.constant 0 : i32
    %c0_i32_2 = arith.constant 0 : i32
    return %c0_i32, %c0_i32_0, %c0_i32_1 : i32, i32, i32
  }
  func.func @transform_3(%arg0: i32, %arg1: i32) -> (i32, i32, i32) {
    %c0_i32 = arith.constant 0 : i32
    %c0_i32_0 = arith.constant 0 : i32
    %c0_i32_1 = arith.constant 0 : i32
    %c0_i32_2 = arith.constant 0 : i32
    return %c0_i32, %c0_i32_0, %c0_i32_1 : i32, i32, i32
  }
  func.func @transform_4(%arg0: i32, %arg1: i32) -> (i32, i32, i32) {
    %c0_i32 = arith.constant 0 : i32
    %c0_i32_0 = arith.constant 0 : i32
    %c0_i32_1 = arith.constant 0 : i32
    %c0_i32_2 = arith.constant 0 : i32
    return %c0_i32, %c0_i32_0, %c0_i32_1 : i32, i32, i32
  }
  func.func @transform_5(%arg0: i32, %arg1: i32) -> (i32, i32, i32) {
    %c0_i32 = arith.constant 0 : i32
    %c0_i32_0 = arith.constant 0 : i32
    %c0_i32_1 = arith.constant 0 : i32
    %c0_i32_2 = arith.constant 0 : i32
    return %c0_i32, %c0_i32_0, %c0_i32_1 : i32, i32, i32
  }
  func.func @transform_6(%arg0: i32, %arg1: i32) -> (i32, i32, i32) {
    %c0_i32 = arith.constant 0 : i32
    %c0_i32_0 = arith.constant 0 : i32
    %c0_i32_1 = arith.constant 0 : i32
    %c0_i32_2 = arith.constant 0 : i32
    return %c0_i32, %c0_i32_0, %c0_i32_1 : i32, i32, i32
  }
  func.func @transform_7(%arg0: i32, %arg1: i32) -> (i32, i32) {
    %c0_i32 = arith.constant 0 : i32
    %c0_i32_0 = arith.constant 0 : i32
    %c0_i32_1 = arith.constant 0 : i32
    return %c0_i32, %c0_i32_0 : i32, i32
  }
  func.func @transform_8(%arg0: i32, %arg1: i32) -> (i32, i32, i32) {
    %c0_i32 = arith.constant 0 : i32
    %c0_i32_0 = arith.constant 0 : i32
    %c0_i32_1 = arith.constant 0 : i32
    %c0_i32_2 = arith.constant 0 : i32
    return %c0_i32, %c0_i32_0, %c0_i32_1 : i32, i32, i32
  }
  func.func @transform_9(%arg0: i32, %arg1: i32) -> (i32, i32) {
    %c0_i32 = arith.constant 0 : i32
    %c0_i32_0 = arith.constant 0 : i32
    %c0_i32_1 = arith.constant 0 : i32
    return %c0_i32, %c0_i32_0 : i32, i32
  }
  func.func @transform_10(%arg0: i32, %arg1: i32) -> (i32, i32, i32) {
    %c0_i32 = arith.constant 0 : i32
    %c0_i32_0 = arith.constant 0 : i32
    return %arg0, %arg1, %c0_i32 : i32, i32, i32
  }
  func.func @transform_11(%arg0: i32, %arg1: i32) -> (i32, i32, i32) {
    %c0_i32 = arith.constant 0 : i32
    %c0_i32_0 = arith.constant 0 : i32
    %c0_i32_1 = arith.constant 0 : i32
    return %arg0, %c0_i32, %c0_i32_0 : i32, i32, i32
  }
}

</mosaic_0001>

<bundles_post_ra>
// kernel: tpu_custom_call.1
= control target key start
LH: loop header
LB: loop body
LE: loop exit
PB: predicated region body
PF: predicated region fallthrough
CT: control target
= control target key end

     0   :  { %s8421_s17 = smov 0   ;;  %s8423_s18 = smov 0   ;;  %s11526_s0 = inlined_call_operand.vmem [shape: bf16[2,128,64], index: 0, kind: input, shape index: {}]   ;;  %s11527_s1 = inlined_call_operand.vmem [shape: bf16[2,96,48], index: 1, kind: input, shape index: {}]   ;;  %s11528_s2 = inlined_call_operand.vmem [shape: bf16[4,64,16], index: 2, kind: input, shape index: {}]   ;;  %s11529_s3 = inlined_call_operand.vmem [shape: bf16[4,64,16], index: 3, kind: input, shape index: {}]   ;;  %s11530_s4 = inlined_call_operand.vmem [shape: bf16[4,48,16], index: 4, kind: input, shape index: {}]   ;;  %s11531_s5 = inlined_call_operand.vmem [shape: bf16[4,48,16], index: 5, kind: input, shape index: {}]   ;;  %s11532_s6 = inlined_call_operand.vmem [shape: bf16[4,16,64], index: 6, kind: input, shape index: {}]   ;;  %s11533_s7 = inlined_call_operand.vmem [shape: f32[1,64], index: 7, kind: input, shape index: {}]   ;;  %s11534_s8 = inlined_call_operand.vmem [shape: bf16[4,16,48], index: 8, kind: input, shape index: {}]   ;;  %s11535_s9 = inlined_call_operand.vmem [shape: f32[1,48], index: 9, kind: input, shape index: {}]   ;;  %s11536_s10 = inlined_call_operand.vmem [shape: f32[2,128,64], index: 10, kind: output, shape index: {0}]   ;;  %s11537_s11 = inlined_call_operand.vmem [shape: f32[2,96,48], index: 11, kind: output, shape index: {1}]  }
   0x1   :  { %s8425_s19 = smov 0   ;;  %s8427_s20 = smov 0  }
   0x2   :  { %s8429_s21 = smov 0  }
   0x3 LB: > { %11652 = sst [smem:[#allocation7_spill]] %s8347_s19  ;;  %s31_s22 = sadd.s32 1, %s8347_s19  ;;  %s8355_s21 = sphi %s8429_s21, %s22_s21   ;;  %s8351_s20 = sphi %s8427_s20, %s11959_s20   ;;  %s8347_s19 = sphi %s8425_s19, %s11958_s19   ;;  %s8343_s18 = sphi %s8423_s18, %s11957_s18   ;;  %s8339_s17 = sphi %s8421_s17, %s11956_s17  }
   0x4   : > { %11653 = sst [smem:[#allocation8_spill]] %s8351_s20  ;;  %s34_s23 = sadd.s32 1, %s8351_s20 }
   0x5   : > { %11654 = sst [smem:[#allocation9_spill]] %s8355_s21  ;;  %p32_p0 = scmp.ge.s32.totalorder %s31_s22, 2 }
   0x6   : > { %p7000_p1 = scmp.ge.s32.totalorder %s8355_s21, 1  ;;  %p371_p2 = scmp.lt.s32.totalorder %s8355_s21, 5 }
   0x7   : > { %s11961_s22 = smov (%p32_p0, %s31_s22), 0  ;;  %s11963_s23 = smov (!%p32_p0, %s34_s23), %s8351_s20 }
   0x8   : > { %11655 = sst [smem:[#allocation10_spill]] %s11961_s22  ;;  %p372_p3 = pnand %p7000_p1, %p371_p2 }
   0x9   : > { %p36_p4 = scmp.ge.s32.totalorder %s11963_s23, 2 }
   0xa   : > { %375 = sbr.rel (%p372_p3) target bundleno = 2477 (0x9ad), region = 60 }
   0xb   : > { %s11965_s23 = smov (%p36_p4, %s11963_s23), 0 }
   0xc   : > { %11656 = sst [smem:[#allocation11_spill]] %s11965_s23 }
   0xf   : > { %s7001_s24 = sshll.u32 %s8339_s17, 3  ;;  %p430_p5 = scmp.lt.s32.totalorder %s8343_s18, 1 }
  0x10   : > { %p432_p6 = scmp.lt.s32.totalorder %s7001_s24, 15  ;;  %p7009_p7 = scmp.ne.s32.totalorder %s8339_s17, 0 }
  0x11   : > { %s11967_s18 = smov (!%p430_p5, %s8343_s18), 1 }
  0x12   : > { %s11969_s24 = smov (!%p432_p6, %s7001_s24), 15  ;;  %s7002_s25 = sshll.u32 %s11967_s18, 4 }
  0x13   : > { %s7823_s26 = smul.u32 48, %s11967_s18  ;;  %s435_s27 = sadd.s32 %s7002_s25, %s11969_s24 }
  0x14   : > { %s7824_s28 = smul.u32 96, %s11967_s18  ;;  %s7003_s29 = sshll.u32 %s435_s27, 2 }
  0x15   : > { %s8457_s13 = scalar_lea.vmem %s11527_s1, %s7823_s26  ;;  %s8462_s16 = scalar_lea.vmem %s11526_s0, %s7003_s29 }
  0x16   : > { %s7007_s23 = sshll.u32 %s435_s27, 3  ;;  %s8472_s18 = scalar_lea.vmem %s11537_s11, %s7824_s28 }
  0x17   : > { %s8467_s19 = scalar_lea.vmem %s11536_s10, %s7007_s23  ;;  %463 = sbr.rel (%p7009_p7) target bundleno = 460 (0x1cc), region = 64 }
  0x1c   : > { %v7709_v0 = vld [vmem:[%s11530_s4 + $0x10] sm:$0xff]  ;;  %v7712_v1 = vld [vmem:[%s11530_s4 + $0x28] sm:$0xff]  ;;  %v7715_v2 = vld [vmem:[%s11530_s4 + $0x40] sm:$0xff]  ;;  %vm548_vm0 = vcmask 392192   ;;  %vm825_vm1 = vcmask 125952   ;;  %vm1222_vm2 = vcmask 7168  }
  0x1d   : > { %v7718_v3 = vld [vmem:[%s11530_s4 + $0x58] sm:$0xff]  ;;  %572 = vmatpush.bf16.msra.mxu0 %v7709_v0  ;;  %629 = vmatpush.bf16.msra.mxu1 %v7712_v1  ;;  %v7708_v4 = vld [vmem:[%s11530_s4 + $0x8] sm:$0xff]  ;;  %v7711_v5 = vld [vmem:[%s11530_s4 + $0x20] sm:$0xff]  ;;  %vm1319_vm3 = vcmask 130048  }
  0x1e   : > { %686 = vmatpush.bf16.msra.mxu2 %v7715_v2  ;;  %743 = vmatpush.bf16.msra.mxu3 %v7718_v3  ;;  %v7714_v6 = vld [vmem:[%s11530_s4 + $0x38] sm:$0xff]  ;;  %v7717_v7 = vld [vmem:[%s11530_s4 + $0x50] sm:$0xff]  ;;  %v7707_v8 = vld [vmem:[%s11530_s4] sm:$0xff] }
  0x1f   : > { %v7710_v9 = vld [vmem:[%s11530_s4 + $0x18] sm:$0xff]  ;;  %v7713_v10 = vld [vmem:[%s11530_s4 + $0x30] sm:$0xff]  ;;  %v7716_v11 = vld [vmem:[%s11530_s4 + $0x48] sm:$0xff] }
  0x20   : > { %v7727_v12 = vld [vmem:[%s11531_s5 + $0x40] sm:$0xff]  ;;  %v7730_v13 = vld [vmem:[%s11531_s5 + $0x58] sm:$0xff]  ;;  %v7721_v15 = vld [vmem:[%s11531_s5 + $0x10] sm:$0xff] }
  0x21   : > { %573 = vmatpush.bf16.msra.mxu0 %v7708_v4  ;;  %630 = vmatpush.bf16.msra.mxu1 %v7711_v5  ;;  %v7701_v14 = vld [vmem:[%s8457_s13] sm:$0xff]  ;;  %v7724_v16 = vld [vmem:[%s11531_s5 + $0x28] sm:$0xff]  ;;  %v7726_v17 = vld [vmem:[%s11531_s5 + $0x38] sm:$0xff] }
  0x22   : > { %687 = vmatpush.bf16.msra.mxu2 %v7714_v6  ;;  %744 = vmatpush.bf16.msra.mxu3 %v7717_v7  ;;  %v7729_v18 = vld [vmem:[%s11531_s5 + $0x50] sm:$0xff]  ;;  %v7720_v19 = vld [vmem:[%s11531_s5 + $0x8] sm:$0xff]  ;;  %v7723_v20 = vld [vmem:[%s11531_s5 + $0x20] sm:$0xff] }
  0x23   : > { %v7702_v21 = vld [vmem:[%s8457_s13 + $0x8] sm:$0xff]  ;;  %v7703_v22 = vld [vmem:[%s8457_s13 + $0x10] sm:$0xff]  ;;  %v7719_v25 = vld [vmem:[%s11531_s5] sm:$0xff] }
  0x24   : > { %v7725_v23 = vld [vmem:[%s11531_s5 + $0x30] sm:$0xff]  ;;  %v7728_v24 = vld [vmem:[%s11531_s5 + $0x48] sm:$0xff]  ;;  %v7722_v26 = vld [vmem:[%s11531_s5 + $0x18] sm:$0xff] }
  0x25   : > { %574 = vmatpush.bf16.msra.mxu0 %v7707_v8  ;;  %631 = vmatpush.bf16.msra.mxu1 %v7710_v9  ;;  %v7704_v27 = vld [vmem:[%s8457_s13 + $0x18] sm:$0xff]  ;;  %v8568_v28 = vld [vmem:[%s8457_s13 + $0x20] sm:$0xff]  ;;  %v8579_v29 = vld [vmem:[%s8457_s13 + $0x28] sm:$0xff] }
  0x26   : > { %688 = vmatpush.bf16.msra.mxu2 %v7713_v10  ;;  %745 = vmatpush.bf16.msra.mxu3 %v7716_v11 }
  0x28   : > { %7046 = vmatmul.msk.bf16.vlgmr.msra.gmra.mxu0 %vm548_vm0, %v7701_v14  ;;  %7064 = vmatmul.msk.bf16.vlgmr.msra.gmra.mxu1 %vm548_vm0, %v7701_v14 }
  0x29   : > { %7082 = vmatmul.msk.bf16.vlgmr.msra.gmra.mxu2 %vm548_vm0, %v7701_v14  ;;  %7100 = vmatmul.msk.bf16.vlgmr.msra.gmra.mxu3 %vm548_vm0, %v7701_v14 }
  0x2a   : > { %1035 = vmatpush.bf16.msrb.mxu2 %v7727_v12  ;;  %1092 = vmatpush.bf16.msrb.mxu3 %v7730_v13 }
  0x2b   : > { %921 = vmatpush.bf16.msrb.mxu0 %v7721_v15  ;;  %978 = vmatpush.bf16.msrb.mxu1 %v7724_v16 }
  0x2e   : > { %1036 = vmatpush.bf16.msrb.mxu2 %v7726_v17  ;;  %1093 = vmatpush.bf16.msrb.mxu3 %v7729_v18 }
  0x2f   : > { %922 = vmatpush.bf16.msrb.mxu0 %v7720_v19  ;;  %979 = vmatpush.bf16.msrb.mxu1 %v7723_v20 }
  0x32   : > { %1037 = vmatpush.bf16.msrb.mxu2 %v7725_v23  ;;  %1094 = vmatpush.bf16.msrb.mxu3 %v7728_v24 }
  0x33   : > { %923 = vmatpush.bf16.msrb.mxu0 %v7719_v25  ;;  %980 = vmatpush.bf16.msrb.mxu1 %v7722_v26 }
  0x38   : > { %7047 = vmatmul.msk.bf16.gmra.mxu0 %vm548_vm0, %v7702_v21  ;;  %7065 = vmatmul.msk.bf16.gmra.mxu1 %vm548_vm0, %v7702_v21 }
  0x39   : > { %7083 = vmatmul.msk.bf16.gmra.mxu2 %vm548_vm0, %v7702_v21  ;;  %7101 = vmatmul.msk.bf16.gmra.mxu3 %vm548_vm0, %v7702_v21 }
  0x48   : > { %7048 = vmatmul.msk.bf16.gmra.mxu0 %vm548_vm0, %v7703_v22  ;;  %7066 = vmatmul.msk.bf16.gmra.mxu1 %vm548_vm0, %v7703_v22 }
  0x49   : > { %7084 = vmatmul.msk.bf16.gmra.mxu2 %vm548_vm0, %v7703_v22  ;;  %7102 = vmatmul.msk.bf16.gmra.mxu3 %vm548_vm0, %v7703_v22 }
  0x58   : > { %7049 = vmatmul.msk.bf16.gmra.mxu0 %vm548_vm0, %v7704_v27  ;;  %7067 = vmatmul.msk.bf16.gmra.mxu1 %vm548_vm0, %v7704_v27 }
  0x59   : > { %7085 = vmatmul.msk.bf16.gmra.mxu2 %vm548_vm0, %v7704_v27  ;;  %7103 = vmatmul.msk.bf16.gmra.mxu3 %vm548_vm0, %v7704_v27 }
  0x68   : > { %7050 = vmatmul.msk.bf16.gmra.mxu0 %vm548_vm0, %v8568_v28  ;;  %7068 = vmatmul.msk.bf16.gmra.mxu1 %vm548_vm0, %v8568_v28 }
  0x69   : > { %7086 = vmatmul.msk.bf16.gmra.mxu2 %vm548_vm0, %v8568_v28  ;;  %7104 = vmatmul.msk.bf16.gmra.mxu3 %vm548_vm0, %v8568_v28 }
  0x78   : > { %7051 = vmatmul.msk.bf16.gmra.mxu0 %vm548_vm0, %v8579_v29  ;;  %7069 = vmatmul.msk.bf16.gmra.mxu1 %vm548_vm0, %v8579_v29 }
  0x79   : > { %7087 = vmatmul.msk.bf16.gmra.mxu2 %vm548_vm0, %v8579_v29  ;;  %7105 = vmatmul.msk.bf16.gmra.mxu3 %vm548_vm0, %v8579_v29 }
  0x88   : > { %7118 = vmatmul.msk.bf16.vlgmr.msrb.gmra.mxu0 %vm548_vm0, %v7701_v14  ;;  %7136 = vmatmul.msk.bf16.vlgmr.msrb.gmra.mxu1 %vm548_vm0, %v7701_v14 }
  0x89   : > { %7154 = vmatmul.msk.bf16.vlgmr.msrb.gmra.mxu2 %vm548_vm0, %v7701_v14  ;;  %7172 = vmatmul.msk.bf16.vlgmr.msrb.gmra.mxu3 %vm548_vm0, %v7701_v14 }
  0x98   : > { %7119 = vmatmul.msk.bf16.gmra.mxu0 %vm548_vm0, %v7702_v21  ;;  %7137 = vmatmul.msk.bf16.gmra.mxu1 %vm548_vm0, %v7702_v21 }
  0x99   : > { %7155 = vmatmul.msk.bf16.gmra.mxu2 %vm548_vm0, %v7702_v21  ;;  %7173 = vmatmul.msk.bf16.gmra.mxu3 %vm548_vm0, %v7702_v21 }
  0xa5   : > { %v576_v30 = vpop.f32.mrf.mxu0  ;;  %v633_v31 = vpop.f32.mrf.mxu1 }
  0xa6   : > { %v777_v32 = vpack.c.bf16 %v576_v30, %v576_v30  ;;  %v789_v33 = vpack.c.bf16 %v633_v31, %v633_v31 }
  0xa8   : > { %826 = vst.msk [vmem:[#allocation2] sm:$0xf] %vm825_vm1, %v777_v32  ;;  %7120 = vmatmul.msk.bf16.gmra.mxu0 %vm548_vm0, %v7703_v22  ;;  %7138 = vmatmul.msk.bf16.gmra.mxu1 %vm548_vm0, %v7703_v22 }
  0xa9   : > { %838 = vst.msk [vmem:[#allocation2 + $0x30] sm:$0xf] %vm825_vm1, %v789_v33  ;;  %7156 = vmatmul.msk.bf16.gmra.mxu2 %vm548_vm0, %v7703_v22  ;;  %7174 = vmatmul.msk.bf16.gmra.mxu3 %vm548_vm0, %v7703_v22 }
  0xac   : > { %v690_v34 = vpop.f32.mrf.mxu2  ;;  %v747_v35 = vpop.f32.mrf.mxu3 }
  0xad   : > { %v801_v36 = vpack.c.bf16 %v690_v34, %v690_v34  ;;  %v813_v37 = vpack.c.bf16 %v747_v35, %v747_v35  ;;  %v578_v38 = vpop.f32.mrf.mxu0  ;;  %v635_v39 = vpop.f32.mrf.mxu1 }
  0xae   : > { %v778_v40 = vpack.c.bf16 %v578_v38, %v578_v38  ;;  %v790_v41 = vpack.c.bf16 %v635_v39, %v635_v39 }
  0xaf   : > { %850 = vst.msk [vmem:[#allocation2 + $0x60] sm:$0xf] %vm825_vm1, %v801_v36 }
  0xb0   : > { %862 = vst.msk [vmem:[#allocation2 + $0x90] sm:$0xf] %vm825_vm1, %v813_v37 }
  0xb1   : > { %827 = vst.msk [vmem:[#allocation2 + $0x4] sm:$0xf] %vm825_vm1, %v778_v40 }
  0xb2   : > { %839 = vst.msk [vmem:[#allocation2 + $0x34] sm:$0xf] %vm825_vm1, %v790_v41 }
  0xb4   : > { %v692_v42 = vpop.f32.mrf.mxu2  ;;  %v749_v43 = vpop.f32.mrf.mxu3 }
  0xb5   : > { %v802_v44 = vpack.c.bf16 %v692_v42, %v692_v42  ;;  %v814_v45 = vpack.c.bf16 %v749_v43, %v749_v43  ;;  %v581_v46 = vpop.f32.mrf.mxu0  ;;  %v638_v47 = vpop.f32.mrf.mxu1 }
  0xb6   : > { %v779_v48 = vpack.c.bf16 %v581_v46, %v581_v46  ;;  %v791_v49 = vpack.c.bf16 %v638_v47, %v638_v47 }
  0xb7   : > { %851 = vst.msk [vmem:[#allocation2 + $0x64] sm:$0xf] %vm825_vm1, %v802_v44 }
  0xb8   : > { %863 = vst.msk [vmem:[#allocation2 + $0x94] sm:$0xf] %vm825_vm1, %v814_v45  ;;  %7121 = vmatmul.msk.bf16.gmra.mxu0 %vm548_vm0, %v7704_v27  ;;  %7139 = vmatmul.msk.bf16.gmra.mxu1 %vm548_vm0, %v7704_v27 }
  0xb9   : > { %828 = vst.msk [vmem:[#allocation2 + $0x8] sm:$0xf] %vm825_vm1, %v779_v48  ;;  %7157 = vmatmul.msk.bf16.gmra.mxu2 %vm548_vm0, %v7704_v27  ;;  %7175 = vmatmul.msk.bf16.gmra.mxu3 %vm548_vm0, %v7704_v27 }
  0xba   : > { %840 = vst.msk [vmem:[#allocation2 + $0x38] sm:$0xf] %vm825_vm1, %v791_v49 }
  0xbc   : > { %v695_v50 = vpop.f32.mrf.mxu2  ;;  %v752_v51 = vpop.f32.mrf.mxu3 }
  0xbd   : > { %v803_v52 = vpack.c.bf16 %v695_v50, %v695_v50  ;;  %v815_v53 = vpack.c.bf16 %v752_v51, %v752_v51  ;;  %v583_v54 = vpop.f32.mrf.mxu0  ;;  %v640_v55 = vpop.f32.mrf.mxu1 }
  0xbe   : > { %v780_v56 = vpack.c.bf16 %v583_v54, %v583_v54  ;;  %v792_v57 = vpack.c.bf16 %v640_v55, %v640_v55 }
  0xbf   : > { %852 = vst.msk [vmem:[#allocation2 + $0x68] sm:$0xf] %vm825_vm1, %v803_v52 }
  0xc0   : > { %864 = vst.msk [vmem:[#allocation2 + $0x98] sm:$0xf] %vm825_vm1, %v815_v53 }
  0xc1   : > { %829 = vst.msk [vmem:[#allocation2 + $0xc] sm:$0xf] %vm825_vm1, %v780_v56 }
  0xc2   : > { %841 = vst.msk [vmem:[#allocation2 + $0x3c] sm:$0xf] %vm825_vm1, %v792_v57 }
  0xc4   : > { %v697_v58 = vpop.f32.mrf.mxu2  ;;  %v754_v59 = vpop.f32.mrf.mxu3 }
  0xc5   : > { %v804_v60 = vpack.c.bf16 %v697_v58, %v697_v58  ;;  %v816_v61 = vpack.c.bf16 %v754_v59, %v754_v59  ;;  %v586_v62 = vpop.f32.mrf.mxu0  ;;  %v643_v63 = vpop.f32.mrf.mxu1 }
  0xc6   : > { %v781_v0 = vpack.c.bf16 %v586_v62, %v586_v62  ;;  %v793_v1 = vpack.c.bf16 %v643_v63, %v643_v63 }
  0xc7   : > { %853 = vst.msk [vmem:[#allocation2 + $0x6c] sm:$0xf] %vm825_vm1, %v804_v60 }
  0xc8   : > { %865 = vst.msk [vmem:[#allocation2 + $0x9c] sm:$0xf] %vm825_vm1, %v816_v61  ;;  %7122 = vmatmul.msk.bf16.gmra.mxu0 %vm548_vm0, %v8568_v28  ;;  %7140 = vmatmul.msk.bf16.gmra.mxu1 %vm548_vm0, %v8568_v28 }
  0xc9   : > { %830 = vst.msk [vmem:[#allocation2 + $0x10] sm:$0xf] %vm825_vm1, %v781_v0  ;;  %7158 = vmatmul.msk.bf16.gmra.mxu2 %vm548_vm0, %v8568_v28  ;;  %7176 = vmatmul.msk.bf16.gmra.mxu3 %vm548_vm0, %v8568_v28 }
  0xca   : > { %842 = vst.msk [vmem:[#allocation2 + $0x40] sm:$0xf] %vm825_vm1, %v793_v1 }
  0xcc   : > { %v700_v2 = vpop.f32.mrf.mxu2  ;;  %v757_v3 = vpop.f32.mrf.mxu3 }
  0xcd   : > { %v805_v4 = vpack.c.bf16 %v700_v2, %v700_v2  ;;  %v817_v5 = vpack.c.bf16 %v757_v3, %v757_v3  ;;  %v588_v6 = vpop.f32.mrf.mxu0  ;;  %v645_v7 = vpop.f32.mrf.mxu1 }
  0xce   : > { %v782_v8 = vpack.c.bf16 %v588_v6, %v588_v6  ;;  %v794_v9 = vpack.c.bf16 %v645_v7, %v645_v7 }
  0xcf   : > { %854 = vst.msk [vmem:[#allocation2 + $0x70] sm:$0xf] %vm825_vm1, %v805_v4 }
  0xd0   : > { %866 = vst.msk [vmem:[#allocation2 + $0xa0] sm:$0xf] %vm825_vm1, %v817_v5 }
  0xd1   : > { %831 = vst.msk [vmem:[#allocation2 + $0x14] sm:$0xf] %vm825_vm1, %v782_v8 }
  0xd2   : > { %843 = vst.msk [vmem:[#allocation2 + $0x44] sm:$0xf] %vm825_vm1, %v794_v9 }
  0xd4   : > { %v702_v10 = vpop.f32.mrf.mxu2  ;;  %v759_v11 = vpop.f32.mrf.mxu3 }
  0xd5   : > { %v806_v12 = vpack.c.bf16 %v702_v10, %v702_v10  ;;  %v818_v13 = vpack.c.bf16 %v759_v11, %v759_v11  ;;  %v591_v14 = vpop.f32.mrf.mxu0  ;;  %v648_v15 = vpop.f32.mrf.mxu1 }
  0xd6   : > { %v783_v16 = vpack.c.bf16 %v591_v14, %v591_v14  ;;  %v795_v17 = vpack.c.bf16 %v648_v15, %v648_v15 }
  0xd7   : > { %855 = vst.msk [vmem:[#allocation2 + $0x74] sm:$0xf] %vm825_vm1, %v806_v12 }
  0xd8   : > { %867 = vst.msk [vmem:[#allocation2 + $0xa4] sm:$0xf] %vm825_vm1, %v818_v13  ;;  %7123 = vmatmul.msk.bf16.gmra.mxu0 %vm548_vm0, %v8579_v29  ;;  %7141 = vmatmul.msk.bf16.gmra.mxu1 %vm548_vm0, %v8579_v29 }
  0xd9   : > { %832 = vst.msk [vmem:[#allocation2 + $0x18] sm:$0xf] %vm825_vm1, %v783_v16  ;;  %7159 = vmatmul.msk.bf16.gmra.mxu2 %vm548_vm0, %v8579_v29  ;;  %7177 = vmatmul.msk.bf16.gmra.mxu3 %vm548_vm0, %v8579_v29 }
  0xda   : > { %844 = vst.msk [vmem:[#allocation2 + $0x48] sm:$0xf] %vm825_vm1, %v795_v17 }
  0xdc   : > { %v705_v18 = vpop.f32.mrf.mxu2  ;;  %v762_v19 = vpop.f32.mrf.mxu3 }
  0xdd   : > { %v807_v20 = vpack.c.bf16 %v705_v18, %v705_v18  ;;  %v819_v21 = vpack.c.bf16 %v762_v19, %v762_v19  ;;  %v593_v22 = vpop.f32.mrf.mxu0  ;;  %v650_v23 = vpop.f32.mrf.mxu1 }
  0xde   : > { %v784_v24 = vpack.c.bf16 %v593_v22, %v593_v22  ;;  %v796_v25 = vpack.c.bf16 %v650_v23, %v650_v23 }
  0xdf   : > { %856 = vst.msk [vmem:[#allocation2 + $0x78] sm:$0xf] %vm825_vm1, %v807_v20 }
  0xe0   : > { %868 = vst.msk [vmem:[#allocation2 + $0xa8] sm:$0xf] %vm825_vm1, %v819_v21 }
  0xe1   : > { %833 = vst.msk [vmem:[#allocation2 + $0x1c] sm:$0xf] %vm825_vm1, %v784_v24 }
  0xe2   : > { %845 = vst.msk [vmem:[#allocation2 + $0x4c] sm:$0xf] %vm825_vm1, %v796_v25 }
  0xe4   : > { %v707_v26 = vpop.f32.mrf.mxu2  ;;  %v764_v27 = vpop.f32.mrf.mxu3 }
  0xe5   : > { %v808_v28 = vpack.c.bf16 %v707_v26, %v707_v26  ;;  %v820_v29 = vpack.c.bf16 %v764_v27, %v764_v27  ;;  %v596_v30 = vpop.f32.mrf.mxu0  ;;  %v653_v31 = vpop.f32.mrf.mxu1 }
  0xe6   : > { %v785_v32 = vpack.c.bf16 %v596_v30, %v596_v30  ;;  %v797_v33 = vpack.c.bf16 %v653_v31, %v653_v31 }
  0xe7   : > { %857 = vst.msk [vmem:[#allocation2 + $0x7c] sm:$0xf] %vm825_vm1, %v808_v28 }
  0xe8   : > { %869 = vst.msk [vmem:[#allocation2 + $0xac] sm:$0xf] %vm825_vm1, %v820_v29 }
  0xe9   : > { %834 = vst.msk [vmem:[#allocation2 + $0x20] sm:$0xf] %vm825_vm1, %v785_v32 }
  0xea   : > { %846 = vst.msk [vmem:[#allocation2 + $0x50] sm:$0xf] %vm825_vm1, %v797_v33 }
  0xec   : > { %v710_v34 = vpop.f32.mrf.mxu2  ;;  %v767_v35 = vpop.f32.mrf.mxu3 }
  0xed   : > { %v809_v36 = vpack.c.bf16 %v710_v34, %v710_v34  ;;  %v821_v37 = vpack.c.bf16 %v767_v35, %v767_v35  ;;  %v598_v38 = vpop.f32.mrf.mxu0  ;;  %v655_v39 = vpop.f32.mrf.mxu1 }
  0xee   : > { %v786_v40 = vpack.c.bf16 %v598_v38, %v598_v38  ;;  %v798_v41 = vpack.c.bf16 %v655_v39, %v655_v39 }
  0xef   : > { %858 = vst.msk [vmem:[#allocation2 + $0x80] sm:$0xf] %vm825_vm1, %v809_v36 }
  0xf0   : > { %870 = vst.msk [vmem:[#allocation2 + $0xb0] sm:$0xf] %vm825_vm1, %v821_v37 }
  0xf1   : > { %835 = vst.msk [vmem:[#allocation2 + $0x24] sm:$0xf] %vm825_vm1, %v786_v40 }
  0xf2   : > { %847 = vst.msk [vmem:[#allocation2 + $0x54] sm:$0xf] %vm825_vm1, %v798_v41 }
  0xf4   : > { %v712_v42 = vpop.f32.mrf.mxu2  ;;  %v769_v43 = vpop.f32.mrf.mxu3 }
  0xf5   : > { %v810_v44 = vpack.c.bf16 %v712_v42, %v712_v42  ;;  %v822_v45 = vpack.c.bf16 %v769_v43, %v769_v43  ;;  %v601_v46 = vpop.f32.mrf.mxu0  ;;  %v658_v47 = vpop.f32.mrf.mxu1 }
  0xf6   : > { %v787_v48 = vpack.c.bf16 %v601_v46, %v601_v46  ;;  %v799_v49 = vpack.c.bf16 %v658_v47, %v658_v47 }
  0xf7   : > { %859 = vst.msk [vmem:[#allocation2 + $0x84] sm:$0xf] %vm825_vm1, %v810_v44 }
  0xf8   : > { %871 = vst.msk [vmem:[#allocation2 + $0xb4] sm:$0xf] %vm825_vm1, %v822_v45 }
  0xf9   : > { %836 = vst.msk [vmem:[#allocation2 + $0x28] sm:$0xf] %vm825_vm1, %v787_v48 }
  0xfa   : > { %848 = vst.msk [vmem:[#allocation2 + $0x58] sm:$0xf] %vm825_vm1, %v799_v49 }
  0xfc   : > { %v715_v50 = vpop.f32.mrf.mxu2  ;;  %v772_v51 = vpop.f32.mrf.mxu3 }
  0xfd   : > { %v811_v52 = vpack.c.bf16 %v715_v50, %v715_v50  ;;  %v823_v53 = vpack.c.bf16 %v772_v51, %v772_v51  ;;  %v603_v54 = vpop.f32.mrf.mxu0  ;;  %v660_v55 = vpop.f32.mrf.mxu1 }
  0xfe   : > { %v788_v56 = vpack.c.bf16 %v603_v54, %v603_v54  ;;  %v800_v57 = vpack.c.bf16 %v660_v55, %v660_v55 }
  0xff   : > { %860 = vst.msk [vmem:[#allocation2 + $0x88] sm:$0xf] %vm825_vm1, %v811_v52 }
 0x100   : > { %872 = vst.msk [vmem:[#allocation2 + $0xb8] sm:$0xf] %vm825_vm1, %v823_v53 }
 0x101   : > { %837 = vst.msk [vmem:[#allocation2 + $0x2c] sm:$0xf] %vm825_vm1, %v788_v56 }
 0x102   : > { %849 = vst.msk [vmem:[#allocation2 + $0x5c] sm:$0xf] %vm825_vm1, %v800_v57 }
 0x104   : > { %v717_v58 = vpop.f32.mrf.mxu2  ;;  %v774_v59 = vpop.f32.mrf.mxu3 }
 0x105   : > { %v812_v60 = vpack.c.bf16 %v717_v58, %v717_v58  ;;  %v824_v61 = vpack.c.bf16 %v774_v59, %v774_v59  ;;  %v925_v62 = vpop.f32.mrf.mxu0  ;;  %v982_v63 = vpop.f32.mrf.mxu1 }
 0x106   : > { %v1126_v0 = vpack.c.bf16 %v925_v62, %v925_v62  ;;  %v1138_v1 = vpack.c.bf16 %v982_v63, %v982_v63 }
 0x107   : > { %861 = vst.msk [vmem:[#allocation2 + $0x8c] sm:$0xf] %vm825_vm1, %v812_v60 }
 0x108   : > { %873 = vst.msk [vmem:[#allocation2 + $0xbc] sm:$0xf] %vm825_vm1, %v824_v61 }
 0x109   : > { %1174 = vst.msk [vmem:[#allocation3] sm:$0xf] %vm825_vm1, %v1126_v0 }
 0x10a   : > { %1186 = vst.msk [vmem:[#allocation3 + $0x30] sm:$0xf] %vm825_vm1, %v1138_v1 }
 0x10c   : > { %v1039_v2 = vpop.f32.mrf.mxu2  ;;  %v1096_v3 = vpop.f32.mrf.mxu3 }
 0x10d   : > { %v1150_v4 = vpack.c.bf16 %v1039_v2, %v1039_v2  ;;  %v1162_v5 = vpack.c.bf16 %v1096_v3, %v1096_v3  ;;  %v927_v6 = vpop.f32.mrf.mxu0  ;;  %v984_v7 = vpop.f32.mrf.mxu1  ;;  %v8357_v2 = vmov -inf  }
 0x10e   : > { %v1127_v8 = vpack.c.bf16 %v927_v6, %v927_v6  ;;  %v1139_v9 = vpack.c.bf16 %v984_v7, %v984_v7  ;;  %1223 = vst.msk [vmem:[#allocation4] sm:$0xff] %vm1222_vm2, %v8357_v2 }
 0x10f   : > { %1198 = vst.msk [vmem:[#allocation3 + $0x60] sm:$0xf] %vm825_vm1, %v1150_v4 }
 0x110   : > { %1210 = vst.msk [vmem:[#allocation3 + $0x90] sm:$0xf] %vm825_vm1, %v1162_v5 }
 0x111   : > { %1175 = vst.msk [vmem:[#allocation3 + $0x4] sm:$0xf] %vm825_vm1, %v1127_v8 }
 0x112   : > { %1187 = vst.msk [vmem:[#allocation3 + $0x34] sm:$0xf] %vm825_vm1, %v1139_v9 }
 0x113   : > { %1224 = vst.msk [vmem:[#allocation4 + $0x8] sm:$0xff] %vm1222_vm2, %v8357_v2 }
 0x114   : > { %v1041_v10 = vpop.f32.mrf.mxu2  ;;  %v1098_v11 = vpop.f32.mrf.mxu3  ;;  %1225 = vst.msk [vmem:[#allocation4 + $0x10] sm:$0xff] %vm1222_vm2, %v8357_v2 }
 0x115   : > { %v1151_v12 = vpack.c.bf16 %v1041_v10, %v1041_v10  ;;  %v1163_v13 = vpack.c.bf16 %v1098_v11, %v1098_v11  ;;  %v930_v14 = vpop.f32.mrf.mxu0  ;;  %v987_v15 = vpop.f32.mrf.mxu1  ;;  %1226 = vst.msk [vmem:[#allocation4 + $0x18] sm:$0xff] %vm1222_vm2, %v8357_v2 }
 0x116   : > { %v1128_v16 = vpack.c.bf16 %v930_v14, %v930_v14  ;;  %v1140_v17 = vpack.c.bf16 %v987_v15, %v987_v15  ;;  %1227 = vst.msk [vmem:[#allocation4 + $0x20] sm:$0xff] %vm1222_vm2, %v8357_v2 }
 0x117   : > { %1199 = vst.msk [vmem:[#allocation3 + $0x64] sm:$0xf] %vm825_vm1, %v1151_v12 }
 0x118   : > { %1211 = vst.msk [vmem:[#allocation3 + $0x94] sm:$0xf] %vm825_vm1, %v1163_v13 }
 0x119   : > { %1176 = vst.msk [vmem:[#allocation3 + $0x8] sm:$0xf] %vm825_vm1, %v1128_v16 }
 0x11a   : > { %1188 = vst.msk [vmem:[#allocation3 + $0x38] sm:$0xf] %vm825_vm1, %v1140_v17 }
 0x11b   : > { %1228 = vst.msk [vmem:[#allocation4 + $0x28] sm:$0xff] %vm1222_vm2, %v8357_v2 }
 0x11c   : > { %v1044_v18 = vpop.f32.mrf.mxu2  ;;  %v1101_v19 = vpop.f32.mrf.mxu3  ;;  %1229 = vst.msk [vmem:[#allocation4 + $0x30] sm:$0xff] %vm1222_vm2, %v8357_v2 }
 0x11d   : > { %v1152_v20 = vpack.c.bf16 %v1044_v18, %v1044_v18  ;;  %v1164_v21 = vpack.c.bf16 %v1101_v19, %v1101_v19  ;;  %v932_v22 = vpop.f32.mrf.mxu0  ;;  %v989_v23 = vpop.f32.mrf.mxu1  ;;  %1230 = vst.msk [vmem:[#allocation4 + $0x38] sm:$0xff] %vm1222_vm2, %v8357_v2 }
 0x11e   : > { %v1129_v24 = vpack.c.bf16 %v932_v22, %v932_v22  ;;  %v1141_v25 = vpack.c.bf16 %v989_v23, %v989_v23  ;;  %1231 = vst.msk [vmem:[#allocation4 + $0x40] sm:$0xff] %vm1222_vm2, %v8357_v2 }
 0x11f   : > { %1200 = vst.msk [vmem:[#allocation3 + $0x68] sm:$0xf] %vm825_vm1, %v1152_v20 }
 0x120   : > { %1212 = vst.msk [vmem:[#allocation3 + $0x98] sm:$0xf] %vm825_vm1, %v1164_v21 }
 0x121   : > { %1177 = vst.msk [vmem:[#allocation3 + $0xc] sm:$0xf] %vm825_vm1, %v1129_v24 }
 0x122   : > { %1189 = vst.msk [vmem:[#allocation3 + $0x3c] sm:$0xf] %vm825_vm1, %v1141_v25 }
 0x123   : > { %1232 = vst.msk [vmem:[#allocation4 + $0x48] sm:$0xff] %vm1222_vm2, %v8357_v2 }
 0x124   : > { %v1046_v26 = vpop.f32.mrf.mxu2  ;;  %v1103_v27 = vpop.f32.mrf.mxu3  ;;  %1233 = vst.msk [vmem:[#allocation4 + $0x50] sm:$0xff] %vm1222_vm2, %v8357_v2 }
 0x125   : > { %v1153_v28 = vpack.c.bf16 %v1046_v26, %v1046_v26  ;;  %v1165_v29 = vpack.c.bf16 %v1103_v27, %v1103_v27  ;;  %v935_v30 = vpop.f32.mrf.mxu0  ;;  %v992_v31 = vpop.f32.mrf.mxu1  ;;  %1234 = vst.msk [vmem:[#allocation4 + $0x58] sm:$0xff] %vm1222_vm2, %v8357_v2 }
 0x126   : > { %v1130_v32 = vpack.c.bf16 %v935_v30, %v935_v30  ;;  %v1142_v33 = vpack.c.bf16 %v992_v31, %v992_v31  ;;  %1235 = vst.msk [vmem:[#allocation4 + $0x60] sm:$0xff] %vm1222_vm2, %v8357_v2  ;;  %v8358_v31 = vmov 0.0  }
 0x127   : > { %1201 = vst.msk [vmem:[#allocation3 + $0x6c] sm:$0xf] %vm825_vm1, %v1153_v28 }
 0x128   : > { %1213 = vst.msk [vmem:[#allocation3 + $0x9c] sm:$0xf] %vm825_vm1, %v1165_v29 }
 0x129   : > { %1178 = vst.msk [vmem:[#allocation3 + $0x10] sm:$0xf] %vm825_vm1, %v1130_v32 }
 0x12a   : > { %1190 = vst.msk [vmem:[#allocation3 + $0x40] sm:$0xf] %vm825_vm1, %v1142_v33 }
 0x12b   : > { %1236 = vst.msk [vmem:[#allocation4 + $0x68] sm:$0xff] %vm1222_vm2, %v8357_v2 }
 0x12c   : > { %v1049_v34 = vpop.f32.mrf.mxu2  ;;  %v1106_v35 = vpop.f32.mrf.mxu3  ;;  %1237 = vst.msk [vmem:[#allocation4 + $0x70] sm:$0xff] %vm1222_vm2, %v8357_v2 }
 0x12d   : > { %v1154_v36 = vpack.c.bf16 %v1049_v34, %v1049_v34  ;;  %v1166_v37 = vpack.c.bf16 %v1106_v35, %v1106_v35  ;;  %v937_v38 = vpop.f32.mrf.mxu0  ;;  %v994_v39 = vpop.f32.mrf.mxu1  ;;  %1238 = vst.msk [vmem:[#allocation4 + $0x78] sm:$0xff] %vm1222_vm2, %v8357_v2 }
 0x12e   : > { %v1131_v40 = vpack.c.bf16 %v937_v38, %v937_v38  ;;  %v1143_v41 = vpack.c.bf16 %v994_v39, %v994_v39  ;;  %1239 = vst.msk [vmem:[#allocation4 + $0x80] sm:$0xff] %vm1222_vm2, %v8357_v2 }
 0x12f   : > { %1202 = vst.msk [vmem:[#allocation3 + $0x70] sm:$0xf] %vm825_vm1, %v1154_v36 }
 0x130   : > { %1214 = vst.msk [vmem:[#allocation3 + $0xa0] sm:$0xf] %vm825_vm1, %v1166_v37 }
 0x131   : > { %1179 = vst.msk [vmem:[#allocation3 + $0x14] sm:$0xf] %vm825_vm1, %v1131_v40 }
 0x132   : > { %1191 = vst.msk [vmem:[#allocation3 + $0x44] sm:$0xf] %vm825_vm1, %v1143_v41 }
 0x133   : > { %1240 = vst.msk [vmem:[#allocation4 + $0x88] sm:$0xff] %vm1222_vm2, %v8357_v2 }
 0x134   : > { %v1051_v42 = vpop.f32.mrf.mxu2  ;;  %v1108_v43 = vpop.f32.mrf.mxu3  ;;  %1241 = vst.msk [vmem:[#allocation4 + $0x90] sm:$0xff] %vm1222_vm2, %v8357_v2 }
 0x135   : > { %v1155_v44 = vpack.c.bf16 %v1051_v42, %v1051_v42  ;;  %v1167_v45 = vpack.c.bf16 %v1108_v43, %v1108_v43  ;;  %v940_v46 = vpop.f32.mrf.mxu0  ;;  %v997_v47 = vpop.f32.mrf.mxu1  ;;  %1242 = vst.msk [vmem:[#allocation4 + $0x98] sm:$0xff] %vm1222_vm2, %v8357_v2 }
 0x136   : > { %v1132_v48 = vpack.c.bf16 %v940_v46, %v940_v46  ;;  %v1144_v49 = vpack.c.bf16 %v997_v47, %v997_v47  ;;  %1243 = vst.msk [vmem:[#allocation4 + $0xa0] sm:$0xff] %vm1222_vm2, %v8357_v2 }
 0x137   : > { %1203 = vst.msk [vmem:[#allocation3 + $0x74] sm:$0xf] %vm825_vm1, %v1155_v44 }
 0x138   : > { %1215 = vst.msk [vmem:[#allocation3 + $0xa4] sm:$0xf] %vm825_vm1, %v1167_v45 }
 0x139   : > { %1180 = vst.msk [vmem:[#allocation3 + $0x18] sm:$0xf] %vm825_vm1, %v1132_v48 }
 0x13a   : > { %1192 = vst.msk [vmem:[#allocation3 + $0x48] sm:$0xf] %vm825_vm1, %v1144_v49 }
 0x13b   : > { %1244 = vst.msk [vmem:[#allocation4 + $0xa8] sm:$0xff] %vm1222_vm2, %v8357_v2 }
 0x13c   : > { %v1054_v50 = vpop.f32.mrf.mxu2  ;;  %v1111_v51 = vpop.f32.mrf.mxu3  ;;  %1245 = vst.msk [vmem:[#allocation4 + $0xb0] sm:$0xff] %vm1222_vm2, %v8357_v2 }
 0x13d   : > { %v1156_v52 = vpack.c.bf16 %v1054_v50, %v1054_v50  ;;  %v1168_v53 = vpack.c.bf16 %v1111_v51, %v1111_v51  ;;  %v942_v54 = vpop.f32.mrf.mxu0  ;;  %v999_v55 = vpop.f32.mrf.mxu1  ;;  %1246 = vst.msk [vmem:[#allocation4 + $0xb8] sm:$0xff] %vm1222_vm2, %v8357_v2 }
 0x13e   : > { %v1133_v56 = vpack.c.bf16 %v942_v54, %v942_v54  ;;  %v1145_v57 = vpack.c.bf16 %v999_v55, %v999_v55  ;;  %1247 = vst.msk [vmem:[#allocation4 + $0xc0] sm:$0xff] %vm1222_vm2, %v8357_v2 }
 0x13f   : > { %1204 = vst.msk [vmem:[#allocation3 + $0x78] sm:$0xf] %vm825_vm1, %v1156_v52 }
 0x140   : > { %1216 = vst.msk [vmem:[#allocation3 + $0xa8] sm:$0xf] %vm825_vm1, %v1168_v53 }
 0x141   : > { %1181 = vst.msk [vmem:[#allocation3 + $0x1c] sm:$0xf] %vm825_vm1, %v1133_v56 }
 0x142   : > { %1193 = vst.msk [vmem:[#allocation3 + $0x4c] sm:$0xf] %vm825_vm1, %v1145_v57 }
 0x143   : > { %1248 = vst.msk [vmem:[#allocation4 + $0xc8] sm:$0xff] %vm1222_vm2, %v8357_v2 }
 0x144   : > { %v1056_v58 = vpop.f32.mrf.mxu2  ;;  %v1113_v59 = vpop.f32.mrf.mxu3  ;;  %1249 = vst.msk [vmem:[#allocation4 + $0xd0] sm:$0xff] %vm1222_vm2, %v8357_v2 }
 0x145   : > { %v1157_v60 = vpack.c.bf16 %v1056_v58, %v1056_v58  ;;  %v1169_v61 = vpack.c.bf16 %v1113_v59, %v1113_v59  ;;  %v945_v62 = vpop.f32.mrf.mxu0  ;;  %v1002_v63 = vpop.f32.mrf.mxu1  ;;  %1250 = vst.msk [vmem:[#allocation4 + $0xd8] sm:$0xff] %vm1222_vm2, %v8357_v2 }
 0x146   : > { %v1134_v0 = vpack.c.bf16 %v945_v62, %v945_v62  ;;  %v1146_v1 = vpack.c.bf16 %v1002_v63, %v1002_v63  ;;  %1251 = vst.msk [vmem:[#allocation4 + $0xe0] sm:$0xff] %vm1222_vm2, %v8357_v2 }
 0x147   : > { %1205 = vst.msk [vmem:[#allocation3 + $0x7c] sm:$0xf] %vm825_vm1, %v1157_v60 }
 0x148   : > { %1217 = vst.msk [vmem:[#allocation3 + $0xac] sm:$0xf] %vm825_vm1, %v1169_v61 }
 0x149   : > { %1182 = vst.msk [vmem:[#allocation3 + $0x20] sm:$0xf] %vm825_vm1, %v1134_v0 }
 0x14a   : > { %1194 = vst.msk [vmem:[#allocation3 + $0x50] sm:$0xf] %vm825_vm1, %v1146_v1 }
 0x14b   : > { %1252 = vst.msk [vmem:[#allocation4 + $0xe8] sm:$0xff] %vm1222_vm2, %v8357_v2 }
 0x14c   : > { %v1059_v3 = vpop.f32.mrf.mxu2  ;;  %v1116_v4 = vpop.f32.mrf.mxu3  ;;  %1253 = vst.msk [vmem:[#allocation4 + $0xf0] sm:$0xff] %vm1222_vm2, %v8357_v2 }
 0x14d   : > { %v1158_v5 = vpack.c.bf16 %v1059_v3, %v1059_v3  ;;  %v1170_v6 = vpack.c.bf16 %v1116_v4, %v1116_v4  ;;  %v947_v7 = vpop.f32.mrf.mxu0  ;;  %v1004_v8 = vpop.f32.mrf.mxu1  ;;  %1254 = vst.msk [vmem:[#allocation4 + $0xf8] sm:$0xff] %vm1222_vm2, %v8357_v2 }
 0x14e   : > { %v1135_v9 = vpack.c.bf16 %v947_v7, %v947_v7  ;;  %v1147_v10 = vpack.c.bf16 %v1004_v8, %v1004_v8  ;;  %1255 = vst.msk [vmem:[#allocation4 + $0x100] sm:$0xff] %vm1222_vm2, %v8357_v2 }
 0x14f   : > { %1206 = vst.msk [vmem:[#allocation3 + $0x80] sm:$0xf] %vm825_vm1, %v1158_v5 }
 0x150   : > { %1218 = vst.msk [vmem:[#allocation3 + $0xb0] sm:$0xf] %vm825_vm1, %v1170_v6 }
 0x151   : > { %1183 = vst.msk [vmem:[#allocation3 + $0x24] sm:$0xf] %vm825_vm1, %v1135_v9 }
 0x152   : > { %1195 = vst.msk [vmem:[#allocation3 + $0x54] sm:$0xf] %vm825_vm1, %v1147_v10 }
 0x153   : > { %1256 = vst.msk [vmem:[#allocation4 + $0x108] sm:$0xff] %vm1222_vm2, %v8357_v2 }
 0x154   : > { %v1061_v11 = vpop.f32.mrf.mxu2  ;;  %v1118_v12 = vpop.f32.mrf.mxu3  ;;  %1257 = vst.msk [vmem:[#allocation4 + $0x110] sm:$0xff] %vm1222_vm2, %v8357_v2 }
 0x155   : > { %v1159_v13 = vpack.c.bf16 %v1061_v11, %v1061_v11  ;;  %v1171_v14 = vpack.c.bf16 %v1118_v12, %v1118_v12  ;;  %v950_v15 = vpop.f32.mrf.mxu0  ;;  %v1007_v16 = vpop.f32.mrf.mxu1  ;;  %1258 = vst.msk [vmem:[#allocation4 + $0x118] sm:$0xff] %vm1222_vm2, %v8357_v2 }
 0x156   : > { %v1136_v17 = vpack.c.bf16 %v950_v15, %v950_v15  ;;  %v1148_v18 = vpack.c.bf16 %v1007_v16, %v1007_v16  ;;  %1259 = vst.msk [vmem:[#allocation4 + $0x120] sm:$0xff] %vm1222_vm2, %v8357_v2 }
 0x157   : > { %1207 = vst.msk [vmem:[#allocation3 + $0x84] sm:$0xf] %vm825_vm1, %v1159_v13 }
 0x158   : > { %1219 = vst.msk [vmem:[#allocation3 + $0xb4] sm:$0xf] %vm825_vm1, %v1171_v14 }
 0x159   : > { %1184 = vst.msk [vmem:[#allocation3 + $0x28] sm:$0xf] %vm825_vm1, %v1136_v17 }
 0x15a   : > { %1196 = vst.msk [vmem:[#allocation3 + $0x58] sm:$0xf] %vm825_vm1, %v1148_v18 }
 0x15b   : > { %1260 = vst.msk [vmem:[#allocation4 + $0x128] sm:$0xff] %vm1222_vm2, %v8357_v2 }
 0x15c   : > { %v1064_v19 = vpop.f32.mrf.mxu2  ;;  %v1121_v20 = vpop.f32.mrf.mxu3  ;;  %1261 = vst.msk [vmem:[#allocation4 + $0x130] sm:$0xff] %vm1222_vm2, %v8357_v2 }
 0x15d   : > { %v1160_v21 = vpack.c.bf16 %v1064_v19, %v1064_v19  ;;  %v1172_v22 = vpack.c.bf16 %v1121_v20, %v1121_v20  ;;  %v952_v23 = vpop.f32.mrf.mxu0  ;;  %v1009_v24 = vpop.f32.mrf.mxu1  ;;  %1262 = vst.msk [vmem:[#allocation4 + $0x138] sm:$0xff] %vm1222_vm2, %v8357_v2 }
 0x15e   : > { %v1137_v25 = vpack.c.bf16 %v952_v23, %v952_v23  ;;  %v1149_v26 = vpack.c.bf16 %v1009_v24, %v1009_v24  ;;  %1263 = vst.msk [vmem:[#allocation4 + $0x140] sm:$0xff] %vm1222_vm2, %v8357_v2 }
 0x15f   : > { %1208 = vst.msk [vmem:[#allocation3 + $0x88] sm:$0xf] %vm825_vm1, %v1160_v21 }
 0x160   : > { %1220 = vst.msk [vmem:[#allocation3 + $0xb8] sm:$0xf] %vm825_vm1, %v1172_v22 }
 0x161   : > { %1185 = vst.msk [vmem:[#allocation3 + $0x2c] sm:$0xf] %vm825_vm1, %v1137_v25 }
 0x162   : > { %1197 = vst.msk [vmem:[#allocation3 + $0x5c] sm:$0xf] %vm825_vm1, %v1149_v26 }
 0x163   : > { %1264 = vst.msk [vmem:[#allocation4 + $0x148] sm:$0xff] %vm1222_vm2, %v8357_v2 }
 0x164   : > { %v1066_v27 = vpop.f32.mrf.mxu2  ;;  %v1123_v28 = vpop.f32.mrf.mxu3  ;;  %1265 = vst.msk [vmem:[#allocation4 + $0x150] sm:$0xff] %vm1222_vm2, %v8357_v2 }
 0x165   : > { %v1161_v29 = vpack.c.bf16 %v1066_v27, %v1066_v27  ;;  %v1173_v30 = vpack.c.bf16 %v1123_v28, %v1123_v28  ;;  %1266 = vst.msk [vmem:[#allocation4 + $0x158] sm:$0xff] %vm1222_vm2, %v8357_v2 }
 0x166   : > { %1267 = vst.msk [vmem:[#allocation4 + $0x160] sm:$0xff] %vm1222_vm2, %v8357_v2 }
 0x167   : > { %1209 = vst.msk [vmem:[#allocation3 + $0x8c] sm:$0xf] %vm825_vm1, %v1161_v29 }
 0x168   : > { %1221 = vst.msk [vmem:[#allocation3 + $0xbc] sm:$0xf] %vm825_vm1, %v1173_v30 }
 0x169   : > { %1268 = vst.msk [vmem:[#allocation4 + $0x168] sm:$0xff] %vm1222_vm2, %v8357_v2 }
 0x16a   : > { %1269 = vst.msk [vmem:[#allocation4 + $0x170] sm:$0xff] %vm1222_vm2, %v8357_v2 }
 0x16b   : > { %1270 = vst.msk [vmem:[#allocation4 + $0x178] sm:$0xff] %vm1222_vm2, %v8357_v2 }
 0x16c   : > { %1271 = vst.msk [vmem:[#allocation5] sm:$0xff] %vm1222_vm2, %v8358_v31 }
 0x16d   : > { %1272 = vst.msk [vmem:[#allocation5 + $0x8] sm:$0xff] %vm1222_vm2, %v8358_v31 }
 0x16e   : > { %1273 = vst.msk [vmem:[#allocation5 + $0x10] sm:$0xff] %vm1222_vm2, %v8358_v31 }
 0x16f   : > { %1274 = vst.msk [vmem:[#allocation5 + $0x18] sm:$0xff] %vm1222_vm2, %v8358_v31 }
 0x170   : > { %1275 = vst.msk [vmem:[#allocation5 + $0x20] sm:$0xff] %vm1222_vm2, %v8358_v31 }
 0x171   : > { %1276 = vst.msk [vmem:[#allocation5 + $0x28] sm:$0xff] %vm1222_vm2, %v8358_v31 }
 0x172   : > { %1277 = vst.msk [vmem:[#allocation5 + $0x30] sm:$0xff] %vm1222_vm2, %v8358_v31 }
 0x173   : > { %1278 = vst.msk [vmem:[#allocation5 + $0x38] sm:$0xff] %vm1222_vm2, %v8358_v31 }
 0x174   : > { %1279 = vst.msk [vmem:[#allocation5 + $0x40] sm:$0xff] %vm1222_vm2, %v8358_v31 }
 0x175   : > { %1280 = vst.msk [vmem:[#allocation5 + $0x48] sm:$0xff] %vm1222_vm2, %v8358_v31 }
 0x176   : > { %1281 = vst.msk [vmem:[#allocation5 + $0x50] sm:$0xff] %vm1222_vm2, %v8358_v31 }
 0x177   : > { %1282 = vst.msk [vmem:[#allocation5 + $0x58] sm:$0xff] %vm1222_vm2, %v8358_v31 }
 0x178   : > { %1283 = vst.msk [vmem:[#allocation5 + $0x60] sm:$0xff] %vm1222_vm2, %v8358_v31 }
 0x179   : > { %1284 = vst.msk [vmem:[#allocation5 + $0x68] sm:$0xff] %vm1222_vm2, %v8358_v31 }
 0x17a   : > { %1285 = vst.msk [vmem:[#allocation5 + $0x70] sm:$0xff] %vm1222_vm2, %v8358_v31 }
 0x17b   : > { %1286 = vst.msk [vmem:[#allocation5 + $0x78] sm:$0xff] %vm1222_vm2, %v8358_v31 }
 0x17c   : > { %1287 = vst.msk [vmem:[#allocation5 + $0x80] sm:$0xff] %vm1222_vm2, %v8358_v31 }
 0x17d   : > { %1288 = vst.msk [vmem:[#allocation5 + $0x88] sm:$0xff] %vm1222_vm2, %v8358_v31 }
 0x17e   : > { %1289 = vst.msk [vmem:[#allocation5 + $0x90] sm:$0xff] %vm1222_vm2, %v8358_v31 }
 0x17f   : > { %1290 = vst.msk [vmem:[#allocation5 + $0x98] sm:$0xff] %vm1222_vm2, %v8358_v31 }
 0x180   : > { %1291 = vst.msk [vmem:[#allocation5 + $0xa0] sm:$0xff] %vm1222_vm2, %v8358_v31 }
 0x181   : > { %1292 = vst.msk [vmem:[#allocation5 + $0xa8] sm:$0xff] %vm1222_vm2, %v8358_v31 }
 0x182   : > { %1293 = vst.msk [vmem:[#allocation5 + $0xb0] sm:$0xff] %vm1222_vm2, %v8358_v31 }
 0x183   : > { %1294 = vst.msk [vmem:[#allocation5 + $0xb8] sm:$0xff] %vm1222_vm2, %v8358_v31 }
 0x184   : > { %1295 = vst.msk [vmem:[#allocation5 + $0xc0] sm:$0xff] %vm1222_vm2, %v8358_v31 }
 0x185   : > { %1296 = vst.msk [vmem:[#allocation5 + $0xc8] sm:$0xff] %vm1222_vm2, %v8358_v31 }
 0x186   : > { %1297 = vst.msk [vmem:[#allocation5 + $0xd0] sm:$0xff] %vm1222_vm2, %v8358_v31 }
 0x187   : > { %1298 = vst.msk [vmem:[#allocation5 + $0xd8] sm:$0xff] %vm1222_vm2, %v8358_v31 }
 0x188   : > { %1299 = vst.msk [vmem:[#allocation5 + $0xe0] sm:$0xff] %vm1222_vm2, %v8358_v31 }
 0x189   : > { %1300 = vst.msk [vmem:[#allocation5 + $0xe8] sm:$0xff] %vm1222_vm2, %v8358_v31 }
 0x18a   : > { %1301 = vst.msk [vmem:[#allocation5 + $0xf0] sm:$0xff] %vm1222_vm2, %v8358_v31 }
 0x18b   : > { %1302 = vst.msk [vmem:[#allocation5 + $0xf8] sm:$0xff] %vm1222_vm2, %v8358_v31 }
 0x18c   : > { %1303 = vst.msk [vmem:[#allocation5 + $0x100] sm:$0xff] %vm1222_vm2, %v8358_v31 }
 0x18d   : > { %1304 = vst.msk [vmem:[#allocation5 + $0x108] sm:$0xff] %vm1222_vm2, %v8358_v31 }
 0x18e   : > { %1305 = vst.msk [vmem:[#allocation5 + $0x110] sm:$0xff] %vm1222_vm2, %v8358_v31 }
 0x18f   : > { %1306 = vst.msk [vmem:[#allocation5 + $0x118] sm:$0xff] %vm1222_vm2, %v8358_v31 }
 0x190   : > { %1307 = vst.msk [vmem:[#allocation5 + $0x120] sm:$0xff] %vm1222_vm2, %v8358_v31 }
 0x191   : > { %1308 = vst.msk [vmem:[#allocation5 + $0x128] sm:$0xff] %vm1222_vm2, %v8358_v31 }
 0x192   : > { %1309 = vst.msk [vmem:[#allocation5 + $0x130] sm:$0xff] %vm1222_vm2, %v8358_v31 }
 0x193   : > { %1310 = vst.msk [vmem:[#allocation5 + $0x138] sm:$0xff] %vm1222_vm2, %v8358_v31 }
 0x194   : > { %1311 = vst.msk [vmem:[#allocation5 + $0x140] sm:$0xff] %vm1222_vm2, %v8358_v31 }
 0x195   : > { %1312 = vst.msk [vmem:[#allocation5 + $0x148] sm:$0xff] %vm1222_vm2, %v8358_v31 }
 0x196   : > { %1313 = vst.msk [vmem:[#allocation5 + $0x150] sm:$0xff] %vm1222_vm2, %v8358_v31 }
 0x197   : > { %1314 = vst.msk [vmem:[#allocation5 + $0x158] sm:$0xff] %vm1222_vm2, %v8358_v31 }
 0x198   : > { %1315 = vst.msk [vmem:[#allocation5 + $0x160] sm:$0xff] %vm1222_vm2, %v8358_v31 }
 0x199   : > { %1316 = vst.msk [vmem:[#allocation5 + $0x168] sm:$0xff] %vm1222_vm2, %v8358_v31 }
 0x19a   : > { %1317 = vst.msk [vmem:[#allocation5 + $0x170] sm:$0xff] %vm1222_vm2, %v8358_v31 }
 0x19b   : > { %1318 = vst.msk [vmem:[#allocation5 + $0x178] sm:$0xff] %vm1222_vm2, %v8358_v31 }
 0x19c   : > { %1320 = vst.msk [vmem:[#allocation6] sm:$0xff] %vm1319_vm3, %v8358_v31 }
 0x19d   : > { %1321 = vst.msk [vmem:[#allocation6 + $0x8] sm:$0xff] %vm1319_vm3, %v8358_v31 }
 0x19e   : > { %1322 = vst.msk [vmem:[#allocation6 + $0x10] sm:$0xff] %vm1319_vm3, %v8358_v31 }
 0x19f   : > { %1323 = vst.msk [vmem:[#allocation6 + $0x18] sm:$0xff] %vm1319_vm3, %v8358_v31 }
 0x1a0   : > { %1324 = vst.msk [vmem:[#allocation6 + $0x20] sm:$0xff] %vm1319_vm3, %v8358_v31 }
 0x1a1   : > { %1325 = vst.msk [vmem:[#allocation6 + $0x28] sm:$0xff] %vm1319_vm3, %v8358_v31 }
 0x1a2   : > { %1326 = vst.msk [vmem:[#allocation6 + $0x30] sm:$0xff] %vm1319_vm3, %v8358_v31 }
 0x1a3   : > { %1327 = vst.msk [vmem:[#allocation6 + $0x38] sm:$0xff] %vm1319_vm3, %v8358_v31 }
 0x1a4   : > { %1328 = vst.msk [vmem:[#allocation6 + $0x40] sm:$0xff] %vm1319_vm3, %v8358_v31 }
 0x1a5   : > { %1329 = vst.msk [vmem:[#allocation6 + $0x48] sm:$0xff] %vm1319_vm3, %v8358_v31 }
 0x1a6   : > { %1330 = vst.msk [vmem:[#allocation6 + $0x50] sm:$0xff] %vm1319_vm3, %v8358_v31 }
 0x1a7   : > { %1331 = vst.msk [vmem:[#allocation6 + $0x58] sm:$0xff] %vm1319_vm3, %v8358_v31 }
 0x1a8   : > { %1332 = vst.msk [vmem:[#allocation6 + $0x60] sm:$0xff] %vm1319_vm3, %v8358_v31 }
 0x1a9   : > { %1333 = vst.msk [vmem:[#allocation6 + $0x68] sm:$0xff] %vm1319_vm3, %v8358_v31 }
 0x1aa   : > { %1334 = vst.msk [vmem:[#allocation6 + $0x70] sm:$0xff] %vm1319_vm3, %v8358_v31 }
 0x1ab   : > { %1335 = vst.msk [vmem:[#allocation6 + $0x78] sm:$0xff] %vm1319_vm3, %v8358_v31 }
 0x1ac   : > { %1336 = vst.msk [vmem:[#allocation6 + $0x80] sm:$0xff] %vm1319_vm3, %v8358_v31 }
 0x1ad   : > { %1337 = vst.msk [vmem:[#allocation6 + $0x88] sm:$0xff] %vm1319_vm3, %v8358_v31 }
 0x1ae   : > { %1338 = vst.msk [vmem:[#allocation6 + $0x90] sm:$0xff] %vm1319_vm3, %v8358_v31 }
 0x1af   : > { %1339 = vst.msk [vmem:[#allocation6 + $0x98] sm:$0xff] %vm1319_vm3, %v8358_v31 }
 0x1b0   : > { %1340 = vst.msk [vmem:[#allocation6 + $0xa0] sm:$0xff] %vm1319_vm3, %v8358_v31 }
 0x1b1   : > { %1341 = vst.msk [vmem:[#allocation6 + $0xa8] sm:$0xff] %vm1319_vm3, %v8358_v31 }
 0x1b2   : > { %1342 = vst.msk [vmem:[#allocation6 + $0xb0] sm:$0xff] %vm1319_vm3, %v8358_v31 }
 0x1b3   : > { %1343 = vst.msk [vmem:[#allocation6 + $0xb8] sm:$0xff] %vm1319_vm3, %v8358_v31 }
 0x1b4   : > { %1344 = vst.msk [vmem:[#allocation6 + $0xc0] sm:$0xff] %vm1319_vm3, %v8358_v31 }
 0x1b5   : > { %1345 = vst.msk [vmem:[#allocation6 + $0xc8] sm:$0xff] %vm1319_vm3, %v8358_v31 }
 0x1b6   : > { %1346 = vst.msk [vmem:[#allocation6 + $0xd0] sm:$0xff] %vm1319_vm3, %v8358_v31 }
 0x1b7   : > { %1347 = vst.msk [vmem:[#allocation6 + $0xd8] sm:$0xff] %vm1319_vm3, %v8358_v31 }
 0x1b8   : > { %1348 = vst.msk [vmem:[#allocation6 + $0xe0] sm:$0xff] %vm1319_vm3, %v8358_v31 }
 0x1b9   : > { %1349 = vst.msk [vmem:[#allocation6 + $0xe8] sm:$0xff] %vm1319_vm3, %v8358_v31 }
 0x1ba   : > { %1350 = vst.msk [vmem:[#allocation6 + $0xf0] sm:$0xff] %vm1319_vm3, %v8358_v31 }
 0x1bb   : > { %1351 = vst.msk [vmem:[#allocation6 + $0xf8] sm:$0xff] %vm1319_vm3, %v8358_v31 }
 0x1bc   : > { %1352 = vst.msk [vmem:[#allocation6 + $0x100] sm:$0xff] %vm1319_vm3, %v8358_v31 }
 0x1bd   : > { %1353 = vst.msk [vmem:[#allocation6 + $0x108] sm:$0xff] %vm1319_vm3, %v8358_v31 }
 0x1be   : > { %1354 = vst.msk [vmem:[#allocation6 + $0x110] sm:$0xff] %vm1319_vm3, %v8358_v31 }
 0x1bf   : > { %1355 = vst.msk [vmem:[#allocation6 + $0x118] sm:$0xff] %vm1319_vm3, %v8358_v31 }
 0x1c0   : > { %1356 = vst.msk [vmem:[#allocation6 + $0x120] sm:$0xff] %vm1319_vm3, %v8358_v31 }
 0x1c1   : > { %1357 = vst.msk [vmem:[#allocation6 + $0x128] sm:$0xff] %vm1319_vm3, %v8358_v31 }
 0x1c2   : > { %1358 = vst.msk [vmem:[#allocation6 + $0x130] sm:$0xff] %vm1319_vm3, %v8358_v31 }
 0x1c3   : > { %1359 = vst.msk [vmem:[#allocation6 + $0x138] sm:$0xff] %vm1319_vm3, %v8358_v31 }
 0x1c4   : > { %1360 = vst.msk [vmem:[#allocation6 + $0x140] sm:$0xff] %vm1319_vm3, %v8358_v31 }
 0x1c5   : > { %1361 = vst.msk [vmem:[#allocation6 + $0x148] sm:$0xff] %vm1319_vm3, %v8358_v31 }
 0x1c6   : > { %1362 = vst.msk [vmem:[#allocation6 + $0x150] sm:$0xff] %vm1319_vm3, %v8358_v31 }
 0x1c7   : > { %1363 = vst.msk [vmem:[#allocation6 + $0x158] sm:$0xff] %vm1319_vm3, %v8358_v31 }
 0x1c8   : > { %1364 = vst.msk [vmem:[#allocation6 + $0x160] sm:$0xff] %vm1319_vm3, %v8358_v31 }
 0x1c9   : > { %1365 = vst.msk [vmem:[#allocation6 + $0x168] sm:$0xff] %vm1319_vm3, %v8358_v31 }
 0x1ca   : > { %1366 = vst.msk [vmem:[#allocation6 + $0x170] sm:$0xff] %vm1319_vm3, %v8358_v31 }
 0x1cb   : > { %1367 = vst.msk [vmem:[#allocation6 + $0x178] sm:$0xff] %vm1319_vm3, %v8358_v31 }
 0x1cc PF: > { %v7738_v32 = vld [vmem:[%s11528_s2 + $0x18] sm:$0xff]  ;;  %v7737_v36 = vld [vmem:[%s11528_s2 + $0x10] sm:$0xff]  ;;  %v7736_v40 = vld [vmem:[%s11528_s2 + $0x8] sm:$0xff]  ;;  %vm1452_vm4 = vcmask 523264   ;;  %vm2107_vm5 = vcmask 130048   ;;  %vm2494_vm6 = vcmask 785408  }
 0x1cd   : > { %v7742_v33 = vld [vmem:[%s11528_s2 + $0x38] sm:$0xff]  ;;  %1469 = vmatpush.bf16.msra.mxu0 %v7738_v32  ;;  %v7741_v37 = vld [vmem:[%s11528_s2 + $0x30] sm:$0xff]  ;;  %v7740_v41 = vld [vmem:[%s11528_s2 + $0x28] sm:$0xff]  ;;  %vm4863_vm7 = vcmask 7168   ;;  %p7658_p8 = scmp.ne.s32.totalorder %s8339_s17, 1 }
 0x1ce   : > { %v7746_v34 = vld [vmem:[%s11528_s2 + $0x58] sm:$0xff]  ;;  %1522 = vmatpush.bf16.msra.mxu1 %v7742_v33  ;;  %v7745_v38 = vld [vmem:[%s11528_s2 + $0x50] sm:$0xff]  ;;  %v7744_v42 = vld [vmem:[%s11528_s2 + $0x48] sm:$0xff] }
 0x1cf   : > { %v7750_v35 = vld [vmem:[%s11528_s2 + $0x78] sm:$0xff]  ;;  %1575 = vmatpush.bf16.msra.mxu2 %v7746_v34  ;;  %v7749_v39 = vld [vmem:[%s11528_s2 + $0x70] sm:$0xff]  ;;  %v7748_v43 = vld [vmem:[%s11528_s2 + $0x68] sm:$0xff] }
 0x1d0   : > { %1628 = vmatpush.bf16.msra.mxu3 %v7750_v35  ;;  %v7735_v44 = vld [vmem:[%s11528_s2] sm:$0xff]  ;;  %v7754_v48 = vld [vmem:[%s11529_s3 + $0x18] sm:$0xff]  ;;  %v7753_v52 = vld [vmem:[%s11529_s3 + $0x10] sm:$0xff] }
 0x1d1   : > { %1470 = vmatpush.bf16.msra.mxu0 %v7737_v36  ;;  %v7739_v45 = vld [vmem:[%s11528_s2 + $0x20] sm:$0xff]  ;;  %v7762_v49 = vld [vmem:[%s11529_s3 + $0x58] sm:$0xff]  ;;  %v7761_v53 = vld [vmem:[%s11529_s3 + $0x50] sm:$0xff] }
 0x1d2   : > { %1523 = vmatpush.bf16.msra.mxu1 %v7741_v37  ;;  %v7743_v46 = vld [vmem:[%s11528_s2 + $0x40] sm:$0xff]  ;;  %v7758_v51 = vld [vmem:[%s11529_s3 + $0x38] sm:$0xff]  ;;  %v7757_v55 = vld [vmem:[%s11529_s3 + $0x30] sm:$0xff] }
 0x1d3   : > { %1576 = vmatpush.bf16.msra.mxu2 %v7745_v38  ;;  %v7747_v47 = vld [vmem:[%s11528_s2 + $0x60] sm:$0xff]  ;;  %v7766_v54 = vld [vmem:[%s11529_s3 + $0x78] sm:$0xff]  ;;  %v9086_v56 = vld [vmem:[%s8462_s16 + $0x8] sm:$0xff] }
 0x1d4   : > { %1629 = vmatpush.bf16.msra.mxu3 %v7749_v39  ;;  %v9060_v50 = vld [vmem:[%s8462_s16] sm:$0xff]  ;;  %v7752_v57 = vld [vmem:[%s11529_s3 + $0x8] sm:$0xff]  ;;  %v7765_v59 = vld [vmem:[%s11529_s3 + $0x70] sm:$0xff] }
 0x1d5   : > { %1471 = vmatpush.bf16.msra.mxu0 %v7736_v40  ;;  %v7760_v58 = vld [vmem:[%s11529_s3 + $0x48] sm:$0xff]  ;;  %v7751_v61 = vld [vmem:[%s11529_s3] sm:$0xff]  ;;  %v9118_v0 = vld [vmem:[%s8462_s16 + $0x10] sm:$0xff] }
 0x1d6   : > { %1524 = vmatpush.bf16.msra.mxu1 %v7740_v41  ;;  %v7756_v60 = vld [vmem:[%s11529_s3 + $0x28] sm:$0xff]  ;;  %v7759_v62 = vld [vmem:[%s11529_s3 + $0x40] sm:$0xff]  ;;  %v9137_v7 = vld [vmem:[%s8462_s16 + $0x18] sm:$0xff] }
 0x1d7   : > { %1577 = vmatpush.bf16.msra.mxu2 %v7744_v42  ;;  %v7764_v63 = vld [vmem:[%s11529_s3 + $0x68] sm:$0xff]  ;;  %v7755_v1 = vld [vmem:[%s11529_s3 + $0x20] sm:$0xff]  ;;  %v7778_v8 = vld [vmem:[#allocation2 + $0x58] sm:$0xff] }
 0x1d8   : > { %1630 = vmatpush.bf16.msra.mxu3 %v7748_v43  ;;  %v7763_v2 = vld [vmem:[%s11529_s3 + $0x60] sm:$0xff]  ;;  %v7772_v3 = vld [vmem:[#allocation2 + $0x28] sm:$0xff]  ;;  %v7790_v11 = vld [vmem:[#allocation2 + $0xb8] sm:$0xff]  ;;  %v2245_v12 = vsel %vm2107_vm5, %v7778_v8, 0 }
 0x1d9   : > { %1472 = vmatpush.bf16.msra.mxu0 %v7735_v44  ;;  %v7784_v4 = vld [vmem:[#allocation2 + $0x88] sm:$0xff]  ;;  %v2136_v5 = vsel %vm2107_vm5, %v7772_v3, 0  ;;  %v7771_v9 = vld [vmem:[#allocation2 + $0x20] sm:$0xff]  ;;  %v2463_v15 = vsel %vm2107_vm5, %v7790_v11, 0  ;;  %v7777_v16 = vld [vmem:[#allocation2 + $0x50] sm:$0xff] }
 0x1da   : > { %1525 = vmatpush.bf16.msra.mxu1 %v7739_v45  ;;  %v2354_v6 = vsel %vm2107_vm5, %v7784_v4, 0  ;;  %v7783_v10 = vld [vmem:[#allocation2 + $0x80] sm:$0xff]  ;;  %v2133_v13 = vsel %vm2107_vm5, %v7771_v9, 0  ;;  %v7770_v17 = vld [vmem:[#allocation2 + $0x18] sm:$0xff]  ;;  %v2242_v18 = vsel %vm2107_vm5, %v7777_v16, 0  ;;  %v7789_v21 = vld [vmem:[#allocation2 + $0xb0] sm:$0xff] }
 0x1db   : > { %1578 = vmatpush.bf16.msra.mxu2 %v7743_v46  ;;  %v2351_v14 = vsel %vm2107_vm5, %v7783_v10, 0  ;;  %v2130_v19 = vsel %vm2107_vm5, %v7770_v17, 0  ;;  %v7782_v20 = vld [vmem:[#allocation2 + $0x78] sm:$0xff]  ;;  %v7776_v22 = vld [vmem:[#allocation2 + $0x48] sm:$0xff]  ;;  %v7769_v23 = vld [vmem:[#allocation2 + $0x10] sm:$0xff]  ;;  %v2460_v25 = vsel %vm2107_vm5, %v7789_v21, 0 }
 0x1dc   : > { %1631 = vmatpush.bf16.msra.mxu3 %v7747_v47  ;;  %7210 = vmatmul.msk.bf16.vlgmr.msra.gmra.mxu0 %vm1452_vm4, %v9060_v50  ;;  %v2348_v24 = vsel %vm2107_vm5, %v7782_v20, 0  ;;  %v2239_v26 = vsel %vm2107_vm5, %v7776_v22, 0  ;;  %v2127_v27 = vsel %vm2107_vm5, %v7769_v23, 0  ;;  %v7781_v28 = vld [vmem:[#allocation2 + $0x70] sm:$0xff]  ;;  %v7788_v29 = vld [vmem:[#allocation2 + $0xa8] sm:$0xff]  ;;  %v7775_v30 = vld [vmem:[#allocation2 + $0x40] sm:$0xff] }
 0x1dd   : > { %1745 = vmatpush.bf16.msrb.mxu0 %v7754_v48  ;;  %7230 = vmatmul.msk.bf16.vlgmr.msra.gmra.mxu1 %vm1452_vm4, %v9060_v50  ;;  %v2345_v31 = vsel %vm2107_vm5, %v7781_v28, 0  ;;  %v2457_v32 = vsel %vm2107_vm5, %v7788_v29, 0  ;;  %v2236_v33 = vsel %vm2107_vm5, %v7775_v30, 0  ;;  %v7768_v34 = vld [vmem:[#allocation2 + $0x8] sm:$0xff]  ;;  %v7787_v35 = vld [vmem:[#allocation2 + $0xa0] sm:$0xff]  ;;  %v7774_v38 = vld [vmem:[#allocation2 + $0x38] sm:$0xff] }
 0x1de   : > { %7250 = vmatmul.msk.bf16.vlgmr.msra.gmra.mxu2 %vm1452_vm4, %v9060_v50  ;;  %1798 = vmatpush.bf16.msrb.mxu1 %v7758_v51  ;;  %v2124_v36 = vsel %vm2107_vm5, %v7768_v34, 0  ;;  %v2454_v37 = vsel %vm2107_vm5, %v7787_v35, 0  ;;  %v2233_v39 = vsel %vm2107_vm5, %v7774_v38, 0  ;;  %v7780_v40 = vld [vmem:[#allocation2 + $0x68] sm:$0xff]  ;;  %v7786_v41 = vld [vmem:[#allocation2 + $0x98] sm:$0xff]  ;;  %v7767_v44 = vld [vmem:[#allocation2] sm:$0xff] }
 0x1df   : > { %1851 = vmatpush.bf16.msrb.mxu2 %v7762_v49  ;;  %7270 = vmatmul.msk.bf16.vlgmr.msra.gmra.mxu3 %vm1452_vm4, %v9060_v50  ;;  %v2342_v42 = vsel %vm2107_vm5, %v7780_v40, 0  ;;  %v2451_v43 = vsel %vm2107_vm5, %v7786_v41, 0  ;;  %v7773_v45 = vld [vmem:[#allocation2 + $0x30] sm:$0xff]  ;;  %v2121_v46 = vsel %vm2107_vm5, %v7767_v44, 0  ;;  %v7779_v48 = vld [vmem:[#allocation2 + $0x60] sm:$0xff] }
 0x1e0   : > { %1904 = vmatpush.bf16.msrb.mxu3 %v7766_v54  ;;  %v2230_v47 = vsel %vm2107_vm5, %v7773_v45, 0  ;;  %v7785_v49 = vld [vmem:[#allocation2 + $0x90] sm:$0xff] }
 0x1e1   : > { %1746 = vmatpush.bf16.msrb.mxu0 %v7753_v52  ;;  %v2448_v51 = vsel %vm2107_vm5, %v7785_v49, 0 }
 0x1e2   : > { %1799 = vmatpush.bf16.msrb.mxu1 %v7757_v55 }
 0x1e3   : > { %1852 = vmatpush.bf16.msrb.mxu2 %v7761_v53 }
 0x1e4   : > { %1905 = vmatpush.bf16.msrb.mxu3 %v7765_v59 }
 0x1e5   : > { %1747 = vmatpush.bf16.msrb.mxu0 %v7752_v57 }
 0x1e6   : > { %1800 = vmatpush.bf16.msrb.mxu1 %v7756_v60 }
 0x1e7   : > { %1853 = vmatpush.bf16.msrb.mxu2 %v7760_v58 }
 0x1e8   : > { %1906 = vmatpush.bf16.msrb.mxu3 %v7764_v63 }
 0x1e9   : > { %1748 = vmatpush.bf16.msrb.mxu0 %v7751_v61 }
 0x1ea   : > { %1801 = vmatpush.bf16.msrb.mxu1 %v7755_v1 }
 0x1eb   : > { %1854 = vmatpush.bf16.msrb.mxu2 %v7759_v62 }
 0x1ec   : > { %7211 = vmatmul.msk.bf16.gmra.mxu0 %vm1452_vm4, %v9086_v56  ;;  %1907 = vmatpush.bf16.msrb.mxu3 %v7763_v2 }
 0x1ed   : > { %7231 = vmatmul.msk.bf16.gmra.mxu1 %vm1452_vm4, %v9086_v56  ;;  %2140 = vmatpush.bf16.xpose.msra.mxu0 %v2136_v5 }
 0x1ee   : > { %7251 = vmatmul.msk.bf16.gmra.mxu2 %vm1452_vm4, %v9086_v56  ;;  %2249 = vmatpush.bf16.xpose.msra.mxu1 %v2245_v12 }
 0x1ef   : > { %7271 = vmatmul.msk.bf16.gmra.mxu3 %vm1452_vm4, %v9086_v56  ;;  %2358 = vmatpush.bf16.xpose.msra.mxu2 %v2354_v6 }
 0x1f0   : > { %2467 = vmatpush.bf16.xpose.msra.mxu3 %v2463_v15 }
 0x1f5   : > { %2141 = vmatpush.bf16.xpose.msra.mxu0 %v2133_v13 }
 0x1f6   : > { %2250 = vmatpush.bf16.xpose.msra.mxu1 %v2242_v18 }
 0x1f7   : > { %2359 = vmatpush.bf16.xpose.msra.mxu2 %v2351_v14 }
 0x1f8   : > { %2468 = vmatpush.bf16.xpose.msra.mxu3 %v2460_v25 }
 0x1fc   : > { %7212 = vmatmul.msk.bf16.gmra.mxu0 %vm1452_vm4, %v9118_v0 }
 0x1fd   : > { %7232 = vmatmul.msk.bf16.gmra.mxu1 %vm1452_vm4, %v9118_v0  ;;  %2142 = vmatpush.bf16.xpose.msra.mxu0 %v2130_v19 }
 0x1fe   : > { %7252 = vmatmul.msk.bf16.gmra.mxu2 %vm1452_vm4, %v9118_v0  ;;  %2251 = vmatpush.bf16.xpose.msra.mxu1 %v2239_v26 }
 0x1ff   : > { %7272 = vmatmul.msk.bf16.gmra.mxu3 %vm1452_vm4, %v9118_v0  ;;  %2360 = vmatpush.bf16.xpose.msra.mxu2 %v2348_v24 }
 0x200   : > { %2469 = vmatpush.bf16.xpose.msra.mxu3 %v2457_v32 }
 0x205   : > { %2143 = vmatpush.bf16.xpose.msra.mxu0 %v2127_v27 }
 0x206   : > { %2252 = vmatpush.bf16.xpose.msra.mxu1 %v2236_v33 }
 0x207   : > { %2361 = vmatpush.bf16.xpose.msra.mxu2 %v2345_v31 }
 0x208   : > { %2470 = vmatpush.bf16.xpose.msra.mxu3 %v2454_v37 }
 0x20c   : > { %7213 = vmatmul.msk.bf16.gmra.mxu0 %vm1452_vm4, %v9137_v7 }
 0x20d   : > { %7233 = vmatmul.msk.bf16.gmra.mxu1 %vm1452_vm4, %v9137_v7  ;;  %2144 = vmatpush.bf16.xpose.msra.mxu0 %v2124_v36 }
 0x20e   : > { %7253 = vmatmul.msk.bf16.gmra.mxu2 %vm1452_vm4, %v9137_v7  ;;  %2253 = vmatpush.bf16.xpose.msra.mxu1 %v2233_v39 }
 0x20f   : > { %7273 = vmatmul.msk.bf16.gmra.mxu3 %vm1452_vm4, %v9137_v7  ;;  %2362 = vmatpush.bf16.xpose.msra.mxu2 %v2342_v42 }
 0x210   : > { %2471 = vmatpush.bf16.xpose.msra.mxu3 %v2451_v43 }
 0x215   : > { %2145 = vmatpush.bf16.xpose.msra.mxu0 %v2121_v46 }
 0x216   : > { %2254 = vmatpush.bf16.xpose.msra.mxu1 %v2230_v47 }
 0x218   : > { %2472 = vmatpush.bf16.xpose.msra.mxu3 %v2448_v51 }
 0x21c   : > { %7290 = vmatmul.msk.bf16.vlgmr.msrb.gmra.mxu0 %vm1452_vm4, %v9060_v50 }
 0x21d   : > { %7310 = vmatmul.msk.bf16.vlgmr.msrb.gmra.mxu1 %vm1452_vm4, %v9060_v50 }
 0x21e   : > { %7330 = vmatmul.msk.bf16.vlgmr.msrb.gmra.mxu2 %vm1452_vm4, %v9060_v50 }
 0x21f   : > { %7350 = vmatmul.msk.bf16.vlgmr.msrb.gmra.mxu3 %vm1452_vm4, %v9060_v50  ;;  %v2339_v50 = vsel %vm2107_vm5, %v7779_v48, 0 }
 0x220   : > { %2363 = vmatpush.bf16.xpose.msra.mxu2 %v2339_v50 }
 0x22c   : > { %7291 = vmatmul.msk.bf16.gmra.mxu0 %vm1452_vm4, %v9086_v56 }
 0x22d   : > { %7311 = vmatmul.msk.bf16.gmra.mxu1 %vm1452_vm4, %v9086_v56 }
 0x22e   : > { %7331 = vmatmul.msk.bf16.gmra.mxu2 %vm1452_vm4, %v9086_v56 }
 0x22f   : > { %7351 = vmatmul.msk.bf16.gmra.mxu3 %vm1452_vm4, %v9086_v56 }
 0x23c   : > { %7292 = vmatmul.msk.bf16.gmra.mxu0 %vm1452_vm4, %v9118_v0 }
 0x23d   : > { %7312 = vmatmul.msk.bf16.gmra.mxu1 %vm1452_vm4, %v9118_v0 }
 0x23e   : > { %7332 = vmatmul.msk.bf16.gmra.mxu2 %vm1452_vm4, %v9118_v0 }
 0x23f   : > { %7352 = vmatmul.msk.bf16.gmra.mxu3 %vm1452_vm4, %v9118_v0 }
 0x24c   : > { %7293 = vmatmul.msk.bf16.gmra.mxu0 %vm1452_vm4, %v9137_v7 }
 0x24d   : > { %7313 = vmatmul.msk.bf16.gmra.mxu1 %vm1452_vm4, %v9137_v7 }
 0x24e   : > { %7333 = vmatmul.msk.bf16.gmra.mxu2 %vm1452_vm4, %v9137_v7 }
 0x24f   : > { %7353 = vmatmul.msk.bf16.gmra.mxu3 %vm1452_vm4, %v9137_v7 }
 0x259   : > { %v1474_v52 = vpop.f32.mrf.mxu0 }
 0x25a   : > { %v1527_v53 = vpop.f32.mrf.mxu1  ;;  %v1653_v55 = vpack.c.bf16 %v1474_v52, %v1474_v52 }
 0x25b   : > { %v1661_v54 = vpack.c.bf16 %v1527_v53, %v1527_v53 }
 0x25c   : > { %v2065_v63 = vunpack.c.l.b16 %v1653_v55 }
 0x25d   : > { %v2175_v60 = vunpack.c.l.b16 %v1661_v54 }
 0x261   : > { %v1580_v56 = vpop.f32.mrf.mxu2  ;;  %v1476_v58 = vpop.f32.mrf.mxu0 }
 0x262   : > { %v1633_v57 = vpop.f32.mrf.mxu3  ;;  %v1529_v59 = vpop.f32.mrf.mxu1  ;;  %v1654_v61 = vpack.c.bf16 %v1476_v58, %v1476_v58  ;;  %v1669_v5 = vpack.c.bf16 %v1580_v56, %v1580_v56 }
 0x263   : > { %v1662_v62 = vpack.c.bf16 %v1529_v59, %v1529_v59  ;;  %v1677_v2 = vpack.c.bf16 %v1633_v57, %v1633_v57 }
 0x264   : > { %v2066_v0 = vunpack.c.l.b16 %v1654_v61  ;;  %v2284_v13 = vunpack.c.l.b16 %v1669_v5 }
 0x265   : > { %v2176_v1 = vunpack.c.l.b16 %v1662_v62  ;;  %v2393_v8 = vunpack.c.l.b16 %v1677_v2 }
 0x266   : > { %v9201_v3 = vpack.c.b16 %v2066_v0, %v2065_v63 }
 0x267   : > { %v9203_v4 = vpack.c.b16 %v2176_v1, %v2175_v60 }
 0x268   : > { %7378 = vmatmul.msk.bf16.vlgmr.msra.gmra.mxu0 %vm2107_vm5, %v9201_v3 }
 0x269   : > { %v1582_v6 = vpop.f32.mrf.mxu2  ;;  %7406 = vmatmul.msk.bf16.vlgmr.msra.gmra.mxu1 %vm2107_vm5, %v9203_v4  ;;  %v1479_v11 = vpop.f32.mrf.mxu0 }
 0x26a   : > { %v1635_v7 = vpop.f32.mrf.mxu3  ;;  %v1670_v9 = vpack.c.bf16 %v1582_v6, %v1582_v6  ;;  %v1532_v12 = vpop.f32.mrf.mxu1  ;;  %v1655_v19 = vpack.c.bf16 %v1479_v11, %v1479_v11 }
 0x26b   : > { %v1678_v10 = vpack.c.bf16 %v1635_v7, %v1635_v7  ;;  %v1663_v18 = vpack.c.bf16 %v1532_v12, %v1532_v12 }
 0x26c   : > { %v2285_v14 = vunpack.c.l.b16 %v1670_v9  ;;  %v2067_v27 = vunpack.c.l.b16 %v1655_v19 }
 0x26d   : > { %v2394_v15 = vunpack.c.l.b16 %v1678_v10  ;;  %v2177_v24 = vunpack.c.l.b16 %v1663_v18 }
 0x26e   : > { %v9209_v16 = vpack.c.b16 %v2285_v14, %v2284_v13 }
 0x26f   : > { %v9211_v17 = vpack.c.b16 %v2394_v15, %v2393_v8 }
 0x270   : > { %7434 = vmatmul.msk.bf16.vlgmr.msra.gmra.mxu2 %vm2107_vm5, %v9209_v16 }
 0x271   : > { %7462 = vmatmul.msk.bf16.vlgmr.msra.gmra.mxu3 %vm2107_vm5, %v9211_v17  ;;  %v1585_v21 = vpop.f32.mrf.mxu2  ;;  %v1481_v22 = vpop.f32.mrf.mxu0 }
 0x272   : > { %v1638_v20 = vpop.f32.mrf.mxu3  ;;  %v1534_v23 = vpop.f32.mrf.mxu1  ;;  %v1656_v25 = vpack.c.bf16 %v1481_v22, %v1481_v22  ;;  %v1671_v31 = vpack.c.bf16 %v1585_v21, %v1585_v21 }
 0x273   : > { %v1664_v26 = vpack.c.bf16 %v1534_v23, %v1534_v23  ;;  %v1679_v30 = vpack.c.bf16 %v1638_v20, %v1638_v20 }
 0x274   : > { %v2068_v28 = vunpack.c.l.b16 %v1656_v25  ;;  %v2286_v37 = vunpack.c.l.b16 %v1671_v31 }
 0x275   : > { %v2178_v29 = vunpack.c.l.b16 %v1664_v26  ;;  %v2395_v36 = vunpack.c.l.b16 %v1679_v30 }
 0x276   : > { %v9217_v32 = vpack.c.b16 %v2068_v28, %v2067_v27 }
 0x277   : > { %v9219_v33 = vpack.c.b16 %v2178_v29, %v2177_v24 }
 0x278   : > { %7379 = vmatmul.msk.bf16.gmra.mxu0 %vm2107_vm5, %v9217_v32 }
 0x279   : > { %7407 = vmatmul.msk.bf16.gmra.mxu1 %vm2107_vm5, %v9219_v33  ;;  %v1587_v35 = vpop.f32.mrf.mxu2  ;;  %v1484_v39 = vpop.f32.mrf.mxu0 }
 0x27a   : > { %v1640_v34 = vpop.f32.mrf.mxu3  ;;  %v1672_v40 = vpack.c.bf16 %v1587_v35, %v1587_v35  ;;  %v1537_v41 = vpop.f32.mrf.mxu1  ;;  %v1657_v46 = vpack.c.bf16 %v1484_v39, %v1484_v39 }
 0x27b   : > { %v1680_v38 = vpack.c.bf16 %v1640_v34, %v1640_v34  ;;  %v1665_v47 = vpack.c.bf16 %v1537_v41, %v1537_v41 }
 0x27c   : > { %v2287_v43 = vunpack.c.l.b16 %v1672_v40  ;;  %v2069_v52 = vunpack.c.l.b16 %v1657_v46 }
 0x27d   : > { %v2396_v42 = vunpack.c.l.b16 %v1680_v38  ;;  %v2179_v54 = vunpack.c.l.b16 %v1665_v47 }
 0x27e   : > { %v9227_v45 = vpack.c.b16 %v2287_v43, %v2286_v37 }
 0x27f   : > { %v9225_v44 = vpack.c.b16 %v2396_v42, %v2395_v36 }
 0x280   : > { %7435 = vmatmul.msk.bf16.gmra.mxu2 %vm2107_vm5, %v9227_v45 }
 0x281   : > { %7463 = vmatmul.msk.bf16.gmra.mxu3 %vm2107_vm5, %v9225_v44  ;;  %v1590_v48 = vpop.f32.mrf.mxu2  ;;  %v1486_v50 = vpop.f32.mrf.mxu0 }
 0x282   : > { %v1643_v49 = vpop.f32.mrf.mxu3  ;;  %v1539_v51 = vpop.f32.mrf.mxu1  ;;  %v1658_v53 = vpack.c.bf16 %v1486_v50, %v1486_v50  ;;  %v1673_v58 = vpack.c.bf16 %v1590_v48, %v1590_v48 }
 0x283   : > { %v1666_v55 = vpack.c.bf16 %v1539_v51, %v1539_v51  ;;  %v1681_v59 = vpack.c.bf16 %v1643_v49, %v1643_v49 }
 0x284   : > { %v2070_v56 = vunpack.c.l.b16 %v1658_v53  ;;  %v2288_v0 = vunpack.c.l.b16 %v1673_v58 }
 0x285   : > { %v2180_v57 = vunpack.c.l.b16 %v1666_v55  ;;  %v2397_v5 = vunpack.c.l.b16 %v1681_v59 }
 0x286   : > { %v9233_v60 = vpack.c.b16 %v2070_v56, %v2069_v52 }
 0x287   : > { %v9235_v61 = vpack.c.b16 %v2180_v57, %v2179_v54 }
 0x288   : > { %7380 = vmatmul.msk.bf16.gmra.mxu0 %vm2107_vm5, %v9233_v60 }
 0x289   : > { %v1592_v62 = vpop.f32.mrf.mxu2  ;;  %7408 = vmatmul.msk.bf16.gmra.mxu1 %vm2107_vm5, %v9235_v61  ;;  %v1489_v1 = vpop.f32.mrf.mxu0 }
 0x28a   : > { %v1645_v63 = vpop.f32.mrf.mxu3  ;;  %v1674_v2 = vpack.c.bf16 %v1592_v62, %v1592_v62  ;;  %v1542_v6 = vpop.f32.mrf.mxu1  ;;  %v1659_v12 = vpack.c.bf16 %v1489_v1, %v1489_v1 }
 0x28b   : > { %v1682_v7 = vpack.c.bf16 %v1645_v63, %v1645_v63  ;;  %v1667_v13 = vpack.c.bf16 %v1542_v6, %v1542_v6 }
 0x28c   : > { %v2289_v8 = vunpack.c.l.b16 %v1674_v2  ;;  %v2071_v20 = vunpack.c.l.b16 %v1659_v12 }
 0x28d   : > { %v2398_v9 = vunpack.c.l.b16 %v1682_v7  ;;  %v2181_v22 = vunpack.c.l.b16 %v1667_v13 }
 0x28e   : > { %v9241_v10 = vpack.c.b16 %v2289_v8, %v2288_v0 }
 0x28f   : > { %v9243_v11 = vpack.c.b16 %v2398_v9, %v2397_v5 }
 0x290   : > { %7436 = vmatmul.msk.bf16.gmra.mxu2 %vm2107_vm5, %v9241_v10 }
 0x291   : > { %7464 = vmatmul.msk.bf16.gmra.mxu3 %vm2107_vm5, %v9243_v11  ;;  %v1595_v14 = vpop.f32.mrf.mxu2  ;;  %v1491_v18 = vpop.f32.mrf.mxu0 }
 0x292   : > { %v1648_v15 = vpop.f32.mrf.mxu3  ;;  %v1544_v19 = vpop.f32.mrf.mxu1  ;;  %v1660_v21 = vpack.c.bf16 %v1491_v18, %v1491_v18  ;;  %v1675_v26 = vpack.c.bf16 %v1595_v14, %v1595_v14 }
 0x293   : > { %v1668_v23 = vpack.c.bf16 %v1544_v19, %v1544_v19  ;;  %v1683_v27 = vpack.c.bf16 %v1648_v15, %v1648_v15 }
 0x294   : > { %v2072_v24 = vunpack.c.l.b16 %v1660_v21  ;;  %v2290_v34 = vunpack.c.l.b16 %v1675_v26 }
 0x295   : > { %v2182_v25 = vunpack.c.l.b16 %v1668_v23  ;;  %v2399_v36 = vunpack.c.l.b16 %v1683_v27 }
 0x296   : > { %v9249_v28 = vpack.c.b16 %v2072_v24, %v2071_v20 }
 0x297   : > { %v9251_v29 = vpack.c.b16 %v2182_v25, %v2181_v22 }
 0x298   : > { %7381 = vmatmul.msk.bf16.gmra.mxu0 %vm2107_vm5, %v9249_v28 }
 0x299   : > { %v1597_v30 = vpop.f32.mrf.mxu2  ;;  %7409 = vmatmul.msk.bf16.gmra.mxu1 %vm2107_vm5, %v9251_v29  ;;  %v9257_v37 = vpop.f32.mrf.mxu0 }
 0x29a   : > { %v1650_v31 = vpop.f32.mrf.mxu3  ;;  %v1676_v35 = vpack.c.bf16 %v1597_v30, %v1597_v30  ;;  %11657 = vst [vmem:[#allocation12_spill] sm:$0xff] %v9257_v37  ;;  %v9259_v38 = vpop.f32.mrf.mxu1 }
 0x29b   : > { %11658 = vst [vmem:[#allocation13_spill] sm:$0xff] %v9259_v38  ;;  %v1684_v39 = vpack.c.bf16 %v1650_v31, %v1650_v31 }
 0x29c   : > { %v2291_v40 = vunpack.c.l.b16 %v1676_v35 }
 0x29d   : > { %v2400_v41 = vunpack.c.l.b16 %v1684_v39 }
 0x29e   : > { %v9261_v42 = vpack.c.b16 %v2291_v40, %v2290_v34 }
 0x29f   : > { %v9263_v43 = vpack.c.b16 %v2400_v41, %v2399_v36 }
 0x2a0   : > { %7437 = vmatmul.msk.bf16.gmra.mxu2 %vm2107_vm5, %v9261_v42 }
 0x2a1   : > { %7465 = vmatmul.msk.bf16.gmra.mxu3 %vm2107_vm5, %v9263_v43  ;;  %v9269_v46 = vpop.f32.mrf.mxu0  ;;  %v9273_v48 = vpop.f32.mrf.mxu2 }
 0x2a2   : > { %11659 = vst [vmem:[#allocation14_spill] sm:$0xff] %v9269_v46  ;;  %v9271_v47 = vpop.f32.mrf.mxu1  ;;  %v9275_v49 = vpop.f32.mrf.mxu3 }
 0x2a3   : > { %11660 = vst [vmem:[#allocation15_spill] sm:$0xff] %v9271_v47 }
 0x2a4   : > { %11661 = vst [vmem:[#allocation16_spill] sm:$0xff] %v9273_v48 }
 0x2a5   : > { %11662 = vst [vmem:[#allocation17_spill] sm:$0xff] %v9275_v49 }
 0x2a9   : > { %v9279_v51 = vpop.f32.mrf.mxu0  ;;  %v9281_v52 = vpop.f32.mrf.mxu2 }
 0x2aa   : > { %v9277_v50 = vpop.f32.mrf.mxu1  ;;  %11664 = vst [vmem:[#allocation19_spill] sm:$0xff] %v9279_v51  ;;  %v9283_v53 = vpop.f32.mrf.mxu3 }
 0x2ab   : > { %11663 = vst [vmem:[#allocation18_spill] sm:$0xff] %v9277_v50 }
 0x2ac   : > { %11665 = vst [vmem:[#allocation20_spill] sm:$0xff] %v9281_v52 }
 0x2ad   : > { %11666 = vst [vmem:[#allocation21_spill] sm:$0xff] %v9283_v53 }
 0x2b1   : > { %v9287_v55 = vpop.f32.mrf.mxu0  ;;  %v9289_v56 = vpop.f32.mrf.mxu2 }
 0x2b2   : > { %v9285_v54 = vpop.f32.mrf.mxu1  ;;  %11668 = vst [vmem:[#allocation23_spill] sm:$0xff] %v9287_v55  ;;  %v9291_v57 = vpop.f32.mrf.mxu3 }
 0x2b3   : > { %11667 = vst [vmem:[#allocation22_spill] sm:$0xff] %v9285_v54 }
 0x2b4   : > { %11669 = vst [vmem:[#allocation24_spill] sm:$0xff] %v9289_v56 }
 0x2b5   : > { %11670 = vst [vmem:[#allocation25_spill] sm:$0xff] %v9291_v57 }
 0x2b9   : > { %v9295_v59 = vpop.f32.mrf.mxu0  ;;  %v9297_v62 = vpop.f32.mrf.mxu2 }
 0x2ba   : > { %v9293_v58 = vpop.f32.mrf.mxu1  ;;  %11672 = vst [vmem:[#allocation27_spill] sm:$0xff] %v9295_v59  ;;  %v9299_v63 = vpop.f32.mrf.mxu3 }
 0x2bb   : > { %11671 = vst [vmem:[#allocation26_spill] sm:$0xff] %v9293_v58 }
 0x2bc   : > { %11673 = vst [vmem:[#allocation28_spill] sm:$0xff] %v9297_v62 }
 0x2bd   : > { %11674 = vst [vmem:[#allocation29_spill] sm:$0xff] %v9299_v63 }
 0x2c1   : > { %v9303_v1 = vpop.f32.mrf.mxu0  ;;  %v9305_v2 = vpop.f32.mrf.mxu2 }
 0x2c2   : > { %v9301_v0 = vpop.f32.mrf.mxu1  ;;  %11676 = vst [vmem:[#allocation31_spill] sm:$0xff] %v9303_v1  ;;  %v9307_v5 = vpop.f32.mrf.mxu3 }
 0x2c3   : > { %11675 = vst [vmem:[#allocation30_spill] sm:$0xff] %v9301_v0 }
 0x2c4   : > { %11677 = vst [vmem:[#allocation32_spill] sm:$0xff] %v9305_v2 }
 0x2c5   : > { %11678 = vst [vmem:[#allocation33_spill] sm:$0xff] %v9307_v5 }
 0x2c9   : > { %v9311_v7 = vpop.f32.mrf.mxu0  ;;  %v9313_v8 = vpop.f32.mrf.mxu2 }
 0x2ca   : > { %v9309_v6 = vpop.f32.mrf.mxu1  ;;  %11680 = vst [vmem:[#allocation35_spill] sm:$0xff] %v9313_v8  ;;  %v9315_v9 = vpop.f32.mrf.mxu3 }
 0x2cb   : > { %11679 = vst [vmem:[#allocation34_spill] sm:$0xff] %v9309_v6 }
 0x2cc   : > { %11681 = vst [vmem:[#allocation36_spill] sm:$0xff] %v9315_v9 }
 0x2d1   : > { %v9319_v13 = vpop.f32.mrf.mxu0  ;;  %v9321_v14 = vpop.f32.mrf.mxu2 }
 0x2d2   : > { %v9317_v12 = vpop.f32.mrf.mxu1  ;;  %11683 = vst [vmem:[#allocation38_spill] sm:$0xff] %v9321_v14  ;;  %v9323_v15 = vpop.f32.mrf.mxu3 }
 0x2d3   : > { %11682 = vst [vmem:[#allocation37_spill] sm:$0xff] %v9317_v12 }
 0x2d4   : > { %11684 = vst [vmem:[#allocation39_spill] sm:$0xff] %v9323_v15 }
 0x2d9   : > { %v9333_v22 = vpop.f32.mrf.mxu2 }
 0x2da   : > { %11685 = vst [vmem:[#allocation40_spill] sm:$0xff] %v9333_v22  ;;  %v9335_v23 = vpop.f32.mrf.mxu3 }
 0x2db   : > { %11686 = vst [vmem:[#allocation41_spill] sm:$0xff] %v9335_v23 }
 0x2e5   : > { %v9325_v18 = vpop.f32.mrf.mxu0 }
 0x2e6   : > { %v9327_v19 = vpop.f32.mrf.mxu1  ;;  %v2495_v21 = vsel %vm2494_vm6, %v9325_v18, -inf }
 0x2e7   : > { %v2519_v20 = vsel %vm2494_vm6, %v9327_v19, -inf  ;;  %2496 = vmax.xlane.f32.xlu0 %v2495_v21 }
 0x2e8   : > { %2520 = vmax.xlane.f32.xlu2 %v2519_v20 }
 0x2ed   : > { %v9337_v24 = vpop.f32.mrf.mxu0 }
 0x2ee   : > { %v9339_v25 = vpop.f32.mrf.mxu1  ;;  %v2498_v26 = vsel %vm2494_vm6, %v9337_v24, -inf }
 0x2ef   : > { %2499 = vmax.xlane.f32.xlu0 %v2498_v26  ;;  %v2522_v36 = vsel %vm2494_vm6, %v9339_v25, -inf }
 0x2f3   : > { %v9343_v27 = vpop.f32.mrf.mxu2 }
 0x2f4   : > { %v2543_v30 = vsel %vm2494_vm6, %v9343_v27, -inf  ;;  %v9347_v31 = vpop.f32.mrf.mxu3 }
 0x2f5   : > { %2544 = vmax.xlane.f32.xlu1 %v2543_v30  ;;  %v9349_v34 = vpop.f32.mrf.mxu0  ;;  %v2567_v26 = vsel %vm2494_vm6, %v9347_v31, -inf }
 0x2f6   : > { %v9351_v35 = vpop.f32.mrf.mxu1  ;;  %v2501_v41 = vsel %vm2494_vm6, %v9349_v34, -inf }
 0x2f7   : > { %2523 = vmax.xlane.f32.xlu0 %v2522_v36  ;;  %v2525_v49 = vsel %vm2494_vm6, %v9351_v35, -inf }
 0x2fb   : > { %v9355_v39 = vpop.f32.mrf.mxu2 }
 0x2fc   : > { %v2546_v40 = vsel %vm2494_vm6, %v9355_v39, -inf  ;;  %v9363_v21 = vpop.f32.mrf.mxu3 }
 0x2fd   : > { %2547 = vmax.xlane.f32.xlu2 %v2546_v40  ;;  %2502 = vmax.xlane.f32.xlu1 %v2501_v41  ;;  %v9361_v20 = vpop.f32.mrf.mxu0  ;;  %v2570_v9 = vsel %vm2494_vm6, %v9363_v21, -inf }
 0x2fe   : > { %v9367_v30 = vpop.f32.mrf.mxu1  ;;  %v2504_v52 = vsel %vm2494_vm6, %v9361_v20, -inf }
 0x2ff   : > { %2568 = vmax.xlane.f32.xlu0 %v2567_v26  ;;  %v2528_v53 = vsel %vm2494_vm6, %v9367_v30, -inf }
 0x303   : > { %v9369_v36 = vpop.f32.mrf.mxu2 }
 0x304   : > { %v2549_v40 = vsel %vm2494_vm6, %v9369_v36, -inf  ;;  %v9379_v63 = vpop.f32.mrf.mxu3 }
 0x305   : > { %2529 = vmax.xlane.f32.xlu2 %v2528_v53  ;;  %2526 = vmax.xlane.f32.xlu1 %v2525_v49  ;;  %v9377_v41 = vpop.f32.mrf.mxu0  ;;  %v2573_v26 = vsel %vm2494_vm6, %v9379_v63, -inf }
 0x306   : > { %v9383_v57 = vpop.f32.mrf.mxu1  ;;  %v2507_v48 = vsel %vm2494_vm6, %v9377_v41, -inf }
 0x307   : > { %2550 = vmax.xlane.f32.xlu0 %v2549_v40  ;;  %v2531_v49 = vsel %vm2494_vm6, %v9383_v57, -inf }
 0x30b   : > { %v9389_v53 = vpop.f32.mrf.mxu2 }
 0x30c   : > { %v9393_v40 = vpop.f32.mrf.mxu3  ;;  %v2552_v15 = vsel %vm2494_vm6, %v9389_v53, -inf }
 0x30d   : > { %2574 = vmax.xlane.f32.xlu2 %v2573_v26  ;;  %2571 = vmax.xlane.f32.xlu1 %v2570_v9  ;;  %v9391_v5 = vpop.f32.mrf.mxu0  ;;  %v2576_v9 = vsel %vm2494_vm6, %v9393_v40, -inf }
 0x30e   : > { %v9401_v26 = vpop.f32.mrf.mxu1  ;;  %v2510_v62 = vsel %vm2494_vm6, %v9391_v5, -inf }
 0x30f   : > { %2532 = vmax.xlane.f32.xlu0 %v2531_v49  ;;  %v2534_v8 = vsel %vm2494_vm6, %v9401_v26, -inf }
 0x313   : > { %v9403_v23 = vpop.f32.mrf.mxu2 }
 0x314   : > { %v9415_v56 = vpop.f32.mrf.mxu3  ;;  %v2555_v2 = vsel %vm2494_vm6, %v9403_v23, -inf }
 0x315   : > { %2505 = vmax.xlane.f32.xlu1 %v2504_v52  ;;  %2508 = vmax.xlane.f32.xlu2 %v2507_v48  ;;  %v9405_v49 = vpop.f32.mrf.mxu0 }
 0x316   : > { %v2513_v48 = vsel %vm2494_vm6, %v9405_v49, -inf  ;;  %v9413_v52 = vpop.f32.mrf.mxu1 }
 0x317   : > { %2577 = vmax.xlane.f32.xlu0 %v2576_v9  ;;  %v2537_v14 = vsel %vm2494_vm6, %v9413_v52, -inf }
 0x31b   : > { %v9417_v9 = vpop.f32.mrf.mxu2 }
 0x31c   : > { %v9429_v22 = vpop.f32.mrf.mxu3 }
 0x31d   : > { %2553 = vmax.xlane.f32.xlu1 %v2552_v15  ;;  %2511 = vmax.xlane.f32.xlu2 %v2510_v62  ;;  %v2558_v62 = vsel %vm2494_vm6, %v9417_v9, -inf  ;;  %v2579_v15 = vsel %vm2494_vm6, %v9415_v56, -inf  ;;  %v2582_v38 = vsel %vm2494_vm6, %v9429_v22, -inf }
 0x31f   : > { %2514 = vmax.xlane.f32.xlu0 %v2513_v48  ;;  %v9427_v48 = vpop.f32.mrf.mxu1 }
 0x323   : > { %v9433_v47 = vpop.f32.mrf.mxu2 }
 0x324   : > { %v2561_v50 = vsel %vm2494_vm6, %v9433_v47, -inf }
 0x325   : > { %2535 = vmax.xlane.f32.xlu1 %v2534_v8  ;;  %2556 = vmax.xlane.f32.xlu2 %v2555_v2  ;;  %v2540_v2 = vsel %vm2494_vm6, %v9427_v48, -inf  ;;  %v9437_v8 = vpop.f32.mrf.mxu0 }
 0x326   : > { %v2516_v54 = vsel %vm2494_vm6, %v9437_v8, -inf }
 0x327   : > { %2559 = vmax.xlane.f32.xlu0 %v2558_v62  ;;  %v9439_v62 = vpop.f32.mrf.mxu3 }
 0x32d   : > { %2580 = vmax.xlane.f32.xlu1 %v2579_v15  ;;  %2538 = vmax.xlane.f32.xlu2 %v2537_v14  ;;  %v2585_v14 = vsel %vm2494_vm6, %v9439_v62, -inf  ;;  %v9447_v15 = vpop.f32.mrf.mxu2 }
 0x32f   : > { %2541 = vmax.xlane.f32.xlu0 %v2540_v2  ;;  %v2564_v2 = vsel %vm2494_vm6, %v9447_v15, -inf  ;;  %v9453_v0 = vpop.f32.mrf.mxu3 }
 0x335   : > { %2583 = vmax.xlane.f32.xlu2 %v2582_v38  ;;  %2517 = vmax.xlane.f32.xlu1 %v2516_v54  ;;  %v2588_v38 = vsel %vm2494_vm6, %v9453_v0, -inf }
 0x337   : > { %2586 = vmax.xlane.f32.xlu0 %v2585_v14 }
 0x33d   : > { %2565 = vmax.xlane.f32.xlu2 %v2564_v2  ;;  %2562 = vmax.xlane.f32.xlu1 %v2561_v50 }
 0x345   : > { %2589 = vmax.xlane.f32.xlu1 %v2588_v38 }
 0x35a   : > { %v2497_v58 = vpop.xlane.xlu0 %2496 }
 0x35b   : > { %v2521_v54 = vpop.xlane.xlu2 %2520  ;;  %v2591_v46 = vsub.f32 %v9325_v18, %v2497_v58 }
 0x35c   : > { %v2599_v14 = vsub.f32 %v9327_v19, %v2521_v54 }
 0x35d   : > { %v2623_v12 = vmul.f32 1.442695, %v2591_v46 }
 0x35e   : > { %v2639_v37 = vmul.f32 1.442695, %v2599_v14 }
 0x360   : > { %7873 = vpow2.f32 %v2639_v37 }
 0x361   : > { %7875 = vpow2.f32 %v2623_v12 }
 0x362   : > { %v2500_v6 = vpop.xlane.xlu0 %2499 }
 0x363   : > { %v2592_v2 = vsub.f32 %v9337_v24, %v2500_v6 }
 0x365   : > { %v2625_v55 = vmul.f32 1.442695, %v2592_v2 }
 0x366   : > { %v9460_v50 = vpop.eup %7873 }
 0x367   : > { %v9462_v51 = vpop.eup %7875  ;;  %v2711_v38 = vsel %vm2494_vm6, %v9460_v50, 0.0  ;;  %7877 = vpow2.f32 %v2625_v55 }
 0x368   : > { %v2545_v1 = vpop.xlane.xlu1 %2544  ;;  %v2687_v58 = vsel %vm2494_vm6, %v9462_v51, 0.0  ;;  %2712 = vadd.xlane.f32.xlu1 %v2711_v38 }
 0x369   : > { %v2607_v37 = vsub.f32 %v9343_v27, %v2545_v1  ;;  %2688 = vadd.xlane.f32.xlu2 %v2687_v58 }
 0x36a   : > { %v2524_v12 = vpop.xlane.xlu0 %2523 }
 0x36b   : > { %v2655_v46 = vmul.f32 1.442695, %v2607_v37  ;;  %v2600_v6 = vsub.f32 %v9339_v25, %v2524_v12 }
 0x36d   : > { %v9470_v18 = vpop.eup %7877  ;;  %7879 = vpow2.f32 %v2655_v46  ;;  %v2641_v19 = vmul.f32 1.442695, %v2600_v6 }
 0x36e   : > { %v2690_v24 = vsel %vm2494_vm6, %v9470_v18, 0.0 }
 0x36f   : > { %7881 = vpow2.f32 %v2641_v19  ;;  %2691 = vadd.xlane.f32.xlu0 %v2690_v24 }
 0x370   : > { %v2548_v55 = vpop.xlane.xlu2 %2547  ;;  %v2503_v54 = vpop.xlane.xlu1 %2502 }
 0x371   : > { %v2593_v14 = vsub.f32 %v9349_v34, %v2503_v54  ;;  %v2608_v38 = vsub.f32 %v9355_v39, %v2548_v55 }
 0x372   : > { %v2569_v1 = vpop.xlane.xlu0 %2568 }
 0x373   : > { %v2627_v2 = vmul.f32 1.442695, %v2593_v14  ;;  %v9475_v27 = vpop.eup %7879  ;;  %v2615_v25 = vsub.f32 %v9347_v31, %v2569_v1  ;;  %v2657_v6 = vmul.f32 1.442695, %v2608_v38 }
 0x374   : > { %v2735_v12 = vsel %vm2494_vm6, %v9475_v27, 0.0 }
 0x375   : > { %v9479_v58 = vpop.eup %7881  ;;  %7883 = vpow2.f32 %v2627_v2  ;;  %v2671_v37 = vmul.f32 1.442695, %v2615_v25 }
 0x376   : > { %v2714_v46 = vsel %vm2494_vm6, %v9479_v58, 0.0 }
 0x377   : > { %7885 = vpow2.f32 %v2671_v37  ;;  %2715 = vadd.xlane.f32.xlu2 %v2714_v46  ;;  %2736 = vadd.xlane.f32.xlu0 %v2735_v12 }
 0x378   : > { %v2530_v34 = vpop.xlane.xlu2 %2529  ;;  %v2527_v19 = vpop.xlane.xlu1 %2526  ;;  %7887 = vpow2.f32 %v2657_v6 }
 0x379   : > { %v2601_v39 = vsub.f32 %v9351_v35, %v2527_v19  ;;  %v2602_v54 = vsub.f32 %v9367_v30, %v2530_v34 }
 0x37a   : > { %v2551_v31 = vpop.xlane.xlu0 %2550 }
 0x37b   : > { %v2643_v24 = vmul.f32 1.442695, %v2601_v39  ;;  %v9486_v55 = vpop.eup %7883  ;;  %v2645_v38 = vmul.f32 1.442695, %v2602_v54 }
 0x37c   : > { %v2693_v14 = vsel %vm2494_vm6, %v9486_v55, 0.0 }
 0x37d   : > { %v9491_v2 = vpop.eup %7885  ;;  %7889 = vpow2.f32 %v2643_v24  ;;  %2694 = vadd.xlane.f32.xlu1 %v2693_v14 }
 0x37e   : > { %v2759_v1 = vsel %vm2494_vm6, %v9491_v2, 0.0  ;;  %v9496_v46 = vpop.eup %7887  ;;  %7891 = vpow2.f32 %v2645_v38 }
 0x37f   : > { %2760 = vadd.xlane.f32.xlu2 %v2759_v1  ;;  %v2738_v39 = vsel %vm2494_vm6, %v9496_v46, 0.0 }
 0x380   : > { %v2575_v25 = vpop.xlane.xlu2 %2574  ;;  %v2572_v35 = vpop.xlane.xlu1 %2571 }
 0x381   : > { %v2616_v37 = vsub.f32 %v9363_v21, %v2572_v35  ;;  %v2617_v6 = vsub.f32 %v9379_v63, %v2575_v25  ;;  %v2609_v63 = vsub.f32 %v9369_v36, %v2551_v31 }
 0x382   : > { %v2533_v34 = vpop.xlane.xlu0 %2532 }
 0x383   : > { %v2673_v12 = vmul.f32 1.442695, %v2616_v37  ;;  %v9498_v30 = vpop.eup %7889  ;;  %v2675_v24 = vmul.f32 1.442695, %v2617_v6 }
 0x384   : > { %v2717_v19 = vsel %vm2494_vm6, %v9498_v30, 0.0  ;;  %v9507_v38 = vpop.eup %7891 }
 0x385   : > { %7893 = vpow2.f32 %v2673_v12  ;;  %2718 = vadd.xlane.f32.xlu0 %v2717_v19  ;;  %2739 = vadd.xlane.f32.xlu1 %v2738_v39  ;;  %v2720_v6 = vsel %vm2494_vm6, %v9507_v38, 0.0 }
 0x386   : > { %7895 = vpow2.f32 %v2675_v24 }
 0x388   : > { %v2506_v21 = vpop.xlane.xlu1 %2505  ;;  %v2509_v54 = vpop.xlane.xlu2 %2508 }
 0x389   : > { %v2594_v14 = vsub.f32 %v9361_v20, %v2506_v21  ;;  %v2595_v1 = vsub.f32 %v9377_v41, %v2509_v54  ;;  %v2659_v20 = vmul.f32 1.442695, %v2609_v63  ;;  %v2603_v54 = vsub.f32 %v9383_v57, %v2533_v34 }
 0x38a   : > { %v2578_v41 = vpop.xlane.xlu0 %2577 }
 0x38b   : > { %v2629_v25 = vmul.f32 1.442695, %v2594_v14  ;;  %v2631_v35 = vmul.f32 1.442695, %v2595_v1  ;;  %v9510_v37 = vpop.eup %7893 }
 0x38c   : > { %v2762_v12 = vsel %vm2494_vm6, %v9510_v37, 0.0  ;;  %v9518_v21 = vpop.eup %7895 }
 0x38d   : > { %7897 = vpow2.f32 %v2629_v25  ;;  %2763 = vadd.xlane.f32.xlu0 %v2762_v12  ;;  %2721 = vadd.xlane.f32.xlu1 %v2720_v6 }
 0x38e   : > { %7899 = vpow2.f32 %v2631_v35  ;;  %v2647_v35 = vmul.f32 1.442695, %v2603_v54 }
 0x38f   : > { %7901 = vpow2.f32 %v2659_v20 }
 0x390   : > { %v2554_v19 = vpop.xlane.xlu1 %2553  ;;  %v2512_v39 = vpop.xlane.xlu2 %2511 }
 0x391   : > { %v2610_v36 = vsub.f32 %v9389_v53, %v2554_v19  ;;  %v2596_v31 = vsub.f32 %v9391_v5, %v2512_v39  ;;  %v2765_v5 = vsel %vm2494_vm6, %v9518_v21, 0.0 }
 0x392   : > { %v2515_v19 = vpop.xlane.xlu0 %2514 }
 0x393   : > { %v9520_v24 = vpop.eup %7897  ;;  %v2661_v14 = vmul.f32 1.442695, %v2610_v36  ;;  %v2633_v1 = vmul.f32 1.442695, %v2596_v31  ;;  %v2618_v36 = vsub.f32 %v9393_v40, %v2578_v41 }
 0x394   : > { %v9523_v25 = vpop.eup %7899  ;;  %v2696_v63 = vsel %vm2494_vm6, %v9520_v24, 0.0 }
 0x395   : > { %7903 = vpow2.f32 %v2661_v14  ;;  %2697 = vadd.xlane.f32.xlu2 %v2696_v63  ;;  %v2699_v53 = vsel %vm2494_vm6, %v9523_v25, 0.0  ;;  %2766 = vadd.xlane.f32.xlu1 %v2765_v5  ;;  %v9531_v12 = vpop.eup %7901 }
 0x396   : > { %7905 = vpow2.f32 %v2633_v1  ;;  %2700 = vadd.xlane.f32.xlu0 %v2699_v53  ;;  %v2741_v54 = vsel %vm2494_vm6, %v9531_v12, 0.0 }
 0x397   : > { %7907 = vpow2.f32 %v2647_v35 }
 0x398   : > { %v2536_v57 = vpop.xlane.xlu1 %2535  ;;  %v2557_v34 = vpop.xlane.xlu2 %2556 }
 0x399   : > { %v2604_v6 = vsub.f32 %v9401_v26, %v2536_v57  ;;  %v2611_v20 = vsub.f32 %v9403_v23, %v2557_v34  ;;  %v2677_v26 = vmul.f32 1.442695, %v2618_v36  ;;  %v2597_v34 = vsub.f32 %v9405_v49, %v2515_v19 }
 0x39b   : > { %v9535_v39 = vpop.eup %7903  ;;  %v2649_v31 = vmul.f32 1.442695, %v2604_v6  ;;  %v2663_v14 = vmul.f32 1.442695, %v2611_v20  ;;  %v2635_v49 = vmul.f32 1.442695, %v2597_v34 }
 0x39c   : > { %v9538_v1 = vpop.eup %7905  ;;  %v2744_v63 = vsel %vm2494_vm6, %v9535_v39, 0.0 }
 0x39d   : > { %7909 = vpow2.f32 %v2649_v31  ;;  %2742 = vadd.xlane.f32.xlu2 %v2741_v54  ;;  %v2702_v23 = vsel %vm2494_vm6, %v9538_v1, 0.0  ;;  %v9546_v53 = vpop.eup %7907 }
 0x39e   : > { %7911 = vpow2.f32 %v2663_v14  ;;  %2745 = vadd.xlane.f32.xlu0 %v2744_v63  ;;  %2703 = vadd.xlane.f32.xlu1 %v2702_v23  ;;  %v2560_v14 = vpop.xlane.xlu0 %2559  ;;  %v2723_v36 = vsel %vm2494_vm6, %v9546_v53, 0.0 }
 0x39f   : > { %7913 = vpow2.f32 %v2677_v26 }
 0x3a0   : > { %v2581_v40 = vpop.xlane.xlu1 %2580  ;;  %v2539_v41 = vpop.xlane.xlu2 %2538 }
 0x3a1   : > { %v2619_v5 = vsub.f32 %v9415_v56, %v2581_v40  ;;  %v2605_v35 = vsub.f32 %v9413_v52, %v2539_v41  ;;  %v2612_v40 = vsub.f32 %v9417_v9, %v2560_v14  ;;  %v7795_v14 = vld [vmem:[#allocation3 + $0x20] sm:$0xff] }
 0x3a3   : > { %v9550_v57 = vpop.eup %7909  ;;  %v2679_v6 = vmul.f32 1.442695, %v2619_v5  ;;  %v2651_v20 = vmul.f32 1.442695, %v2605_v35  ;;  %v2665_v9 = vmul.f32 1.442695, %v2612_v40 }
 0x3a4   : > { %v9553_v31 = vpop.eup %7911  ;;  %v2726_v54 = vsel %vm2494_vm6, %v9550_v57, 0.0 }
 0x3a5   : > { %7915 = vpow2.f32 %v2679_v6  ;;  %2724 = vadd.xlane.f32.xlu2 %v2723_v36  ;;  %v2747_v56 = vsel %vm2494_vm6, %v9553_v31, 0.0  ;;  %v9561_v63 = vpop.eup %7913 }
 0x3a6   : > { %7917 = vpow2.f32 %v2651_v20  ;;  %2727 = vadd.xlane.f32.xlu0 %v2726_v54  ;;  %2748 = vadd.xlane.f32.xlu1 %v2747_v56  ;;  %v2768_v35 = vsel %vm2494_vm6, %v9561_v63, 0.0  ;;  %v7796_v20 = vld [vmem:[#allocation3 + $0x28] sm:$0xff]  ;;  %v2542_v36 = vpop.xlane.xlu0 %2541 }
 0x3a7   : > { %7919 = vpow2.f32 %v2635_v49  ;;  %2949 = vmatpush.bf16.msrb.mxu0 %v7796_v20 }
 0x3a8   : > { %v2584_v52 = vpop.xlane.xlu2 %2583  ;;  %v2518_v19 = vpop.xlane.xlu1 %2517 }
 0x3a9   : > { %v2598_v23 = vsub.f32 %v9437_v8, %v2518_v19  ;;  %v7802_v8 = vld [vmem:[#allocation3 + $0x58] sm:$0xff]  ;;  %v2620_v59 = vsub.f32 %v9429_v22, %v2584_v52 }
 0x3aa   : > { %3046 = vmatpush.bf16.msrb.mxu1 %v7802_v8 }
 0x3ab   : > { %v9564_v26 = vpop.eup %7915  ;;  %v2637_v41 = vmul.f32 1.442695, %v2598_v23  ;;  %2950 = vmatpush.bf16.msrb.mxu0 %v7795_v14 }
 0x3ac   : > { %v9567_v5 = vpop.eup %7917  ;;  %v2771_v34 = vsel %vm2494_vm6, %v9564_v26, 0.0 }
 0x3ad   : > { %2769 = vadd.xlane.f32.xlu2 %v2768_v35  ;;  %v2729_v6 = vsel %vm2494_vm6, %v9567_v5, 0.0  ;;  %7921 = vpow2.f32 %v2637_v41  ;;  %v9575_v49 = vpop.eup %7919  ;;  %v2606_v35 = vsub.f32 %v9427_v48, %v2542_v36 }
 0x3ae   : > { %2772 = vadd.xlane.f32.xlu0 %v2771_v34  ;;  %2730 = vadd.xlane.f32.xlu1 %v2729_v6  ;;  %7923 = vpow2.f32 %v2665_v9  ;;  %v2705_v6 = vsel %vm2494_vm6, %v9575_v49, 0.0  ;;  %v2587_v48 = vpop.xlane.xlu0 %2586 }
 0x3af   : > { %v2653_v20 = vmul.f32 1.442695, %v2606_v35  ;;  %v2621_v9 = vsub.f32 %v9439_v62, %v2587_v48 }
 0x3b0   : > { %v2566_v54 = vpop.xlane.xlu2 %2565  ;;  %v2563_v56 = vpop.xlane.xlu1 %2562 }
 0x3b1   : > { %v2614_v19 = vsub.f32 %v9447_v15, %v2566_v54  ;;  %v2613_v23 = vsub.f32 %v9433_v47, %v2563_v56  ;;  %v2681_v47 = vmul.f32 1.442695, %v2620_v59 }
 0x3b3   : > { %v2669_v41 = vmul.f32 1.442695, %v2614_v19  ;;  %v2667_v34 = vmul.f32 1.442695, %v2613_v23  ;;  %v9581_v40 = vpop.eup %7921  ;;  %v2683_v19 = vmul.f32 1.442695, %v2621_v9 }
 0x3b4   : > { %v2708_v15 = vsel %vm2494_vm6, %v9581_v40, 0.0  ;;  %v9587_v22 = vpop.eup %7923 }
 0x3b5   : > { %7925 = vpow2.f32 %v2669_v41  ;;  %2706 = vadd.xlane.f32.xlu2 %v2705_v6  ;;  %v2750_v56 = vsel %vm2494_vm6, %v9587_v22, 0.0  ;;  %v7794_v41 = vld [vmem:[#allocation3 + $0x18] sm:$0xff] }
 0x3b6   : > { %7927 = vpow2.f32 %v2667_v34  ;;  %2709 = vadd.xlane.f32.xlu0 %v2708_v15  ;;  %2951 = vmatpush.bf16.msrb.mxu0 %v7794_v41  ;;  %v7807_v41 = vld [vmem:[#allocation3 + $0x80] sm:$0xff] }
 0x3b7   : > { %7929 = vpow2.f32 %v2653_v20  ;;  %v7801_v20 = vld [vmem:[#allocation3 + $0x50] sm:$0xff] }
 0x3b8   : > { %v2590_v8 = vpop.xlane.xlu1 %2589  ;;  %7931 = vpow2.f32 %v2681_v47  ;;  %v7793_v47 = vld [vmem:[#allocation3 + $0x10] sm:$0xff]  ;;  %3047 = vmatpush.bf16.msrb.mxu1 %v7801_v20  ;;  %v7816_v20 = vld [vmem:[%s11532_s6 + $0x8] sm:$0xff] }
 0x3b9   : > { %v2622_v52 = vsub.f32 %v9453_v0, %v2590_v8  ;;  %v7792_v8 = vld [vmem:[#allocation3 + $0x8] sm:$0xff] }
 0x3ba   : > { %2952 = vmatpush.bf16.msrb.mxu0 %v7793_v47 }
 0x3bb   : > { %v9590_v36 = vpop.eup %7925  ;;  %v2685_v14 = vmul.f32 1.442695, %v2622_v52  ;;  %v7800_v52 = vld [vmem:[#allocation3 + $0x48] sm:$0xff] }
 0x3bc   : > { %v9593_v54 = vpop.eup %7927  ;;  %v2756_v59 = vsel %vm2494_vm6, %v9590_v36, 0.0  ;;  %3048 = vmatpush.bf16.msrb.mxu1 %v7800_v52  ;;  %v7813_v52 = vld [vmem:[#allocation3 + $0xb0] sm:$0xff] }
 0x3bd   : > { %7933 = vpow2.f32 %v2685_v14  ;;  %2751 = vadd.xlane.f32.xlu2 %v2750_v56  ;;  %2757 = vadd.xlane.f32.xlu1 %v2756_v59  ;;  %v2753_v0 = vsel %vm2494_vm6, %v9593_v54, 0.0  ;;  %v9601_v23 = vpop.eup %7929  ;;  %v7808_v14 = vld [vmem:[#allocation3 + $0x88] sm:$0xff]  ;;  %v7791_v56 = vld [vmem:[#allocation3] sm:$0xff] }
 0x3be   : > { %2754 = vadd.xlane.f32.xlu0 %v2753_v0  ;;  %v9603_v62 = vpop.eup %7931  ;;  %7935 = vpow2.f32 %v2683_v19  ;;  %v2732_v34 = vsel %vm2494_vm6, %v9601_v23, 0.0  ;;  %2953 = vmatpush.bf16.msrb.mxu0 %v7792_v8  ;;  %v7799_v59 = vld [vmem:[#allocation3 + $0x40] sm:$0xff]  ;;  %v7798_v19 = vld [vmem:[#allocation3 + $0x38] sm:$0xff]  ;;  %v7805_v8 = vld [vmem:[#allocation3 + $0x70] sm:$0xff] }
 0x3bf   : > { %v2774_v6 = vsel %vm2494_vm6, %v9603_v62, 0.0  ;;  %3143 = vmatpush.bf16.msrb.mxu2 %v7808_v14  ;;  %v7815_v0 = vld [vmem:[%s11532_s6] sm:$0xff]  ;;  %v7812_v14 = vld [vmem:[#allocation3 + $0xa8] sm:$0xff] }
 0x3c0   : > { %3049 = vmatpush.bf16.msrb.mxu1 %v7799_v59 }
 0x3c2   : > { %2954 = vmatpush.bf16.msrb.mxu0 %v7791_v56 }
 0x3c3   : > { %v9605_v35 = vpop.eup %7933  ;;  %3144 = vmatpush.bf16.msrb.mxu2 %v7807_v41  ;;  %v7811_v41 = vld [vmem:[#allocation3 + $0xa0] sm:$0xff] }
 0x3c4   : > { %v2780_v15 = vsel %vm2494_vm6, %v9605_v35, 0.0  ;;  %v9613_v48 = vpop.eup %7935  ;;  %3050 = vmatpush.bf16.msrb.mxu1 %v7798_v19  ;;  %v7803_v19 = vld [vmem:[#allocation3 + $0x60] sm:$0xff] }
 0x3c5   : > { %2733 = vadd.xlane.f32.xlu2 %v2732_v34  ;;  %2775 = vadd.xlane.f32.xlu1 %v2774_v6  ;;  %v2777_v9 = vsel %vm2494_vm6, %v9613_v48, 0.0  ;;  %v7814_v34 = vld [vmem:[#allocation3 + $0xb8] sm:$0xff]  ;;  %v7797_v6 = vld [vmem:[#allocation3 + $0x30] sm:$0xff] }
 0x3c6   : > { %2781 = vadd.xlane.f32.xlu0 %v2780_v15  ;;  %3352 = vmatpush.bf16.msra.mxu0 %v7815_v0  ;;  %v7806_v15 = vld [vmem:[#allocation3 + $0x78] sm:$0xff] }
 0x3c7   : > { %3240 = vmatpush.bf16.msrb.mxu3 %v7814_v34  ;;  %3145 = vmatpush.bf16.msrb.mxu2 %v7806_v15  ;;  %v7810_v15 = vld [vmem:[#allocation3 + $0x98] sm:$0xff] }
 0x3c8   : > { %3051 = vmatpush.bf16.msrb.mxu1 %v7797_v6  ;;  %v7817_v6 = vld [vmem:[%s11532_s6 + $0x10] sm:$0xff] }
 0x3cb   : > { %3146 = vmatpush.bf16.msrb.mxu2 %v7805_v8  ;;  %3241 = vmatpush.bf16.msrb.mxu3 %v7813_v52 }
 0x3cc   : > { %3419 = vmatpush.bf16.msra.mxu1 %v7816_v20 }
 0x3cd   : > { %2778 = vadd.xlane.f32.xlu2 %v2777_v9  ;;  %v7804_v9 = vld [vmem:[#allocation3 + $0x68] sm:$0xff] }
 0x3cf   : > { %3147 = vmatpush.bf16.msrb.mxu2 %v7804_v9  ;;  %3242 = vmatpush.bf16.msrb.mxu3 %v7812_v14 }
 0x3d3   : > { %3148 = vmatpush.bf16.msrb.mxu2 %v7803_v19  ;;  %3243 = vmatpush.bf16.msrb.mxu3 %v7811_v41 }
 0x3d7   : > { %3486 = vmatpush.bf16.msra.mxu2 %v7817_v6  ;;  %3244 = vmatpush.bf16.msrb.mxu3 %v7810_v15 }
 0x3db   : > { %v2713_v56 = vpop.xlane.xlu1 %2712 }
 0x3dc   : > { %v2689_v47 = vpop.xlane.xlu2 %2688 }
 0x3dd   : > { %7937 = vrcp.f32 %v2689_v47 }
 0x3e2   : > { %v2692_v59 = vpop.xlane.xlu0 %2691 }
 0x3e3   : > { %v7938_v0 = vpop.eup %7937  ;;  %7939 = vrcp.f32 %v2692_v59 }
 0x3e4   : > { %7941 = vrcp.f32 %v2713_v56  ;;  %v2815_v34 = vmul.f32 %v7938_v0, %v9462_v51  ;;  %v7809_v56 = vld [vmem:[#allocation3 + $0x90] sm:$0xff]  ;;  %v7818_v0 = vld [vmem:[%s11532_s6 + $0x18] sm:$0xff] }
 0x3e5   : > { %3245 = vmatpush.bf16.msrb.mxu3 %v7809_v56 }
 0x3e6   : > { %v2847_v47 = vpack.c.bf16 %v2815_v34, %v2815_v34 }
 0x3e8   : > { %v2887_v59 = vunpack.c.l.b16 %v2847_v47  ;;  %v2118_v47 = vsel %vm2107_vm5, %v9249_v28, 0 }
 0x3e9   : > { %v7940_v20 = vpop.eup %7939  ;;  %3553 = vmatpush.bf16.msra.mxu3 %v7818_v0 }
 0x3ea   : > { %v2816_v8 = vmul.f32 %v7940_v20, %v9470_v18  ;;  %v2716_v52 = vpop.xlane.xlu2 %2715  ;;  %v7942_v9 = vpop.eup %7941 }
 0x3eb   : > { %7943 = vrcp.f32 %v2716_v52  ;;  %v2823_v19 = vmul.f32 %v7942_v9, %v9460_v50  ;;  %v2737_v6 = vpop.xlane.xlu0 %2736 }
 0x3ec   : > { %v2848_v14 = vpack.c.bf16 %v2816_v8, %v2816_v8  ;;  %7945 = vrcp.f32 %v2737_v6 }
 0x3ed   : > { %v2855_v18 = vpack.c.bf16 %v2823_v19, %v2823_v19  ;;  %v2227_v19 = vsel %vm2107_vm5, %v9251_v29, 0  ;;  %v2224_v29 = vsel %vm2107_vm5, %v9235_v61, 0 }
 0x3ee   : > { %v2888_v51 = vunpack.c.l.b16 %v2848_v14 }
 0x3ef   : > { %v2984_v8 = vunpack.c.l.b16 %v2855_v18 }
 0x3f0   : > { %v2895_v41 = vpack.c.b16 %v2888_v51, %v2887_v59  ;;  %v2695_v15 = vpop.xlane.xlu1 %2694 }
 0x3f1   : > { %v7944_v34 = vpop.eup %7943 }
 0x3f2   : > { %v2824_v20 = vmul.f32 %v7944_v34, %v9479_v58  ;;  %7490 = vmatmul.msk.bf16.vlgmr.msrb.gmra.mxu0 %vm2494_vm6, %v2895_v41  ;;  %v2761_v9 = vpop.xlane.xlu2 %2760  ;;  %v7946_v51 = vpop.eup %7945  ;;  %v2115_v58 = vsel %vm2107_vm5, %v9233_v60, 0  ;;  %v2112_v60 = vsel %vm2107_vm5, %v9217_v32, 0 }
 0x3f3   : > { %3655 = vmatpush.bf16.xpose.msrb.mxu0 %v2118_v47  ;;  %v2831_v28 = vmul.f32 %v7946_v51, %v9475_v27 }
 0x3f4   : > { %v2856_v50 = vpack.c.bf16 %v2824_v20, %v2824_v20 }
 0x3f5   : > { %v2863_v18 = vpack.c.bf16 %v2831_v28, %v2831_v28 }
 0x3f6   : > { %v2985_v52 = vunpack.c.l.b16 %v2856_v50 }
 0x3f8   : > { %v2992_v14 = vpack.c.b16 %v2985_v52, %v2984_v8  ;;  %v2719_v56 = vpop.xlane.xlu0 %2718  ;;  %v2740_v59 = vpop.xlane.xlu1 %2739 }
 0x3f9   : > { %7947 = vrcp.f32 %v2740_v59 }
 0x3fa   : > { %7518 = vmatmul.msk.bf16.vlgmr.msrb.gmra.mxu1 %vm2494_vm6, %v2992_v14  ;;  %7949 = vrcp.f32 %v2761_v9 }
 0x3fb   : > { %3656 = vmatpush.bf16.xpose.msrb.mxu0 %v2115_v58  ;;  %3694 = vmatpush.bf16.xpose.msrb.mxu1 %v2227_v19  ;;  %7951 = vrcp.f32 %v2719_v56 }
 0x3fc   : > { %7953 = vrcp.f32 %v2695_v15  ;;  %v3081_v15 = vunpack.c.l.b16 %v2863_v18 }
 0x3ff   : > { %v7948_v0 = vpop.eup %7947 }
 0x400   : > { %v2764_v41 = vpop.xlane.xlu0 %2763  ;;  %v2722_v6 = vpop.xlane.xlu1 %2721  ;;  %v2832_v20 = vmul.f32 %v7948_v0, %v9496_v46  ;;  %v2109_v0 = vsel %vm2107_vm5, %v9201_v3, 0 }
 0x401   : > { %v7950_v34 = vpop.eup %7949  ;;  %7955 = vrcp.f32 %v2764_v41  ;;  %v2221_v41 = vsel %vm2107_vm5, %v9219_v33, 0  ;;  %v2445_v33 = vsel %vm2107_vm5, %v9263_v43, 0 }
 0x402   : > { %v7952_v47 = vpop.eup %7951  ;;  %7957 = vrcp.f32 %v2722_v6  ;;  %v2864_v50 = vpack.c.bf16 %v2832_v20, %v2832_v20  ;;  %v2839_v27 = vmul.f32 %v7950_v34, %v9491_v2  ;;  %v2336_v2 = vsel %vm2107_vm5, %v9261_v42, 0 }
 0x403   : > { %3657 = vmatpush.bf16.xpose.msrb.mxu0 %v2112_v60  ;;  %3695 = vmatpush.bf16.xpose.msrb.mxu1 %v2224_v29  ;;  %v2825_v8 = vmul.f32 %v7952_v47, %v9498_v30  ;;  %v7954_v9 = vpop.eup %7953 }
 0x404   : > { %v3082_v52 = vunpack.c.l.b16 %v2864_v50  ;;  %v2871_v51 = vpack.c.bf16 %v2839_v27, %v2839_v27 }
 0x405   : > { %v2857_v19 = vpack.c.bf16 %v2825_v8, %v2825_v8  ;;  %v2333_v8 = vsel %vm2107_vm5, %v9241_v10, 0 }
 0x406   : > { %v3089_v14 = vpack.c.b16 %v3082_v52, %v3081_v15  ;;  %v3178_v34 = vunpack.c.l.b16 %v2871_v51 }
 0x407   : > { %v7956_v46 = vpop.eup %7955  ;;  %v2986_v18 = vunpack.c.l.b16 %v2857_v19 }
 0x408   : > { %v2698_v56 = vpop.xlane.xlu2 %2697  ;;  %v7958_v59 = vpop.eup %7957  ;;  %v2840_v32 = vmul.f32 %v7956_v46, %v9510_v37  ;;  %7546 = vmatmul.msk.bf16.vlgmr.msrb.gmra.mxu2 %vm2494_vm6, %v3089_v14  ;;  %v2817_v37 = vmul.f32 %v7954_v9, %v9486_v55 }
 0x409   : > { %7959 = vrcp.f32 %v2698_v56  ;;  %v2701_v58 = vpop.xlane.xlu0 %2700  ;;  %v2767_v61 = vpop.xlane.xlu1 %2766  ;;  %v2826_v28 = vmul.f32 %v7958_v59, %v9507_v38  ;;  %3733 = vmatpush.bf16.xpose.msrb.mxu2 %v2336_v2  ;;  %v2330_v2 = vsel %vm2107_vm5, %v9227_v45, 0  ;;  %v2439_v45 = vsel %vm2107_vm5, %v9225_v44, 0 }
 0x40a   : > { %v2872_v30 = vpack.c.bf16 %v2840_v32, %v2840_v32  ;;  %v2849_v42 = vpack.c.bf16 %v2817_v37, %v2817_v37  ;;  %7961 = vrcp.f32 %v2701_v58  ;;  %v2442_v58 = vsel %vm2107_vm5, %v9243_v11, 0 }
 0x40b   : > { %v2858_v6 = vpack.c.bf16 %v2826_v28, %v2826_v28  ;;  %3658 = vmatpush.bf16.xpose.msrb.mxu0 %v2109_v0  ;;  %3696 = vmatpush.bf16.xpose.msrb.mxu1 %v2221_v41 }
 0x40c   : > { %v3179_v38 = vunpack.c.l.b16 %v2872_v30  ;;  %v2889_v52 = vunpack.c.l.b16 %v2849_v42 }
 0x40d   : > { %v2987_v20 = vunpack.c.l.b16 %v2858_v6 }
 0x40e   : > { %v3186_v60 = vpack.c.b16 %v3179_v38, %v3178_v34 }
 0x40f   : > { %v7960_v47 = vpop.eup %7959  ;;  %v2993_v3 = vpack.c.b16 %v2987_v20, %v2986_v18 }
 0x410   : > { %v2818_v29 = vmul.f32 %v7960_v47, %v9520_v24  ;;  %v2743_v50 = vpop.xlane.xlu2 %2742  ;;  %7574 = vmatmul.msk.bf16.vlgmr.msrb.gmra.mxu3 %vm2494_vm6, %v3186_v60  ;;  %v2218_v24 = vsel %vm2107_vm5, %v9203_v4, 0  ;;  %v7962_v46 = vpop.eup %7961  ;;  %v2327_v60 = vsel %vm2107_vm5, %v9209_v16, 0  ;;  %v2436_v16 = vsel %vm2107_vm5, %v9211_v17, 0 }
 0x411   : > { %7963 = vrcp.f32 %v2743_v50  ;;  %v2746_v55 = vpop.xlane.xlu0 %2745  ;;  %v2704_v27 = vpop.xlane.xlu1 %2703  ;;  %3772 = vmatpush.bf16.xpose.msrb.mxu3 %v2445_v33  ;;  %7519 = vmatmul.msk.bf16.gmra.mxu1 %vm2494_vm6, %v2993_v3  ;;  %v2819_v30 = vmul.f32 %v7962_v46, %v9523_v25 }
 0x412   : > { %v2850_v15 = vpack.c.bf16 %v2818_v29, %v2818_v29  ;;  %7965 = vrcp.f32 %v2746_v55  ;;  %3734 = vmatpush.bf16.xpose.msrb.mxu2 %v2333_v8 }
 0x413   : > { %7967 = vrcp.f32 %v2704_v27  ;;  %3697 = vmatpush.bf16.xpose.msrb.mxu1 %v2218_v24  ;;  %v2851_v38 = vpack.c.bf16 %v2819_v30, %v2819_v30 }
 0x414   : > { %v2890_v9 = vunpack.c.l.b16 %v2850_v15 }
 0x415   : > { %v2891_v50 = vunpack.c.l.b16 %v2851_v38 }
 0x416   : > { %v2896_v43 = vpack.c.b16 %v2890_v9, %v2889_v52 }
 0x417   : > { %v7964_v14 = vpop.eup %7963 }
 0x418   : > { %v7966_v56 = vpop.eup %7965  ;;  %v2833_v59 = vmul.f32 %v7964_v14, %v9531_v12  ;;  %v2725_v51 = vpop.xlane.xlu2 %2724  ;;  %7491 = vmatmul.msk.bf16.gmra.mxu0 %vm2494_vm6, %v2896_v43 }
 0x419   : > { %v7968_v32 = vpop.eup %7967  ;;  %v2834_v10 = vmul.f32 %v7966_v56, %v9535_v39  ;;  %7969 = vrcp.f32 %v2725_v51  ;;  %v2728_v4 = vpop.xlane.xlu0 %2727  ;;  %3773 = vmatpush.bf16.xpose.msrb.mxu3 %v2442_v58 }
 0x41a   : > { %v2865_v19 = vpack.c.bf16 %v2833_v59, %v2833_v59  ;;  %v2820_v28 = vmul.f32 %v7968_v32, %v9538_v1  ;;  %7971 = vrcp.f32 %v2728_v4  ;;  %3735 = vmatpush.bf16.xpose.msrb.mxu2 %v2330_v2  ;;  %v2749_v37 = vpop.xlane.xlu1 %2748 }
 0x41b   : > { %7973 = vrcp.f32 %v2767_v61  ;;  %v2866_v12 = vpack.c.bf16 %v2834_v10, %v2834_v10 }
 0x41c   : > { %v3083_v0 = vunpack.c.l.b16 %v2865_v19  ;;  %v2852_v41 = vpack.c.bf16 %v2820_v28, %v2820_v28 }
 0x41d   : > { %v3084_v39 = vunpack.c.l.b16 %v2866_v12 }
 0x41e   : > { %v2892_v42 = vunpack.c.l.b16 %v2852_v41 }
 0x41f   : > { %v7970_v6 = vpop.eup %7969  ;;  %v3090_v11 = vpack.c.b16 %v3084_v39, %v3083_v0 }
 0x420   : > { %v7972_v34 = vpop.eup %7971  ;;  %v2827_v1 = vmul.f32 %v7970_v6, %v9546_v53  ;;  %v2770_v18 = vpop.xlane.xlu2 %2769  ;;  %v2897_v33 = vpack.c.b16 %v2892_v42, %v2891_v50 }
 0x421   : > { %v7974_v20 = vpop.eup %7973  ;;  %v2828_v47 = vmul.f32 %v7972_v34, %v9550_v57  ;;  %7975 = vrcp.f32 %v2770_v18  ;;  %v2773_v61 = vpop.xlane.xlu0 %2772  ;;  %7547 = vmatmul.msk.bf16.gmra.mxu2 %vm2494_vm6, %v3090_v11  ;;  %3774 = vmatpush.bf16.xpose.msrb.mxu3 %v2439_v45 }
 0x422   : > { %v2859_v25 = vpack.c.bf16 %v2827_v1, %v2827_v1  ;;  %3736 = vmatpush.bf16.xpose.msrb.mxu2 %v2327_v60  ;;  %v2841_v53 = vmul.f32 %v7974_v20, %v9518_v21  ;;  %v2731_v8 = vpop.xlane.xlu1 %2730 }
 0x423   : > { %v2860_v29 = vpack.c.bf16 %v2828_v47, %v2828_v47 }
 0x424   : > { %v2988_v3 = vunpack.c.l.b16 %v2859_v25  ;;  %v2873_v44 = vpack.c.bf16 %v2841_v53, %v2841_v53 }
 0x425   : > { %v2989_v57 = vunpack.c.l.b16 %v2860_v29 }
 0x426   : > { %v3180_v9 = vunpack.c.l.b16 %v2873_v44 }
 0x427   : > { %v7976_v55 = vpop.eup %7975  ;;  %v2994_v27 = vpack.c.b16 %v2989_v57, %v2988_v3 }
 0x428   : > { %v2842_v15 = vmul.f32 %v7976_v55, %v9561_v63  ;;  %v2707_v24 = vpop.xlane.xlu2 %2706  ;;  %7492 = vmatmul.msk.bf16.gmra.mxu0 %vm2494_vm6, %v2897_v33 }
 0x429   : > { %7977 = vrcp.f32 %v2707_v24  ;;  %v2710_v52 = vpop.xlane.xlu0 %2709  ;;  %7520 = vmatmul.msk.bf16.gmra.mxu1 %vm2494_vm6, %v2994_v27  ;;  %3775 = vmatpush.bf16.xpose.msrb.mxu3 %v2436_v16 }
 0x42a   : > { %v2874_v21 = vpack.c.bf16 %v2842_v15, %v2842_v15  ;;  %7979 = vrcp.f32 %v2710_v52 }
 0x42b   : > { %7981 = vrcp.f32 %v2749_v37 }
 0x42c   : > { %v3181_v46 = vunpack.c.l.b16 %v2874_v21 }
 0x42e   : > { %v3187_v43 = vpack.c.b16 %v3181_v46, %v3180_v9 }
 0x42f   : > { %v7978_v14 = vpop.eup %7977 }
 0x430   : > { %v7980_v63 = vpop.eup %7979  ;;  %v2821_v56 = vmul.f32 %v7978_v14, %v9575_v49  ;;  %v2752_v59 = vpop.xlane.xlu2 %2751  ;;  %7575 = vmatmul.msk.bf16.gmra.mxu3 %vm2494_vm6, %v3187_v43 }
 0x431   : > { %v2758_v51 = vpop.xlane.xlu1 %2757  ;;  %v7982_v32 = vpop.eup %7981  ;;  %v2822_v17 = vmul.f32 %v7980_v63, %v9581_v40  ;;  %7983 = vrcp.f32 %v2752_v59  ;;  %v1936_v59 = vpack.c.bf16 %v9319_v13, %v9319_v13 }
 0x432   : > { %v2853_v10 = vpack.c.bf16 %v2821_v56, %v2821_v56  ;;  %7985 = vrcp.f32 %v2731_v8  ;;  %v2835_v4 = vmul.f32 %v7982_v32, %v9553_v31  ;;  %v2755_v19 = vpop.xlane.xlu0 %2754  ;;  %v1935_v56 = vpack.c.bf16 %v9311_v7, %v9311_v7  ;;  %v11687_v32 = vld [vmem:[#allocation27_spill] sm:$0xff] }
 0x433   : > { %v2854_v58 = vpack.c.bf16 %v2822_v17, %v2822_v17  ;;  %7987 = vrcp.f32 %v2773_v61  ;;  %v1933_v17 = vpack.c.bf16 %v11687_v32, %v11687_v32  ;;  %v11701_v32 = vld [vmem:[#allocation38_spill] sm:$0xff] }
 0x434   : > { %v2893_v28 = vunpack.c.l.b16 %v2853_v10  ;;  %7989 = vrcp.f32 %v2755_v19  ;;  %v2867_v30 = vpack.c.bf16 %v2835_v4, %v2835_v4  ;;  %v5340_v19 = vunpack.c.l.b16 %v1935_v56 }
 0x435   : > { %v2894_v2 = vunpack.c.l.b16 %v2854_v58  ;;  %7991 = vrcp.f32 %v2758_v51  ;;  %v11688_v58 = vld [vmem:[#allocation31_spill] sm:$0xff] }
 0x436   : > { %v3085_v11 = vunpack.c.l.b16 %v2867_v30  ;;  %v1934_v4 = vpack.c.bf16 %v11688_v58, %v11688_v58  ;;  %v11690_v30 = vld [vmem:[#allocation23_spill] sm:$0xff] }
 0x437   : > { %v7984_v12 = vpop.eup %7983  ;;  %v2898_v49 = vpack.c.b16 %v2894_v2, %v2893_v28  ;;  %v5341_v28 = vunpack.c.l.b16 %v1936_v59  ;;  %v1932_v13 = vpack.c.bf16 %v11690_v30, %v11690_v30 }
 0x438   : > { %v2836_v0 = vmul.f32 %v7984_v12, %v9587_v22  ;;  %v2734_v39 = vpop.xlane.xlu2 %2733  ;;  %v7986_v40 = vpop.eup %7985 }
 0x439   : > { %v2776_v41 = vpop.xlane.xlu1 %2775  ;;  %7993 = vrcp.f32 %v2734_v39  ;;  %7493 = vmatmul.msk.bf16.gmra.mxu0 %vm2494_vm6, %v2898_v49  ;;  %v7988_v37 = vpop.eup %7987  ;;  %v2829_v31 = vmul.f32 %v7986_v40, %v9567_v5  ;;  %v11689_v49 = vld [vmem:[#allocation19_spill] sm:$0xff]  ;;  %v11691_v40 = vld [vmem:[#allocation34_spill] sm:$0xff] }
 0x43a   : > { %v2868_v6 = vpack.c.bf16 %v2836_v0, %v2836_v0  ;;  %7995 = vrcp.f32 %v2776_v41  ;;  %v7990_v38 = vpop.eup %7989  ;;  %v2843_v1 = vmul.f32 %v7988_v37, %v9564_v26  ;;  %v2782_v53 = vpop.xlane.xlu0 %2781  ;;  %v1931_v7 = vpack.c.bf16 %v11689_v49, %v11689_v49 }
 0x43b   : > { %v7992_v18 = vpop.eup %7991  ;;  %v2861_v47 = vpack.c.bf16 %v2829_v31, %v2829_v31  ;;  %v2837_v42 = vmul.f32 %v7990_v38, %v9593_v54  ;;  %v5338_v0 = vunpack.c.l.b16 %v1933_v17  ;;  %v5339_v41 = vunpack.c.l.b16 %v1934_v4  ;;  %v11692_v31 = vld [vmem:[#allocation37_spill] sm:$0xff]  ;;  %v11693_v38 = vld [vmem:[#allocation12_spill] sm:$0xff] }
 0x43c   : > { %v3086_v34 = vunpack.c.l.b16 %v2868_v6  ;;  %v2875_v60 = vpack.c.bf16 %v2843_v1, %v2843_v1  ;;  %v2838_v5 = vmul.f32 %v7992_v18, %v9590_v36  ;;  %v1943_v37 = vpack.c.bf16 %v11691_v40, %v11691_v40  ;;  %v11694_v18 = vld [vmem:[#allocation14_spill] sm:$0xff] }
 0x43d   : > { %v2990_v3 = vunpack.c.l.b16 %v2861_v47  ;;  %v5345_v6 = vpack.c.b16 %v5341_v28, %v5340_v19  ;;  %v1929_v1 = vpack.c.bf16 %v11693_v38, %v11693_v38  ;;  %v5336_v47 = vunpack.c.l.b16 %v1931_v7  ;;  %v11703_v7 = vld [vmem:[#allocation32_spill] sm:$0xff] }
 0x43e   : > { %v3091_v20 = vpack.c.b16 %v3086_v34, %v3085_v11  ;;  %v3182_v33 = vunpack.c.l.b16 %v2875_v60  ;;  %v2870_v55 = vpack.c.bf16 %v2838_v5, %v2838_v5  ;;  %v1944_v11 = vpack.c.bf16 %v11692_v31, %v11692_v31  ;;  %v11706_v38 = vld [vmem:[#allocation28_spill] sm:$0xff] }
 0x43f   : > { %v7994_v22 = vpop.eup %7993  ;;  %v1951_v17 = vpack.c.bf16 %v11701_v32, %v11701_v32  ;;  %v1949_v30 = vpack.c.bf16 %v11703_v7, %v11703_v7  ;;  %v11716_v7 = vld [vmem:[#allocation21_spill] sm:$0xff] }
 0x440   : > { %v2830_v45 = vmul.f32 %v7994_v22, %v9601_v23  ;;  %v2779_v61 = vpop.xlane.xlu2 %2778  ;;  %7548 = vmatmul.msk.bf16.gmra.mxu2 %vm2494_vm6, %v3091_v20  ;;  %v7996_v25 = vpop.eup %7995  ;;  %v2869_v23 = vpack.c.bf16 %v2837_v42, %v2837_v42  ;;  %v3088_v8 = vunpack.c.l.b16 %v2870_v55  ;;  %v1930_v20 = vpack.c.bf16 %v11694_v18, %v11694_v18  ;;  %v11696_v42 = vld [vmem:[#allocation30_spill] sm:$0xff]  ;;  %v11707_v18 = vld [vmem:[#allocation39_spill] sm:$0xff] }
 0x441   : > { %v2844_v50 = vmul.f32 %v7996_v25, %v9603_v62  ;;  %7997 = vrcp.f32 %v2779_v61  ;;  %v11695_v61 = vld [vmem:[#allocation26_spill] sm:$0xff]  ;;  %v1942_v5 = vpack.c.bf16 %v11696_v42, %v11696_v42 }
 0x442   : > { %v2862_v29 = vpack.c.bf16 %v2830_v45, %v2830_v45  ;;  %7999 = vrcp.f32 %v2782_v53  ;;  %v3087_v36 = vunpack.c.l.b16 %v2869_v23  ;;  %v5337_v45 = vunpack.c.l.b16 %v1932_v13  ;;  %v11697_v23 = vld [vmem:[#allocation18_spill] sm:$0xff]  ;;  %v11704_v13 = vld [vmem:[#allocation35_spill] sm:$0xff] }
 0x443   : > { %v2876_v26 = vpack.c.bf16 %v2844_v50, %v2844_v50  ;;  %v1941_v25 = vpack.c.bf16 %v11695_v61, %v11695_v61  ;;  %v5452_v53 = vunpack.c.l.b16 %v1944_v11  ;;  %v5344_v50 = vpack.c.b16 %v5339_v41, %v5338_v0  ;;  %v11705_v11 = vld [vmem:[#allocation24_spill] sm:$0xff] }
 0x444   : > { %v2991_v57 = vunpack.c.l.b16 %v2862_v29  ;;  %v3092_v52 = vpack.c.b16 %v3088_v8, %v3087_v36  ;;  %v5451_v29 = vunpack.c.l.b16 %v1943_v37  ;;  %v1939_v55 = vpack.c.bf16 %v11697_v23, %v11697_v23 }
 0x445   : > { %v3183_v44 = vunpack.c.l.b16 %v2876_v26  ;;  %v5450_v36 = vunpack.c.l.b16 %v1942_v5  ;;  %v1950_v0 = vpack.c.bf16 %v11704_v13, %v11704_v13 }
 0x446   : > { %v2995_v27 = vpack.c.b16 %v2991_v57, %v2990_v3  ;;  %v5334_v57 = vunpack.c.l.b16 %v1929_v1  ;;  %v5456_v8 = vpack.c.b16 %v5452_v53, %v5451_v29  ;;  %v1948_v1 = vpack.c.bf16 %v11706_v38, %v11706_v38  ;;  %v11709_v53 = vld [vmem:[#allocation16_spill] sm:$0xff] }
 0x447   : > { %v3188_v15 = vpack.c.b16 %v3183_v44, %v3182_v33  ;;  %v7998_v54 = vpop.eup %7997  ;;  %v5335_v33 = vunpack.c.l.b16 %v1930_v20  ;;  %v1959_v20 = vpack.c.bf16 %v11707_v18, %v11707_v18  ;;  %v5561_v42 = vunpack.c.l.b16 %v1950_v0 }
 0x448   : > { %7521 = vmatmul.msk.bf16.gmra.mxu1 %vm2494_vm6, %v2995_v27  ;;  %v8000_v24 = vpop.eup %7999  ;;  %v2845_v62 = vmul.f32 %v7998_v54, %v9613_v48  ;;  %v11698_v27 = vld [vmem:[#allocation22_spill] sm:$0xff]  ;;  %v5449_v54 = vunpack.c.l.b16 %v1941_v25 }
 0x449   : > { %7576 = vmatmul.msk.bf16.gmra.mxu3 %vm2494_vm6, %v3188_v15  ;;  %v2846_v16 = vmul.f32 %v8000_v24, %v9605_v35  ;;  %v1940_v44 = vpack.c.bf16 %v11698_v27, %v11698_v27  ;;  %v5343_v24 = vpack.c.b16 %v5337_v45, %v5336_v47  ;;  %v11711_v27 = vld [vmem:[#allocation33_spill] sm:$0xff] }
 0x44a   : > { %v2877_v21 = vpack.c.bf16 %v2845_v62, %v2845_v62  ;;  %v11699_v62 = vld [vmem:[#allocation13_spill] sm:$0xff] }
 0x44b   : > { %v2878_v9 = vpack.c.bf16 %v2846_v16, %v2846_v16  ;;  %v1937_v16 = vpack.c.bf16 %v11699_v62, %v11699_v62 }
 0x44c   : > { %v3184_v46 = vunpack.c.l.b16 %v2877_v21 }
 0x44d   : > { %v3185_v43 = vunpack.c.l.b16 %v2878_v9  ;;  %v5447_v9 = vunpack.c.l.b16 %v1939_v55  ;;  %v5445_v56 = vunpack.c.l.b16 %v1937_v16 }
 0x44f   : > { %v3189_v14 = vpack.c.b16 %v3185_v43, %v3184_v46  ;;  %v5448_v46 = vunpack.c.l.b16 %v1940_v44  ;;  %v5342_v43 = vpack.c.b16 %v5335_v33, %v5334_v57  ;;  %v11710_v33 = vld [vmem:[#allocation20_spill] sm:$0xff]  ;;  %v1957_v44 = vpack.c.bf16 %v11711_v27, %v11711_v27 }
 0x450   : > { %7549 = vmatmul.msk.bf16.gmra.mxu2 %vm2494_vm6, %v3092_v52  ;;  %v11700_v52 = vld [vmem:[#allocation15_spill] sm:$0xff]  ;;  %v1946_v23 = vpack.c.bf16 %v11710_v33, %v11710_v33 }
 0x451   : > { %v1938_v21 = vpack.c.bf16 %v11700_v52, %v11700_v52  ;;  %v5559_v52 = vunpack.c.l.b16 %v1948_v1 }
 0x453   : > { %v5446_v59 = vunpack.c.l.b16 %v1938_v21 }
 0x459   : > { %7577 = vmatmul.msk.bf16.gmra.mxu3 %vm2494_vm6, %v3189_v14  ;;  %v5455_v14 = vpack.c.b16 %v5450_v36, %v5449_v54  ;;  %v11712_v36 = vld [vmem:[#allocation36_spill] sm:$0xff] }
 0x46f   : > { %v2956_v63 = vpop.f32.mrf.mxu0 }
 0x470   : > { %v3267_v48 = vpack.c.bf16 %v2956_v63, %v2956_v63 }
 0x472   : > { %v3315_v2 = vunpack.c.l.b16 %v3267_v48  ;;  %v5454_v48 = vpack.c.b16 %v5448_v46, %v5447_v9 }
 0x477   : > { %v2958_v51 = vpop.f32.mrf.mxu0  ;;  %v3053_v35 = vpop.f32.mrf.mxu1 }
 0x478   : > { %v3268_v10 = vpack.c.bf16 %v2958_v51, %v2958_v51  ;;  %v3275_v34 = vpack.c.bf16 %v3053_v35, %v3053_v35  ;;  %v5453_v35 = vpack.c.b16 %v5446_v59, %v5445_v56  ;;  %v11714_v59 = vld [vmem:[#allocation29_spill] sm:$0xff] }
 0x47a   : > { %v3316_v12 = vunpack.c.l.b16 %v3268_v10  ;;  %v3382_v26 = vunpack.c.l.b16 %v3275_v34  ;;  %v11702_v10 = vld [vmem:[#allocation40_spill] sm:$0xff]  ;;  %v1947_v34 = vpack.c.bf16 %v11705_v11, %v11705_v11 }
 0x47b   : > { %v1952_v58 = vpack.c.bf16 %v11702_v10, %v11702_v10 }
 0x47c   : > { %v3323_v39 = vpack.c.b16 %v3316_v12, %v3315_v2  ;;  %v5558_v55 = vunpack.c.l.b16 %v1947_v34 }
 0x47d   : > { %v5563_v41 = vunpack.c.l.b16 %v1952_v58 }
 0x47e   : > { %7582 = vmatmul.msk.bf16.vlgmr.msra.gmra.mxu0 %vm2107_vm5, %v3323_v39  ;;  %v5562_v39 = vunpack.c.l.b16 %v1951_v17 }
 0x47f   : > { %5372 = vmatpush.bf16.msra.mxu0 %v5345_v6  ;;  %v3055_v22 = vpop.f32.mrf.mxu1 }
 0x480   : > { %v3276_v60 = vpack.c.bf16 %v3055_v22, %v3055_v22  ;;  %v11708_v22 = vld [vmem:[#allocation41_spill] sm:$0xff]  ;;  %v5567_v5 = vpack.c.b16 %v5563_v41, %v5562_v39 }
 0x481   : > { %v1960_v47 = vpack.c.bf16 %v11708_v22, %v11708_v22 }
 0x482   : > { %v3383_v3 = vunpack.c.l.b16 %v3276_v60  ;;  %v5560_v60 = vunpack.c.l.b16 %v1949_v30  ;;  %v1954_v30 = vpack.c.bf16 %v11716_v7, %v11716_v7 }
 0x483   : > { %5373 = vmatpush.bf16.msra.mxu0 %v5344_v50  ;;  %v1945_v50 = vpack.c.bf16 %v11709_v53, %v11709_v53  ;;  %v5674_v62 = vunpack.c.l.b16 %v1960_v47 }
 0x484   : > { %v3390_v15 = vpack.c.b16 %v3383_v3, %v3382_v26  ;;  %v5566_v46 = vpack.c.b16 %v5561_v42, %v5560_v60 }
 0x485   : > { %v5556_v58 = vunpack.c.l.b16 %v1945_v50 }
 0x486   : > { %7590 = vmatmul.msk.bf16.vlgmr.msra.gmra.mxu1 %vm2107_vm5, %v3390_v15 }
 0x487   : > { %5374 = vmatpush.bf16.msra.mxu0 %v5343_v24  ;;  %5483 = vmatpush.bf16.msra.mxu1 %v5456_v8  ;;  %v1958_v8 = vpack.c.bf16 %v11712_v36, %v11712_v36  ;;  %v5673_v24 = vunpack.c.l.b16 %v1959_v20 }
 0x489   : > { %v5672_v32 = vunpack.c.l.b16 %v1958_v8  ;;  %v5678_v17 = vpack.c.b16 %v5674_v62, %v5673_v24 }
 0x48b   : > { %5375 = vmatpush.bf16.msra.mxu0 %v5342_v43  ;;  %5484 = vmatpush.bf16.msra.mxu1 %v5455_v14  ;;  %v3150_v63 = vpop.f32.mrf.mxu2 }
 0x48c   : > { %v3283_v4 = vpack.c.bf16 %v3150_v63, %v3150_v63  ;;  %v11713_v63 = vld [vmem:[#allocation25_spill] sm:$0xff] }
 0x48d   : > { %v1955_v56 = vpack.c.bf16 %v11713_v63, %v11713_v63 }
 0x48e   : > { %v3058_v51 = vpop.f32.mrf.mxu1  ;;  %v3449_v37 = vunpack.c.l.b16 %v3283_v4  ;;  %v5557_v4 = vunpack.c.l.b16 %v1946_v23 }
 0x48f   : > { %5485 = vmatpush.bf16.msra.mxu1 %v5454_v48  ;;  %v3277_v12 = vpack.c.bf16 %v3058_v51, %v3058_v51  ;;  %v1956_v48 = vpack.c.bf16 %v11714_v59, %v11714_v59  ;;  %v5669_v13 = vunpack.c.l.b16 %v1955_v56 }
 0x491   : > { %v3384_v45 = vunpack.c.l.b16 %v3277_v12  ;;  %v5670_v0 = vunpack.c.l.b16 %v1956_v48 }
 0x493   : > { %v3247_v19 = vpop.f32.mrf.mxu3  ;;  %5486 = vmatpush.bf16.msra.mxu1 %v5453_v35  ;;  %v3152_v28 = vpop.f32.mrf.mxu2  ;;  %v5671_v35 = vunpack.c.l.b16 %v1957_v44 }
 0x494   : > { %v3284_v49 = vpack.c.bf16 %v3152_v28, %v3152_v28  ;;  %v3291_v29 = vpack.c.bf16 %v3247_v19, %v3247_v19  ;;  %v5565_v19 = vpack.c.b16 %v5559_v52, %v5558_v55 }
 0x495   : > { %v2961_v2 = vpop.f32.mrf.mxu0  ;;  %v5677_v41 = vpack.c.b16 %v5672_v32, %v5671_v35 }
 0x496   : > { %v3060_v40 = vpop.f32.mrf.mxu1  ;;  %v3450_v6 = vunpack.c.l.b16 %v3284_v49  ;;  %v3269_v26 = vpack.c.bf16 %v2961_v2, %v2961_v2  ;;  %v3516_v21 = vunpack.c.l.b16 %v3291_v29  ;;  %v11715_v2 = vld [vmem:[#allocation17_spill] sm:$0xff] }
 0x497   : > { %v3278_v31 = vpack.c.bf16 %v3060_v40, %v3060_v40  ;;  %v1953_v12 = vpack.c.bf16 %v11715_v2, %v11715_v2  ;;  %v5564_v40 = vpack.c.b16 %v5557_v4, %v5556_v58  ;;  %v8193_v2 = vld [vmem:[#allocation2] sm:$0xff] }
 0x498   : > { %v3457_v61 = vpack.c.b16 %v3450_v6, %v3449_v37  ;;  %v3317_v43 = vunpack.c.l.b16 %v3269_v26  ;;  %v5668_v6 = vunpack.c.l.b16 %v1954_v30 }
 0x499   : > { %v3385_v25 = vunpack.c.l.b16 %v3278_v31  ;;  %v5667_v37 = vunpack.c.l.b16 %v1953_v12  ;;  %v5676_v31 = vpack.c.b16 %v5670_v0, %v5669_v13 }
 0x49a   : > { %7598 = vmatmul.msk.bf16.vlgmr.msra.gmra.mxu2 %vm2107_vm5, %v3457_v61 }
 0x49b   : > { %v3391_v3 = vpack.c.b16 %v3385_v25, %v3384_v45  ;;  %v3249_v57 = vpop.f32.mrf.mxu3  ;;  %5594 = vmatpush.bf16.msra.mxu2 %v5567_v5  ;;  %v5675_v45 = vpack.c.b16 %v5668_v6, %v5667_v37 }
 0x49c   : > { %v3292_v15 = vpack.c.bf16 %v3249_v57, %v3249_v57 }
 0x49d   : > { %v2963_v54 = vpop.f32.mrf.mxu0  ;;  %7591 = vmatmul.msk.bf16.gmra.mxu1 %vm2107_vm5, %v3391_v3 }
 0x49e   : > { %v3270_v16 = vpack.c.bf16 %v2963_v54, %v2963_v54  ;;  %v3517_v9 = vunpack.c.l.b16 %v3292_v15 }
 0x49f   : > { %5595 = vmatpush.bf16.msra.mxu2 %v5566_v46 }
 0x4a0   : > { %v3318_v14 = vunpack.c.l.b16 %v3270_v16  ;;  %v3524_v51 = vpack.c.b16 %v3517_v9, %v3516_v21 }
 0x4a2   : > { %v3324_v10 = vpack.c.b16 %v3318_v14, %v3317_v43  ;;  %7606 = vmatmul.msk.bf16.vlgmr.msra.gmra.mxu3 %vm2107_vm5, %v3524_v51 }
 0x4a3   : > { %5705 = vmatpush.bf16.msra.mxu3 %v5678_v17  ;;  %5596 = vmatpush.bf16.msra.mxu2 %v5565_v19 }
 0x4a4   : > { %v3155_v28 = vpop.f32.mrf.mxu2  ;;  %7583 = vmatmul.msk.bf16.gmra.mxu0 %vm2107_vm5, %v3324_v10 }
 0x4a5   : > { %v2966_v49 = vpop.f32.mrf.mxu0  ;;  %v3285_v11 = vpack.c.bf16 %v3155_v28, %v3155_v28 }
 0x4a6   : > { %v3063_v39 = vpop.f32.mrf.mxu1  ;;  %v3271_v34 = vpack.c.bf16 %v2966_v49, %v2966_v49 }
 0x4a7   : > { %5706 = vmatpush.bf16.msra.mxu3 %v5677_v41  ;;  %5597 = vmatpush.bf16.msra.mxu2 %v5564_v40  ;;  %v3279_v1 = vpack.c.bf16 %v3063_v39, %v3063_v39  ;;  %v3451_v61 = vunpack.c.l.b16 %v3285_v11  ;;  %v8194_v11 = vld [vmem:[#allocation2 + $0x30] sm:$0xff] }
 0x4a8   : > { %v3319_v42 = vunpack.c.l.b16 %v3271_v34 }
 0x4a9   : > { %v3386_v29 = vunpack.c.l.b16 %v3279_v1 }
 0x4ab   : > { %5707 = vmatpush.bf16.msra.mxu3 %v5676_v31 }
 0x4ac   : > { %v3157_v38 = vpop.f32.mrf.mxu2 }
 0x4ad   : > { %v3286_v18 = vpack.c.bf16 %v3157_v38, %v3157_v38  ;;  %v2968_v20 = vpop.f32.mrf.mxu0  ;;  %v8195_v38 = vld [vmem:[#allocation2 + $0x8] sm:$0xff] }
 0x4ae   : > { %v3272_v22 = vpack.c.bf16 %v2968_v20, %v2968_v20  ;;  %v3065_v47 = vpop.f32.mrf.mxu1 }
 0x4af   : > { %v3452_v25 = vunpack.c.l.b16 %v3286_v18  ;;  %v3280_v60 = vpack.c.bf16 %v3065_v47, %v3065_v47  ;;  %5708 = vmatpush.bf16.msra.mxu3 %v5675_v45  ;;  %v8196_v47 = vld [vmem:[#allocation2 + $0x60] sm:$0xff]  ;;  %v8197_v45 = vld [vmem:[#allocation2 + $0x38] sm:$0xff] }
 0x4b0   : > { %v3320_v5 = vunpack.c.l.b16 %v3272_v22 }
 0x4b1   : > { %v3458_v53 = vpack.c.b16 %v3452_v25, %v3451_v61  ;;  %v3387_v50 = vunpack.c.l.b16 %v3280_v60  ;;  %v8198_v61 = vld [vmem:[#allocation2 + $0x10] sm:$0xff]  ;;  %v8200_v60 = vld [vmem:[#allocation2 + $0x68] sm:$0xff] }
 0x4b2   : > { %v3325_v26 = vpack.c.b16 %v3320_v5, %v3319_v42  ;;  %v8199_v25 = vld [vmem:[#allocation2 + $0x90] sm:$0xff]  ;;  %v8201_v42 = vld [vmem:[#allocation2 + $0x40] sm:$0xff]  ;;  %v8202_v5 = vld [vmem:[#allocation2 + $0x18] sm:$0xff] }
 0x4b3   : > { %v3392_v3 = vpack.c.b16 %v3387_v50, %v3386_v29  ;;  %7599 = vmatmul.msk.bf16.gmra.mxu2 %vm2107_vm5, %v3458_v53  ;;  %v3252_v57 = vpop.f32.mrf.mxu3  ;;  %v8203_v29 = vld [vmem:[#allocation2 + $0x98] sm:$0xff]  ;;  %v8204_v50 = vld [vmem:[#allocation2 + $0x70] sm:$0xff] }
 0x4b4   : > { %7584 = vmatmul.msk.bf16.gmra.mxu0 %vm2107_vm5, %v3325_v26  ;;  %v3293_v23 = vpack.c.bf16 %v3252_v57, %v3252_v57  ;;  %v8205_v26 = vld [vmem:[#allocation2 + $0x48] sm:$0xff] }
 0x4b5   : > { %7592 = vmatmul.msk.bf16.gmra.mxu1 %vm2107_vm5, %v3392_v3  ;;  %v8206_v3 = vld [vmem:[#allocation2 + $0x20] sm:$0xff] }
 0x4b6   : > { %v2971_v33 = vpop.f32.mrf.mxu0  ;;  %v3518_v15 = vunpack.c.l.b16 %v3293_v23  ;;  %v8207_v23 = vld [vmem:[#allocation2 + $0xa0] sm:$0xff] }
 0x4b7   : > { %v3273_v44 = vpack.c.bf16 %v2971_v33, %v2971_v33 }
 0x4b9   : > { %v3321_v62 = vunpack.c.l.b16 %v3273_v44 }
 0x4bb   : > { %v3254_v55 = vpop.f32.mrf.mxu3 }
 0x4bc   : > { %v3294_v27 = vpack.c.bf16 %v3254_v55, %v3254_v55 }
 0x4be   : > { %v3519_v54 = vunpack.c.l.b16 %v3294_v27  ;;  %v2973_v36 = vpop.f32.mrf.mxu0 }
 0x4bf   : > { %v3274_v8 = vpack.c.bf16 %v2973_v36, %v2973_v36 }
 0x4c0   : > { %v3525_v24 = vpack.c.b16 %v3519_v54, %v3518_v15  ;;  %v8208_v15 = vld [vmem:[#allocation2 + $0x78] sm:$0xff] }
 0x4c1   : > { %v3322_v16 = vunpack.c.l.b16 %v3274_v8 }
 0x4c2   : > { %7607 = vmatmul.msk.bf16.gmra.mxu3 %vm2107_vm5, %v3525_v24  ;;  %v8209_v24 = vld [vmem:[#allocation2 + $0x50] sm:$0xff] }
 0x4c3   : > { %v3326_v52 = vpack.c.b16 %v3322_v16, %v3321_v62  ;;  %v3160_v21 = vpop.f32.mrf.mxu2  ;;  %v8210_v16 = vld [vmem:[#allocation2 + $0x28] sm:$0xff] }
 0x4c4   : > { %v3287_v46 = vpack.c.bf16 %v3160_v21, %v3160_v21 }
 0x4c5   : > { %7585 = vmatmul.msk.bf16.gmra.mxu0 %vm2107_vm5, %v3326_v52  ;;  %v3068_v9 = vpop.f32.mrf.mxu1 }
 0x4c6   : > { %v3281_v14 = vpack.c.bf16 %v3068_v9, %v3068_v9  ;;  %v3453_v48 = vunpack.c.l.b16 %v3287_v46  ;;  %v9813_v9 = vld [vmem:[%s11533_s7] ss:$0 sm:$0xff] }
 0x4c8   : > { %v3388_v32 = vunpack.c.l.b16 %v3281_v14 }
 0x4cb   : > { %v3162_v43 = vpop.f32.mrf.mxu2 }
 0x4cc   : > { %v3288_v63 = vpack.c.bf16 %v3162_v43, %v3162_v43  ;;  %v3257_v56 = vpop.f32.mrf.mxu3 }
 0x4cd   : > { %v3070_v59 = vpop.f32.mrf.mxu1  ;;  %v3295_v19 = vpack.c.bf16 %v3257_v56, %v3257_v56 }
 0x4ce   : > { %v3454_v51 = vunpack.c.l.b16 %v3288_v63  ;;  %v3282_v35 = vpack.c.bf16 %v3070_v59, %v3070_v59 }
 0x4cf   : > { %v3520_v49 = vunpack.c.l.b16 %v3295_v19 }
 0x4d0   : > { %v3459_v17 = vpack.c.b16 %v3454_v51, %v3453_v48  ;;  %v3389_v10 = vunpack.c.l.b16 %v3282_v35 }
 0x4d2   : > { %v3393_v58 = vpack.c.b16 %v3389_v10, %v3388_v32  ;;  %7600 = vmatmul.msk.bf16.gmra.mxu2 %vm2107_vm5, %v3459_v17  ;;  %v8211_v32 = vld [vmem:[#allocation2 + $0xa8] sm:$0xff] }
 0x4d3   : > { %v3165_v4 = vpop.f32.mrf.mxu2 }
 0x4d4   : > { %7593 = vmatmul.msk.bf16.gmra.mxu1 %vm2107_vm5, %v3393_v58  ;;  %v3259_v28 = vpop.f32.mrf.mxu3  ;;  %v3289_v30 = vpack.c.bf16 %v3165_v4, %v3165_v4 }
 0x4d5   : > { %7610 = vmatmul.msk.bf16.vlgmr.msrb.gmra.mxu0 %vm2107_vm5, %v8193_v2  ;;  %v3296_v12 = vpack.c.bf16 %v3259_v28, %v3259_v28 }
 0x4d6   : > { %v3455_v40 = vunpack.c.l.b16 %v3289_v30 }
 0x4d7   : > { %v3521_v7 = vunpack.c.l.b16 %v3296_v12  ;;  %v8212_v12 = vld [vmem:[#allocation2 + $0x80] sm:$0xff] }
 0x4d9   : > { %v3526_v13 = vpack.c.b16 %v3521_v7, %v3520_v49  ;;  %v8213_v49 = vld [vmem:[#allocation2 + $0x58] sm:$0xff] }
 0x4db   : > { %v3167_v0 = vpop.f32.mrf.mxu2  ;;  %7608 = vmatmul.msk.bf16.gmra.mxu3 %vm2107_vm5, %v3526_v13  ;;  %v8214_v13 = vld [vmem:[#allocation2 + $0xb0] sm:$0xff] }
 0x4dc   : > { %v3290_v39 = vpack.c.bf16 %v3167_v0, %v3167_v0  ;;  %v3262_v41 = vpop.f32.mrf.mxu3 }
 0x4dd   : > { %v3297_v31 = vpack.c.bf16 %v3262_v41, %v3262_v41 }
 0x4de   : > { %v3456_v37 = vunpack.c.l.b16 %v3290_v39 }
 0x4df   : > { %v3522_v18 = vunpack.c.l.b16 %v3297_v31  ;;  %v8215_v31 = vld [vmem:[#allocation2 + $0x88] sm:$0xff] }
 0x4e0   : > { %v3460_v6 = vpack.c.b16 %v3456_v37, %v3455_v40 }
 0x4e2   : > { %7601 = vmatmul.msk.bf16.gmra.mxu2 %vm2107_vm5, %v3460_v6 }
 0x4e4   : > { %7616 = vmatmul.msk.bf16.vlgmr.msrb.gmra.mxu1 %vm2107_vm5, %v8194_v11  ;;  %v3264_v34 = vpop.f32.mrf.mxu3 }
 0x4e5   : > { %7611 = vmatmul.msk.bf16.gmra.mxu0 %vm2107_vm5, %v8195_v38  ;;  %v3298_v1 = vpack.c.bf16 %v3264_v34, %v3264_v34 }
 0x4e7   : > { %v3523_v20 = vunpack.c.l.b16 %v3298_v1 }
 0x4e9   : > { %v3527_v22 = vpack.c.b16 %v3523_v20, %v3522_v18 }
 0x4eb   : > { %7609 = vmatmul.msk.bf16.gmra.mxu3 %vm2107_vm5, %v3527_v22 }
 0x4f2   : > { %7622 = vmatmul.msk.bf16.vlgmr.msrb.gmra.mxu2 %vm2107_vm5, %v8196_v47 }
 0x4f4   : > { %7617 = vmatmul.msk.bf16.gmra.mxu1 %vm2107_vm5, %v8197_v45 }
 0x4f5   : > { %7612 = vmatmul.msk.bf16.gmra.mxu0 %vm2107_vm5, %v8198_v61 }
 0x4fb   : > { %7628 = vmatmul.msk.bf16.vlgmr.msrb.gmra.mxu3 %vm2107_vm5, %v8199_v25  ;;  %v3354_v53 = vpop.f32.mrf.mxu0 }
 0x4fc   : > { %v3575_v54 = vsel %vm1452_vm4, %v3354_v53, 0.0 }
 0x502   : > { %7623 = vmatmul.msk.bf16.gmra.mxu2 %vm2107_vm5, %v8200_v60 }
 0x503   : > { %v3356_v57 = vpop.f32.mrf.mxu0  ;;  %v3421_v33 = vpop.f32.mrf.mxu1 }
 0x504   : > { %7618 = vmatmul.msk.bf16.gmra.mxu1 %vm2107_vm5, %v8201_v42  ;;  %v3576_v27 = vsel %vm1452_vm4, %v3421_v33, 0.0  ;;  %v3582_v48 = vsel %vm1452_vm4, %v3356_v57, 0.0 }
 0x505   : > { %7613 = vmatmul.msk.bf16.gmra.mxu0 %vm2107_vm5, %v8202_v5  ;;  %v3577_v8 = vadd.f32 %v3576_v27, %v3575_v54  ;;  %v8216_v5 = vld [vmem:[#allocation2 + $0xb8] sm:$0xff] }
 0x50b   : > { %7629 = vmatmul.msk.bf16.gmra.mxu3 %vm2107_vm5, %v8203_v29  ;;  %v3423_v62 = vpop.f32.mrf.mxu1 }
 0x50c   : > { %v3583_v63 = vsel %vm1452_vm4, %v3423_v62, 0.0 }
 0x50d   : > { %v3584_v35 = vadd.f32 %v3583_v63, %v3582_v48 }
 0x512   : > { %7624 = vmatmul.msk.bf16.gmra.mxu2 %vm2107_vm5, %v8204_v50 }
 0x514   : > { %7619 = vmatmul.msk.bf16.gmra.mxu1 %vm2107_vm5, %v8205_v26 }
 0x515   : > { %7614 = vmatmul.msk.bf16.gmra.mxu0 %vm2107_vm5, %v8206_v3 }
 0x51a   : > { %v3426_v17 = vpop.f32.mrf.mxu1 }
 0x51b   : > { %7630 = vmatmul.msk.bf16.gmra.mxu3 %vm2107_vm5, %v8207_v23  ;;  %v3590_v40 = vsel %vm1452_vm4, %v3426_v17, 0.0 }
 0x51d   : > { %v3488_v55 = vpop.f32.mrf.mxu2 }
 0x51e   : > { %v3578_v36 = vsel %vm1452_vm4, %v3488_v55, 0.0 }
 0x51f   : > { %v3579_v52 = vadd.f32 %v3578_v36, %v3577_v8 }
 0x521   : > { %v3359_v44 = vpop.f32.mrf.mxu0 }
 0x522   : > { %7625 = vmatmul.msk.bf16.gmra.mxu2 %vm2107_vm5, %v8208_v15  ;;  %v3428_v7 = vpop.f32.mrf.mxu1  ;;  %v3589_v41 = vsel %vm1452_vm4, %v3359_v44, 0.0 }
 0x523   : > { %v3591_v11 = vadd.f32 %v3590_v40, %v3589_v41  ;;  %v3597_v61 = vsel %vm1452_vm4, %v3428_v7, 0.0 }
 0x524   : > { %7620 = vmatmul.msk.bf16.gmra.mxu1 %vm2107_vm5, %v8209_v24 }
 0x525   : > { %7615 = vmatmul.msk.bf16.gmra.mxu0 %vm2107_vm5, %v8210_v16  ;;  %v3555_v21 = vpop.f32.mrf.mxu3  ;;  %v3490_v43 = vpop.f32.mrf.mxu2 }
 0x526   : > { %v3580_v46 = vsel %vm1452_vm4, %v3555_v21, 0.0  ;;  %v3585_v51 = vsel %vm1452_vm4, %v3490_v43, 0.0 }
 0x527   : > { %v3581_v14 = vadd.f32 %v3580_v46, %v3579_v52  ;;  %v3586_v10 = vadd.f32 %v3585_v51, %v3584_v35 }
 0x529   : > { %v3361_v56 = vpop.f32.mrf.mxu0  ;;  %v3635_v59 = vadd.f32 %v9813_v9, %v3581_v14 }
 0x52a   : > { %v3596_v22 = vsel %vm1452_vm4, %v3361_v56, 0.0 }
 0x52b   : > { %3643 = vst.msk [vmem:[%s8467_s19] sm:$0xff] %vm1452_vm4, %v3635_v59  ;;  %7631 = vmatmul.msk.bf16.gmra.mxu3 %vm2107_vm5, %v8211_v32  ;;  %v3598_v42 = vadd.f32 %v3597_v61, %v3596_v22 }
 0x52d   : > { %v3557_v58 = vpop.f32.mrf.mxu3 }
 0x52e   : > { %v3587_v4 = vsel %vm1452_vm4, %v3557_v58, 0.0 }
 0x52f   : > { %v3588_v19 = vadd.f32 %v3587_v4, %v3586_v10 }
 0x531   : > { %v3364_v28 = vpop.f32.mrf.mxu0  ;;  %v3636_v2 = vadd.f32 %v9813_v9, %v3588_v19 }
 0x532   : > { %7626 = vmatmul.msk.bf16.gmra.mxu2 %vm2107_vm5, %v8212_v12  ;;  %v3431_v39 = vpop.f32.mrf.mxu1  ;;  %v3603_v44 = vsel %vm1452_vm4, %v3364_v28, 0.0 }
 0x533   : > { %3644 = vst.msk [vmem:[%s8467_s19 + $0x8] sm:$0xff] %vm1452_vm4, %v3636_v2  ;;  %v3604_v15 = vsel %vm1452_vm4, %v3431_v39, 0.0 }
 0x534   : > { %7621 = vmatmul.msk.bf16.gmra.mxu1 %vm2107_vm5, %v8213_v49  ;;  %v3605_v24 = vadd.f32 %v3604_v15, %v3603_v44 }
 0x536   : > { %v3493_v0 = vpop.f32.mrf.mxu2 }
 0x537   : > { %v3592_v37 = vsel %vm1452_vm4, %v3493_v0, 0.0 }
 0x538   : > { %v3593_v34 = vadd.f32 %v3592_v37, %v3591_v11 }
 0x539   : > { %v3366_v30 = vpop.f32.mrf.mxu0 }
 0x53a   : > { %v3433_v47 = vpop.f32.mrf.mxu1  ;;  %v3610_v14 = vsel %vm1452_vm4, %v3366_v30, 0.0 }
 0x53b   : > { %7632 = vmatmul.msk.bf16.gmra.mxu3 %vm2107_vm5, %v8214_v13  ;;  %v3611_v63 = vsel %vm1452_vm4, %v3433_v47, 0.0 }
 0x53c   : > { %v3612_v32 = vadd.f32 %v3611_v63, %v3610_v14 }
 0x53e   : > { %v3495_v18 = vpop.f32.mrf.mxu2 }
 0x53f   : > { %v3599_v25 = vsel %vm1452_vm4, %v3495_v18, 0.0 }
 0x540   : > { %v3600_v29 = vadd.f32 %v3599_v25, %v3598_v42 }
 0x542   : > { %v9833_v6 = vpop.f32.mrf.mxu0  ;;  %7627 = vmatmul.msk.bf16.gmra.mxu2 %vm2107_vm5, %v8215_v31 }
 0x543   : > { %v3617_v13 = vsel %vm1452_vm4, %v9833_v6, 0.0 }
 0x545   : > { %v3560_v38 = vpop.f32.mrf.mxu3 }
 0x546   : > { %v3594_v1 = vsel %vm1452_vm4, %v3560_v38, 0.0 }
 0x547   : > { %v3595_v20 = vadd.f32 %v3594_v1, %v3593_v34 }
 0x549   : > { %v3637_v45 = vadd.f32 %v9813_v9, %v3595_v20 }
 0x54a   : > { %v9841_v60 = vpop.f32.mrf.mxu0 }
 0x54b   : > { %3645 = vst.msk [vmem:[%s8467_s19 + $0x10] sm:$0xff] %vm1452_vm4, %v3637_v45  ;;  %7633 = vmatmul.msk.bf16.gmra.mxu3 %vm2107_vm5, %v8216_v5  ;;  %v3624_v22 = vsel %vm1452_vm4, %v9841_v60, 0.0 }
 0x54d   : > { %v3562_v53 = vpop.f32.mrf.mxu3 }
 0x54e   : > { %v3601_v50 = vsel %vm1452_vm4, %v3562_v53, 0.0 }
 0x54f   : > { %v3602_v26 = vadd.f32 %v3601_v50, %v3600_v29 }
 0x551   : > { %v3638_v3 = vadd.f32 %v9813_v9, %v3602_v26  ;;  %v3436_v57 = vpop.f32.mrf.mxu1 }
 0x552   : > { %v9848_v33 = vpop.f32.mrf.mxu0  ;;  %v3618_v2 = vsel %vm1452_vm4, %v3436_v57, 0.0 }
 0x553   : > { %3646 = vst.msk [vmem:[%s8467_s19 + $0x18] sm:$0xff] %vm1452_vm4, %v3638_v3  ;;  %v3855_v23 = vsel %vm1452_vm4, %v9848_v33, -inf  ;;  %v3619_v39 = vadd.f32 %v3618_v2, %v3617_v13 }
 0x554   : > { %3856 = vmax.xlane.f32.xlu1 %v3855_v23 }
 0x555   : > { %v3498_v55 = vpop.f32.mrf.mxu2 }
 0x556   : > { %v3606_v8 = vsel %vm1452_vm4, %v3498_v55, 0.0 }
 0x557   : > { %v3607_v16 = vadd.f32 %v3606_v8, %v3605_v24 }
 0x559   : > { %v3438_v27 = vpop.f32.mrf.mxu1 }
 0x55a   : > { %v9856_v54 = vpop.f32.mrf.mxu0  ;;  %v3625_v38 = vsel %vm1452_vm4, %v3438_v27, 0.0 }
 0x55b   : > { %v3858_v36 = vsel %vm1452_vm4, %v9856_v54, -inf  ;;  %v3626_v45 = vadd.f32 %v3625_v38, %v3624_v22 }
 0x55c   : > { %3859 = vmax.xlane.f32.xlu2 %v3858_v36 }
 0x55d   : > { %v3500_v62 = vpop.f32.mrf.mxu2 }
 0x55e   : > { %v3565_v52 = vpop.f32.mrf.mxu3  ;;  %v3613_v35 = vsel %vm1452_vm4, %v3500_v62, 0.0 }
 0x55f   : > { %v3608_v21 = vsel %vm1452_vm4, %v3565_v52, 0.0  ;;  %v3614_v10 = vadd.f32 %v3613_v35, %v3612_v32 }
 0x560   : > { %v3609_v46 = vadd.f32 %v3608_v21, %v3607_v16 }
 0x561   : > { %v9862_v43 = vpop.f32.mrf.mxu1 }
 0x562   : > { %v9866_v56 = vpop.f32.mrf.mxu0  ;;  %v3891_v59 = vsel %vm1452_vm4, %v9862_v43, -inf  ;;  %v3639_v48 = vadd.f32 %v9813_v9, %v3609_v46 }
 0x563   : > { %3892 = vmax.xlane.f32.xlu1 %v3891_v59  ;;  %v3861_v51 = vsel %vm1452_vm4, %v9866_v56, -inf }
 0x564   : > { %3862 = vmax.xlane.f32.xlu0 %v3861_v51  ;;  %3647 = vst.msk [vmem:[%s8467_s19 + $0x20] sm:$0xff] %vm1452_vm4, %v3639_v48 }
 0x565   : > { %v3503_v17 = vpop.f32.mrf.mxu2 }
 0x566   : > { %v3567_v58 = vpop.f32.mrf.mxu3  ;;  %v3620_v0 = vsel %vm1452_vm4, %v3503_v17, 0.0 }
 0x567   : > { %v3615_v4 = vsel %vm1452_vm4, %v3567_v58, 0.0  ;;  %v3621_v40 = vadd.f32 %v3620_v0, %v3619_v39 }
 0x568   : > { %v3616_v19 = vadd.f32 %v3615_v4, %v3614_v10 }
 0x569   : > { %v9877_v28 = vpop.f32.mrf.mxu1 }
 0x56a   : > { %v9880_v12 = vpop.f32.mrf.mxu0  ;;  %v3894_v49 = vsel %vm1452_vm4, %v9877_v28, -inf  ;;  %v3640_v7 = vadd.f32 %v9813_v9, %v3616_v19 }
 0x56b   : > { %3895 = vmax.xlane.f32.xlu2 %v3894_v49  ;;  %v3864_v30 = vsel %vm1452_vm4, %v9880_v12, -inf }
 0x56c   : > { %3865 = vmax.xlane.f32.xlu1 %v3864_v30  ;;  %3648 = vst.msk [vmem:[%s8467_s19 + $0x28] sm:$0xff] %vm1452_vm4, %v3640_v7 }
 0x56d   : > { %v3505_v41 = vpop.f32.mrf.mxu2 }
 0x56e   : > { %v3570_v37 = vpop.f32.mrf.mxu3  ;;  %v3627_v47 = vsel %vm1452_vm4, %v3505_v41, 0.0 }
 0x56f   : > { %v3622_v31 = vsel %vm1452_vm4, %v3570_v37, 0.0  ;;  %v3628_v25 = vadd.f32 %v3627_v47, %v3626_v45 }
 0x570   : > { %v3623_v11 = vadd.f32 %v3622_v31, %v3621_v40 }
 0x571   : > { %v9893_v34 = vpop.f32.mrf.mxu1 }
 0x572   : > { %v3897_v6 = vsel %vm1452_vm4, %v9893_v34, -inf  ;;  %v9898_v1 = vpop.f32.mrf.mxu0  ;;  %v3641_v18 = vadd.f32 %v9813_v9, %v3623_v11 }
 0x573   : > { %11717 = vst [vmem:[#allocation27_spill] sm:$0xff] %v9898_v1  ;;  %3898 = vmax.xlane.f32.xlu0 %v3897_v6  ;;  %v3867_v20 = vsel %vm1452_vm4, %v9898_v1, -inf }
 0x574   : > { %3868 = vmax.xlane.f32.xlu2 %v3867_v20  ;;  %3649 = vst.msk [vmem:[%s8467_s19 + $0x30] sm:$0xff] %vm1452_vm4, %v3641_v18 }
 0x575   : > { %v9908_v61 = vpop.f32.mrf.mxu2 }
 0x576   : > { %11718 = vst [vmem:[#allocation31_spill] sm:$0xff] %v9908_v61  ;;  %v3572_v42 = vpop.f32.mrf.mxu3  ;;  %v3927_v55 = vsel %vm1452_vm4, %v9908_v61, -inf }
 0x577   : > { %v3629_v5 = vsel %vm1452_vm4, %v3572_v42, 0.0 }
 0x578   : > { %v3630_v29 = vadd.f32 %v3629_v5, %v3628_v25 }
 0x579   : > { %v9911_v53 = vpop.f32.mrf.mxu1 }
 0x57a   : > { %11719 = vst [vmem:[#allocation19_spill] sm:$0xff] %v9911_v53  ;;  %v3900_v50 = vsel %vm1452_vm4, %v9911_v53, -inf  ;;  %v9915_v60 = vpop.f32.mrf.mxu0  ;;  %v3642_v26 = vadd.f32 %v9813_v9, %v3630_v29 }
 0x57b   : > { %11720 = vst [vmem:[#allocation23_spill] sm:$0xff] %v9915_v60  ;;  %3901 = vmax.xlane.f32.xlu1 %v3900_v50  ;;  %v3870_v3 = vsel %vm1452_vm4, %v9915_v60, -inf }
 0x57c   : > { %3871 = vmax.xlane.f32.xlu0 %v3870_v3  ;;  %3650 = vst.msk [vmem:[%s8467_s19 + $0x38] sm:$0xff] %vm1452_vm4, %v3642_v26 }
 0x57d   : > { %v9922_v57 = vpop.f32.mrf.mxu2 }
 0x57e   : > { %11721 = vst [vmem:[#allocation34_spill] sm:$0xff] %v9922_v57  ;;  %v9924_v23 = vpop.f32.mrf.mxu3  ;;  %v3930_v24 = vsel %vm1452_vm4, %v9922_v57, -inf }
 0x57f   : > { %11722 = vst [vmem:[#allocation37_spill] sm:$0xff] %v9924_v23  ;;  %v3963_v36 = vsel %vm1452_vm4, %v9924_v23, -inf }
 0x581   : > { %v9928_v27 = vpop.f32.mrf.mxu1 }
 0x582   : > { %11723 = vst [vmem:[#allocation12_spill] sm:$0xff] %v9928_v27  ;;  %v3903_v44 = vsel %vm1452_vm4, %v9928_v27, -inf  ;;  %v9944_v16 = vpop.f32.mrf.mxu0  ;;  %v10341_v27 = vld [vmem:[#allocation4 + $0x148] sm:$0xff] }
 0x583   : > { %3928 = vmax.xlane.f32.xlu1 %v3927_v55  ;;  %3904 = vmax.xlane.f32.xlu2 %v3903_v44  ;;  %11727 = vst [vmem:[#allocation18_spill] sm:$0xff] %v9944_v16  ;;  %v3873_v21 = vsel %vm1452_vm4, %v9944_v16, -inf }
 0x585   : > { %v9932_v9 = vpop.f32.mrf.mxu2 }
 0x586   : > { %11724 = vst [vmem:[#allocation14_spill] sm:$0xff] %v9932_v9  ;;  %v9934_v15 = vpop.f32.mrf.mxu3  ;;  %v3933_v14 = vsel %vm1452_vm4, %v9932_v9, -inf }
 0x587   : > { %11725 = vst [vmem:[#allocation26_spill] sm:$0xff] %v9934_v15  ;;  %v3966_v63 = vsel %vm1452_vm4, %v9934_v15, -inf }
 0x589   : > { %v9938_v8 = vpop.f32.mrf.mxu1 }
 0x58a   : > { %11726 = vst [vmem:[#allocation30_spill] sm:$0xff] %v9938_v8  ;;  %v3906_v62 = vsel %vm1452_vm4, %v9938_v8, -inf  ;;  %v9958_v48 = vpop.f32.mrf.mxu0 }
 0x58b   : > { %3964 = vmax.xlane.f32.xlu1 %v3963_v36  ;;  %3931 = vmax.xlane.f32.xlu2 %v3930_v24  ;;  %11731 = vst [vmem:[#allocation38_spill] sm:$0xff] %v9958_v48  ;;  %v3876_v17 = vsel %vm1452_vm4, %v9958_v48, -inf  ;;  %v10032_v36 = vld [vmem:[#allocation4] sm:$0xff] }
 0x58c   : > { %3907 = vmax.xlane.f32.xlu0 %v3906_v62 }
 0x58d   : > { %v9950_v46 = vpop.f32.mrf.mxu2 }
 0x58e   : > { %v9946_v52 = vpop.f32.mrf.mxu3  ;;  %11729 = vst [vmem:[#allocation13_spill] sm:$0xff] %v9950_v46  ;;  %v3936_v2 = vsel %vm1452_vm4, %v9950_v46, -inf }
 0x58f   : > { %11728 = vst [vmem:[#allocation22_spill] sm:$0xff] %v9946_v52  ;;  %v3969_v32 = vsel %vm1452_vm4, %v9946_v52, -inf }
 0x591   : > { %v9956_v59 = vpop.f32.mrf.mxu1 }
 0x592   : > { %11730 = vst [vmem:[#allocation15_spill] sm:$0xff] %v9956_v59  ;;  %v3909_v51 = vsel %vm1452_vm4, %v9956_v59, -inf  ;;  %v9972_v4 = vpop.f32.mrf.mxu0 }
 0x593   : > { %3967 = vmax.xlane.f32.xlu2 %v3966_v63  ;;  %3874 = vmax.xlane.f32.xlu1 %v3873_v21  ;;  %11735 = vst [vmem:[#allocation24_spill] sm:$0xff] %v9972_v4  ;;  %v3879_v19 = vsel %vm1452_vm4, %v9972_v4, -inf }
 0x594   : > { %3934 = vmax.xlane.f32.xlu0 %v3933_v14 }
 0x595   : > { %v9968_v10 = vpop.f32.mrf.mxu2 }
 0x596   : > { %v9962_v35 = vpop.f32.mrf.mxu3  ;;  %11733 = vst [vmem:[#allocation32_spill] sm:$0xff] %v9968_v10  ;;  %v3939_v0 = vsel %vm1452_vm4, %v9968_v10, -inf }
 0x597   : > { %11732 = vst [vmem:[#allocation40_spill] sm:$0xff] %v9962_v35  ;;  %v3972_v41 = vsel %vm1452_vm4, %v9962_v35, -inf }
 0x599   : > { %v9970_v58 = vpop.f32.mrf.mxu1 }
 0x59a   : > { %11734 = vst [vmem:[#allocation35_spill] sm:$0xff] %v9970_v58  ;;  %v3912_v49 = vsel %vm1452_vm4, %v9970_v58, -inf  ;;  %v9992_v40 = vpop.f32.mrf.mxu0 }
 0x59b   : > { %3910 = vmax.xlane.f32.xlu1 %v3909_v51  ;;  %3877 = vmax.xlane.f32.xlu2 %v3876_v17  ;;  %11739 = vst [vmem:[#allocation16_spill] sm:$0xff] %v9992_v40  ;;  %v3882_v38 = vsel %vm1452_vm4, %v9992_v40, -inf }
 0x59c   : > { %3970 = vmax.xlane.f32.xlu0 %v3969_v32 }
 0x59d   : > { %v9982_v30 = vpop.f32.mrf.mxu2 }
 0x59e   : > { %v9980_v7 = vpop.f32.mrf.mxu3  ;;  %11737 = vst [vmem:[#allocation39_spill] sm:$0xff] %v9982_v30  ;;  %v3942_v6 = vsel %vm1452_vm4, %v9982_v30, -inf }
 0x59f   : > { %11736 = vst [vmem:[#allocation28_spill] sm:$0xff] %v9980_v7  ;;  %v3975_v11 = vsel %vm1452_vm4, %v9980_v7, -inf }
 0x5a1   : > { %v9984_v13 = vpop.f32.mrf.mxu1 }
 0x5a2   : > { %11738 = vst [vmem:[#allocation41_spill] sm:$0xff] %v9984_v13  ;;  %v3915_v39 = vsel %vm1452_vm4, %v9984_v13, -inf  ;;  %v10006_v20 = vpop.f32.mrf.mxu0 }
 0x5a3   : > { %3937 = vmax.xlane.f32.xlu1 %v3936_v2  ;;  %3913 = vmax.xlane.f32.xlu2 %v3912_v49  ;;  %11743 = vst [vmem:[#allocation25_spill] sm:$0xff] %v10006_v20  ;;  %v3885_v45 = vsel %vm1452_vm4, %v10006_v20, -inf }
 0x5a4   : > { %3880 = vmax.xlane.f32.xlu0 %v3879_v19  ;;  %v10051_v19 = vld [vmem:[#allocation4 + $0x8] sm:$0xff] }
 0x5a5   : > { %v9996_v31 = vpop.f32.mrf.mxu2 }
 0x5a6   : > { %v9994_v37 = vpop.f32.mrf.mxu3  ;;  %11741 = vst [vmem:[#allocation33_spill] sm:$0xff] %v9996_v31  ;;  %v3945_v44 = vsel %vm1452_vm4, %v9996_v31, -inf }
 0x5a7   : > { %11740 = vst [vmem:[#allocation20_spill] sm:$0xff] %v9994_v37  ;;  %v3978_v42 = vsel %vm1452_vm4, %v9994_v37, -inf }
 0x5a9   : > { %v10004_v18 = vpop.f32.mrf.mxu1 }
 0x5aa   : > { %11742 = vst [vmem:[#allocation36_spill] sm:$0xff] %v10004_v18  ;;  %v3918_v25 = vsel %vm1452_vm4, %v10004_v18, -inf  ;;  %v10020_v29 = vpop.f32.mrf.mxu0 }
 0x5ab   : > { %3973 = vmax.xlane.f32.xlu1 %v3972_v41  ;;  %3940 = vmax.xlane.f32.xlu2 %v3939_v0  ;;  %11747 = vst [vmem:[#allocation42_spill] sm:$0xff] %v10020_v29  ;;  %v3888_v3 = vsel %vm1452_vm4, %v10020_v29, -inf  ;;  %v10168_v29 = vld [vmem:[#allocation4 + $0x88] sm:$0xff] }
 0x5ac   : > { %3916 = vmax.xlane.f32.xlu0 %v3915_v39 }
 0x5ad   : > { %v10010_v47 = vpop.f32.mrf.mxu2 }
 0x5ae   : > { %v10008_v22 = vpop.f32.mrf.mxu3  ;;  %11745 = vst [vmem:[#allocation17_spill] sm:$0xff] %v10010_v47  ;;  %v3948_v32 = vsel %vm1452_vm4, %v10010_v47, -inf }
 0x5af   : > { %11744 = vst [vmem:[#allocation29_spill] sm:$0xff] %v10008_v22  ;;  %v3981_v51 = vsel %vm1452_vm4, %v10008_v22, -inf }
 0x5b1   : > { %v10018_v5 = vpop.f32.mrf.mxu1 }
 0x5b2   : > { %11746 = vst [vmem:[#allocation21_spill] sm:$0xff] %v10018_v5  ;;  %v3921_v26 = vsel %vm1452_vm4, %v10018_v5, -inf }
 0x5b3   : > { %3976 = vmax.xlane.f32.xlu2 %v3975_v11  ;;  %3883 = vmax.xlane.f32.xlu1 %v3882_v38  ;;  %v10066_v38 = vld [vmem:[#allocation4 + $0x60] sm:$0xff] }
 0x5b4   : > { %3943 = vmax.xlane.f32.xlu0 %v3942_v6 }
 0x5b5   : > { %v10028_v55 = vpop.f32.mrf.mxu2 }
 0x5b6   : > { %v10022_v50 = vpop.f32.mrf.mxu3  ;;  %11749 = vst [vmem:[#allocation44_spill] sm:$0xff] %v10028_v55  ;;  %v3951_v41 = vsel %vm1452_vm4, %v10028_v55, -inf }
 0x5b7   : > { %11748 = vst [vmem:[#allocation43_spill] sm:$0xff] %v10022_v50  ;;  %v3984_v39 = vsel %vm1452_vm4, %v10022_v50, -inf }
 0x5b9   : > { %v10034_v24 = vpop.f32.mrf.mxu1 }
 0x5ba   : > { %11750 = vst [vmem:[#allocation45_spill] sm:$0xff] %v10034_v24  ;;  %v3924_v14 = vsel %vm1452_vm4, %v10034_v24, -inf }
 0x5bb   : > { %3919 = vmax.xlane.f32.xlu1 %v3918_v25  ;;  %3886 = vmax.xlane.f32.xlu2 %v3885_v45  ;;  %v3809_v45 = vld [vmem:[#allocation4 + $0x10] sm:$0xff] }
 0x5bc   : > { %3979 = vmax.xlane.f32.xlu0 %v3978_v42  ;;  %v8359_v42 = vmov 0  }
 0x5bd   : > { %v10049_v17 = vpop.f32.mrf.mxu2  ;;  %7869 = vset.pattern.permute.xlu1 %v8359_v42  ;;  %7871 = vset.pattern.permute.xlu2 %v8359_v42 }
 0x5be   : > { %v10041_v63 = vpop.f32.mrf.mxu3  ;;  %11752 = vst [vmem:[#allocation47_spill] sm:$0xff] %v10049_v17  ;;  %v3954_v0 = vsel %vm1452_vm4, %v10049_v17, -inf  ;;  %7870 = vset.pattern.permute.xlu0 %v8359_v42 }
 0x5bf   : > { %11751 = vst [vmem:[#allocation46_spill] sm:$0xff] %v10041_v63 }
 0x5c3   : > { %3946 = vmax.xlane.f32.xlu1 %v3945_v44  ;;  %3922 = vmax.xlane.f32.xlu2 %v3921_v26 }
 0x5c4   : > { %3889 = vmax.xlane.f32.xlu0 %v3888_v3 }
 0x5c5   : > { %v10068_v6 = vpop.f32.mrf.mxu2 }
 0x5c6   : > { %v10064_v11 = vpop.f32.mrf.mxu3  ;;  %11754 = vst [vmem:[#allocation49_spill] sm:$0xff] %v10068_v6  ;;  %v3957_v44 = vsel %vm1452_vm4, %v10068_v6, -inf }
 0x5c7   : > { %v3857_v62 = vpop.xlane.xlu1 %3856  ;;  %11753 = vst [vmem:[#allocation48_spill] sm:$0xff] %v10064_v11 }
 0x5c8   : > { %v10037_v21 = vmax.f32 %v10032_v36, %v3857_v62 }
 0x5ca   : > { %5836 = vst.msk [vmem:[#allocation4] sm:$0xff] %vm4863_vm7, %v10037_v21 }
 0x5cb   : > { %3982 = vmax.xlane.f32.xlu1 %v3981_v51  ;;  %3949 = vmax.xlane.f32.xlu2 %v3948_v32  ;;  %v3987_v51 = vsel %vm1452_vm4, %v10041_v63, -inf  ;;  %v10085_v32 = vld [vmem:[#allocation4 + $0x68] sm:$0xff] }
 0x5cc   : > { %3925 = vmax.xlane.f32.xlu0 %v3924_v14  ;;  %v3990_v14 = vsel %vm1452_vm4, %v10064_v11, -inf }
 0x5cf   : > { %v3860_v2 = vpop.xlane.xlu2 %3859 }
 0x5d0   : > { %v10054_v49 = vmax.f32 %v10051_v19, %v3860_v2  ;;  %v10087_v2 = vpop.f32.mrf.mxu3 }
 0x5d1   : > { %11755 = vst [vmem:[#allocation50_spill] sm:$0xff] %v10087_v2 }
 0x5d2   : > { %5837 = vst.msk [vmem:[#allocation4 + $0x8] sm:$0xff] %vm4863_vm7, %v10054_v49 }
 0x5d3   : > { %3955 = vmax.xlane.f32.xlu1 %v3954_v0  ;;  %3985 = vmax.xlane.f32.xlu2 %v3984_v39  ;;  %v10089_v0 = vld [vmem:[#allocation4 + $0x18] sm:$0xff] }
 0x5d4   : > { %3952 = vmax.xlane.f32.xlu0 %v3951_v41  ;;  %v10091_v41 = vpop.f32.mrf.mxu2 }
 0x5d5   : > { %11756 = vst [vmem:[#allocation51_spill] sm:$0xff] %v10091_v41 }
 0x5d6   : > { %v3893_v25 = vpop.xlane.xlu1 %3892 }
 0x5d7   : > { %v10071_v26 = vmax.f32 %v10066_v38, %v3893_v25  ;;  %v3863_v3 = vpop.xlane.xlu0 %3862 }
 0x5d8   : > { %v10075_v62 = vmax.f32 %v3809_v45, %v3863_v3  ;;  %v10111_v6 = vpop.f32.mrf.mxu3 }
 0x5d9   : > { %5848 = vst.msk [vmem:[#allocation4 + $0x60] sm:$0xff] %vm4863_vm7, %v10071_v26  ;;  %v4059_v47 = vsub.f32 %v10066_v38, %v10071_v26  ;;  %v10164_v38 = vld [vmem:[#allocation4 + $0x120] sm:$0xff] }
 0x5da   : > { %5838 = vst.msk [vmem:[#allocation4 + $0x10] sm:$0xff] %vm4863_vm7, %v10075_v62 }
 0x5db   : > { %3991 = vmax.xlane.f32.xlu1 %v3990_v14  ;;  %3958 = vmax.xlane.f32.xlu2 %v3957_v44  ;;  %v3993_v44 = vsel %vm1452_vm4, %v10087_v2, -inf  ;;  %v3960_v14 = vsel %vm1452_vm4, %v10091_v41, -inf  ;;  %11757 = vst [vmem:[#allocation52_spill] sm:$0xff] %v10111_v6  ;;  %v10125_v41 = vld [vmem:[#allocation4 + $0x28] sm:$0xff] }
 0x5dc   : > { %3988 = vmax.xlane.f32.xlu0 %v3987_v51  ;;  %v3996_v51 = vsel %vm1452_vm4, %v10111_v6, -inf }
 0x5de   : > { %v3896_v39 = vpop.xlane.xlu2 %3895 }
 0x5df   : > { %v10094_v25 = vmax.f32 %v10085_v32, %v3896_v39  ;;  %v3866_v42 = vpop.xlane.xlu1 %3865  ;;  %v3821_v39 = vld [vmem:[#allocation4 + $0x70] sm:$0xff] }
 0x5e0   : > { %v10097_v3 = vmax.f32 %v10089_v0, %v3866_v42  ;;  %v10109_v42 = vld [vmem:[#allocation4 + $0x20] sm:$0xff] }
 0x5e1   : > { %5849 = vst.msk [vmem:[#allocation4 + $0x68] sm:$0xff] %vm4863_vm7, %v10094_v25 }
 0x5e2   : > { %5839 = vst.msk [vmem:[#allocation4 + $0x18] sm:$0xff] %vm4863_vm7, %v10097_v3 }
 0x5e3   : > { %3994 = vmax.xlane.f32.xlu2 %v3993_v44  ;;  %v10142_v44 = vld [vmem:[#allocation4 + $0x80] sm:$0xff] }
 0x5e4   : > { %3961 = vmax.xlane.f32.xlu0 %v3960_v14  ;;  %v10123_v14 = vld [vmem:[#allocation4 + $0x78] sm:$0xff] }
 0x5e6   : > { %v3899_v11 = vpop.xlane.xlu0 %3898 }
 0x5e7   : > { %v4013_v2 = vmax.f32 %v3821_v39, %v3899_v11  ;;  %v3869_v17 = vpop.xlane.xlu2 %3868 }
 0x5e8   : > { %v10114_v63 = vmax.f32 %v10109_v42, %v3869_v17 }
 0x5e9   : > { %5850 = vst.msk [vmem:[#allocation4 + $0x70] sm:$0xff] %vm4863_vm7, %v4013_v2  ;;  %v4061_v5 = vsub.f32 %v3821_v39, %v4013_v2  ;;  %v10200_v39 = vld [vmem:[#allocation4 + $0xd0] sm:$0xff] }
 0x5ea   : > { %5840 = vst.msk [vmem:[#allocation4 + $0x20] sm:$0xff] %vm4863_vm7, %v10114_v63 }
 0x5ec   : > { %3997 = vmax.xlane.f32.xlu0 %v3996_v51  ;;  %v10140_v51 = vld [vmem:[#allocation4 + $0xc0] sm:$0xff] }
 0x5ee   : > { %v3902_v11 = vpop.xlane.xlu1 %3901 }
 0x5ef   : > { %v10128_v17 = vmax.f32 %v10123_v14, %v3902_v11  ;;  %v3872_v55 = vpop.xlane.xlu0 %3871  ;;  %v4049_v11 = vsub.f32 %v3809_v45, %v10075_v62 }
 0x5f0   : > { %v10131_v50 = vmax.f32 %v10125_v41, %v3872_v55 }
 0x5f1   : > { %5851 = vst.msk [vmem:[#allocation4 + $0x78] sm:$0xff] %vm4863_vm7, %v10128_v17  ;;  %v4099_v31 = vmul.f32 1.442695, %v4049_v11  ;;  %v10166_v11 = vld [vmem:[#allocation4 + $0xc8] sm:$0xff] }
 0x5f2   : > { %5841 = vst.msk [vmem:[#allocation4 + $0x28] sm:$0xff] %vm4863_vm7, %v10131_v50  ;;  %v4052_v15 = vsub.f32 %v10125_v41, %v10131_v50 }
 0x5f3   : > { %8001 = vpow2.f32 %v4099_v31  ;;  %v4123_v31 = vmul.f32 1.442695, %v4061_v5  ;;  %v10196_v5 = vld [vmem:[#allocation4 + $0x128] sm:$0xff] }
 0x5f4   : > { %4193 = vperm.xlu1 %7869, %v10037_v21  }
 0x5f6   : > { %v3929_v22 = vpop.xlane.xlu1 %3928  ;;  %v3905_v55 = vpop.xlane.xlu2 %3904 }
 0x5f7   : > { %v10146_v24 = vmax.f32 %v10140_v51, %v3929_v22  ;;  %v10149_v6 = vmax.f32 %v10142_v44, %v3905_v55  ;;  %v4047_v22 = vsub.f32 %v10032_v36, %v10037_v21  ;;  %v4119_v55 = vmul.f32 1.442695, %v4059_v47 }
 0x5f9   : > { %5860 = vst.msk [vmem:[#allocation4 + $0xc0] sm:$0xff] %vm4863_vm7, %v10146_v24  ;;  %v4095_v36 = vmul.f32 1.442695, %v4047_v22  ;;  %8003 = vpow2.f32 %v4119_v55 }
 0x5fa   : > { %5852 = vst.msk [vmem:[#allocation4 + $0x80] sm:$0xff] %vm4863_vm7, %v10149_v6 }
 0x5fb   : > { %4198 = vperm.xlu2 %7871, %v10054_v49   ;;  %8005 = vpow2.f32 %v4095_v36 }
 0x5fc   : > { %4263 = vperm.xlu1 %7869, %v4013_v2   ;;  %v10188_v2 = vpop.eup %8001  ;;  %8007 = vpow2.f32 %v4123_v31  ;;  %v4048_v31 = vsub.f32 %v10051_v19, %v10054_v49  ;;  %v10232_v19 = vld [vmem:[#allocation4 + $0x90] sm:$0xff]  ;;  %v10234_v49 = vld [vmem:[#allocation4 + $0x38] sm:$0xff] }
 0x5fd   : > { %11758 = vst [vmem:[#allocation53_spill] sm:$0xff] %v10188_v2 }
 0x5fe   : > { %v3965_v18 = vpop.xlane.xlu1 %3964  ;;  %v3932_v45 = vpop.xlane.xlu2 %3931 }
 0x5ff   : > { %v10171_v20 = vmax.f32 %v10164_v38, %v3965_v18  ;;  %v10174_v40 = vmax.f32 %v10166_v11, %v3932_v45  ;;  %v3908_v13 = vpop.xlane.xlu0 %3907  ;;  %v10202_v55 = vpop.eup %8003 }
 0x600   : > { %v10177_v21 = vmax.f32 %v10168_v29, %v3908_v13  ;;  %4253 = vperm.xlu0 %7870, %v10071_v26   ;;  %v4060_v13 = vsub.f32 %v10085_v32, %v10094_v25  ;;  %v10198_v26 = vld [vmem:[#allocation4 + $0x30] sm:$0xff]  ;;  %11759 = vst [vmem:[#allocation54_spill] sm:$0xff] %v10202_v55 }
 0x601   : > { %5872 = vst.msk [vmem:[#allocation4 + $0x120] sm:$0xff] %vm4863_vm7, %v10171_v20 }
 0x602   : > { %5861 = vst.msk [vmem:[#allocation4 + $0xc8] sm:$0xff] %vm4863_vm7, %v10174_v40  ;;  %v4121_v32 = vmul.f32 1.442695, %v4060_v13  ;;  %v4064_v41 = vsub.f32 %v10168_v29, %v10177_v21 }
 0x603   : > { %5853 = vst.msk [vmem:[#allocation4 + $0x88] sm:$0xff] %vm4863_vm7, %v10177_v21  ;;  %4258 = vperm.xlu2 %7871, %v10094_v25  }
 0x604   : > { %4972 = vperm.xlu1 %7869, %v10188_v2   ;;  %8009 = vpow2.f32 %v4121_v32  ;;  %v4129_v29 = vmul.f32 1.442695, %v4064_v41  ;;  %v10406_v41 = vld [vmem:[#allocation4 + $0xb8] sm:$0xff] }
 0x606   : > { %v3968_v45 = vpop.xlane.xlu2 %3967  ;;  %v3875_v22 = vpop.xlane.xlu1 %3874 }
 0x607   : > { %v10205_v18 = vmax.f32 %v10196_v5, %v3968_v45  ;;  %v3935_v36 = vpop.xlane.xlu0 %3934  ;;  %v10208_v47 = vmax.f32 %v10198_v26, %v3875_v22  ;;  %v10222_v22 = vpop.eup %8005  ;;  %v10236_v45 = vld [vmem:[#allocation4 + $0x130] sm:$0xff] }
 0x608   : > { %v10211_v25 = vmax.f32 %v10200_v39, %v3935_v36  ;;  %5022 = vperm.xlu0 %7870, %v10202_v55   ;;  %11760 = vst [vmem:[#allocation55_spill] sm:$0xff] %v10222_v22  ;;  %v10226_v13 = vpop.eup %8007  ;;  %v4097_v36 = vmul.f32 1.442695, %v4048_v31 }
 0x609   : > { %5873 = vst.msk [vmem:[#allocation4 + $0x128] sm:$0xff] %vm4863_vm7, %v10205_v18 }
 0x60a   : > { %5862 = vst.msk [vmem:[#allocation4 + $0xd0] sm:$0xff] %vm4863_vm7, %v10211_v25  ;;  %8011 = vpow2.f32 %v4097_v36  ;;  %v10250_v31 = vpop.eup %8009 }
 0x60b   : > { %11761 = vst [vmem:[#allocation56_spill] sm:$0xff] %v10226_v13  ;;  %4962 = vperm.xlu2 %7871, %v10222_v22  }
 0x60c   : > { %5842 = vst.msk [vmem:[#allocation4 + $0x30] sm:$0xff] %vm4863_vm7, %v10208_v47  ;;  %5032 = vperm.xlu1 %7869, %v10226_v13  }
 0x60d   : > { %11762 = vst [vmem:[#allocation57_spill] sm:$0xff] %v10250_v31 }
 0x60e   : > { %v3911_v2 = vpop.xlane.xlu1 %3910  ;;  %v3878_v55 = vpop.xlane.xlu2 %3877 }
 0x60f   : > { %v3971_v4 = vpop.xlane.xlu0 %3970  ;;  %v10239_v37 = vmax.f32 %v10232_v19, %v3911_v2  ;;  %v10242_v7 = vmax.f32 %v10234_v49, %v3878_v55  ;;  %v10260_v2 = vld [vmem:[#allocation4 + $0x98] sm:$0xff] }
 0x610   : > { %v10245_v32 = vmax.f32 %v10236_v45, %v3971_v4  ;;  %4203 = vperm.xlu0 %7870, %v10075_v62   ;;  %v10258_v4 = vld [vmem:[#allocation4 + $0xd8] sm:$0xff]  ;;  %v10262_v62 = vld [vmem:[#allocation4 + $0x40] sm:$0xff]  ;;  %v10264_v13 = vpop.eup %8011 }
 0x611   : > { %5854 = vst.msk [vmem:[#allocation4 + $0x90] sm:$0xff] %vm4863_vm7, %v10239_v37 }
 0x612   : > { %5874 = vst.msk [vmem:[#allocation4 + $0x130] sm:$0xff] %vm4863_vm7, %v10245_v32 }
 0x613   : > { %5843 = vst.msk [vmem:[#allocation4 + $0x38] sm:$0xff] %vm4863_vm7, %v10242_v7  ;;  %5027 = vperm.xlu2 %7871, %v10250_v31  }
 0x614   : > { %4213 = vperm.xlu1 %7869, %v10114_v63   ;;  %11763 = vst [vmem:[#allocation58_spill] sm:$0xff] %v10264_v13 }
 0x616   : > { %v3938_v55 = vpop.xlane.xlu1 %3937  ;;  %v3914_v36 = vpop.xlane.xlu2 %3913 }
 0x617   : > { %v10267_v22 = vmax.f32 %v10258_v4, %v3938_v55  ;;  %v10270_v30 = vmax.f32 %v10260_v2, %v3914_v36  ;;  %v3881_v35 = vpop.xlane.xlu0 %3880  ;;  %v10284_v55 = vld [vmem:[#allocation4 + $0x138] sm:$0xff]  ;;  %v10286_v36 = vld [vmem:[#allocation4 + $0xe0] sm:$0xff] }
 0x618   : > { %v10273_v31 = vmax.f32 %v10262_v62, %v3881_v35  ;;  %4967 = vperm.xlu0 %7870, %v10264_v13   ;;  %v10288_v35 = vld [vmem:[#allocation4 + $0xa0] sm:$0xff] }
 0x619   : > { %5863 = vst.msk [vmem:[#allocation4 + $0xd8] sm:$0xff] %vm4863_vm7, %v10267_v22 }
 0x61a   : > { %5855 = vst.msk [vmem:[#allocation4 + $0x98] sm:$0xff] %vm4863_vm7, %v10270_v30 }
 0x61b   : > { %5844 = vst.msk [vmem:[#allocation4 + $0x40] sm:$0xff] %vm4863_vm7, %v10273_v31  ;;  %4208 = vperm.xlu2 %7871, %v10097_v3  }
 0x61c   : > { %4278 = vperm.xlu1 %7869, %v10177_v21  }
 0x61e   : > { %v3974_v13 = vpop.xlane.xlu1 %3973  ;;  %v3941_v10 = vpop.xlane.xlu2 %3940 }
 0x61f   : > { %v10291_v46 = vmax.f32 %v10284_v55, %v3974_v13  ;;  %v10294_v52 = vmax.f32 %v10286_v36, %v3941_v10  ;;  %v3917_v58 = vpop.xlane.xlu0 %3916  ;;  %v10308_v10 = vld [vmem:[#allocation4 + $0x140] sm:$0xff]  ;;  %v10310_v13 = vld [vmem:[#allocation4 + $0x48] sm:$0xff] }
 0x620   : > { %v10297_v59 = vmax.f32 %v10288_v35, %v3917_v58  ;;  %4268 = vperm.xlu0 %7870, %v10128_v17   ;;  %11764 = vst [vmem:[#allocation59_spill] sm:$0xff] %v10308_v10  ;;  %v10312_v58 = vld [vmem:[#allocation4 + $0xe8] sm:$0xff] }
 0x621   : > { %5875 = vst.msk [vmem:[#allocation4 + $0x138] sm:$0xff] %vm4863_vm7, %v10291_v46 }
 0x622   : > { %5864 = vst.msk [vmem:[#allocation4 + $0xe0] sm:$0xff] %vm4863_vm7, %v10294_v52 }
 0x623   : > { %5856 = vst.msk [vmem:[#allocation4 + $0xa0] sm:$0xff] %vm4863_vm7, %v10297_v59  ;;  %4273 = vperm.xlu2 %7871, %v10149_v6  }
 0x624   : > { %4323 = vperm.xlu1 %7869, %v10211_v25   ;;  %11765 = vst [vmem:[#allocation60_spill] sm:$0xff] %v10310_v13 }
 0x626   : > { %v3977_v9 = vpop.xlane.xlu2 %3976  ;;  %v3884_v48 = vpop.xlane.xlu1 %3883 }
 0x627   : > { %v10315_v16 = vmax.f32 %v10308_v10, %v3977_v9  ;;  %v3944_v23 = vpop.xlane.xlu0 %3943  ;;  %v10318_v60 = vmax.f32 %v10310_v13, %v3884_v48  ;;  %v10332_v9 = vld [vmem:[#allocation4 + $0xa8] sm:$0xff]  ;;  %v10334_v48 = vld [vmem:[#allocation4 + $0x50] sm:$0xff] }
 0x628   : > { %v10321_v61 = vmax.f32 %v10312_v58, %v3944_v23  ;;  %4313 = vperm.xlu0 %7870, %v10146_v24   ;;  %11767 = vst [vmem:[#allocation62_spill] sm:$0xff] %v10332_v9  ;;  %v11769_v23 = vsub.f32 %v10089_v0, %v10097_v3  ;;  %v4105_v0 = vmul.f32 1.442695, %v4052_v15  ;;  %v11772_v15 = vsub.f32 %v10123_v14, %v10128_v17  ;;  %v10370_v3 = vld [vmem:[#allocation4 + $0x58] sm:$0xff] }
 0x629   : > { %11766 = vst [vmem:[#allocation61_spill] sm:$0xff] %v10318_v60  ;;  %v11774_v14 = vsub.f32 %v10109_v42, %v10114_v63  ;;  %v10399_v63 = vld [vmem:[#allocation4 + $0xf8] sm:$0xff]  ;;  %v11776_v42 = vsub.f32 %v10140_v51, %v10146_v24  ;;  %v11778_v24 = vsub.f32 %v10142_v44, %v10149_v6  ;;  %v10435_v6 = vld [vmem:[#allocation4 + $0x108] sm:$0xff] }
 0x62a   : > { %5876 = vst.msk [vmem:[#allocation4 + $0x140] sm:$0xff] %vm4863_vm7, %v10315_v16  ;;  %v4101_v13 = vmul.f32 1.442695, %v11769_v23  ;;  %v10437_v44 = vld [vmem:[#allocation4 + $0x158] sm:$0xff] }
 0x62b   : > { %5865 = vst.msk [vmem:[#allocation4 + $0xe8] sm:$0xff] %vm4863_vm7, %v10321_v61  ;;  %4318 = vperm.xlu2 %7871, %v10174_v40   ;;  %v4103_v17 = vmul.f32 1.442695, %v11774_v14  ;;  %v4127_v51 = vmul.f32 1.442695, %v11778_v24 }
 0x62c   : > { %5845 = vst.msk [vmem:[#allocation4 + $0x48] sm:$0xff] %vm4863_vm7, %v10318_v60  ;;  %4383 = vperm.xlu1 %7869, %v10245_v32   ;;  %8013 = vpow2.f32 %v4101_v13 }
 0x62d   : > { %11768 = vst [vmem:[#allocation63_spill] sm:$0xff] %v10334_v48  ;;  %8015 = vpow2.f32 %v4105_v0 }
 0x62e   : > { %v3920_v8 = vpop.xlane.xlu1 %3919  ;;  %v3887_v1 = vpop.xlane.xlu2 %3886 }
 0x62f   : > { %v3980_v53 = vpop.xlane.xlu0 %3979  ;;  %v10344_v57 = vmax.f32 %v10332_v9, %v3920_v8  ;;  %v10347_v60 = vmax.f32 %v10334_v48, %v3887_v1  ;;  %v10361_v1 = vld [vmem:[#allocation4 + $0xf0] sm:$0xff]  ;;  %v4125_v8 = vmul.f32 1.442695, %v11772_v15  ;;  %v4143_v15 = vmul.f32 1.442695, %v11776_v42 }
 0x630   : > { %v10350_v10 = vmax.f32 %v10341_v27, %v3980_v53  ;;  %4373 = vperm.xlu0 %7870, %v10171_v20   ;;  %v10363_v53 = vld [vmem:[#allocation4 + $0xb0] sm:$0xff] }
 0x631   : > { %11770 = vst [vmem:[#allocation64_spill] sm:$0xff] %v10344_v57  ;;  %8017 = vpow2.f32 %v4125_v8  ;;  %v4073_v8 = vsub.f32 %v10200_v39, %v10211_v25 }
 0x632   : > { %11771 = vst [vmem:[#allocation65_spill] sm:$0xff] %v10347_v60  ;;  %v10372_v48 = vpop.eup %8013  ;;  %8019 = vpow2.f32 %v4103_v17 }
 0x633   : > { %5857 = vst.msk [vmem:[#allocation4 + $0xa8] sm:$0xff] %vm4863_vm7, %v10344_v57  ;;  %4378 = vperm.xlu2 %7871, %v10205_v18   ;;  %v10391_v21 = vpop.eup %8015  ;;  %8021 = vpow2.f32 %v4129_v29  ;;  %v4147_v39 = vmul.f32 1.442695, %v4073_v8  ;;  %v4085_v8 = vsub.f32 %v10236_v45, %v10245_v32 }
 0x634   : > { %5877 = vst.msk [vmem:[#allocation4 + $0x148] sm:$0xff] %vm4863_vm7, %v10350_v10  ;;  %4223 = vperm.xlu1 %7869, %v10208_v47   ;;  %8023 = vpow2.f32 %v4143_v15 }
 0x635   : > { %5846 = vst.msk [vmem:[#allocation4 + $0x50] sm:$0xff] %vm4863_vm7, %v10347_v60  ;;  %8025 = vpow2.f32 %v4127_v51  ;;  %v4171_v45 = vmul.f32 1.442695, %v4085_v8 }
 0x636   : > { %v3947_v13 = vpop.xlane.xlu1 %3946  ;;  %v3923_v23 = vpop.xlane.xlu2 %3922  ;;  %11773 = vst [vmem:[#allocation66_spill] sm:$0xff] %v10372_v48  ;;  %8027 = vpow2.f32 %v4147_v39 }
 0x637   : > { %v10375_v9 = vmax.f32 %v10361_v1, %v3947_v13  ;;  %v10378_v60 = vmax.f32 %v10363_v53, %v3923_v23  ;;  %v3890_v57 = vpop.xlane.xlu0 %3889  ;;  %11775 = vst [vmem:[#allocation67_spill] sm:$0xff] %v10391_v21 }
 0x638   : > { %v10384_v0 = vmax.f32 %v10370_v3, %v3890_v57  ;;  %4977 = vperm.xlu0 %7870, %v10372_v48   ;;  %v10397_v57 = vld [vmem:[#allocation4 + $0x150] sm:$0xff] }
 0x639   : > { %5866 = vst.msk [vmem:[#allocation4 + $0xf0] sm:$0xff] %vm4863_vm7, %v10375_v9 }
 0x63a   : > { %5858 = vst.msk [vmem:[#allocation4 + $0xb0] sm:$0xff] %vm4863_vm7, %v10378_v60 }
 0x63b   : > { %5847 = vst.msk [vmem:[#allocation4 + $0x58] sm:$0xff] %vm4863_vm7, %v10384_v0  ;;  %4218 = vperm.xlu2 %7871, %v10131_v50   ;;  %v10408_v50 = vpop.eup %8017 }
 0x63c   : > { %4987 = vperm.xlu1 %7869, %v10391_v21   ;;  %11777 = vst [vmem:[#allocation68_spill] sm:$0xff] %v10408_v50  ;;  %v10425_v25 = vpop.eup %8019 }
 0x63d   : > { %11779 = vst [vmem:[#allocation69_spill] sm:$0xff] %v10425_v25  ;;  %v10429_v42 = vpop.eup %8021 }
 0x63e   : > { %v3983_v13 = vpop.xlane.xlu1 %3982  ;;  %v3950_v23 = vpop.xlane.xlu2 %3949  ;;  %11780 = vst [vmem:[#allocation70_spill] sm:$0xff] %v10429_v42 }
 0x63f   : > { %v10411_v14 = vmax.f32 %v10397_v57, %v3983_v13  ;;  %v10414_v17 = vmax.f32 %v10399_v63, %v3950_v23  ;;  %v3926_v48 = vpop.xlane.xlu0 %3925  ;;  %v10444_v13 = vld [vmem:[#allocation4 + $0x100] sm:$0xff] }
 0x640   : > { %v10420_v29 = vmax.f32 %v10406_v41, %v3926_v48  ;;  %5037 = vperm.xlu0 %7870, %v10408_v50   ;;  %v11781_v48 = vsub.f32 %v10164_v38, %v10171_v20  ;;  %v10446_v50 = vpop.eup %8023  ;;  %v11783_v20 = vsub.f32 %v10166_v11, %v10174_v40  ;;  %v10473_v40 = vld [vmem:[#allocation4 + $0x168] sm:$0xff]  ;;  %v10475_v11 = vld [vmem:[#allocation4 + $0x110] sm:$0xff] }
 0x641   : > { %5878 = vst.msk [vmem:[#allocation4 + $0x150] sm:$0xff] %vm4863_vm7, %v10411_v14  ;;  %v10463_v32 = vpop.eup %8025 }
 0x642   : > { %5867 = vst.msk [vmem:[#allocation4 + $0xf8] sm:$0xff] %vm4863_vm7, %v10414_v17  ;;  %v4167_v15 = vmul.f32 1.442695, %v11781_v48  ;;  %v4145_v38 = vmul.f32 1.442695, %v11783_v20  ;;  %v10467_v48 = vpop.eup %8027 }
 0x643   : > { %5859 = vst.msk [vmem:[#allocation4 + $0xb8] sm:$0xff] %vm4863_vm7, %v10420_v29  ;;  %4982 = vperm.xlu2 %7871, %v10425_v25  }
 0x644   : > { %5047 = vperm.xlu1 %7869, %v10429_v42   ;;  %11782 = vst [vmem:[#allocation71_spill] sm:$0xff] %v10446_v50  ;;  %8029 = vpow2.f32 %v4167_v15 }
 0x645   : > { %11784 = vst [vmem:[#allocation72_spill] sm:$0xff] %v10463_v32  ;;  %8031 = vpow2.f32 %v4145_v38 }
 0x646   : > { %v3956_v23 = vpop.xlane.xlu1 %3955  ;;  %v3986_v24 = vpop.xlane.xlu2 %3985  ;;  %11785 = vst [vmem:[#allocation73_spill] sm:$0xff] %v10467_v48  ;;  %8033 = vpow2.f32 %v4171_v45 }
 0x647   : > { %v10449_v51 = vmax.f32 %v10435_v6, %v3956_v23  ;;  %v10452_v42 = vmax.f32 %v10437_v44, %v3986_v24  ;;  %v3953_v21 = vpop.xlane.xlu0 %3952  ;;  %11786 = vst [vmem:[#allocation74_spill] sm:$0xff] %v10473_v40 }
 0x648   : > { %v10458_v39 = vmax.f32 %v10444_v13, %v3953_v21  ;;  %5082 = vperm.xlu0 %7870, %v10446_v50   ;;  %v10477_v21 = vld [vmem:[#allocation4 + $0x160] sm:$0xff]  ;;  %v11789_v50 = vsub.f32 %v10196_v5, %v10205_v18  ;;  %v10506_v18 = vld [vmem:[#allocation4 + $0x170] sm:$0xff]  ;;  %v10508_v5 = vld [vmem:[#allocation4 + $0x118] sm:$0xff] }
 0x649   : > { %5869 = vst.msk [vmem:[#allocation4 + $0x108] sm:$0xff] %vm4863_vm7, %v10449_v51 }
 0x64a   : > { %5879 = vst.msk [vmem:[#allocation4 + $0x158] sm:$0xff] %vm4863_vm7, %v10452_v42  ;;  %v10479_v23 = vpop.eup %8029 }
 0x64b   : > { %5868 = vst.msk [vmem:[#allocation4 + $0x100] sm:$0xff] %vm4863_vm7, %v10458_v39  ;;  %5042 = vperm.xlu2 %7871, %v10463_v32   ;;  %v10496_v45 = vpop.eup %8031 }
 0x64c   : > { %5092 = vperm.xlu1 %7869, %v10467_v48   ;;  %11787 = vst [vmem:[#allocation75_spill] sm:$0xff] %v10479_v23  ;;  %v4169_v48 = vmul.f32 1.442695, %v11789_v50 }
 0x64d   : > { %11790 = vst [vmem:[#allocation77_spill] sm:$0xff] %v10496_v45 }
 0x64e   : > { %v3992_v15 = vpop.xlane.xlu1 %3991  ;;  %v3959_v8 = vpop.xlane.xlu2 %3958  ;;  %8035 = vpow2.f32 %v4169_v48  ;;  %11792 = vst [vmem:[#allocation79_spill] sm:$0xff] %v10506_v18 }
 0x64f   : > { %v10482_v24 = vmax.f32 %v10473_v40, %v3992_v15  ;;  %v10485_v20 = vmax.f32 %v10475_v11, %v3959_v8  ;;  %v3989_v38 = vpop.xlane.xlu0 %3988  ;;  %v10500_v15 = vpop.eup %8033 }
 0x650   : > { %v10491_v32 = vmax.f32 %v10477_v21, %v3989_v38  ;;  %5142 = vperm.xlu0 %7870, %v10479_v23   ;;  %11791 = vst [vmem:[#allocation78_spill] sm:$0xff] %v10500_v15 }
 0x651   : > { %11788 = vst [vmem:[#allocation76_spill] sm:$0xff] %v10482_v24 }
 0x652   : > { %5881 = vst.msk [vmem:[#allocation4 + $0x168] sm:$0xff] %vm4863_vm7, %v10482_v24 }
 0x653   : > { %5870 = vst.msk [vmem:[#allocation4 + $0x110] sm:$0xff] %vm4863_vm7, %v10485_v20  ;;  %5087 = vperm.xlu2 %7871, %v10496_v45  }
 0x654   : > { %5880 = vst.msk [vmem:[#allocation4 + $0x160] sm:$0xff] %vm4863_vm7, %v10491_v32  ;;  %5152 = vperm.xlu1 %7869, %v10500_v15   ;;  %v10519_v48 = vpop.eup %8035 }
 0x655   : > { %11794 = vst [vmem:[#allocation81_spill] sm:$0xff] %v10519_v48 }
 0x656   : > { %v3995_v50 = vpop.xlane.xlu2 %3994 }
 0x657   : > { %v10511_v8 = vmax.f32 %v10506_v18, %v3995_v50  ;;  %v3962_v38 = vpop.xlane.xlu0 %3961  ;;  %v10525_v50 = vld [vmem:[#allocation4 + $0x178] sm:$0xff] }
 0x658   : > { %4283 = vperm.xlu0 %7870, %v10239_v37   ;;  %v10515_v23 = vmax.f32 %v10508_v5, %v3962_v38  ;;  %11795 = vst [vmem:[#allocation82_spill] sm:$0xff] %v10525_v50 }
 0x659   : > { %11793 = vst [vmem:[#allocation80_spill] sm:$0xff] %v10511_v8 }
 0x65a   : > { %5882 = vst.msk [vmem:[#allocation4 + $0x170] sm:$0xff] %vm4863_vm7, %v10511_v8 }
 0x65b   : > { %5871 = vst.msk [vmem:[#allocation4 + $0x118] sm:$0xff] %vm4863_vm7, %v10515_v23  ;;  %5147 = vperm.xlu2 %7871, %v10519_v48   ;;  %v11797_v48 = vsub.f32 %v10198_v26, %v10208_v47 }
 0x65c   : > { %4233 = vperm.xlu1 %7869, %v10273_v31  }
 0x65d   : > { %v4107_v40 = vmul.f32 1.442695, %v11797_v48  ;;  %v4074_v48 = vsub.f32 %v10258_v4, %v10267_v22 }
 0x65e   : > { %v4199_v15 = vpop.permute.xlu2 %4198 }
 0x65f   : > { %v4432_v18 = vsub.f32 %v9856_v54, %v4199_v15  ;;  %v3998_v45 = vpop.xlane.xlu0 %3997 }
 0x660   : > { %4328 = vperm.xlu0 %7870, %v10267_v22   ;;  %v10530_v38 = vmax.f32 %v10525_v50, %v3998_v45  ;;  %v4065_v45 = vsub.f32 %v10232_v19, %v10239_v37  ;;  %v4067_v22 = vsub.f32 %v10288_v35, %v10297_v59 }
 0x661   : > { %v4481_v25 = vmul.f32 1.442695, %v4432_v18 }
 0x662   : > { %11796 = vst [vmem:[#allocation83_spill] sm:$0xff] %v10530_v38  ;;  %v4131_v26 = vmul.f32 1.442695, %v4065_v45 }
 0x663   : > { %5883 = vst.msk [vmem:[#allocation4 + $0x178] sm:$0xff] %vm4863_vm7, %v10530_v38  ;;  %4228 = vperm.xlu2 %7871, %v10242_v7   ;;  %8037 = vpow2.f32 %v4481_v25 }
 0x664   : > { %4293 = vperm.xlu1 %7869, %v10297_v59   ;;  %8039 = vpow2.f32 %v4107_v40  ;;  %v4086_v59 = vsub.f32 %v10284_v55, %v10291_v46 }
 0x666   : > { %v4194_v8 = vpop.permute.xlu1 %4193  ;;  %v4259_v54 = vpop.permute.xlu2 %4258 }
 0x667   : > { %v4431_v15 = vsub.f32 %v9848_v33, %v4194_v8  ;;  %v4444_v50 = vsub.f32 %v9877_v28, %v4259_v54  ;;  %v4055_v33 = vsub.f32 %v10262_v62, %v10273_v31 }
 0x668   : > { %4388 = vperm.xlu0 %7870, %v10291_v46   ;;  %v4076_v46 = vsub.f32 %v10312_v58, %v10321_v61 }
 0x669   : > { %v4479_v18 = vmul.f32 1.442695, %v4431_v15  ;;  %v10546_v47 = vpop.eup %8037  ;;  %v4505_v37 = vmul.f32 1.442695, %v4444_v50  ;;  %v4111_v54 = vmul.f32 1.442695, %v4055_v33  ;;  %v4054_v50 = vsub.f32 %v10234_v49, %v10242_v7 }
 0x66a   : > { %11798 = vst [vmem:[#allocation84_spill] sm:$0xff] %v10546_v47  ;;  %v10554_v8 = vpop.eup %8039  ;;  %v5249_v28 = vpack.c.bf16 %v10546_v47, %v10546_v47  ;;  %v4135_v49 = vmul.f32 1.442695, %v4067_v22 }
 0x66b   : > { %8041 = vpow2.f32 %v4479_v18  ;;  %4288 = vperm.xlu2 %7871, %v10270_v30   ;;  %11799 = vst [vmem:[#allocation85_spill] sm:$0xff] %v10554_v8 }
 0x66c   : > { %4338 = vperm.xlu1 %7869, %v10321_v61   ;;  %8043 = vpow2.f32 %v4131_v26  ;;  %v5309_v45 = vunpack.c.l.b16 %v5249_v28  ;;  %v4149_v26 = vmul.f32 1.442695, %v4074_v48  ;;  %v4066_v48 = vsub.f32 %v10260_v2, %v10270_v30 }
 0x66d   : > { %8045 = vpow2.f32 %v4505_v37 }
 0x66e   : > { %v10550_v25 = vpop.permute.xlu1 %4263  ;;  %v10552_v40 = vpop.permute.xlu2 %4962  ;;  %8047 = vpow2.f32 %v4111_v54  ;;  %v4133_v2 = vmul.f32 1.442695, %v4066_v48  ;;  %v4088_v48 = vsub.f32 %v10341_v27, %v10350_v10 }
 0x66f   : > { %v4445_v27 = vsub.f32 %v9893_v34, %v10550_v25 }
 0x670   : > { %4992 = vperm.xlu0 %7870, %v10554_v8  }
 0x671   : > { %v10559_v19 = vpop.eup %8041  ;;  %v4507_v34 = vmul.f32 1.442695, %v4445_v27 }
 0x672   : > { %v5248_v31 = vpack.c.bf16 %v10559_v19, %v10559_v19  ;;  %v4254_v62 = vpop.permute.xlu0 %4253 }
 0x673   : > { %v4443_v15 = vsub.f32 %v9862_v43, %v4254_v62  ;;  %4333 = vperm.xlu2 %7871, %v10294_v52   ;;  %v10576_v43 = vpop.eup %8043  ;;  %v4109_v62 = vmul.f32 1.442695, %v4054_v50 }
 0x674   : > { %v5308_v18 = vunpack.c.l.b16 %v5248_v31  ;;  %4398 = vperm.xlu1 %7869, %v10350_v10   ;;  %11800 = vst [vmem:[#allocation86_spill] sm:$0xff] %v10576_v43  ;;  %v10580_v7 = vpop.eup %8045  ;;  %v11809_v10 = vld [vmem:[#allocation59_spill] sm:$0xff] }
 0x675   : > { %v4503_v4 = vmul.f32 1.442695, %v4443_v15  ;;  %v10586_v28 = vpop.eup %8047  ;;  %v5261_v54 = vpack.c.bf16 %v10580_v7, %v10580_v7  ;;  %v4173_v15 = vmul.f32 1.442695, %v4086_v59 }
 0x676   : > { %v5320_v33 = vpack.c.b16 %v5309_v45, %v5308_v18  ;;  %v10572_v8 = vpop.permute.xlu1 %4972  ;;  %v10574_v37 = vpop.permute.xlu2 %5027  ;;  %11801 = vst [vmem:[#allocation87_spill] sm:$0xff] %v10586_v28 }
 0x677   : > { %8049 = vpow2.f32 %v4503_v4  ;;  %v4153_v4 = vmul.f32 1.442695, %v4076_v46 }
 0x678   : > { %5052 = vperm.xlu0 %7870, %v10576_v43   ;;  %7634 = vmatmul.msk.bf16.vlgmr.msra.gmra.mxu0 %vm1452_vm4, %v5320_v33  ;;  %8051 = vpow2.f32 %v4149_v26  ;;  %v5420_v26 = vunpack.c.l.b16 %v5261_v54 }
 0x679   : > { %8053 = vpow2.f32 %v4109_v62 }
 0x67a   : > { %v10584_v35 = vpop.permute.xlu0 %5022  ;;  %8055 = vpow2.f32 %v4135_v49 }
 0x67b   : > { %4393 = vperm.xlu2 %7871, %v10315_v16   ;;  %8057 = vpow2.f32 %v4173_v15 }
 0x67c   : > { %5002 = vperm.xlu1 %7869, %v10586_v28  }
 0x67d   : > { %v10594_v31 = vpop.eup %8049 }
 0x67e   : > { %v5260_v55 = vpack.c.bf16 %v10594_v31, %v10594_v31  ;;  %v10600_v50 = vpop.permute.xlu1 %5032  ;;  %v4209_v45 = vpop.permute.xlu2 %4208 }
 0x67f   : > { %v10602_v18 = vpop.eup %8051  ;;  %v4434_v30 = vsub.f32 %v9880_v12, %v4209_v45  ;;  %v4075_v12 = vsub.f32 %v10286_v36, %v10294_v52  ;;  %v4177_v52 = vmul.f32 1.442695, %v4088_v48  ;;  %v11810_v48 = vld [vmem:[#allocation61_spill] sm:$0xff] }
 0x680   : > { %11802 = vst [vmem:[#allocation88_spill] sm:$0xff] %v10602_v18  ;;  %v5419_v22 = vunpack.c.l.b16 %v5260_v55  ;;  %5097 = vperm.xlu0 %7870, %v10602_v18   ;;  %v10606_v62 = vpop.eup %8053  ;;  %v11814_v18 = vld [vmem:[#allocation19_spill] sm:$0xff] }
 0x681   : > { %v4485_v33 = vmul.f32 1.442695, %v4434_v30  ;;  %11803 = vst [vmem:[#allocation89_spill] sm:$0xff] %v10606_v62  ;;  %v10608_v59 = vpop.eup %8055 }
 0x682   : > { %v5431_v61 = vpack.c.b16 %v5420_v26, %v5419_v22  ;;  %v4204_v58 = vpop.permute.xlu0 %4203  ;;  %11804 = vst [vmem:[#allocation90_spill] sm:$0xff] %v10608_v59  ;;  %v10618_v55 = vpop.eup %8057  ;;  %v4087_v26 = vsub.f32 %v11809_v10, %v10315_v16 }
 0x683   : > { %8059 = vpow2.f32 %v4485_v33  ;;  %v4433_v49 = vsub.f32 %v9866_v56, %v4204_v58  ;;  %4997 = vperm.xlu2 %7871, %v10606_v62   ;;  %11805 = vst [vmem:[#allocation91_spill] sm:$0xff] %v10618_v55  ;;  %v4151_v56 = vmul.f32 1.442695, %v4075_v12  ;;  %v11827_v62 = vld [vmem:[#allocation65_spill] sm:$0xff] }
 0x684   : > { %8061 = vpow2.f32 %v4133_v2  ;;  %7640 = vmatmul.msk.bf16.vlgmr.msra.gmra.mxu1 %vm1452_vm4, %v5431_v61  ;;  %5062 = vperm.xlu1 %7869, %v10608_v59   ;;  %v4175_v25 = vmul.f32 1.442695, %v4087_v26  ;;  %v11821_v59 = vld [vmem:[#allocation31_spill] sm:$0xff] }
 0x685   : > { %8063 = vpow2.f32 %v4153_v4  ;;  %v4483_v54 = vmul.f32 1.442695, %v4433_v49 }
 0x686   : > { %v4214_v15 = vpop.permute.xlu1 %4213  ;;  %v4274_v46 = vpop.permute.xlu2 %4273 }
 0x687   : > { %8065 = vpow2.f32 %v4483_v54 }
 0x688   : > { %5157 = vperm.xlu0 %7870, %v10618_v55   ;;  %8067 = vpow2.f32 %v4151_v56  ;;  %v11813_v55 = vld [vmem:[#allocation34_spill] sm:$0xff] }
 0x689   : > { %v10621_v45 = vpop.eup %8059  ;;  %8069 = vpow2.f32 %v4177_v52 }
 0x68a   : > { %11806 = vst [vmem:[#allocation92_spill] sm:$0xff] %v10621_v45  ;;  %v10623_v36 = vpop.eup %8061  ;;  %v10625_v30 = vpop.permute.xlu0 %4967  ;;  %v5251_v22 = vpack.c.bf16 %v10621_v45, %v10621_v45  ;;  %8071 = vpow2.f32 %v4507_v34  ;;  %v11816_v34 = vld [vmem:[#allocation64_spill] sm:$0xff] }
 0x68b   : > { %11807 = vst [vmem:[#allocation93_spill] sm:$0xff] %v10623_v36  ;;  %v10627_v2 = vpop.eup %8063  ;;  %5057 = vperm.xlu2 %7871, %v10623_v36   ;;  %8073 = vpow2.f32 %v4175_v25  ;;  %v11819_v25 = vld [vmem:[#allocation12_spill] sm:$0xff] }
 0x68c   : > { %11808 = vst [vmem:[#allocation94_spill] sm:$0xff] %v10627_v2  ;;  %5107 = vperm.xlu1 %7869, %v10627_v2   ;;  %v5311_v49 = vunpack.c.l.b16 %v5251_v22 }
 0x68d   : > { %v10637_v4 = vpop.eup %8065 }
 0x68e   : > { %v5250_v33 = vpack.c.bf16 %v10637_v4, %v10637_v4  ;;  %v4279_v61 = vpop.permute.xlu1 %4278  ;;  %v4319_v58 = vpop.permute.xlu2 %4318 }
 0x68f   : > { %v10642_v16 = vpop.eup %8067  ;;  %v4456_v52 = vsub.f32 %v11813_v55, %v4319_v58 }
 0x690   : > { %v5310_v12 = vunpack.c.l.b16 %v5250_v33  ;;  %4238 = vperm.xlu0 %7870, %v11810_v48   ;;  %11811 = vst [vmem:[#allocation59_spill] sm:$0xff] %v10642_v16  ;;  %v10644_v10 = vpop.eup %8069 }
 0x691   : > { %11812 = vst [vmem:[#allocation61_spill] sm:$0xff] %v10644_v10  ;;  %v4529_v33 = vmul.f32 1.442695, %v4456_v52  ;;  %v10655_v55 = vpop.eup %8071 }
 0x692   : > { %v4269_v54 = vpop.permute.xlu0 %4268  ;;  %v5321_v56 = vpack.c.b16 %v5311_v49, %v5310_v12  ;;  %v11815_v49 = vld [vmem:[#allocation27_spill] sm:$0xff] }
 0x693   : > { %v4446_v2 = vsub.f32 %v11814_v18, %v4269_v54  ;;  %5102 = vperm.xlu2 %7871, %v10642_v16   ;;  %v4435_v12 = vsub.f32 %v11815_v49, %v4214_v15  ;;  %v11817_v18 = vld [vmem:[#allocation30_spill] sm:$0xff]  ;;  %v10658_v54 = vpop.eup %8073  ;;  %v5262_v15 = vpack.c.bf16 %v10655_v55, %v10655_v55 }
 0x694   : > { %7635 = vmatmul.msk.bf16.gmra.mxu0 %vm1452_vm4, %v5321_v56  ;;  %5167 = vperm.xlu1 %7869, %v10644_v10   ;;  %v4448_v58 = vsub.f32 %v11817_v18, %v4279_v61  ;;  %11818 = vst [vmem:[#allocation34_spill] sm:$0xff] %v10658_v54  ;;  %v4447_v56 = vsub.f32 %v11819_v25, %v4274_v46 }
 0x695   : > { %v4509_v27 = vmul.f32 1.442695, %v4446_v2  ;;  %v11820_v2 = vld [vmem:[#allocation26_spill] sm:$0xff]  ;;  %v4487_v52 = vmul.f32 1.442695, %v4435_v12 }
 0x696   : > { %v10651_v26 = vpop.permute.xlu1 %4323  ;;  %v4379_v22 = vpop.permute.xlu2 %4378  ;;  %v4513_v61 = vmul.f32 1.442695, %v4448_v58  ;;  %v4511_v18 = vmul.f32 1.442695, %v4447_v56 }
 0x697   : > { %8075 = vpow2.f32 %v4509_v27  ;;  %v4468_v10 = vsub.f32 %v11820_v2, %v4379_v22  ;;  %v5421_v2 = vunpack.c.l.b16 %v5262_v15 }
 0x698   : > { %4298 = vperm.xlu0 %7870, %v11816_v34   ;;  %8077 = vpow2.f32 %v4529_v33 }
 0x69a   : > { %v4314_v43 = vpop.permute.xlu0 %4313 }
 0x69b   : > { %v4455_v16 = vsub.f32 %v11821_v59, %v4314_v43  ;;  %5162 = vperm.xlu2 %7871, %v10658_v54   ;;  %v4553_v43 = vmul.f32 1.442695, %v4468_v10  ;;  %v11823_v59 = vld [vmem:[#allocation23_spill] sm:$0xff]  ;;  %v11826_v10 = vld [vmem:[#allocation37_spill] sm:$0xff] }
 0x69c   : > { %4248 = vperm.xlu1 %7869, %v10384_v0  }
 0x69d   : > { %v10667_v27 = vpop.eup %8075  ;;  %v4527_v49 = vmul.f32 1.442695, %v4455_v16  ;;  %v11825_v16 = vld [vmem:[#allocation60_spill] sm:$0xff] }
 0x69e   : > { %11822 = vst [vmem:[#allocation19_spill] sm:$0xff] %v10667_v27  ;;  %v5263_v46 = vpack.c.bf16 %v10667_v27, %v10667_v27  ;;  %v10671_v33 = vpop.permute.xlu1 %4383  ;;  %v4219_v22 = vpop.permute.xlu2 %4218  ;;  %v4056_v58 = vsub.f32 %v11825_v16, %v11810_v48 }
 0x69f   : > { %8079 = vpow2.f32 %v4527_v49  ;;  %v4436_v25 = vsub.f32 %v11823_v59, %v4219_v22  ;;  %v10675_v54 = vpop.eup %8077 }
 0x6a0   : > { %8081 = vpow2.f32 %v4487_v52  ;;  %v5422_v12 = vunpack.c.l.b16 %v5263_v46  ;;  %4343 = vperm.xlu0 %7870, %v10375_v9   ;;  %11824 = vst [vmem:[#allocation27_spill] sm:$0xff] %v10675_v54  ;;  %v5273_v15 = vpack.c.bf16 %v10675_v54, %v10675_v54  ;;  %v4113_v48 = vmul.f32 1.442695, %v4056_v58 }
 0x6a1   : > { %8083 = vpow2.f32 %v4513_v61  ;;  %v4489_v56 = vmul.f32 1.442695, %v4436_v25 }
 0x6a2   : > { %8085 = vpow2.f32 %v4511_v18  ;;  %v4374_v28 = vpop.permute.xlu0 %4373  ;;  %v5432_v36 = vpack.c.b16 %v5422_v12, %v5421_v2  ;;  %v11832_v12 = vld [vmem:[#allocation62_spill] sm:$0xff] }
 0x6a3   : > { %8087 = vpow2.f32 %v4553_v43  ;;  %v4467_v49 = vsub.f32 %v11826_v10, %v4374_v28  ;;  %4243 = vperm.xlu2 %7871, %v11827_v62   ;;  %v4068_v16 = vsub.f32 %v11832_v12, %v11816_v34 }
 0x6a4   : > { %8089 = vpow2.f32 %v4489_v56  ;;  %7641 = vmatmul.msk.bf16.gmra.mxu1 %vm1452_vm4, %v5432_v36  ;;  %4308 = vperm.xlu1 %7869, %v10420_v29   ;;  %v5531_v36 = vunpack.c.l.b16 %v5273_v15 }
 0x6a5   : > { %v10685_v52 = vpop.eup %8079  ;;  %v4551_v61 = vmul.f32 1.442695, %v4467_v49 }
 0x6a6   : > { %11828 = vst [vmem:[#allocation64_spill] sm:$0xff] %v10685_v52  ;;  %v10687_v18 = vpop.eup %8081  ;;  %v5272_v46 = vpack.c.bf16 %v10685_v52, %v10685_v52  ;;  %v10691_v28 = vpop.permute.xlu1 %4223  ;;  %v4058_v52 = vsub.f32 %v10370_v3, %v10384_v0  ;;  %v4077_v3 = vsub.f32 %v10361_v1, %v10375_v9  ;;  %v4070_v9 = vsub.f32 %v10406_v41, %v10420_v29 }
 0x6a7   : > { %v10693_v22 = vpop.permute.xlu2 %4982  ;;  %v10695_v43 = vpop.eup %8083  ;;  %8091 = vpow2.f32 %v4551_v61  ;;  %v5252_v58 = vpack.c.bf16 %v10687_v18, %v10687_v18  ;;  %v4069_v41 = vsub.f32 %v10363_v53, %v10378_v60 }
 0x6a8   : > { %11829 = vst [vmem:[#allocation30_spill] sm:$0xff] %v10693_v22  ;;  %v10697_v59 = vpop.eup %8085  ;;  %v5530_v25 = vunpack.c.l.b16 %v5272_v46  ;;  %4403 = vperm.xlu0 %7870, %v10411_v14   ;;  %8093 = vpow2.f32 %v4113_v48  ;;  %v5265_v10 = vpack.c.bf16 %v10695_v43, %v10695_v43  ;;  %v4117_v0 = vmul.f32 1.442695, %v4058_v52 }
 0x6a9   : > { %11830 = vst [vmem:[#allocation12_spill] sm:$0xff] %v10695_v43  ;;  %v10700_v2 = vpop.eup %8087  ;;  %v5264_v48 = vpack.c.bf16 %v10697_v59, %v10697_v59  ;;  %v4141_v52 = vmul.f32 1.442695, %v4070_v9 }
 0x6aa   : > { %11831 = vst [vmem:[#allocation26_spill] sm:$0xff] %v10700_v2  ;;  %v10706_v56 = vpop.eup %8089  ;;  %v5542_v49 = vpack.c.b16 %v5531_v36, %v5530_v25  ;;  %v10710_v61 = vpop.permute.xlu0 %4977  ;;  %v5285_v34 = vpack.c.bf16 %v10700_v2, %v10700_v2  ;;  %v4137_v36 = vmul.f32 1.442695, %v4068_v16  ;;  %v5312_v25 = vunpack.c.l.b16 %v5252_v58 }
 0x6ab   : > { %11833 = vst [vmem:[#allocation31_spill] sm:$0xff] %v10706_v56  ;;  %v5253_v15 = vpack.c.bf16 %v10706_v56, %v10706_v56  ;;  %4303 = vperm.xlu2 %7871, %v10378_v60   ;;  %v5424_v27 = vunpack.c.l.b16 %v5265_v10  ;;  %v5423_v54 = vunpack.c.l.b16 %v5264_v48 }
 0x6ac   : > { %7646 = vmatmul.msk.bf16.vlgmr.msra.gmra.mxu2 %vm1452_vm4, %v5542_v49  ;;  %4353 = vperm.xlu1 %7869, %v10458_v39   ;;  %v5642_v56 = vunpack.c.l.b16 %v5285_v34  ;;  %8095 = vpow2.f32 %v4137_v36  ;;  %v4079_v36 = vsub.f32 %v10444_v13, %v10458_v39  ;;  %v4078_v39 = vsub.f32 %v10399_v63, %v10414_v17 }
 0x6ad   : > { %v10721_v46 = vpop.eup %8091  ;;  %v5313_v12 = vunpack.c.l.b16 %v5253_v15  ;;  %v5433_v10 = vpack.c.b16 %v5424_v27, %v5423_v54  ;;  %v11835_v15 = vld [vmem:[#allocation63_spill] sm:$0xff]  ;;  %8097 = vpow2.f32 %v4117_v0  ;;  %v4090_v63 = vsub.f32 %v10437_v44, %v10452_v42 }
 0x6ae   : > { %v5284_v43 = vpack.c.bf16 %v10721_v46, %v10721_v46  ;;  %v10727_v22 = vpop.permute.xlu1 %4987  ;;  %v10731_v2 = vpop.eup %8093  ;;  %v4057_v48 = vsub.f32 %v11835_v15, %v11827_v62  ;;  %v4089_v62 = vsub.f32 %v10397_v57, %v10411_v14  ;;  %v4159_v53 = vmul.f32 1.442695, %v4079_v36 }
 0x6af   : > { %v10729_v45 = vpop.permute.xlu2 %5042  ;;  %11834 = vst [vmem:[#allocation23_spill] sm:$0xff] %v10731_v2  ;;  %v5322_v49 = vpack.c.b16 %v5313_v12, %v5312_v25  ;;  %v11839_v12 = vld [vmem:[#allocation18_spill] sm:$0xff] }
 0x6b0   : > { %v5641_v47 = vunpack.c.l.b16 %v5284_v43  ;;  %5007 = vperm.xlu0 %7870, %v10731_v2   ;;  %v4155_v43 = vmul.f32 1.442695, %v4077_v3  ;;  %v4115_v27 = vmul.f32 1.442695, %v4057_v48  ;;  %v4179_v29 = vmul.f32 1.442695, %v4089_v62 }
 0x6b1   : > { %7636 = vmatmul.msk.bf16.gmra.mxu0 %vm1452_vm4, %v5322_v49  ;;  %v4437_v49 = vsub.f32 %v11839_v12, %v10691_v28  ;;  %v4139_v3 = vmul.f32 1.442695, %v4069_v41  ;;  %v4091_v28 = vsub.f32 %v10477_v21, %v10491_v32 }
 0x6b2   : > { %v5653_v16 = vpack.c.b16 %v5642_v56, %v5641_v47  ;;  %v10737_v58 = vpop.permute.xlu0 %5037  ;;  %v10751_v54 = vpop.eup %8095  ;;  %8099 = vpow2.f32 %v4155_v43  ;;  %v11843_v43 = vld [vmem:[#allocation38_spill] sm:$0xff] }
 0x6b3   : > { %4348 = vperm.xlu2 %7871, %v10414_v17   ;;  %11836 = vst [vmem:[#allocation60_spill] sm:$0xff] %v10751_v54  ;;  %v10759_v34 = vpop.eup %8097  ;;  %8101 = vpow2.f32 %v4115_v27  ;;  %v4157_v27 = vmul.f32 1.442695, %v4078_v39  ;;  %v4183_v17 = vmul.f32 1.442695, %v4091_v28 }
 0x6b4   : > { %7642 = vmatmul.msk.bf16.gmra.mxu1 %vm1452_vm4, %v5433_v10  ;;  %7652 = vmatmul.msk.bf16.vlgmr.msra.gmra.mxu3 %vm1452_vm4, %v5653_v16  ;;  %11837 = vst [vmem:[#allocation37_spill] sm:$0xff] %v10759_v34  ;;  %8103 = vpow2.f32 %v4141_v52  ;;  %v4491_v16 = vmul.f32 1.442695, %v4437_v49 }
 0x6b5   : > { %4413 = vperm.xlu1 %7869, %v10491_v32   ;;  %8105 = vpow2.f32 %v4179_v29  ;;  %v11845_v32 = vld [vmem:[#allocation14_spill] sm:$0xff]  ;;  %v11846_v29 = vld [vmem:[#allocation15_spill] sm:$0xff] }
 0x6b6   : > { %v10747_v1 = vpop.permute.xlu1 %5047  ;;  %8107 = vpow2.f32 %v4139_v3  ;;  %v4457_v21 = vsub.f32 %v11845_v32, %v10651_v26  ;;  %v11848_v26 = vld [vmem:[#allocation35_spill] sm:$0xff]  ;;  %v11851_v32 = vld [vmem:[#allocation13_spill] sm:$0xff] }
 0x6b7   : > { %v10749_v47 = vpop.permute.xlu2 %5087  ;;  %8109 = vpow2.f32 %v4159_v53  ;;  %v4181_v53 = vmul.f32 1.442695, %v4090_v63 }
 0x6b8   : > { %5067 = vperm.xlu0 %7870, %v10751_v54   ;;  %v10770_v14 = vpop.eup %8099  ;;  %8111 = vpow2.f32 %v4491_v16  ;;  %v4531_v16 = vmul.f32 1.442695, %v4457_v21 }
 0x6b9   : > { %11838 = vst [vmem:[#allocation65_spill] sm:$0xff] %v10770_v14  ;;  %v10775_v60 = vpop.eup %8101 }
 0x6ba   : > { %v10756_v56 = vpop.permute.xlu0 %5082  ;;  %11840 = vst [vmem:[#allocation62_spill] sm:$0xff] %v10775_v60  ;;  %v10780_v13 = vpop.eup %8103 }
 0x6bb   : > { %4408 = vperm.xlu2 %7871, %v10452_v42   ;;  %11841 = vst [vmem:[#allocation63_spill] sm:$0xff] %v10780_v13  ;;  %v10789_v48 = vpop.eup %8105 }
 0x6bc   : > { %11842 = vst [vmem:[#allocation18_spill] sm:$0xff] %v10789_v48  ;;  %v10793_v52 = vpop.eup %8107 }
 0x6bd   : > { %5017 = vperm.xlu1 %7869, %v10759_v34   ;;  %11844 = vst [vmem:[#allocation38_spill] sm:$0xff] %v10793_v52  ;;  %v10801_v12 = vpop.eup %8109 }
 0x6be   : > { %v10766_v25 = vpop.permute.xlu1 %5092  ;;  %11847 = vst [vmem:[#allocation14_spill] sm:$0xff] %v10801_v12  ;;  %v10803_v49 = vpop.eup %8111 }
 0x6bf   : > { %v10768_v57 = vpop.permute.xlu2 %5147  ;;  %v5254_v28 = vpack.c.bf16 %v10803_v49, %v10803_v49 }
 0x6c0   : > { %5112 = vperm.xlu0 %7870, %v10770_v14  }
 0x6c2   : > { %v10777_v0 = vpop.permute.xlu0 %5142 }
 0x6c3   : > { %5012 = vperm.xlu2 %7871, %v10775_v60  }
 0x6c5   : > { %5077 = vperm.xlu1 %7869, %v10780_v13  }
 0x6c6   : > { %v10787_v10 = vpop.permute.xlu1 %5152 }
 0x6c7   : > { %v4229_v15 = vpop.permute.xlu2 %4228 }
 0x6c8   : > { %v4438_v9 = vsub.f32 %v11843_v43, %v4229_v15  ;;  %5172 = vperm.xlu0 %7870, %v10789_v48   ;;  %v4080_v43 = vsub.f32 %v10435_v6, %v10449_v51 }
 0x6ca   : > { %v4493_v62 = vmul.f32 1.442695, %v4438_v9  ;;  %v4284_v41 = vpop.permute.xlu0 %4283 }
 0x6cb   : > { %v4449_v36 = vsub.f32 %v11846_v29, %v4284_v41  ;;  %5072 = vperm.xlu2 %7871, %v10793_v52  }
 0x6cc   : > { %8113 = vpow2.f32 %v4493_v62 }
 0x6cd   : > { %8115 = vpow2.f32 %v4157_v27  ;;  %v4515_v3 = vmul.f32 1.442695, %v4449_v36  ;;  %5122 = vperm.xlu1 %7869, %v10801_v12   ;;  %v5314_v36 = vunpack.c.l.b16 %v5254_v28 }
 0x6ce   : > { %8117 = vpow2.f32 %v4183_v17  ;;  %v10806_v42 = vpop.permute.xlu1 %4233  ;;  %v11850_v17 = vld [vmem:[#allocation22_spill] sm:$0xff] }
 0x6cf   : > { %v4289_v44 = vpop.permute.xlu2 %4288  ;;  %8119 = vpow2.f32 %v4515_v3  ;;  %v4469_v41 = vsub.f32 %v11850_v17, %v10671_v33 }
 0x6d0   : > { %v4450_v39 = vsub.f32 %v11848_v26, %v4289_v44  ;;  %4358 = vperm.xlu0 %7870, %v10449_v51   ;;  %8121 = vpow2.f32 %v4181_v53  ;;  %v4161_v51 = vmul.f32 1.442695, %v4080_v43 }
 0x6d1   : > { %8123 = vpow2.f32 %v4531_v16  ;;  %v4555_v33 = vmul.f32 1.442695, %v4469_v41 }
 0x6d2   : > { %v10812_v15 = vpop.eup %8113  ;;  %v4517_v9 = vmul.f32 1.442695, %v4450_v39  ;;  %v4329_v63 = vpop.permute.xlu0 %4328 }
 0x6d3   : > { %v10816_v27 = vpop.eup %8115  ;;  %v5255_v62 = vpack.c.bf16 %v10812_v15, %v10812_v15  ;;  %v4458_v21 = vsub.f32 %v11851_v32, %v4329_v63  ;;  %v11855_v32 = vld [vmem:[#allocation40_spill] sm:$0xff] }
 0x6d4   : > { %11849 = vst [vmem:[#allocation15_spill] sm:$0xff] %v10816_v27  ;;  %5117 = vperm.xlu2 %7871, %v10816_v27   ;;  %v10824_v29 = vpop.eup %8117  ;;  %8125 = vpow2.f32 %v4517_v9 }
 0x6d5   : > { %11852 = vst [vmem:[#allocation35_spill] sm:$0xff] %v10824_v29  ;;  %v5315_v6 = vunpack.c.l.b16 %v5255_v62  ;;  %v4533_v3 = vmul.f32 1.442695, %v4458_v21  ;;  %5182 = vperm.xlu1 %7869, %v10824_v29   ;;  %v10827_v53 = vpop.eup %8119  ;;  %v11854_v62 = vld [vmem:[#allocation32_spill] sm:$0xff]  ;;  %v11857_v29 = vld [vmem:[#allocation39_spill] sm:$0xff] }
 0x6d6   : > { %v10829_v44 = vpop.permute.xlu1 %4293  ;;  %v10831_v39 = vpop.eup %8121  ;;  %v5266_v43 = vpack.c.bf16 %v10827_v53, %v10827_v53 }
 0x6d7   : > { %v4334_v16 = vpop.permute.xlu2 %4333  ;;  %v5323_v26 = vpack.c.b16 %v5315_v6, %v5314_v36  ;;  %8127 = vpow2.f32 %v4533_v3  ;;  %11853 = vst [vmem:[#allocation22_spill] sm:$0xff] %v10831_v39  ;;  %v10835_v28 = vpop.eup %8123 }
 0x6d8   : > { %4418 = vperm.xlu0 %7870, %v10482_v24   ;;  %8129 = vpow2.f32 %v4161_v51  ;;  %v4459_v63 = vsub.f32 %v11854_v62, %v4334_v16  ;;  %v5274_v36 = vpack.c.bf16 %v10835_v28, %v10835_v28  ;;  %v5425_v51 = vunpack.c.l.b16 %v5266_v43 }
 0x6d9   : > { %7637 = vmatmul.msk.bf16.gmra.mxu0 %vm1452_vm4, %v5323_v26  ;;  %8131 = vpow2.f32 %v4555_v33  ;;  %v4082_v16 = vsub.f32 %v10508_v5, %v10515_v23  ;;  %v11858_v5 = vld [vmem:[#allocation28_spill] sm:$0xff] }
 0x6da   : > { %v10839_v9 = vpop.eup %8125  ;;  %v4389_v17 = vpop.permute.xlu0 %4388  ;;  %v4535_v62 = vmul.f32 1.442695, %v4459_v63  ;;  %v5532_v43 = vunpack.c.l.b16 %v5274_v36 }
 0x6db   : > { %v5267_v41 = vpack.c.bf16 %v10839_v9, %v10839_v9  ;;  %v4470_v21 = vsub.f32 %v11855_v32, %v4389_v17 }
 0x6dc   : > { %5177 = vperm.xlu2 %7871, %v10831_v39  }
 0x6dd   : > { %v10848_v6 = vpop.eup %8127  ;;  %v5426_v3 = vunpack.c.l.b16 %v5267_v41  ;;  %v4557_v26 = vmul.f32 1.442695, %v4470_v21  ;;  %4368 = vperm.xlu1 %7869, %v10515_v23   ;;  %v4165_v23 = vmul.f32 1.442695, %v4082_v16 }
 0x6de   : > { %v5275_v33 = vpack.c.bf16 %v10848_v6, %v10848_v6  ;;  %v4339_v17 = vpop.permute.xlu1 %4338  ;;  %v10855_v48 = vpop.eup %8129 }
 0x6df   : > { %v4394_v32 = vpop.permute.xlu2 %4393  ;;  %11856 = vst [vmem:[#allocation13_spill] sm:$0xff] %v10855_v48  ;;  %8133 = vpow2.f32 %v4557_v26  ;;  %v4460_v14 = vsub.f32 %v11857_v29, %v4339_v17  ;;  %v5434_v12 = vpack.c.b16 %v5426_v3, %v5425_v51  ;;  %v10859_v21 = vpop.eup %8131  ;;  %v4081_v29 = vsub.f32 %v10475_v11, %v10485_v20  ;;  %v11859_v26 = vld [vmem:[#allocation20_spill] sm:$0xff] }
 0x6e0   : > { %v5533_v41 = vunpack.c.l.b16 %v5275_v33  ;;  %5127 = vperm.xlu0 %7870, %v10855_v48   ;;  %8135 = vpow2.f32 %v4535_v62  ;;  %v4471_v63 = vsub.f32 %v11858_v5, %v4394_v32  ;;  %v5286_v36 = vpack.c.bf16 %v10859_v21, %v10859_v21 }
 0x6e1   : > { %v4537_v54 = vmul.f32 1.442695, %v4460_v14  ;;  %7643 = vmatmul.msk.bf16.gmra.mxu1 %vm1452_vm4, %v5434_v12 }
 0x6e2   : > { %v10863_v39 = vpop.permute.xlu0 %4992  ;;  %v5543_v13 = vpack.c.b16 %v5533_v41, %v5532_v43  ;;  %v4559_v51 = vmul.f32 1.442695, %v4471_v63  ;;  %v5643_v33 = vunpack.c.l.b16 %v5286_v36 }
 0x6e3   : > { %8137 = vpow2.f32 %v4537_v54 }
 0x6e4   : > { %4363 = vperm.xlu2 %7871, %v10485_v20   ;;  %7647 = vmatmul.msk.bf16.gmra.mxu2 %vm1452_vm4, %v5543_v13  ;;  %8139 = vpow2.f32 %v4165_v23  ;;  %v4163_v20 = vmul.f32 1.442695, %v4081_v29  ;;  %v11860_v23 = vld [vmem:[#allocation80_spill] sm:$0xff] }
 0x6e5   : > { %v10871_v14 = vpop.eup %8133  ;;  %4428 = vperm.xlu1 %7869, %v10530_v38   ;;  %8141 = vpow2.f32 %v4559_v51 }
 0x6e6   : > { %v5287_v12 = vpack.c.bf16 %v10871_v14, %v10871_v14  ;;  %v4399_v54 = vpop.permute.xlu1 %4398  ;;  %v10879_v11 = vpop.eup %8135 }
 0x6e7   : > { %v10876_v3 = vpop.permute.xlu2 %4997  ;;  %v4472_v16 = vsub.f32 %v11859_v26, %v4399_v54  ;;  %v5276_v63 = vpack.c.bf16 %v10879_v11, %v10879_v11 }
 0x6e8   : > { %v5644_v62 = vunpack.c.l.b16 %v5287_v12 }
 0x6e9   : > { %v10881_v13 = vpop.eup %8137  ;;  %v4561_v17 = vmul.f32 1.442695, %v4472_v16  ;;  %v5534_v54 = vunpack.c.l.b16 %v5276_v63  ;;  %v4912_v16 = vld [vmem:[#allocation6] sm:$0xff] }
 0x6ea   : > { %v5277_v32 = vpack.c.bf16 %v10881_v13, %v10881_v13  ;;  %v10885_v43 = vpop.permute.xlu0 %5052  ;;  %v5654_v41 = vpack.c.b16 %v5644_v62, %v5643_v33  ;;  %v10888_v5 = vpop.eup %8139 }
 0x6eb   : > { %8143 = vpow2.f32 %v4561_v17  ;;  %11861 = vst [vmem:[#allocation32_spill] sm:$0xff] %v10888_v5  ;;  %v10898_v51 = vpop.eup %8141 }
 0x6ec   : > { %4423 = vperm.xlu2 %7871, %v11860_v23   ;;  %8145 = vpow2.f32 %v4163_v20  ;;  %7653 = vmatmul.msk.bf16.gmra.mxu3 %vm1452_vm4, %v5654_v41  ;;  %v5535_v29 = vunpack.c.l.b16 %v5277_v32  ;;  %v5200_v32 = vmul.f32 %v10552_v40, %v4912_v16  ;;  %v5288_v41 = vpack.c.bf16 %v10898_v51, %v10898_v51  ;;  %v11865_v40 = vld [vmem:[#allocation24_spill] sm:$0xff] }
 0x6ed   : > { %5137 = vperm.xlu1 %7869, %v10888_v5   ;;  %v4439_v16 = vsub.f32 %v11865_v40, %v10806_v42 }
 0x6ee   : > { %v10894_v36 = vpop.permute.xlu1 %5002  ;;  %v5544_v17 = vpack.c.b16 %v5535_v29, %v5534_v54  ;;  %v5645_v34 = vunpack.c.l.b16 %v5288_v41  ;;  %v4913_v29 = vld [vmem:[#allocation6 + $0x8] sm:$0xff] }
 0x6ef   : > { %11862 = vst [vmem:[#allocation40_spill] sm:$0xff] %v10894_v36  ;;  %v10896_v12 = vpop.permute.xlu2 %5057  ;;  %v5201_v52 = vmul.f32 %v10625_v30, %v4913_v29  ;;  %v4495_v41 = vmul.f32 1.442695, %v4439_v16  ;;  %v11866_v30 = vld [vmem:[#allocation41_spill] sm:$0xff] }
 0x6f0   : > { %v4451_v42 = vsub.f32 %v11866_v30, %v10829_v44 }
 0x6f1   : > { %v10900_v26 = vpop.eup %8143  ;;  %8147 = vpow2.f32 %v4495_v41  ;;  %v4671_v41 = vsel %vm1452_vm4, %v10559_v19, 0.0 }
 0x6f2   : > { %v10902_v33 = vpop.eup %8145  ;;  %v5289_v20 = vpack.c.bf16 %v10900_v26, %v10900_v26  ;;  %v10906_v62 = vpop.permute.xlu0 %5097  ;;  %v4519_v38 = vmul.f32 1.442695, %v4451_v42 }
 0x6f3   : > { %11863 = vst [vmem:[#allocation39_spill] sm:$0xff] %v10902_v33 }
 0x6f4   : > { %5132 = vperm.xlu2 %7871, %v10902_v33   ;;  %7648 = vmatmul.msk.bf16.gmra.mxu2 %vm1452_vm4, %v5544_v17  ;;  %v5646_v48 = vunpack.c.l.b16 %v5289_v20  ;;  %v4924_v20 = vld [vmem:[#allocation6 + $0x60] sm:$0xff] }
 0x6f5   : > { %v5377_v63 = vpop.f32.mrf.mxu0 }
 0x6f6   : > { %v5740_v5 = vadd.f32 %v5377_v63, %v5200_v32  ;;  %v10913_v2 = vpop.permute.xlu1 %5062  ;;  %v5655_v33 = vpack.c.b16 %v5646_v48, %v5645_v34 }
 0x6f7   : > { %11864 = vst [vmem:[#allocation28_spill] sm:$0xff] %v10913_v2  ;;  %v10915_v27 = vpop.permute.xlu2 %5102  ;;  %v11872_v2 = vld [vmem:[#allocation21_spill] sm:$0xff] }
 0x6f8   : > { %5788 = vst.msk [vmem:[#allocation6] sm:$0xff] %vm2107_vm5, %v5740_v5  ;;  %v5212_v5 = vmul.f32 %v10584_v35, %v4924_v20  ;;  %v10937_v20 = vpop.eup %8147 }
 0x6f9   : > { %v5256_v42 = vpack.c.bf16 %v10937_v20, %v10937_v20 }
 0x6fa   : > { %v10918_v54 = vpop.permute.xlu0 %5157 }
 0x6fc   : > { %7654 = vmatmul.msk.bf16.gmra.mxu3 %vm1452_vm4, %v5655_v33  ;;  %v11867_v33 = vld [vmem:[#allocation16_spill] sm:$0xff] }
 0x6fd   : > { %v5379_v17 = vpop.f32.mrf.mxu0 }
 0x6fe   : > { %v5741_v32 = vadd.f32 %v5379_v17, %v5201_v52  ;;  %v10924_v63 = vpop.permute.xlu1 %5107  ;;  %v4925_v52 = vld [vmem:[#allocation6 + $0x68] sm:$0xff] }
 0x6ff   : > { %v10926_v60 = vpop.permute.xlu2 %5162  ;;  %v5213_v35 = vmul.f32 %v10574_v37, %v4925_v52 }
 0x700   : > { %5789 = vst.msk [vmem:[#allocation6 + $0x8] sm:$0xff] %vm2107_vm5, %v5741_v32 }
 0x701   : > { %v5488_v34 = vpop.f32.mrf.mxu1 }
 0x702   : > { %v5752_v48 = vadd.f32 %v5488_v34, %v5212_v5  ;;  %v4239_v23 = vpop.permute.xlu0 %4238  ;;  %v11869_v5 = vld [vmem:[#allocation25_spill] sm:$0xff] }
 0x703   : > { %v4440_v29 = vsub.f32 %v11867_v33, %v4239_v23  ;;  %v4914_v33 = vld [vmem:[#allocation6 + $0x10] sm:$0xff] }
 0x704   : > { %5800 = vst.msk [vmem:[#allocation6 + $0x60] sm:$0xff] %vm2107_vm5, %v5752_v48  ;;  %v11870_v48 = vld [vmem:[#allocation36_spill] sm:$0xff] }
 0x705   : > { %v4497_v40 = vmul.f32 1.442695, %v4440_v29 }
 0x706   : > { %v10934_v17 = vpop.permute.xlu1 %5167 }
 0x707   : > { %11868 = vst [vmem:[#allocation20_spill] sm:$0xff] %v10934_v17  ;;  %v4244_v16 = vpop.permute.xlu2 %4243  ;;  %8149 = vpow2.f32 %v4497_v40 }
 0x708   : > { %8151 = vpow2.f32 %v4519_v38  ;;  %v4441_v34 = vsub.f32 %v11869_v5, %v4244_v16  ;;  %v11871_v38 = vld [vmem:[#allocation42_spill] sm:$0xff] }
 0x709   : > { %v5490_v32 = vpop.f32.mrf.mxu1 }
 0x70a   : > { %v5753_v44 = vadd.f32 %v5490_v32, %v5213_v35  ;;  %4672 = vadd.xlane.f32.xlu0 %v4671_v41  ;;  %v4299_v23 = vpop.permute.xlu0 %4298  ;;  %v4499_v35 = vmul.f32 1.442695, %v4441_v34  ;;  %v5202_v32 = vmul.f32 %v10572_v8, %v4914_v33  ;;  %v5316_v41 = vunpack.c.l.b16 %v5256_v42 }
 0x70b   : > { %v4452_v30 = vsub.f32 %v11870_v48, %v4299_v23 }
 0x70c   : > { %5801 = vst.msk [vmem:[#allocation6 + $0x68] sm:$0xff] %vm2107_vm5, %v5753_v44 }
 0x70d   : > { %v10946_v37 = vpop.eup %8149  ;;  %v4521_v29 = vmul.f32 1.442695, %v4452_v30  ;;  %v4710_v30 = vsel %vm1452_vm4, %v10580_v7, 0.0  ;;  %v4915_v7 = vld [vmem:[#allocation6 + $0x18] sm:$0xff] }
 0x70e   : > { %v5257_v19 = vpack.c.bf16 %v10946_v37, %v10946_v37  ;;  %v4249_v40 = vpop.permute.xlu1 %4248  ;;  %v10952_v5 = vpop.eup %8151 }
 0x70f   : > { %v4304_v52 = vpop.permute.xlu2 %4303  ;;  %8153 = vpow2.f32 %v4521_v29  ;;  %v4442_v16 = vsub.f32 %v11871_v38, %v4249_v40  ;;  %v11873_v29 = vld [vmem:[#allocation33_spill] sm:$0xff]  ;;  %v5268_v8 = vpack.c.bf16 %v10952_v5, %v10952_v5 }
 0x710   : > { %v5317_v23 = vunpack.c.l.b16 %v5257_v19  ;;  %v4453_v36 = vsub.f32 %v11872_v2, %v4304_v52  ;;  %8155 = vpow2.f32 %v4499_v35  ;;  %v11874_v38 = vld [vmem:[#allocation17_spill] sm:$0xff] }
 0x711   : > { %v4501_v44 = vmul.f32 1.442695, %v4442_v16  ;;  %v5382_v48 = vpop.f32.mrf.mxu0 }
 0x712   : > { %v5742_v24 = vadd.f32 %v5382_v48, %v5202_v32  ;;  %4711 = vadd.xlane.f32.xlu0 %v4710_v30  ;;  %v4344_v17 = vpop.permute.xlu0 %4343  ;;  %v5324_v34 = vpack.c.b16 %v5317_v23, %v5316_v41  ;;  %v4523_v19 = vmul.f32 1.442695, %v4453_v36  ;;  %v11875_v32 = vld [vmem:[#allocation45_spill] sm:$0xff]  ;;  %v5203_v41 = vmul.f32 %v10710_v61, %v4915_v7 }
 0x713   : > { %v4461_v40 = vsub.f32 %v11873_v29, %v4344_v17  ;;  %8157 = vpow2.f32 %v4501_v44  ;;  %v4677_v17 = vsel %vm1452_vm4, %v10637_v4, 0.0  ;;  %v5427_v23 = vunpack.c.l.b16 %v5268_v8  ;;  %v11876_v8 = vld [vmem:[#allocation29_spill] sm:$0xff] }
 0x714   : > { %5790 = vst.msk [vmem:[#allocation6 + $0x10] sm:$0xff] %vm2107_vm5, %v5742_v24  ;;  %7638 = vmatmul.msk.bf16.gmra.mxu0 %vm1452_vm4, %v5324_v34  ;;  %v4683_v29 = vsel %vm1452_vm4, %v10687_v18, 0.0 }
 0x715   : > { %v10962_v42 = vpop.eup %8153  ;;  %v4539_v33 = vmul.f32 1.442695, %v4461_v40 }
 0x716   : > { %v5269_v2 = vpack.c.bf16 %v10962_v42, %v10962_v42  ;;  %v4309_v35 = vpop.permute.xlu1 %4308  ;;  %v10971_v48 = vpop.eup %8155 }
 0x717   : > { %v4349_v52 = vpop.permute.xlu2 %4348  ;;  %8159 = vpow2.f32 %v4539_v33  ;;  %v4454_v24 = vsub.f32 %v11875_v32, %v4309_v35  ;;  %4678 = vadd.xlane.f32.xlu1 %v4677_v17  ;;  %v5258_v35 = vpack.c.bf16 %v10971_v48, %v10971_v48 }
 0x718   : > { %v4462_v16 = vsub.f32 %v11874_v38, %v4349_v52  ;;  %v5428_v44 = vunpack.c.l.b16 %v5269_v2  ;;  %8161 = vpow2.f32 %v4523_v19  ;;  %v4707_v2 = vsel %vm1452_vm4, %v10594_v31, 0.0  ;;  %v4926_v19 = vld [vmem:[#allocation6 + $0x70] sm:$0xff] }
 0x719   : > { %v4525_v34 = vmul.f32 1.442695, %v4454_v24  ;;  %v5384_v36 = vpop.f32.mrf.mxu0  ;;  %v10975_v40 = vpop.eup %8157  ;;  %v4713_v31 = vsel %vm1452_vm4, %v10655_v55, 0.0  ;;  %v11877_v24 = vld [vmem:[#allocation43_spill] sm:$0xff] }
 0x71a   : > { %v4541_v30 = vmul.f32 1.442695, %v4462_v16  ;;  %v5743_v4 = vadd.f32 %v5384_v36, %v5203_v41  ;;  %4684 = vadd.xlane.f32.xlu0 %v4683_v29  ;;  %v4404_v33 = vpop.permute.xlu0 %4403  ;;  %v5435_v52 = vpack.c.b16 %v5428_v44, %v5427_v23  ;;  %v5259_v61 = vpack.c.bf16 %v10975_v40, %v10975_v40 }
 0x71b   : > { %v4473_v7 = vsub.f32 %v11876_v8, %v4404_v33  ;;  %v5214_v44 = vmul.f32 %v10600_v50, %v4926_v19  ;;  %v4719_v33 = vsel %vm1452_vm4, %v10697_v59, 0.0 }
 0x71c   : > { %8163 = vpow2.f32 %v4541_v30  ;;  %5791 = vst.msk [vmem:[#allocation6 + $0x18] sm:$0xff] %vm2107_vm5, %v5743_v4  ;;  %7644 = vmatmul.msk.bf16.gmra.mxu1 %vm1452_vm4, %v5435_v52  ;;  %v5319_v38 = vunpack.c.l.b16 %v5259_v61  ;;  %v5318_v30 = vunpack.c.l.b16 %v5258_v35 }
 0x71d   : > { %8165 = vpow2.f32 %v4525_v34  ;;  %4708 = vadd.xlane.f32.xlu2 %v4707_v2  ;;  %v10986_v18 = vpop.eup %8159  ;;  %v4563_v17 = vmul.f32 1.442695, %v4473_v7  ;;  %v11879_v2 = vld [vmem:[#allocation84_spill] sm:$0xff] }
 0x71e   : > { %v10988_v32 = vpop.permute.xlu1 %4353  ;;  %v10993_v23 = vpop.eup %8161  ;;  %v5278_v34 = vpack.c.bf16 %v10986_v18, %v10986_v18  ;;  %v5325_v50 = vpack.c.b16 %v5319_v38, %v5318_v30  ;;  %v4674_v35 = vsel %vm1452_vm4, %v11879_v2, 0.0  ;;  %v4927_v38 = vld [vmem:[#allocation6 + $0x78] sm:$0xff]  ;;  %v4916_v2 = vld [vmem:[#allocation6 + $0x20] sm:$0xff] }
 0x71f   : > { %v4409_v16 = vpop.permute.xlu2 %4408  ;;  %8167 = vpow2.f32 %v4563_v17  ;;  %4714 = vadd.xlane.f32.xlu1 %v4713_v31  ;;  %v5270_v59 = vpack.c.bf16 %v10993_v23, %v10993_v23 }
 0x720   : > { %v4474_v41 = vsub.f32 %v11877_v24, %v4409_v16  ;;  %v5536_v19 = vunpack.c.l.b16 %v5278_v34  ;;  %v5215_v34 = vmul.f32 %v10737_v58, %v4927_v38  ;;  %v11884_v38 = vld [vmem:[#allocation92_spill] sm:$0xff] }
 0x721   : > { %v5493_v4 = vpop.f32.mrf.mxu1 }
 0x722   : > { %v10998_v36 = vpop.eup %8163  ;;  %v4565_v29 = vmul.f32 1.442695, %v4474_v41  ;;  %v5754_v61 = vadd.f32 %v5493_v4, %v5214_v44  ;;  %4720 = vadd.xlane.f32.xlu0 %v4719_v33  ;;  %v11006_v8 = vpop.permute.xlu0 %5007  ;;  %v11881_v41 = vld [vmem:[#allocation31_spill] sm:$0xff]  ;;  %v5429_v4 = vunpack.c.l.b16 %v5270_v59  ;;  %v4936_v59 = vld [vmem:[#allocation6 + $0xc0] sm:$0xff] }
 0x723   : > { %v11002_v55 = vpop.eup %8165  ;;  %v5279_v52 = vpack.c.bf16 %v10998_v36, %v10998_v36  ;;  %11878 = vst [vmem:[#allocation24_spill] sm:$0xff] %v11006_v8  ;;  %v4686_v44 = vsel %vm1452_vm4, %v11881_v41, 0.0  ;;  %v4680_v41 = vsel %vm1452_vm4, %v11884_v38, 0.0  ;;  %v4928_v8 = vld [vmem:[#allocation6 + $0x80] sm:$0xff] }
 0x724   : > { %v5271_v7 = vpack.c.bf16 %v11002_v55, %v11002_v55  ;;  %8169 = vpow2.f32 %v4565_v29  ;;  %5802 = vst.msk [vmem:[#allocation6 + $0x70] sm:$0xff] %vm2107_vm5, %v5754_v61  ;;  %7639 = vmatmul.msk.bf16.gmra.mxu0 %vm1452_vm4, %v5325_v50  ;;  %v11882_v50 = vld [vmem:[#allocation27_spill] sm:$0xff] }
 0x725   : > { %v5537_v17 = vunpack.c.l.b16 %v5279_v52  ;;  %4675 = vadd.xlane.f32.xlu2 %v4674_v35  ;;  %v11016_v16 = vpop.eup %8167 }
 0x726   : > { %v5430_v31 = vunpack.c.l.b16 %v5271_v7  ;;  %v5290_v33 = vpack.c.bf16 %v11016_v16, %v11016_v16  ;;  %v4746_v7 = vsel %vm1452_vm4, %v11882_v50, 0.0  ;;  %v11885_v50 = vld [vmem:[#allocation30_spill] sm:$0xff] }
 0x727   : > { %v11018_v24 = vpop.permute.xlu2 %5012  ;;  %v5545_v30 = vpack.c.b16 %v5537_v17, %v5536_v19  ;;  %v11022_v29 = vpop.permute.xlu1 %4413  ;;  %4687 = vadd.xlane.f32.xlu1 %v4686_v44 }
 0x728   : > { %11880 = vst [vmem:[#allocation41_spill] sm:$0xff] %v11018_v24  ;;  %v5436_v58 = vpack.c.b16 %v5430_v31, %v5429_v4  ;;  %v5647_v44 = vunpack.c.l.b16 %v5290_v33  ;;  %v5204_v24 = vmul.f32 %v11885_v50, %v4916_v2  ;;  %v11886_v31 = vld [vmem:[#allocation12_spill] sm:$0xff]  ;;  %v11887_v2 = vld [vmem:[#allocation26_spill] sm:$0xff]  ;;  %v11888_v50 = vld [vmem:[#allocation19_spill] sm:$0xff] }
 0x729   : > { %7649 = vmatmul.msk.bf16.gmra.mxu2 %vm1452_vm4, %v5545_v30  ;;  %v5495_v61 = vpop.f32.mrf.mxu1  ;;  %v4722_v4 = vsel %vm1452_vm4, %v11886_v31, 0.0 }
 0x72a   : > { %v11028_v52 = vpop.eup %8169  ;;  %v5755_v19 = vadd.f32 %v5495_v61, %v5215_v34  ;;  %4747 = vadd.xlane.f32.xlu0 %v4746_v7  ;;  %v11034_v17 = vpop.permute.xlu0 %5067  ;;  %v5224_v34 = vmul.f32 %v10756_v56, %v4936_v59  ;;  %v4782_v59 = vsel %vm1452_vm4, %v11887_v2, 0.0 }
 0x72b   : > { %v5291_v35 = vpack.c.bf16 %v11028_v52, %v11028_v52  ;;  %11883 = vst [vmem:[#allocation16_spill] sm:$0xff] %v11034_v17 }
 0x72c   : > { %5803 = vst.msk [vmem:[#allocation6 + $0x78] sm:$0xff] %vm2107_vm5, %v5755_v19  ;;  %7645 = vmatmul.msk.bf16.gmra.mxu1 %vm1452_vm4, %v5436_v58  ;;  %v5216_v19 = vmul.f32 %v10729_v45, %v4928_v8  ;;  %v4716_v45 = vsel %vm1452_vm4, %v11888_v50, 0.0  ;;  %v4948_v8 = vld [vmem:[#allocation6 + $0x120] sm:$0xff] }
 0x72d   : > { %v5648_v30 = vunpack.c.l.b16 %v5291_v35  ;;  %4681 = vadd.xlane.f32.xlu2 %v4680_v41  ;;  %v4917_v41 = vld [vmem:[#allocation6 + $0x28] sm:$0xff] }
 0x72e   : > { %v5387_v61 = vpop.f32.mrf.mxu0 }
 0x72f   : > { %v11042_v7 = vpop.permute.xlu2 %5072  ;;  %v5656_v17 = vpack.c.b16 %v5648_v30, %v5647_v44  ;;  %v5744_v38 = vadd.f32 %v5387_v61, %v5204_v24  ;;  %v11046_v33 = vpop.permute.xlu1 %5017  ;;  %4723 = vadd.xlane.f32.xlu1 %v4722_v4  ;;  %v4937_v30 = vld [vmem:[#allocation6 + $0xc8] sm:$0xff] }
 0x730   : > { %v5599_v35 = vpop.f32.mrf.mxu2  ;;  %v5225_v61 = vmul.f32 %v10749_v47, %v4937_v30  ;;  %v11889_v30 = vld [vmem:[#allocation44_spill] sm:$0xff] }
 0x731   : > { %v5764_v58 = vadd.f32 %v5599_v35, %v5224_v34  ;;  %7655 = vmatmul.msk.bf16.gmra.mxu3 %vm1452_vm4, %v5656_v17  ;;  %5792 = vst.msk [vmem:[#allocation6 + $0x20] sm:$0xff] %vm2107_vm5, %v5744_v38  ;;  %v5498_v56 = vpop.f32.mrf.mxu1  ;;  %v5205_v17 = vmul.f32 %v10727_v22, %v4917_v41  ;;  %v4929_v34 = vld [vmem:[#allocation6 + $0x88] sm:$0xff]  ;;  %v4749_v38 = vsel %vm1452_vm4, %v10835_v28, 0.0  ;;  %v5236_v35 = vmul.f32 %v10777_v0, %v4948_v8 }
 0x732   : > { %v5756_v44 = vadd.f32 %v5498_v56, %v5216_v19  ;;  %4783 = vadd.xlane.f32.xlu0 %v4782_v59  ;;  %v11054_v24 = vpop.permute.xlu0 %5112  ;;  %v5217_v2 = vmul.f32 %v10747_v1, %v4929_v34  ;;  %v4463_v50 = vsub.f32 %v11889_v30, %v10988_v32  ;;  %v11890_v1 = vld [vmem:[#allocation64_spill] sm:$0xff]  ;;  %v4949_v8 = vld [vmem:[#allocation6 + $0x128] sm:$0xff] }
 0x733   : > { %5812 = vst.msk [vmem:[#allocation6 + $0xc0] sm:$0xff] %vm2107_vm5, %v5764_v58  ;;  %v5237_v34 = vmul.f32 %v10768_v57, %v4949_v8  ;;  %v4779_v57 = vsel %vm1452_vm4, %v10721_v46, 0.0  ;;  %v11893_v46 = vld [vmem:[#allocation49_spill] sm:$0xff] }
 0x734   : > { %5804 = vst.msk [vmem:[#allocation6 + $0x80] sm:$0xff] %vm2107_vm5, %v5756_v44  ;;  %v4692_v44 = vsel %vm1452_vm4, %v10812_v15, 0.0  ;;  %v4785_v15 = vsel %vm1452_vm4, %v10859_v21, 0.0  ;;  %v11892_v21 = vld [vmem:[#allocation47_spill] sm:$0xff] }
 0x735   : > { %4717 = vadd.xlane.f32.xlu2 %v4716_v45  ;;  %v4743_v45 = vsel %vm1452_vm4, %v11890_v1, 0.0  ;;  %v11894_v1 = vld [vmem:[#allocation48_spill] sm:$0xff] }
 0x736   : > { %v5389_v31 = vpop.f32.mrf.mxu0 }
 0x737   : > { %v11061_v4 = vpop.permute.xlu2 %5117  ;;  %v5745_v19 = vadd.f32 %v5389_v31, %v5205_v17  ;;  %v11066_v58 = vpop.permute.xlu1 %5077  ;;  %4750 = vadd.xlane.f32.xlu1 %v4749_v38 }
 0x738   : > { %v5601_v56 = vpop.f32.mrf.mxu2  ;;  %v5710_v22 = vpop.f32.mrf.mxu3 }
 0x739   : > { %v5765_v59 = vadd.f32 %v5601_v56, %v5225_v61  ;;  %5793 = vst.msk [vmem:[#allocation6 + $0x28] sm:$0xff] %vm2107_vm5, %v5745_v19  ;;  %v5776_v47 = vadd.f32 %v5710_v22, %v5236_v35  ;;  %v5500_v41 = vpop.f32.mrf.mxu1  ;;  %v4543_v61 = vmul.f32 1.442695, %v4463_v50  ;;  %v4728_v35 = vsel %vm1452_vm4, %v10839_v9, 0.0  ;;  %v11891_v56 = vld [vmem:[#allocation46_spill] sm:$0xff] }
 0x73a   : > { %v5757_v28 = vadd.f32 %v5500_v41, %v5217_v2  ;;  %4693 = vadd.xlane.f32.xlu0 %v4692_v44  ;;  %v11073_v0 = vpop.permute.xlu0 %5172  ;;  %v4475_v2 = vsub.f32 %v11891_v56, %v11022_v29  ;;  %v4695_v41 = vsel %vm1452_vm4, %v10937_v20, 0.0  ;;  %v4755_v29 = vsel %vm1452_vm4, %v10879_v11, 0.0  ;;  %v11895_v56 = vld [vmem:[#allocation51_spill] sm:$0xff] }
 0x73b   : > { %5813 = vst.msk [vmem:[#allocation6 + $0xc8] sm:$0xff] %vm2107_vm5, %v5765_v59  ;;  %8171 = vpow2.f32 %v4543_v61  ;;  %v4689_v20 = vsel %vm1452_vm4, %v10803_v49, 0.0  ;;  %v4731_v61 = vsel %vm1452_vm4, %v10952_v5, 0.0  ;;  %v11896_v5 = vld [vmem:[#allocation50_spill] sm:$0xff] }
 0x73c   : > { %5824 = vst.msk [vmem:[#allocation6 + $0x120] sm:$0xff] %vm2107_vm5, %v5776_v47  ;;  %v4567_v9 = vmul.f32 1.442695, %v4475_v2 }
 0x73d   : > { %5805 = vst.msk [vmem:[#allocation6 + $0x88] sm:$0xff] %vm2107_vm5, %v5757_v28  ;;  %4744 = vadd.xlane.f32.xlu2 %v4743_v45 }
 0x73f   : > { %v11081_v17 = vpop.permute.xlu2 %5177  ;;  %v11086_v31 = vpop.permute.xlu1 %5122  ;;  %4786 = vadd.xlane.f32.xlu1 %v4785_v15 }
 0x740   : > { %v5712_v32 = vpop.f32.mrf.mxu3 }
 0x741   : > { %v5777_v38 = vadd.f32 %v5712_v32, %v5237_v34  ;;  %v11100_v28 = vpop.eup %8171 }
 0x742   : > { %4729 = vadd.xlane.f32.xlu0 %v4728_v35  ;;  %v4359_v19 = vpop.permute.xlu0 %4358  ;;  %v5280_v8 = vpack.c.bf16 %v11100_v28, %v11100_v28 }
 0x743   : > { %5825 = vst.msk [vmem:[#allocation6 + $0x128] sm:$0xff] %vm2107_vm5, %v5777_v38  ;;  %v4464_v59 = vsub.f32 %v11892_v21, %v4359_v19 }
 0x744   : > { %v5538_v35 = vunpack.c.l.b16 %v5280_v8 }
 0x745   : > { %4780 = vadd.xlane.f32.xlu2 %v4779_v57  ;;  %v4545_v22 = vmul.f32 1.442695, %v4464_v59  ;;  %v4918_v59 = vld [vmem:[#allocation6 + $0x30] sm:$0xff]  ;;  %v4791_v57 = vsel %vm1452_vm4, %v10898_v51, 0.0 }
 0x747   : > { %v4364_v47 = vpop.permute.xlu2 %4363  ;;  %8173 = vpow2.f32 %v4545_v22  ;;  %v11098_v44 = vpop.permute.xlu1 %5182  ;;  %4696 = vadd.xlane.f32.xlu1 %v4695_v41 }
 0x748   : > { %8175 = vpow2.f32 %v4567_v9  ;;  %v4465_v50 = vsub.f32 %v11893_v46, %v4364_v47  ;;  %v4725_v9 = vsel %vm1452_vm4, %v10827_v53, 0.0 }
 0x74a   : > { %4756 = vadd.xlane.f32.xlu0 %v4755_v29  ;;  %v4419_v30 = vpop.permute.xlu0 %4418  ;;  %v4547_v32 = vmul.f32 1.442695, %v4465_v50  ;;  %v5206_v29 = vmul.f32 %v10863_v39, %v4918_v59 }
 0x74b   : > { %v4476_v45 = vsub.f32 %v11894_v1, %v4419_v30 }
 0x74d   : > { %4690 = vadd.xlane.f32.xlu2 %v4689_v20  ;;  %v11110_v15 = vpop.eup %8173  ;;  %v4569_v34 = vmul.f32 1.442695, %v4476_v45  ;;  %v4758_v45 = vsel %vm1452_vm4, %v10881_v13, 0.0 }
 0x74e   : > { %v5281_v11 = vpack.c.bf16 %v11110_v15, %v11110_v15  ;;  %v11117_v21 = vpop.eup %8175 }
 0x74f   : > { %8177 = vpow2.f32 %v4569_v34  ;;  %v4369_v38 = vpop.permute.xlu1 %4368  ;;  %4732 = vadd.xlane.f32.xlu1 %v4731_v61  ;;  %v4424_v49 = vpop.permute.xlu2 %4423  ;;  %v5292_v30 = vpack.c.bf16 %v11117_v21, %v11117_v21  ;;  %v11897_v34 = vld [vmem:[#allocation52_spill] sm:$0xff] }
 0x750   : > { %v5539_v19 = vunpack.c.l.b16 %v5281_v11  ;;  %v4466_v2 = vsub.f32 %v11895_v56, %v4369_v38  ;;  %8179 = vpow2.f32 %v4547_v32  ;;  %v4477_v41 = vsub.f32 %v11896_v5, %v4424_v49  ;;  %v4919_v32 = vld [vmem:[#allocation6 + $0x38] sm:$0xff] }
 0x751   : > { %v5649_v39 = vunpack.c.l.b16 %v5292_v30  ;;  %v4701_v38 = vsel %vm1452_vm4, %v10971_v48, 0.0  ;;  %v5207_v59 = vmul.f32 %v10876_v3, %v4919_v32  ;;  %v4737_v30 = vsel %vm1452_vm4, %v10993_v23, 0.0 }
 0x752   : > { %v4549_v22 = vmul.f32 1.442695, %v4466_v2  ;;  %4792 = vadd.xlane.f32.xlu0 %v4791_v57  ;;  %v5546_v47 = vpack.c.b16 %v5539_v19, %v5538_v35  ;;  %v4571_v53 = vmul.f32 1.442695, %v4477_v41  ;;  %v4930_v19 = vld [vmem:[#allocation6 + $0x90] sm:$0xff]  ;;  %v4752_v2 = vsel %vm1452_vm4, %v10848_v6, 0.0 }
 0x753   : > { %v5218_v48 = vmul.f32 %v10885_v43, %v4930_v19  ;;  %v4764_v19 = vsel %vm1452_vm4, %v10998_v36, 0.0 }
 0x754   : > { %8181 = vpow2.f32 %v4549_v22  ;;  %7650 = vmatmul.msk.bf16.gmra.mxu2 %vm1452_vm4, %v5546_v47 }
 0x755   : > { %4726 = vadd.xlane.f32.xlu2 %v4725_v9  ;;  %v11128_v46 = vpop.eup %8177  ;;  %8183 = vpow2.f32 %v4571_v53  ;;  %v4794_v9 = vsel %vm1452_vm4, %v10900_v26, 0.0 }
 0x756   : > { %v5392_v51 = vpop.f32.mrf.mxu0  ;;  %v5293_v50 = vpack.c.bf16 %v11128_v46, %v11128_v46  ;;  %v11136_v61 = vpop.eup %8179 }
 0x757   : > { %v5746_v1 = vadd.f32 %v5392_v51, %v5206_v29  ;;  %v4429_v20 = vpop.permute.xlu1 %4428  ;;  %4759 = vadd.xlane.f32.xlu1 %v4758_v45  ;;  %v5282_v57 = vpack.c.bf16 %v11136_v61, %v11136_v61  ;;  %v4931_v51 = vld [vmem:[#allocation6 + $0x98] sm:$0xff]  ;;  %v4788_v45 = vsel %vm1452_vm4, %v10871_v14, 0.0 }
 0x758   : > { %v5650_v8 = vunpack.c.l.b16 %v5293_v50  ;;  %v4478_v11 = vsub.f32 %v11897_v34, %v4429_v20  ;;  %v5219_v23 = vmul.f32 %v10896_v12, %v4931_v51  ;;  %v4704_v34 = vsel %vm1452_vm4, %v10975_v40, 0.0  ;;  %v4575_v51 = vld [vmem:[#allocation5] sm:$0xff] }
 0x759   : > { %5794 = vst.msk [vmem:[#allocation6 + $0x30] sm:$0xff] %vm2107_vm5, %v5746_v1  ;;  %v5540_v6 = vunpack.c.l.b16 %v5282_v57  ;;  %v4938_v1 = vld [vmem:[#allocation6 + $0xd0] sm:$0xff] }
 0x75a   : > { %v11140_v35 = vpop.eup %8181  ;;  %v4573_v49 = vmul.f32 1.442695, %v4478_v11  ;;  %4702 = vadd.xlane.f32.xlu0 %v4701_v38  ;;  %v5657_v13 = vpack.c.b16 %v5650_v8, %v5649_v39  ;;  %v5226_v20 = vmul.f32 %v10766_v25, %v4938_v1  ;;  %v4950_v25 = vld [vmem:[#allocation6 + $0x130] sm:$0xff] }
 0x75b   : > { %v5283_v56 = vpack.c.bf16 %v11140_v35, %v11140_v35  ;;  %v11154_v3 = vpop.eup %8183  ;;  %v5238_v40 = vmul.f32 %v10787_v10, %v4950_v25  ;;  %v4734_v10 = vsel %vm1452_vm4, %v10962_v42, 0.0  ;;  %v4941_v42 = vld [vmem:[#allocation6 + $0xe8] sm:$0xff]  ;;  %v4577_v25 = vld [vmem:[#allocation5 + $0x10] sm:$0xff] }
 0x75c   : > { %8185 = vpow2.f32 %v4573_v49  ;;  %7656 = vmatmul.msk.bf16.gmra.mxu3 %vm1452_vm4, %v5657_v13  ;;  %v5294_v53 = vpack.c.bf16 %v11154_v3, %v11154_v3  ;;  %v4939_v49 = vld [vmem:[#allocation6 + $0xd8] sm:$0xff]  ;;  %v4698_v13 = vsel %vm1452_vm4, %v10946_v37, 0.0  ;;  %v4940_v37 = vld [vmem:[#allocation6 + $0xe0] sm:$0xff] }
 0x75d   : > { %4753 = vadd.xlane.f32.xlu2 %v4752_v2  ;;  %v5541_v47 = vunpack.c.l.b16 %v5283_v56  ;;  %v5227_v56 = vmul.f32 %v10906_v62, %v4939_v49  ;;  %v4740_v2 = vsel %vm1452_vm4, %v11002_v55, 0.0  ;;  %v11189_v62 = vpop.permute.xlu0 %5127  ;;  %v5228_v55 = vmul.f32 %v10915_v27, %v4940_v37  ;;  %v11901_v49 = vld [vmem:[#allocation76_spill] sm:$0xff] }
 0x75e   : > { %v5394_v22 = vpop.f32.mrf.mxu0  ;;  %v5503_v41 = vpop.f32.mrf.mxu1  ;;  %v5651_v38 = vunpack.c.l.b16 %v5294_v53  ;;  %v4761_v27 = vsel %vm1452_vm4, %v10986_v18, 0.0  ;;  %v4803_v53 = vsel %vm1452_vm4, %v11117_v21, 0.0  ;;  %v4809_v18 = vsel %vm1452_vm4, %v11154_v3, 0.0  ;;  %v11899_v21 = vld [vmem:[#allocation57_spill] sm:$0xff] }
 0x75f   : > { %v5747_v5 = vadd.f32 %v5394_v22, %v5207_v59  ;;  %v5758_v29 = vadd.f32 %v5503_v41, %v5218_v48  ;;  %4795 = vadd.xlane.f32.xlu1 %v4794_v9  ;;  %v5547_v50 = vpack.c.b16 %v5541_v47, %v5540_v6  ;;  %v4800_v22 = vsel %vm1452_vm4, %v11028_v52, 0.0  ;;  %v4951_v47 = vld [vmem:[#allocation6 + $0x138] sm:$0xff] }
 0x760   : > { %v4767_v52 = vsel %vm1452_vm4, %v11100_v28, 0.0  ;;  %v4776_v3 = vsel %vm1452_vm4, %v11140_v35, 0.0  ;;  %v4770_v35 = vsel %vm1452_vm4, %v11110_v15, 0.0 }
 0x761   : > { %5795 = vst.msk [vmem:[#allocation6 + $0x38] sm:$0xff] %vm2107_vm5, %v5747_v5  ;;  %v5239_v5 = vmul.f32 %v10918_v54, %v4951_v47  ;;  %v11898_v54 = vld [vmem:[#allocation55_spill] sm:$0xff]  ;;  %v4587_v47 = vld [vmem:[#allocation5 + $0x60] sm:$0xff] }
 0x762   : > { %5806 = vst.msk [vmem:[#allocation6 + $0x90] sm:$0xff] %vm2107_vm5, %v5758_v29  ;;  %v11159_v43 = vpop.eup %8185  ;;  %4738 = vadd.xlane.f32.xlu0 %v4737_v30  ;;  %v4773_v30 = vsel %vm1452_vm4, %v11136_v61, 0.0  ;;  %v4623_v28 = vmul.f32 %v11898_v54, %v4575_v51  ;;  %v11907_v54 = vld [vmem:[#allocation56_spill] sm:$0xff] }
 0x763   : > { %v5295_v26 = vpack.c.bf16 %v11159_v43, %v11159_v43 }
 0x764   : > { %7651 = vmatmul.msk.bf16.gmra.mxu2 %vm1452_vm4, %v5547_v50  ;;  %v4952_v50 = vld [vmem:[#allocation6 + $0x140] sm:$0xff] }
 0x765   : > { %4789 = vadd.xlane.f32.xlu2 %v4788_v45  ;;  %v5652_v39 = vunpack.c.l.b16 %v5295_v26  ;;  %v5229_v26 = vmul.f32 %v10924_v63, %v4941_v42  ;;  %v5240_v45 = vmul.f32 %v10926_v60, %v4952_v50  ;;  %v4953_v60 = vld [vmem:[#allocation6 + $0x148] sm:$0xff]  ;;  %v4797_v63 = vsel %vm1452_vm4, %v11016_v16, 0.0  ;;  %v11906_v42 = vld [vmem:[#allocation40_spill] sm:$0xff] }
 0x766   : > { %v5505_v8 = vpop.f32.mrf.mxu1 }
 0x767   : > { %v5759_v11 = vadd.f32 %v5505_v8, %v5219_v23  ;;  %4705 = vadd.xlane.f32.xlu1 %v4704_v34  ;;  %v5604_v32 = vpop.f32.mrf.mxu2  ;;  %v5658_v12 = vpack.c.b16 %v5652_v39, %v5651_v38  ;;  %v4588_v34 = vld [vmem:[#allocation5 + $0x68] sm:$0xff] }
 0x768   : > { %v5766_v14 = vadd.f32 %v5604_v32, %v5226_v20  ;;  %v4636_v32 = vmul.f32 %v11899_v21, %v4588_v34 }
 0x769   : > { %5807 = vst.msk [vmem:[#allocation6 + $0x98] sm:$0xff] %vm2107_vm5, %v5759_v11  ;;  %v11209_v11 = vpop.permute.xlu1 %5137 }
 0x76a   : > { %5814 = vst.msk [vmem:[#allocation6 + $0xd0] sm:$0xff] %vm2107_vm5, %v5766_v14  ;;  %4765 = vadd.xlane.f32.xlu0 %v4764_v19  ;;  %v11900_v14 = vld [vmem:[#allocation20_spill] sm:$0xff] }
 0x76b   : > { %v5241_v19 = vmul.f32 %v11900_v14, %v4953_v60 }
 0x76c   : > { %7657 = vmatmul.msk.bf16.gmra.mxu3 %vm1452_vm4, %v5658_v12 }
 0x76d   : > { %4699 = vadd.xlane.f32.xlu2 %v4698_v13  ;;  %v11902_v13 = vld [vmem:[#allocation74_spill] sm:$0xff] }
 0x76f   : > { %4741 = vadd.xlane.f32.xlu1 %v4740_v2  ;;  %v5606_v36 = vpop.f32.mrf.mxu2  ;;  %v5715_v59 = vpop.f32.mrf.mxu3 }
 0x770   : > { %v5767_v57 = vadd.f32 %v5606_v36, %v5227_v56  ;;  %v5778_v48 = vadd.f32 %v5715_v59, %v5238_v40  ;;  %v4092_v40 = vsub.f32 %v11902_v13, %v11901_v49  ;;  %v11221_v56 = vpop.permute.xlu2 %5132  ;;  %v11903_v36 = vld [vmem:[#allocation53_spill] sm:$0xff]  ;;  %v11913_v49 = vld [vmem:[#allocation82_spill] sm:$0xff] }
 0x771   : > { %v4625_v59 = vmul.f32 %v11903_v36, %v4577_v25  ;;  %v11912_v25 = vld [vmem:[#allocation83_spill] sm:$0xff] }
 0x772   : > { %5815 = vst.msk [vmem:[#allocation6 + $0xd8] sm:$0xff] %vm2107_vm5, %v5767_v57  ;;  %4801 = vadd.xlane.f32.xlu0 %v4800_v22  ;;  %v4579_v57 = vld [vmem:[#allocation5 + $0x20] sm:$0xff]  ;;  %v4185_v22 = vmul.f32 1.442695, %v4092_v40  ;;  %v4094_v13 = vsub.f32 %v11913_v49, %v11912_v25  ;;  %v4601_v25 = vld [vmem:[#allocation5 + $0xd0] sm:$0xff] }
 0x773   : > { %5826 = vst.msk [vmem:[#allocation6 + $0x130] sm:$0xff] %vm2107_vm5, %v5778_v48 }
 0x774   : > { %8187 = vpow2.f32 %v4185_v22 }
 0x775   : > { %4735 = vadd.xlane.f32.xlu2 %v4734_v10  ;;  %v11904_v10 = vld [vmem:[#allocation69_spill] sm:$0xff] }
 0x777   : > { %4768 = vadd.xlane.f32.xlu1 %v4767_v52  ;;  %v5609_v41 = vpop.f32.mrf.mxu2  ;;  %v5717_v9 = vpop.f32.mrf.mxu3 }
 0x778   : > { %v5768_v29 = vadd.f32 %v5609_v41, %v5228_v55  ;;  %v5779_v6 = vadd.f32 %v5717_v9, %v5239_v5  ;;  %v4627_v55 = vmul.f32 %v11904_v10, %v4579_v57  ;;  %v4920_v5 = vld [vmem:[#allocation6 + $0x40] sm:$0xff]  ;;  %v4812_v9 = vsel %vm1452_vm4, %v11159_v43, 0.0 }
 0x779   : > { %v5208_v15 = vmul.f32 %v11906_v42, %v4920_v5  ;;  %v11917_v5 = vld [vmem:[#allocation79_spill] sm:$0xff] }
 0x77a   : > { %5816 = vst.msk [vmem:[#allocation6 + $0xe0] sm:$0xff] %vm2107_vm5, %v5768_v29  ;;  %4774 = vadd.xlane.f32.xlu0 %v4773_v30  ;;  %v11905_v29 = vld [vmem:[#allocation54_spill] sm:$0xff] }
 0x77b   : > { %5827 = vst.msk [vmem:[#allocation6 + $0x138] sm:$0xff] %vm2107_vm5, %v5779_v6  ;;  %v4635_v6 = vmul.f32 %v11905_v29, %v4587_v47  ;;  %v4589_v30 = vld [vmem:[#allocation5 + $0x70] sm:$0xff]  ;;  %v11915_v47 = vld [vmem:[#allocation77_spill] sm:$0xff] }
 0x77c   : > { %v4933_v29 = vld [vmem:[#allocation6 + $0xa8] sm:$0xff] }
 0x77d   : > { %4762 = vadd.xlane.f32.xlu2 %v4761_v27  ;;  %v4673_v1 = vpop.xlane.xlu0 %4672 }
 0x77e   : > { %v4815_v61 = vadd.f32 %v4673_v1, %v4623_v28  ;;  %v4637_v28 = vmul.f32 %v11907_v54, %v4589_v30  ;;  %v4591_v1 = vld [vmem:[#allocation5 + $0x80] sm:$0xff] }
 0x77f   : > { %4804 = vadd.xlane.f32.xlu1 %v4803_v53  ;;  %v5611_v23 = vpop.f32.mrf.mxu2  ;;  %v5720_v20 = vpop.f32.mrf.mxu3  ;;  %v4576_v53 = vld [vmem:[#allocation5 + $0x8] sm:$0xff] }
 0x780   : > { %4864 = vst.msk [vmem:[#allocation5] sm:$0xff] %vm4863_vm7, %v4815_v61  ;;  %v5769_v39 = vadd.f32 %v5611_v23, %v5229_v26  ;;  %v5780_v8 = vadd.f32 %v5720_v20, %v5240_v45  ;;  %v4806_v61 = vsel %vm1452_vm4, %v11128_v46, 0.0  ;;  %v11908_v23 = vld [vmem:[#allocation72_spill] sm:$0xff] }
 0x781   : > { %v4639_v20 = vmul.f32 %v11908_v23, %v4591_v1 }
 0x782   : > { %5817 = vst.msk [vmem:[#allocation6 + $0xe8] sm:$0xff] %vm2107_vm5, %v5769_v39  ;;  %4810 = vadd.xlane.f32.xlu0 %v4809_v18  ;;  %v11241_v39 = vpop.eup %8187  ;;  %v4921_v18 = vld [vmem:[#allocation6 + $0x48] sm:$0xff] }
 0x783   : > { %5828 = vst.msk [vmem:[#allocation6 + $0x140] sm:$0xff] %vm2107_vm5, %v5780_v8  ;;  %v4932_v8 = vld [vmem:[#allocation6 + $0xa0] sm:$0xff] }
 0x785   : > { %4798 = vadd.xlane.f32.xlu2 %v4797_v63  ;;  %v4712_v38 = vpop.xlane.xlu0 %4711  ;;  %v11909_v63 = vld [vmem:[#allocation58_spill] sm:$0xff] }
 0x786   : > { %v4828_v12 = vadd.f32 %v4712_v38, %v4636_v32  ;;  %v4624_v21 = vmul.f32 %v11909_v63, %v4576_v53  ;;  %v4580_v32 = vld [vmem:[#allocation5 + $0x28] sm:$0xff]  ;;  %v11910_v38 = vld [vmem:[#allocation28_spill] sm:$0xff]  ;;  %v11921_v53 = vld [vmem:[#allocation70_spill] sm:$0xff] }
 0x787   : > { %4777 = vadd.xlane.f32.xlu1 %v4776_v3  ;;  %v5722_v2 = vpop.f32.mrf.mxu3  ;;  %v5220_v14 = vmul.f32 %v11910_v38, %v4932_v8  ;;  %v4590_v63 = vld [vmem:[#allocation5 + $0x78] sm:$0xff] }
 0x788   : > { %4877 = vst.msk [vmem:[#allocation5 + $0x68] sm:$0xff] %vm4863_vm7, %v4828_v12  ;;  %v5781_v16 = vadd.f32 %v5722_v2, %v5241_v19  ;;  %v11911_v19 = vld [vmem:[#allocation24_spill] sm:$0xff]  ;;  %v4923_v38 = vld [vmem:[#allocation6 + $0x58] sm:$0xff] }
 0x789   : > { %v5209_v12 = vmul.f32 %v11911_v19, %v4921_v18 }
 0x78a   : > { %5829 = vst.msk [vmem:[#allocation6 + $0x148] sm:$0xff] %vm2107_vm5, %v5781_v16  ;;  %v4679_v48 = vpop.xlane.xlu1 %4678  ;;  %v11914_v16 = vld [vmem:[#allocation67_spill] sm:$0xff] }
 0x78b   : > { %v4817_v37 = vadd.f32 %v4679_v48, %v4625_v59  ;;  %v4628_v36 = vmul.f32 %v11914_v16, %v4580_v32  ;;  %v4600_v59 = vld [vmem:[#allocation5 + $0xc8] sm:$0xff]  ;;  %v5211_v16 = vmul.f32 %v11046_v33, %v4923_v38 }
 0x78c   : > { %v4648_v10 = vmul.f32 %v11915_v47, %v4600_v59 }
 0x78d   : > { %4771 = vadd.xlane.f32.xlu2 %v4770_v35  ;;  %4866 = vst.msk [vmem:[#allocation5 + $0x10] sm:$0xff] %vm4863_vm7, %v4817_v37  ;;  %v4685_v52 = vpop.xlane.xlu0 %4684  ;;  %v4578_v35 = vld [vmem:[#allocation5 + $0x18] sm:$0xff] }
 0x78e   : > { %v4819_v41 = vadd.f32 %v4685_v52, %v4627_v55  ;;  %v11916_v55 = vld [vmem:[#allocation80_spill] sm:$0xff] }
 0x78f   : > { %4813 = vadd.xlane.f32.xlu1 %v4812_v9  ;;  %v4093_v52 = vsub.f32 %v11917_v5, %v11916_v55  ;;  %v4922_v9 = vld [vmem:[#allocation6 + $0x50] sm:$0xff] }
 0x790   : > { %v4709_v51 = vpop.xlane.xlu2 %4708  ;;  %4868 = vst.msk [vmem:[#allocation5 + $0x20] sm:$0xff] %vm4863_vm7, %v4819_v41  ;;  %v4189_v41 = vmul.f32 1.442695, %v4094_v13  ;;  %v4942_v13 = vld [vmem:[#allocation6 + $0xf0] sm:$0xff] }
 0x791   : > { %v4827_v50 = vadd.f32 %v4709_v51, %v4635_v6  ;;  %v5397_v27 = vpop.f32.mrf.mxu0  ;;  %v11918_v51 = vld [vmem:[#allocation66_spill] sm:$0xff] }
 0x792   : > { %v5748_v26 = vadd.f32 %v5397_v27, %v5208_v15  ;;  %v4715_v45 = vpop.xlane.xlu1 %4714  ;;  %v4626_v42 = vmul.f32 %v11918_v51, %v4578_v35  ;;  %v4592_v15 = vld [vmem:[#allocation5 + $0x88] sm:$0xff]  ;;  %8189 = vpow2.f32 %v4189_v41  ;;  %v5230_v35 = vmul.f32 %v11054_v24, %v4942_v13  ;;  %v11926_v51 = vld [vmem:[#allocation71_spill] sm:$0xff] }
 0x793   : > { %4876 = vst.msk [vmem:[#allocation5 + $0x60] sm:$0xff] %vm4863_vm7, %v4827_v50  ;;  %v4829_v43 = vadd.f32 %v4715_v45, %v4637_v28  ;;  %v11919_v27 = vld [vmem:[#allocation41_spill] sm:$0xff]  ;;  %v11920_v28 = vld [vmem:[#allocation16_spill] sm:$0xff]  ;;  %v4187_v45 = vmul.f32 1.442695, %v4093_v52  ;;  %v4640_v23 = vmul.f32 %v11921_v53, %v4592_v15  ;;  %v4613_v15 = vld [vmem:[#allocation5 + $0x130] sm:$0xff] }
 0x794   : > { %5796 = vst.msk [vmem:[#allocation6 + $0x40] sm:$0xff] %vm2107_vm5, %v5748_v26  ;;  %v5210_v54 = vmul.f32 %v11919_v27, %v4922_v9  ;;  %v5221_v1 = vmul.f32 %v11920_v28, %v4933_v29  ;;  %v4599_v52 = vld [vmem:[#allocation5 + $0xc0] sm:$0xff]  ;;  %v11925_v9 = vld [vmem:[#allocation89_spill] sm:$0xff]  ;;  %v4954_v27 = vld [vmem:[#allocation6 + $0x150] sm:$0xff] }
 0x795   : > { %4807 = vadd.xlane.f32.xlu2 %v4806_v61  ;;  %4878 = vst.msk [vmem:[#allocation5 + $0x70] sm:$0xff] %vm4863_vm7, %v4829_v43  ;;  %v4721_v34 = vpop.xlane.xlu0 %4720  ;;  %8191 = vpow2.f32 %v4187_v45  ;;  %v11927_v45 = vld [vmem:[#allocation78_spill] sm:$0xff]  ;;  %v11930_v13 = vld [vmem:[#allocation87_spill] sm:$0xff] }
 0x796   : > { %v4831_v60 = vadd.f32 %v4721_v34, %v4639_v20  ;;  %5187 = vperm.xlu0 %7870, %v11241_v39   ;;  %v4612_v20 = vld [vmem:[#allocation5 + $0x128] sm:$0xff] }
 0x798   : > { %v4676_v46 = vpop.xlane.xlu2 %4675  ;;  %4880 = vst.msk [vmem:[#allocation5 + $0x80] sm:$0xff] %vm4863_vm7, %v4831_v60  ;;  %v11270_v49 = vpop.eup %8189 }
 0x799   : > { %v4816_v3 = vadd.f32 %v4676_v46, %v4624_v21  ;;  %v5399_v40 = vpop.f32.mrf.mxu0  ;;  %v5508_v2 = vpop.f32.mrf.mxu1  ;;  %v11922_v21 = vld [vmem:[#allocation81_spill] sm:$0xff]  ;;  %v4934_v46 = vld [vmem:[#allocation6 + $0xb0] sm:$0xff] }
 0x79a   : > { %v5749_v57 = vadd.f32 %v5399_v40, %v5209_v12  ;;  %v5760_v48 = vadd.f32 %v5508_v2, %v5220_v14  ;;  %v4688_v22 = vpop.xlane.xlu1 %4687  ;;  %v4660_v32 = vmul.f32 %v11922_v21, %v4612_v20  ;;  %v11923_v12 = vld [vmem:[#allocation68_spill] sm:$0xff]  ;;  %v5222_v2 = vmul.f32 %v11042_v7, %v4934_v46 }
 0x79b   : > { %4865 = vst.msk [vmem:[#allocation5 + $0x8] sm:$0xff] %vm4863_vm7, %v4816_v3  ;;  %v4820_v37 = vadd.f32 %v4688_v22, %v4628_v36  ;;  %v4638_v3 = vmul.f32 %v11923_v12, %v4590_v63  ;;  %v11279_v7 = vpop.eup %8191  ;;  %v4611_v63 = vld [vmem:[#allocation5 + $0x120] sm:$0xff]  ;;  %v4955_v12 = vld [vmem:[#allocation6 + $0x158] sm:$0xff] }
 0x79c   : > { %5797 = vst.msk [vmem:[#allocation6 + $0x48] sm:$0xff] %vm2107_vm5, %v5749_v57 }
 0x79d   : > { %5808 = vst.msk [vmem:[#allocation6 + $0xa0] sm:$0xff] %vm2107_vm5, %v5760_v48  ;;  %v4748_v6 = vpop.xlane.xlu0 %4747  ;;  %v11924_v48 = vld [vmem:[#allocation73_spill] sm:$0xff] }
 0x79e   : > { %4869 = vst.msk [vmem:[#allocation5 + $0x28] sm:$0xff] %vm4863_vm7, %v4820_v37  ;;  %v4840_v30 = vadd.f32 %v4748_v6, %v4648_v10  ;;  %v4649_v22 = vmul.f32 %v11924_v48, %v4601_v25  ;;  %v4582_v37 = vld [vmem:[#allocation5 + $0x38] sm:$0xff]  ;;  %v4581_v48 = vld [vmem:[#allocation5 + $0x30] sm:$0xff] }
 0x79f   : > { %v4630_v29 = vmul.f32 %v11925_v9, %v4582_v37  ;;  %v4935_v6 = vld [vmem:[#allocation6 + $0xb8] sm:$0xff] }
 0x7a0   : > { %v4682_v50 = vpop.xlane.xlu2 %4681  ;;  %4889 = vst.msk [vmem:[#allocation5 + $0xc8] sm:$0xff] %vm4863_vm7, %v4840_v30  ;;  %v5223_v28 = vmul.f32 %v11066_v58, %v4935_v6  ;;  %v11931_v37 = vld [vmem:[#allocation59_spill] sm:$0xff] }
 0x7a1   : > { %v4818_v26 = vadd.f32 %v4682_v50, %v4626_v42  ;;  %v5402_v43 = vpop.f32.mrf.mxu0  ;;  %v5510_v61 = vpop.f32.mrf.mxu1  ;;  %v4647_v42 = vmul.f32 %v11926_v51, %v4599_v52  ;;  %v4943_v50 = vld [vmem:[#allocation6 + $0xf8] sm:$0xff]  ;;  %v11934_v51 = vld [vmem:[#allocation34_spill] sm:$0xff] }
 0x7a2   : > { %v5750_v8 = vadd.f32 %v5402_v43, %v5210_v54  ;;  %v5761_v18 = vadd.f32 %v5510_v61, %v5221_v1  ;;  %v4724_v34 = vpop.xlane.xlu1 %4723  ;;  %v4661_v43 = vmul.f32 %v11927_v45, %v4613_v15  ;;  %v4594_v61 = vld [vmem:[#allocation5 + $0x98] sm:$0xff]  ;;  %v5231_v53 = vmul.f32 %v11061_v4, %v4943_v50  ;;  %v11936_v45 = vld [vmem:[#allocation94_spill] sm:$0xff] }
 0x7a3   : > { %4867 = vst.msk [vmem:[#allocation5 + $0x18] sm:$0xff] %vm4863_vm7, %v4818_v26  ;;  %v4832_v60 = vadd.f32 %v4724_v34, %v4640_v23  ;;  %v5242_v23 = vmul.f32 %v11073_v0, %v4954_v27  ;;  %v11929_v0 = vld [vmem:[#allocation75_spill] sm:$0xff]  ;;  %v11935_v27 = vld [vmem:[#allocation86_spill] sm:$0xff] }
 0x7a4   : > { %5798 = vst.msk [vmem:[#allocation6 + $0x50] sm:$0xff] %vm2107_vm5, %v5750_v8 }
 0x7a5   : > { %5809 = vst.msk [vmem:[#allocation6 + $0xa8] sm:$0xff] %vm2107_vm5, %v5761_v18  ;;  %v4784_v14 = vpop.xlane.xlu0 %4783 }
 0x7a6   : > { %4881 = vst.msk [vmem:[#allocation5 + $0x88] sm:$0xff] %vm4863_vm7, %v4832_v60  ;;  %v4852_v19 = vadd.f32 %v4784_v14, %v4660_v32  ;;  %v11928_v32 = vld [vmem:[#allocation93_spill] sm:$0xff]  ;;  %v4659_v14 = vmul.f32 %v11929_v0, %v4611_v63  ;;  %v11938_v63 = vld [vmem:[#allocation88_spill] sm:$0xff]  ;;  %v4597_v0 = vld [vmem:[#allocation5 + $0xb0] sm:$0xff] }
 0x7a7   : > { %v4642_v46 = vmul.f32 %v11928_v32, %v4594_v61  ;;  %v4585_v61 = vld [vmem:[#allocation5 + $0x50] sm:$0xff] }
 0x7a8   : > { %v4718_v40 = vpop.xlane.xlu2 %4717  ;;  %4901 = vst.msk [vmem:[#allocation5 + $0x128] sm:$0xff] %vm4863_vm7, %v4852_v19  ;;  %5197 = vperm.xlu1 %7869, %v11270_v49   ;;  %v4583_v19 = vld [vmem:[#allocation5 + $0x40] sm:$0xff] }
 0x7a9   : > { %v4830_v36 = vadd.f32 %v4718_v40, %v4638_v3  ;;  %v5404_v59 = vpop.f32.mrf.mxu0  ;;  %v5513_v57 = vpop.f32.mrf.mxu1  ;;  %v4631_v40 = vmul.f32 %v11930_v13, %v4583_v19  ;;  %v4944_v19 = vld [vmem:[#allocation6 + $0x100] sm:$0xff] }
 0x7aa   : > { %v5751_v47 = vadd.f32 %v5404_v59, %v5211_v16  ;;  %v5762_v10 = vadd.f32 %v5513_v57, %v5222_v2  ;;  %v4751_v55 = vpop.xlane.xlu1 %4750  ;;  %v4603_v2 = vld [vmem:[#allocation5 + $0xe0] sm:$0xff]  ;;  %v5243_v16 = vmul.f32 %v11081_v17, %v4955_v12 }
 0x7ab   : > { %4879 = vst.msk [vmem:[#allocation5 + $0x78] sm:$0xff] %vm4863_vm7, %v4830_v36  ;;  %v4841_v33 = vadd.f32 %v4751_v55, %v4649_v22  ;;  %v11932_v55 = vld [vmem:[#allocation85_spill] sm:$0xff] }
 0x7ac   : > { %v5614_v5 = vpop.f32.mrf.mxu2  ;;  %5799 = vst.msk [vmem:[#allocation6 + $0x58] sm:$0xff] %vm2107_vm5, %v5751_v47 }
 0x7ad   : > { %v5770_v41 = vadd.f32 %v5614_v5, %v5230_v35  ;;  %5192 = vperm.xlu2 %7871, %v11279_v7   ;;  %5810 = vst.msk [vmem:[#allocation6 + $0xb0] sm:$0xff] %vm2107_vm5, %v5762_v10  ;;  %v4694_v24 = vpop.xlane.xlu0 %4693  ;;  %v4651_v35 = vmul.f32 %v11931_v37, %v4603_v2  ;;  %v4595_v5 = vld [vmem:[#allocation5 + $0xa0] sm:$0xff]  ;;  %v5232_v2 = vmul.f32 %v11086_v31, %v4944_v19  ;;  %v4609_v19 = vld [vmem:[#allocation5 + $0x110] sm:$0xff] }
 0x7ae   : > { %4890 = vst.msk [vmem:[#allocation5 + $0xd0] sm:$0xff] %vm4863_vm7, %v4841_v33  ;;  %v4822_v30 = vadd.f32 %v4694_v24, %v4630_v29  ;;  %v4629_v33 = vmul.f32 %v11932_v55, %v4581_v48  ;;  %v4615_v29 = vld [vmem:[#allocation5 + $0x140] sm:$0xff]  ;;  %v4606_v55 = vld [vmem:[#allocation5 + $0xf8] sm:$0xff] }
 0x7af   : > { %5818 = vst.msk [vmem:[#allocation6 + $0xf0] sm:$0xff] %vm2107_vm5, %v5770_v41  ;;  %v11933_v41 = vld [vmem:[#allocation90_spill] sm:$0xff] }
 0x7b0   : > { %v4745_v54 = vpop.xlane.xlu2 %4744  ;;  %4871 = vst.msk [vmem:[#allocation5 + $0x38] sm:$0xff] %vm4863_vm7, %v4822_v30  ;;  %v4643_v9 = vmul.f32 %v11933_v41, %v4595_v5  ;;  %v4593_v30 = vld [vmem:[#allocation5 + $0x90] sm:$0xff]  ;;  %v4956_v5 = vld [vmem:[#allocation6 + $0x160] sm:$0xff] }
 0x7b1   : > { %v4839_v1 = vadd.f32 %v4745_v54, %v4647_v42  ;;  %v5515_v26 = vpop.f32.mrf.mxu1  ;;  %v4663_v42 = vmul.f32 %v11934_v51, %v4615_v29  ;;  %v4641_v54 = vmul.f32 %v11935_v27, %v4593_v30  ;;  %v4598_v51 = vld [vmem:[#allocation5 + $0xb8] sm:$0xff] }
 0x7b2   : > { %v5763_v20 = vadd.f32 %v5515_v26, %v5223_v28  ;;  %v4787_v8 = vpop.xlane.xlu1 %4786  ;;  %v4604_v28 = vld [vmem:[#allocation5 + $0xe8] sm:$0xff] }
 0x7b3   : > { %4888 = vst.msk [vmem:[#allocation5 + $0xc0] sm:$0xff] %vm4863_vm7, %v4839_v1  ;;  %v4853_v18 = vadd.f32 %v4787_v8, %v4661_v43  ;;  %v4652_v43 = vmul.f32 %v11936_v45, %v4604_v28  ;;  %v11937_v8 = vld [vmem:[#allocation62_spill] sm:$0xff]  ;;  %v11945_v45 = vld [vmem:[#allocation63_spill] sm:$0xff] }
 0x7b4   : > { %v5616_v34 = vpop.f32.mrf.mxu2  ;;  %v5725_v60 = vpop.f32.mrf.mxu3  ;;  %5811 = vst.msk [vmem:[#allocation6 + $0xb8] sm:$0xff] %vm2107_vm5, %v5763_v20  ;;  %v4602_v20 = vld [vmem:[#allocation5 + $0xd8] sm:$0xff] }
 0x7b5   : > { %v5771_v58 = vadd.f32 %v5616_v34, %v5231_v53  ;;  %v5782_v21 = vadd.f32 %v5725_v60, %v5242_v23  ;;  %4902 = vst.msk [vmem:[#allocation5 + $0x130] sm:$0xff] %vm4863_vm7, %v4853_v18  ;;  %v4730_v38 = vpop.xlane.xlu0 %4729  ;;  %v4633_v18 = vmul.f32 %v11937_v8, %v4585_v61  ;;  %v4618_v61 = vld [vmem:[#allocation5 + $0x158] sm:$0xff]  ;;  %v4596_v8 = vld [vmem:[#allocation5 + $0xa8] sm:$0xff] }
 0x7b6   : > { %v4834_v4 = vadd.f32 %v4730_v38, %v4642_v46  ;;  %v11939_v38 = vld [vmem:[#allocation61_spill] sm:$0xff] }
 0x7b7   : > { %5819 = vst.msk [vmem:[#allocation6 + $0xf8] sm:$0xff] %vm2107_vm5, %v5771_v58  ;;  %v4650_v58 = vmul.f32 %v11938_v63, %v4602_v20  ;;  %v4607_v63 = vld [vmem:[#allocation5 + $0x100] sm:$0xff] }
 0x7b8   : > { %5830 = vst.msk [vmem:[#allocation6 + $0x150] sm:$0xff] %vm2107_vm5, %v5782_v21  ;;  %v4781_v3 = vpop.xlane.xlu2 %4780  ;;  %v4616_v21 = vld [vmem:[#allocation5 + $0x148] sm:$0xff] }
 0x7b9   : > { %4883 = vst.msk [vmem:[#allocation5 + $0x98] sm:$0xff] %vm4863_vm7, %v4834_v4  ;;  %v4851_v25 = vadd.f32 %v4781_v3, %v4659_v14  ;;  %v4664_v4 = vmul.f32 %v11939_v38, %v4616_v21  ;;  %v4614_v3 = vld [vmem:[#allocation5 + $0x138] sm:$0xff]  ;;  %v11947_v21 = vld [vmem:[#allocation60_spill] sm:$0xff] }
 0x7ba   : > { %v4697_v36 = vpop.xlane.xlu1 %4696 }
 0x7bb   : > { %4900 = vst.msk [vmem:[#allocation5 + $0x120] sm:$0xff] %vm4863_vm7, %v4851_v25  ;;  %v4823_v59 = vadd.f32 %v4697_v36, %v4631_v40  ;;  %v11940_v25 = vld [vmem:[#allocation38_spill] sm:$0xff]  ;;  %v11941_v36 = vld [vmem:[#allocation91_spill] sm:$0xff] }
 0x7bc   : > { %v5727_v57 = vpop.f32.mrf.mxu3  ;;  %v4645_v13 = vmul.f32 %v11940_v25, %v4597_v0  ;;  %v11948_v0 = vld [vmem:[#allocation14_spill] sm:$0xff]  ;;  %v11949_v25 = vld [vmem:[#allocation39_spill] sm:$0xff] }
 0x7bd   : > { %v5783_v22 = vadd.f32 %v5727_v57, %v5243_v16  ;;  %4872 = vst.msk [vmem:[#allocation5 + $0x40] sm:$0xff] %vm4863_vm7, %v4823_v59  ;;  %v4757_v47 = vpop.xlane.xlu0 %4756  ;;  %v4662_v59 = vmul.f32 %v11941_v36, %v4614_v3  ;;  %v4586_v57 = vld [vmem:[#allocation5 + $0x58] sm:$0xff] }
 0x7be   : > { %v4843_v10 = vadd.f32 %v4757_v47, %v4651_v35  ;;  %v11942_v47 = vld [vmem:[#allocation37_spill] sm:$0xff]  ;;  %v4947_v3 = vld [vmem:[#allocation6 + $0x118] sm:$0xff] }
 0x7bf   : > { %5831 = vst.msk [vmem:[#allocation6 + $0x158] sm:$0xff] %vm2107_vm5, %v5783_v22 }
 0x7c0   : > { %v4691_v52 = vpop.xlane.xlu2 %4690  ;;  %4892 = vst.msk [vmem:[#allocation5 + $0xe0] sm:$0xff] %vm4863_vm7, %v4843_v10  ;;  %v4634_v10 = vmul.f32 %v11942_v47, %v4586_v57 }
 0x7c1   : > { %v4821_v17 = vadd.f32 %v4691_v52, %v4629_v33  ;;  %v4945_v52 = vld [vmem:[#allocation6 + $0x108] sm:$0xff] }
 0x7c2   : > { %v4733_v6 = vpop.xlane.xlu1 %4732 }
 0x7c3   : > { %4870 = vst.msk [vmem:[#allocation5 + $0x30] sm:$0xff] %vm4863_vm7, %v4821_v17  ;;  %v4835_v24 = vadd.f32 %v4733_v6, %v4643_v9  ;;  %v11943_v17 = vld [vmem:[#allocation15_spill] sm:$0xff]  ;;  %v4584_v9 = vld [vmem:[#allocation5 + $0x48] sm:$0xff]  ;;  %v5244_v6 = vmul.f32 %v11098_v44, %v4956_v5 }
 0x7c4   : > { %v4654_v41 = vmul.f32 %v11943_v17, %v4606_v55 }
 0x7c5   : > { %4884 = vst.msk [vmem:[#allocation5 + $0xa0] sm:$0xff] %vm4863_vm7, %v4835_v24  ;;  %v4793_v15 = vpop.xlane.xlu0 %4792  ;;  %v5233_v24 = vmul.f32 %v11189_v62, %v4945_v52 }
 0x7c6   : > { %v4855_v50 = vadd.f32 %v4793_v15, %v4663_v42 }
 0x7c8   : > { %v4727_v1 = vpop.xlane.xlu2 %4726  ;;  %4904 = vst.msk [vmem:[#allocation5 + $0x140] sm:$0xff] %vm4863_vm7, %v4855_v50  ;;  %v11944_v50 = vld [vmem:[#allocation23_spill] sm:$0xff] }
 0x7c9   : > { %v4833_v26 = vadd.f32 %v4727_v1, %v4641_v54  ;;  %v4632_v27 = vmul.f32 %v11944_v50, %v4584_v9  ;;  %v4610_v9 = vld [vmem:[#allocation5 + $0x118] sm:$0xff] }
 0x7ca   : > { %v4760_v53 = vpop.xlane.xlu1 %4759 }
 0x7cb   : > { %4882 = vst.msk [vmem:[#allocation5 + $0x90] sm:$0xff] %vm4863_vm7, %v4833_v26  ;;  %v4844_v23 = vadd.f32 %v4760_v53, %v4652_v43  ;;  %v4646_v43 = vmul.f32 %v11945_v45, %v4598_v51  ;;  %v4946_v53 = vld [vmem:[#allocation6 + $0x110] sm:$0xff]  ;;  %v11953_v51 = vld [vmem:[#allocation32_spill] sm:$0xff] }
 0x7cd   : > { %4893 = vst.msk [vmem:[#allocation5 + $0xe8] sm:$0xff] %vm4863_vm7, %v4844_v23  ;;  %v4703_v34 = vpop.xlane.xlu0 %4702  ;;  %v11946_v23 = vld [vmem:[#allocation22_spill] sm:$0xff] }
 0x7ce   : > { %v4825_v60 = vadd.f32 %v4703_v34, %v4633_v18  ;;  %v4666_v20 = vmul.f32 %v11946_v23, %v4618_v61  ;;  %v5234_v34 = vmul.f32 %v11221_v56, %v4946_v53  ;;  %v4957_v53 = vld [vmem:[#allocation6 + $0x168] sm:$0xff] }
 0x7d0   : > { %v4754_v32 = vpop.xlane.xlu2 %4753  ;;  %4874 = vst.msk [vmem:[#allocation5 + $0x50] sm:$0xff] %vm4863_vm7, %v4825_v60 }
 0x7d1   : > { %v4842_v46 = vadd.f32 %v4754_v32, %v4650_v58  ;;  %v4644_v32 = vmul.f32 %v11947_v21, %v4596_v8 }
 0x7d2   : > { %v4796_v14 = vpop.xlane.xlu1 %4795 }
 0x7d3   : > { %4891 = vst.msk [vmem:[#allocation5 + $0xd8] sm:$0xff] %vm4863_vm7, %v4842_v46  ;;  %v4856_v12 = vadd.f32 %v4796_v14, %v4664_v4  ;;  %v4655_v14 = vmul.f32 %v11948_v0, %v4607_v63 }
 0x7d5   : > { %4905 = vst.msk [vmem:[#allocation5 + $0x148] sm:$0xff] %vm4863_vm7, %v4856_v12  ;;  %v4739_v40 = vpop.xlane.xlu0 %4738 }
 0x7d6   : > { %v4837_v16 = vadd.f32 %v4739_v40, %v4645_v13  ;;  %v4657_v13 = vmul.f32 %v11949_v25, %v4609_v19  ;;  %v4605_v40 = vld [vmem:[#allocation5 + $0xf0] sm:$0xff] }
 0x7d7   : > { %v5619_v48 = vpop.f32.mrf.mxu2 }
 0x7d8   : > { %v4790_v22 = vpop.xlane.xlu2 %4789  ;;  %4886 = vst.msk [vmem:[#allocation5 + $0xb0] sm:$0xff] %vm4863_vm7, %v4837_v16  ;;  %v5772_v37 = vadd.f32 %v5619_v48, %v5232_v2  ;;  %v5235_v16 = vmul.f32 %v11209_v11, %v4947_v3  ;;  %v11950_v48 = vld [vmem:[#allocation65_spill] sm:$0xff] }
 0x7d9   : > { %v4854_v35 = vadd.f32 %v4790_v22, %v4662_v59  ;;  %v4619_v59 = vld [vmem:[#allocation5 + $0x160] sm:$0xff]  ;;  %v4653_v22 = vmul.f32 %v11950_v48, %v4605_v40 }
 0x7da   : > { %5820 = vst.msk [vmem:[#allocation6 + $0x100] sm:$0xff] %vm2107_vm5, %v5772_v37  ;;  %v4706_v33 = vpop.xlane.xlu1 %4705 }
 0x7db   : > { %4903 = vst.msk [vmem:[#allocation5 + $0x138] sm:$0xff] %vm4863_vm7, %v4854_v35  ;;  %v4826_v31 = vadd.f32 %v4706_v33, %v4634_v10  ;;  %v11951_v10 = vld [vmem:[#allocation35_spill] sm:$0xff]  ;;  %v4621_v33 = vld [vmem:[#allocation5 + $0x170] sm:$0xff] }
 0x7dc   : > { %v4667_v55 = vmul.f32 %v11951_v10, %v4619_v59  ;;  %v4669_v11 = vmul.f32 %v11279_v7, %v4621_v33  ;;  %v4622_v7 = vld [vmem:[#allocation5 + $0x178] sm:$0xff] }
 0x7dd   : > { %4875 = vst.msk [vmem:[#allocation5 + $0x58] sm:$0xff] %vm4863_vm7, %v4826_v31  ;;  %v4766_v29 = vpop.xlane.xlu0 %4765  ;;  %v4617_v31 = vld [vmem:[#allocation5 + $0x150] sm:$0xff]  ;;  %v4670_v45 = vmul.f32 %v11270_v49, %v4622_v7 }
 0x7de   : > { %v4846_v30 = vadd.f32 %v4766_v29, %v4654_v41  ;;  %v11952_v29 = vld [vmem:[#allocation18_spill] sm:$0xff] }
 0x7df   : > { %v5621_v42 = vpop.f32.mrf.mxu2  ;;  %v5730_v15 = vpop.f32.mrf.mxu3  ;;  %v4958_v49 = vld [vmem:[#allocation6 + $0x170] sm:$0xff] }
 0x7e0   : > { %4895 = vst.msk [vmem:[#allocation5 + $0xf8] sm:$0xff] %vm4863_vm7, %v4846_v30  ;;  %v5773_v54 = vadd.f32 %v5621_v42, %v5233_v24  ;;  %v5784_v28 = vadd.f32 %v5730_v15, %v5244_v6  ;;  %v4700_v1 = vpop.xlane.xlu2 %4699  ;;  %v4665_v6 = vmul.f32 %v11952_v29, %v4617_v31  ;;  %v4658_v42 = vmul.f32 %v11953_v51, %v4610_v9 }
 0x7e1   : > { %v4824_v26 = vadd.f32 %v4700_v1, %v4632_v27  ;;  %v4608_v27 = vld [vmem:[#allocation5 + $0x108] sm:$0xff] }
 0x7e2   : > { %5821 = vst.msk [vmem:[#allocation6 + $0x108] sm:$0xff] %vm2107_vm5, %v5773_v54  ;;  %v4742_v44 = vpop.xlane.xlu1 %4741  ;;  %v11954_v54 = vld [vmem:[#allocation13_spill] sm:$0xff] }
 0x7e3   : > { %5832 = vst.msk [vmem:[#allocation6 + $0x160] sm:$0xff] %vm2107_vm5, %v5784_v28  ;;  %v4838_v62 = vadd.f32 %v4742_v44, %v4646_v43  ;;  %v4656_v28 = vmul.f32 %v11954_v54, %v4608_v27  ;;  %v4620_v44 = vld [vmem:[#allocation5 + $0x168] sm:$0xff] }
 0x7e4   : > { %4873 = vst.msk [vmem:[#allocation5 + $0x48] sm:$0xff] %vm4863_vm7, %v4824_v26  ;;  %v4668_v23 = vmul.f32 %v11241_v39, %v4620_v44 }
 0x7e5   : > { %4887 = vst.msk [vmem:[#allocation5 + $0xb8] sm:$0xff] %vm4863_vm7, %v4838_v62  ;;  %v4802_v18 = vpop.xlane.xlu0 %4801 }
 0x7e6   : > { %v4858_v60 = vadd.f32 %v4802_v18, %v4666_v20 }
 0x7e7   : > { %v5624_v58 = vpop.f32.mrf.mxu2  ;;  %v5732_v62 = vpop.f32.mrf.mxu3 }
 0x7e8   : > { %4907 = vst.msk [vmem:[#allocation5 + $0x158] sm:$0xff] %vm4863_vm7, %v4858_v60  ;;  %v5774_v46 = vadd.f32 %v5624_v58, %v5234_v34  ;;  %v4736_v38 = vpop.xlane.xlu2 %4735 }
 0x7e9   : > { %v4836_v4 = vadd.f32 %v4736_v38, %v4644_v32 }
 0x7ea   : > { %5822 = vst.msk [vmem:[#allocation6 + $0x110] sm:$0xff] %vm2107_vm5, %v5774_v46  ;;  %v4769_v12 = vpop.xlane.xlu1 %4768  ;;  %v4959_v46 = vld [vmem:[#allocation6 + $0x178] sm:$0xff] }
 0x7eb   : > { %4885 = vst.msk [vmem:[#allocation5 + $0xa8] sm:$0xff] %vm4863_vm7, %v4836_v4  ;;  %v4847_v56 = vadd.f32 %v4769_v12, %v4655_v14 }
 0x7ed   : > { %4896 = vst.msk [vmem:[#allocation5 + $0x100] sm:$0xff] %vm4863_vm7, %v4847_v56  ;;  %v4775_v2 = vpop.xlane.xlu0 %4774 }
 0x7ee   : > { %v4849_v36 = vadd.f32 %v4775_v2, %v4657_v13 }
 0x7ef   : > { %v5626_v57 = vpop.f32.mrf.mxu2  ;;  %v5735_v21 = vpop.f32.mrf.mxu3 }
 0x7f0   : > { %4898 = vst.msk [vmem:[#allocation5 + $0x110] sm:$0xff] %vm4863_vm7, %v4849_v36  ;;  %v5775_v37 = vadd.f32 %v5626_v57, %v5235_v16  ;;  %v4763_v35 = vpop.xlane.xlu2 %4762 }
 0x7f1   : > { %v4845_v47 = vadd.f32 %v4763_v35, %v4653_v22 }
 0x7f2   : > { %5823 = vst.msk [vmem:[#allocation6 + $0x118] sm:$0xff] %vm2107_vm5, %v5775_v37  ;;  %v4805_v5 = vpop.xlane.xlu1 %4804 }
 0x7f3   : > { %4894 = vst.msk [vmem:[#allocation5 + $0xf0] sm:$0xff] %vm4863_vm7, %v4845_v47  ;;  %v4859_v52 = vadd.f32 %v4805_v5, %v4667_v55 }
 0x7f5   : > { %4908 = vst.msk [vmem:[#allocation5 + $0x160] sm:$0xff] %vm4863_vm7, %v4859_v52  ;;  %v4811_v17 = vpop.xlane.xlu0 %4810 }
 0x7f6   : > { %v4861_v41 = vadd.f32 %v4811_v17, %v4669_v11 }
 0x7f7   : > { %v5737_v39 = vpop.f32.mrf.mxu3 }
 0x7f8   : > { %4910 = vst.msk [vmem:[#allocation5 + $0x170] sm:$0xff] %vm4863_vm7, %v4861_v41  ;;  %v4799_v24 = vpop.xlane.xlu2 %4798 }
 0x7f9   : > { %v4857_v30 = vadd.f32 %v4799_v24, %v4665_v6 }
 0x7fa   : > { %v4778_v15 = vpop.xlane.xlu1 %4777 }
 0x7fb   : > { %4906 = vst.msk [vmem:[#allocation5 + $0x150] sm:$0xff] %vm4863_vm7, %v4857_v30  ;;  %v4850_v50 = vadd.f32 %v4778_v15, %v4658_v42 }
 0x7fd   : > { %4899 = vst.msk [vmem:[#allocation5 + $0x118] sm:$0xff] %vm4863_vm7, %v4850_v50 }
 0x800   : > { %v4772_v1 = vpop.xlane.xlu2 %4771 }
 0x801   : > { %v4848_v26 = vadd.f32 %v4772_v1, %v4656_v28 }
 0x802   : > { %v4814_v43 = vpop.xlane.xlu1 %4813 }
 0x803   : > { %4897 = vst.msk [vmem:[#allocation5 + $0x108] sm:$0xff] %vm4863_vm7, %v4848_v26  ;;  %v4862_v61 = vadd.f32 %v4814_v43, %v4670_v45 }
 0x805   : > { %4911 = vst.msk [vmem:[#allocation5 + $0x178] sm:$0xff] %vm4863_vm7, %v4862_v61 }
 0x808   : > { %v4808_v20 = vpop.xlane.xlu2 %4807  ;;  %v5188_v8 = vpop.permute.xlu0 %5187 }
 0x809   : > { %v4860_v18 = vadd.f32 %v4808_v20, %v4668_v23  ;;  %v5245_v34 = vmul.f32 %v5188_v8, %v4957_v53 }
 0x80b   : > { %4909 = vst.msk [vmem:[#allocation5 + $0x168] sm:$0xff] %vm4863_vm7, %v4860_v18  ;;  %v5785_v60 = vadd.f32 %v5732_v62, %v5245_v34 }
 0x80d   : > { %5833 = vst.msk [vmem:[#allocation6 + $0x168] sm:$0xff] %vm2107_vm5, %v5785_v60 }
 0x810   : > { %v5193_v63 = vpop.permute.xlu2 %5192 }
 0x811   : > { %v5246_v58 = vmul.f32 %v5193_v63, %v4958_v49 }
 0x813   : > { %v5786_v32 = vadd.f32 %v5735_v21, %v5246_v58 }
 0x815   : > { %5834 = vst.msk [vmem:[#allocation6 + $0x170] sm:$0xff] %vm2107_vm5, %v5786_v32 }
 0x81a   : > { %v5198_v38 = vpop.permute.xlu1 %5197 }
 0x81b   : > { %v5247_v4 = vmul.f32 %v5198_v38, %v4959_v46  ;;  %5887 = sbr.rel (%p7658_p8) target bundleno = 2477 (0x9ad), region = 68 }
 0x81d   : > { %v5787_v0 = vadd.f32 %v5737_v39, %v5247_v4 }
 0x81f   : > { %5835 = vst.msk [vmem:[#allocation6 + $0x178] sm:$0xff] %vm2107_vm5, %v5787_v0 }
 0x820   : > { %v5961_v14 = vld [vmem:[#allocation5 + $0xc8] sm:$0xff]  ;;  %v5938_v19 = vld [vmem:[#allocation5 + $0x10] sm:$0xff]  ;;  %v5936_v12 = vld [vmem:[#allocation5] sm:$0xff]  ;;  %v8360_v3 = vmov 0   ;;  %vm6748_vm8 = vcmask 392192  }
 0x821   : > { %8219 = vset.pattern.permute.xlu2 %v8360_v3  ;;  %8218 = vset.pattern.permute.xlu1 %v8360_v3  ;;  %8221 = vrcp.f32 %v5961_v14  ;;  %v5972_v56 = vld [vmem:[#allocation5 + $0x120] sm:$0xff]  ;;  %v5937_v13 = vld [vmem:[#allocation5 + $0x8] sm:$0xff]  ;;  %v5974_v35 = vld [vmem:[#allocation5 + $0x130] sm:$0xff] }
 0x822   : > { %8217 = vset.pattern.permute.xlu0 %v8360_v3  ;;  %8223 = vrcp.f32 %v5938_v19  ;;  %v5960_v25 = vld [vmem:[#allocation5 + $0xc0] sm:$0xff]  ;;  %v5949_v36 = vld [vmem:[#allocation5 + $0x68] sm:$0xff]  ;;  %v5963_v10 = vld [vmem:[#allocation5 + $0xd8] sm:$0xff] }
 0x823   : > { %8225 = vrcp.f32 %v5936_v12  ;;  %v5948_v57 = vld [vmem:[#allocation5 + $0x60] sm:$0xff]  ;;  %v5973_v22 = vld [vmem:[#allocation5 + $0x128] sm:$0xff]  ;;  %v5962_v33 = vld [vmem:[#allocation5 + $0xd0] sm:$0xff] }
 0x824   : > { %8227 = vrcp.f32 %v5972_v56  ;;  %v5950_v52 = vld [vmem:[#allocation5 + $0x70] sm:$0xff]  ;;  %v5939_v31 = vld [vmem:[#allocation5 + $0x18] sm:$0xff]  ;;  %v5965_v29 = vld [vmem:[#allocation5 + $0xe8] sm:$0xff] }
 0x825   : > { %8229 = vrcp.f32 %v5960_v25  ;;  %v5975_v41 = vld [vmem:[#allocation5 + $0x138] sm:$0xff]  ;;  %v5964_v24 = vld [vmem:[#allocation5 + $0xe0] sm:$0xff]  ;;  %v5977_v27 = vld [vmem:[#allocation5 + $0x148] sm:$0xff] }
 0x826   : > { %8231 = vrcp.f32 %v5937_v13  ;;  %v5951_v51 = vld [vmem:[#allocation5 + $0x78] sm:$0xff]  ;;  %v5940_v15 = vld [vmem:[#allocation5 + $0x20] sm:$0xff]  ;;  %v5953_v1 = vld [vmem:[#allocation5 + $0x88] sm:$0xff] }
 0x827   : > { %v8222_v40 = vpop.eup %8221  ;;  %8233 = vrcp.f32 %v5949_v36  ;;  %v5976_v54 = vld [vmem:[#allocation5 + $0x140] sm:$0xff]  ;;  %v5941_v61 = vld [vmem:[#allocation5 + $0x28] sm:$0xff]  ;;  %v5978_v53 = vld [vmem:[#allocation5 + $0x150] sm:$0xff] }
 0x828   : > { %v8224_v2 = vpop.eup %8223  ;;  %6159 = vperm.xlu2 %8219, %v8222_v40   ;;  %8235 = vrcp.f32 %v5948_v57  ;;  %v5952_v45 = vld [vmem:[#allocation5 + $0x80] sm:$0xff]  ;;  %v5967_v23 = vld [vmem:[#allocation5 + $0xf8] sm:$0xff]  ;;  %v5966_v8 = vld [vmem:[#allocation5 + $0xf0] sm:$0xff] }
 0x829   : > { %v8226_v16 = vpop.eup %8225  ;;  %6044 = vperm.xlu1 %8218, %v8224_v2   ;;  %8237 = vrcp.f32 %v5973_v22  ;;  %v5943_v34 = vld [vmem:[#allocation5 + $0x38] sm:$0xff]  ;;  %v5942_v49 = vld [vmem:[#allocation5 + $0x30] sm:$0xff]  ;;  %v5968_v32 = vld [vmem:[#allocation5 + $0x100] sm:$0xff] }
 0x82a   : > { %6034 = vperm.xlu0 %8217, %v8226_v16   ;;  %v8228_v59 = vpop.eup %8227  ;;  %8239 = vrcp.f32 %v5974_v35  ;;  %v5979_v58 = vld [vmem:[#allocation5 + $0x158] sm:$0xff]  ;;  %v5954_v39 = vld [vmem:[#allocation5 + $0x90] sm:$0xff]  ;;  %v5981_v14 = vld [vmem:[#allocation5 + $0x168] sm:$0xff] }
 0x82b   : > { %v8230_v48 = vpop.eup %8229  ;;  %8241 = vrcp.f32 %v5963_v10  ;;  %v5955_v38 = vld [vmem:[#allocation5 + $0x98] sm:$0xff]  ;;  %v5980_v12 = vld [vmem:[#allocation5 + $0x160] sm:$0xff]  ;;  %v5969_v56 = vld [vmem:[#allocation5 + $0x108] sm:$0xff] }
 0x82c   : > { %v8232_v37 = vpop.eup %8231  ;;  %8243 = vrcp.f32 %v5962_v33  ;;  %v5956_v13 = vld [vmem:[#allocation5 + $0xa0] sm:$0xff]  ;;  %v5945_v2 = vld [vmem:[#allocation5 + $0x48] sm:$0xff]  ;;  %v7821_v33 = vld [vmem:[%s11534_s8 + $0x10] sm:$0xff] }
 0x82d   : > { %v8234_v47 = vpop.eup %8233  ;;  %8245 = vrcp.f32 %v5950_v52  ;;  %v5944_v36 = vld [vmem:[#allocation5 + $0x40] sm:$0xff]  ;;  %6623 = vmatpush.bf16.msra.mxu2 %v7821_v33  ;;  %v5946_v52 = vld [vmem:[#allocation5 + $0x50] sm:$0xff] }
 0x82e   : > { %v8236_v55 = vpop.eup %8235  ;;  %8247 = vrcp.f32 %v5939_v31  ;;  %v5983_v31 = vld [vmem:[#allocation5 + $0x178] sm:$0xff]  ;;  %v5914_v33 = vld [vmem:[#allocation6 + $0xd0] sm:$0xff] }
 0x82f   : > { %v8238_v5 = vpop.eup %8237  ;;  %8249 = vrcp.f32 %v5975_v41  ;;  %v5982_v41 = vld [vmem:[#allocation5 + $0x170] sm:$0xff] }
 0x830   : > { %6214 = vperm.xlu2 %8219, %v8228_v59   ;;  %v8240_v11 = vpop.eup %8239  ;;  %8251 = vrcp.f32 %v5965_v29  ;;  %v7820_v29 = vld [vmem:[%s11534_s8 + $0x8] sm:$0xff] }
 0x831   : > { %6154 = vperm.xlu1 %8218, %v8230_v48   ;;  %v8242_v17 = vpop.eup %8241  ;;  %8253 = vrcp.f32 %v5964_v24  ;;  %v5971_v48 = vld [vmem:[#allocation5 + $0x118] sm:$0xff]  ;;  %6530 = vmatpush.bf16.msra.mxu1 %v7820_v29 }
 0x832   : > { %6039 = vperm.xlu0 %8217, %v8232_v37   ;;  %v8244_v9 = vpop.eup %8243  ;;  %8255 = vrcp.f32 %v5951_v51  ;;  %v5970_v37 = vld [vmem:[#allocation5 + $0x110] sm:$0xff] }
 0x833   : > { %v8246_v6 = vpop.eup %8245  ;;  %8257 = vrcp.f32 %v5940_v15 }
 0x834   : > { %v8248_v30 = vpop.eup %8247  ;;  %8259 = vrcp.f32 %v5977_v27 }
 0x835   : > { %v8250_v42 = vpop.eup %8249  ;;  %8261 = vrcp.f32 %v5976_v54 }
 0x836   : > { %v8252_v50 = vpop.eup %8251  ;;  %8263 = vrcp.f32 %v5953_v1 }
 0x837   : > { %v8254_v7 = vpop.eup %8253  ;;  %8265 = vrcp.f32 %v5952_v45 }
 0x838   : > { %6099 = vperm.xlu2 %8219, %v8234_v47   ;;  %v8256_v28 = vpop.eup %8255  ;;  %8267 = vrcp.f32 %v5941_v61  ;;  %v5957_v47 = vld [vmem:[#allocation5 + $0xa8] sm:$0xff] }
 0x839   : > { %6094 = vperm.xlu1 %8218, %v8236_v55   ;;  %v8258_v26 = vpop.eup %8257  ;;  %8269 = vrcp.f32 %v5978_v53  ;;  %v7819_v55 = vld [vmem:[%s11534_s8] sm:$0xff] }
 0x83a   : > { %6219 = vperm.xlu0 %8217, %v8238_v5   ;;  %v8260_v43 = vpop.eup %8259  ;;  %8271 = vrcp.f32 %v5967_v23  ;;  %6437 = vmatpush.bf16.msra.mxu0 %v7819_v55  ;;  %v5915_v55 = vld [vmem:[#allocation6 + $0xd8] sm:$0xff] }
 0x83b   : > { %v8262_v44 = vpop.eup %8261  ;;  %8273 = vrcp.f32 %v5966_v8 }
 0x83c   : > { %v8264_v62 = vpop.eup %8263  ;;  %8275 = vrcp.f32 %v5943_v34 }
 0x83d   : > { %v8266_v20 = vpop.eup %8265  ;;  %8277 = vrcp.f32 %v5942_v49  ;;  %v5901_v49 = vld [vmem:[#allocation6 + $0x68] sm:$0xff] }
 0x83e   : > { %v8268_v18 = vpop.eup %8267  ;;  %8279 = vrcp.f32 %v5979_v58 }
 0x83f   : > { %v8270_v60 = vpop.eup %8269  ;;  %8281 = vrcp.f32 %v5968_v32 }
 0x840   : > { %6224 = vperm.xlu2 %8219, %v8240_v11   ;;  %v8272_v63 = vpop.eup %8271  ;;  %8283 = vrcp.f32 %v5955_v38 }
 0x841   : > { %6169 = vperm.xlu1 %8218, %v8242_v17   ;;  %v8274_v21 = vpop.eup %8273  ;;  %8285 = vrcp.f32 %v5954_v39 }
 0x842   : > { %6164 = vperm.xlu0 %8217, %v8244_v9   ;;  %v8276_v46 = vpop.eup %8275  ;;  %8287 = vrcp.f32 %v5981_v14 }
 0x843   : > { %v8278_v4 = vpop.eup %8277  ;;  %8289 = vrcp.f32 %v5980_v12  ;;  %v5900_v12 = vld [vmem:[#allocation6 + $0x60] sm:$0xff] }
 0x844   : > { %v8280_v0 = vpop.eup %8279  ;;  %8291 = vrcp.f32 %v5969_v56  ;;  %v5925_v56 = vld [vmem:[#allocation6 + $0x128] sm:$0xff] }
 0x845   : > { %v8282_v19 = vpop.eup %8281  ;;  %8293 = vrcp.f32 %v5956_v13 }
 0x846   : > { %v8284_v3 = vpop.eup %8283  ;;  %8295 = vrcp.f32 %v5945_v2 }
 0x847   : > { %v8286_v25 = vpop.eup %8285  ;;  %8297 = vrcp.f32 %v5944_v36 }
 0x848   : > { %6104 = vperm.xlu2 %8219, %v8246_v6   ;;  %v8288_v40 = vpop.eup %8287  ;;  %8299 = vrcp.f32 %v5971_v48  ;;  %v7822_v6 = vld [vmem:[%s11534_s8 + $0x18] sm:$0xff] }
 0x849   : > { %6049 = vperm.xlu1 %8218, %v8248_v30   ;;  %v8290_v16 = vpop.eup %8289  ;;  %8301 = vrcp.f32 %v5970_v37  ;;  %6716 = vmatpush.bf16.msra.mxu3 %v7822_v6  ;;  %v5959_v30 = vld [vmem:[#allocation5 + $0xb8] sm:$0xff]  ;;  %v5926_v6 = vld [vmem:[#allocation6 + $0x130] sm:$0xff] }
 0x84a   : > { %6229 = vperm.xlu0 %8217, %v8250_v42   ;;  %v8292_v59 = vpop.eup %8291  ;;  %8303 = vrcp.f32 %v5957_v47  ;;  %v5958_v42 = vld [vmem:[#allocation5 + $0xb0] sm:$0xff] }
 0x84b   : > { %v8294_v22 = vpop.eup %8293  ;;  %8305 = vrcp.f32 %v5946_v52 }
 0x84c   : > { %v8296_v35 = vpop.eup %8295  ;;  %8307 = vrcp.f32 %v5983_v31 }
 0x84d   : > { %v8298_v10 = vpop.eup %8297  ;;  %8309 = vrcp.f32 %v5982_v41 }
 0x84e   : > { %v8300_v11 = vpop.eup %8299  ;;  %8311 = vrcp.f32 %v5959_v30 }
 0x84f   : > { %v8302_v17 = vpop.eup %8301  ;;  %8313 = vrcp.f32 %v5958_v42 }
 0x850   : > { %6179 = vperm.xlu2 %8219, %v8252_v50   ;;  %v8304_v9 = vpop.eup %8303  ;;  %v5947_v50 = vld [vmem:[#allocation5 + $0x58] sm:$0xff] }
 0x851   : > { %6174 = vperm.xlu1 %8218, %v8254_v7   ;;  %v8306_v51 = vpop.eup %8305  ;;  %8315 = vrcp.f32 %v5947_v50 }
 0x852   : > { %6109 = vperm.xlu0 %8217, %v8256_v28   ;;  %v8308_v15 = vpop.eup %8307 }
 0x853   : > { %v8310_v27 = vpop.eup %8309 }
 0x854   : > { %v8312_v1 = vpop.eup %8311 }
 0x855   : > { %v8314_v45 = vpop.eup %8313 }
 0x857   : > { %v8316_v61 = vpop.eup %8315 }
 0x858   : > { %6054 = vperm.xlu2 %8219, %v8258_v26   ;;  %v5913_v26 = vld [vmem:[#allocation6 + $0xc8] sm:$0xff] }
 0x859   : > { %6239 = vperm.xlu1 %8218, %v8260_v43   ;;  %v5888_v43 = vld [vmem:[#allocation6] sm:$0xff] }
 0x85a   : > { %6234 = vperm.xlu0 %8217, %v8262_v44  }
 0x860   : > { %6119 = vperm.xlu2 %8219, %v8264_v62   ;;  %v5912_v62 = vld [vmem:[#allocation6 + $0xc0] sm:$0xff] }
 0x861   : > { %6114 = vperm.xlu1 %8218, %v8266_v20   ;;  %v5889_v20 = vld [vmem:[#allocation6 + $0x8] sm:$0xff] }
 0x862   : > { %6059 = vperm.xlu0 %8217, %v8268_v18  }
 0x868   : > { %6244 = vperm.xlu2 %8219, %v8270_v60  }
 0x869   : > { %6189 = vperm.xlu1 %8218, %v8272_v63  }
 0x86a   : > { %6184 = vperm.xlu0 %8217, %v8274_v21   ;;  %v5924_v21 = vld [vmem:[#allocation6 + $0x120] sm:$0xff] }
 0x870   : > { %6069 = vperm.xlu2 %8219, %v8276_v46  }
 0x871   : > { %6064 = vperm.xlu1 %8218, %v8278_v4  }
 0x872   : > { %6249 = vperm.xlu0 %8217, %v8280_v0  }
 0x878   : > { %6194 = vperm.xlu2 %8219, %v8282_v19  }
 0x879   : > { %6129 = vperm.xlu1 %8218, %v8284_v3  }
 0x87a   : > { %6124 = vperm.xlu0 %8217, %v8286_v25  }
 0x880   : > { %6259 = vperm.xlu2 %8219, %v8288_v40  }
 0x881   : > { %6254 = vperm.xlu1 %8218, %v8290_v16  }
 0x882   : > { %6199 = vperm.xlu0 %8217, %v8292_v59   ;;  %v6160_v57 = vpop.permute.xlu2 %6159 }
 0x883   : > { %v6297_v44 = vmul.f32 %v6160_v57, %v5913_v26 }
 0x885   : > { %v6345_v18 = vpack.c.bf16 %v6297_v44, %v6297_v44 }
 0x887   : > { %v6575_v38 = vunpack.c.l.b16 %v6345_v18 }
 0x888   : > { %6134 = vperm.xlu2 %8219, %v8294_v22  }
 0x889   : > { %6079 = vperm.xlu1 %8218, %v8296_v35  }
 0x88a   : > { %6074 = vperm.xlu0 %8217, %v8298_v10   ;;  %v6215_v5 = vpop.permute.xlu2 %6214 }
 0x88b   : > { %v6308_v0 = vmul.f32 %v6215_v5, %v5924_v21  ;;  %v5916_v21 = vld [vmem:[#allocation6 + $0xe0] sm:$0xff] }
 0x88d   : > { %v6356_v59 = vpack.c.bf16 %v6308_v0, %v6308_v0 }
 0x88f   : > { %v6667_v47 = vunpack.c.l.b16 %v6356_v59 }
 0x890   : > { %6209 = vperm.xlu2 %8219, %v8300_v11  }
 0x891   : > { %6204 = vperm.xlu1 %8218, %v8302_v17  }
 0x892   : > { %6139 = vperm.xlu0 %8217, %v8304_v9   ;;  %v6100_v24 = vpop.permute.xlu2 %6099  ;;  %v5890_v9 = vld [vmem:[#allocation6 + $0x10] sm:$0xff] }
 0x893   : > { %v6285_v4 = vmul.f32 %v6100_v24, %v5901_v49 }
 0x895   : > { %v6333_v2 = vpack.c.bf16 %v6285_v4, %v6285_v4 }
 0x897   : > { %v6482_v37 = vunpack.c.l.b16 %v6333_v2 }
 0x898   : > { %6084 = vperm.xlu2 %8219, %v8306_v51  }
 0x899   : > { %6269 = vperm.xlu1 %8218, %v8308_v15  }
 0x89a   : > { %6264 = vperm.xlu0 %8217, %v8310_v27   ;;  %v11386_v7 = vpop.permute.xlu2 %6224  ;;  %v5891_v27 = vld [vmem:[#allocation6 + $0x18] sm:$0xff] }
 0x89b   : > { %v11388_v54 = vpop.permute.xlu1 %6044  ;;  %v6310_v15 = vmul.f32 %v11386_v7, %v5926_v6 }
 0x89c   : > { %v6035_v28 = vpop.permute.xlu0 %6034  ;;  %v6274_v51 = vmul.f32 %v11388_v54, %v5890_v9  ;;  %v5904_v9 = vld [vmem:[#allocation6 + $0x80] sm:$0xff] }
 0x89d   : > { %v6272_v53 = vmul.f32 %v6035_v28, %v5888_v43  ;;  %v5927_v28 = vld [vmem:[#allocation6 + $0x138] sm:$0xff]  ;;  %v6358_v44 = vpack.c.bf16 %v6310_v15, %v6310_v15 }
 0x89f   : > { %v6320_v63 = vpack.c.bf16 %v6272_v53, %v6272_v53  ;;  %v5917_v53 = vld [vmem:[#allocation6 + $0xe8] sm:$0xff]  ;;  %v6669_v49 = vunpack.c.l.b16 %v6358_v44 }
 0x8a0   : > { %6149 = vperm.xlu2 %8219, %v8312_v1  }
 0x8a1   : > { %6144 = vperm.xlu1 %8218, %v8314_v45   ;;  %v6388_v14 = vunpack.c.l.b16 %v6320_v63  ;;  %v6322_v45 = vpack.c.bf16 %v6274_v51, %v6274_v51 }
 0x8a2   : > { %6089 = vperm.xlu0 %8217, %v8316_v61   ;;  %v11390_v23 = vpop.permute.xlu2 %6104 }
 0x8a3   : > { %v6155_v8 = vpop.permute.xlu1 %6154 }
 0x8a4   : > { %v6296_v34 = vmul.f32 %v6155_v8, %v5912_v62  ;;  %v6040_v60 = vpop.permute.xlu0 %6039  ;;  %v5902_v8 = vld [vmem:[#allocation6 + $0x70] sm:$0xff] }
 0x8a5   : > { %v6273_v58 = vmul.f32 %v6040_v60, %v5889_v20  ;;  %v6286_v63 = vmul.f32 %v11390_v23, %v5902_v8 }
 0x8a6   : > { %v6344_v32 = vpack.c.bf16 %v6296_v34, %v6296_v34  ;;  %v6390_v34 = vunpack.c.l.b16 %v6322_v45 }
 0x8a7   : > { %v6321_v46 = vpack.c.bf16 %v6273_v58, %v6273_v58 }
 0x8a8   : > { %v6574_v39 = vunpack.c.l.b16 %v6344_v32  ;;  %v5903_v32 = vld [vmem:[#allocation6 + $0x78] sm:$0xff] }
 0x8a9   : > { %v6389_v19 = vunpack.c.l.b16 %v6321_v46 }
 0x8aa   : > { %v6180_v3 = vpop.permute.xlu2 %6179  ;;  %v6586_v25 = vpack.c.b16 %v6575_v38, %v6574_v39 }
 0x8ab   : > { %v6095_v13 = vpop.permute.xlu1 %6094  ;;  %v6400_v40 = vpack.c.b16 %v6389_v19, %v6388_v14  ;;  %v6301_v60 = vmul.f32 %v6180_v3, %v5917_v53  ;;  %v6334_v19 = vpack.c.bf16 %v6286_v63, %v6286_v63 }
 0x8ac   : > { %v6284_v16 = vmul.f32 %v6095_v13, %v5900_v12  ;;  %v6220_v36 = vpop.permute.xlu0 %6219  ;;  %7683 = vmatmul.msk.bf16.vlgmr.msra.gmra.mxu2 %vm2107_vm5, %v6586_v25 }
 0x8ad   : > { %v6309_v57 = vmul.f32 %v6220_v36, %v5925_v56  ;;  %7663 = vmatmul.msk.bf16.vlgmr.msra.gmra.mxu0 %vm2107_vm5, %v6400_v40  ;;  %v6349_v39 = vpack.c.bf16 %v6301_v60, %v6301_v60  ;;  %v6483_v40 = vunpack.c.l.b16 %v6334_v19  ;;  %v5928_v36 = vld [vmem:[#allocation6 + $0x140] sm:$0xff]  ;;  %v5930_v60 = vld [vmem:[#allocation6 + $0x150] sm:$0xff] }
 0x8ae   : > { %v6332_v48 = vpack.c.bf16 %v6284_v16, %v6284_v16  ;;  %v5929_v16 = vld [vmem:[#allocation6 + $0x148] sm:$0xff] }
 0x8af   : > { %v6357_v22 = vpack.c.bf16 %v6309_v57, %v6309_v57  ;;  %v6579_v13 = vunpack.c.l.b16 %v6349_v39 }
 0x8b0   : > { %v6481_v35 = vunpack.c.l.b16 %v6332_v48 }
 0x8b1   : > { %v6668_v10 = vunpack.c.l.b16 %v6357_v22 }
 0x8b2   : > { %v6493_v5 = vpack.c.b16 %v6482_v37, %v6481_v35  ;;  %v11394_v52 = vpop.permute.xlu2 %6054  ;;  %v5905_v35 = vld [vmem:[#allocation6 + $0x88] sm:$0xff] }
 0x8b3   : > { %v6170_v11 = vpop.permute.xlu1 %6169  ;;  %v6679_v31 = vpack.c.b16 %v6668_v10, %v6667_v47  ;;  %v5892_v10 = vld [vmem:[#allocation6 + $0x20] sm:$0xff] }
 0x8b4   : > { %v6299_v17 = vmul.f32 %v6170_v11, %v5915_v55  ;;  %v6165_v41 = vpop.permute.xlu0 %6164  ;;  %7673 = vmatmul.msk.bf16.vlgmr.msra.gmra.mxu1 %vm2107_vm5, %v6493_v5 }
 0x8b5   : > { %v6298_v29 = vmul.f32 %v6165_v41, %v5914_v33  ;;  %7693 = vmatmul.msk.bf16.vlgmr.msra.gmra.mxu3 %vm2107_vm5, %v6679_v31  ;;  %v6276_v31 = vmul.f32 %v11394_v52, %v5892_v10  ;;  %v5919_v52 = vld [vmem:[#allocation6 + $0xf8] sm:$0xff] }
 0x8b6   : > { %v6347_v24 = vpack.c.bf16 %v6299_v17, %v6299_v17 }
 0x8b7   : > { %v6346_v30 = vpack.c.bf16 %v6298_v29, %v6298_v29  ;;  %v5893_v29 = vld [vmem:[#allocation6 + $0x28] sm:$0xff]  ;;  %v6324_v15 = vpack.c.bf16 %v6276_v31, %v6276_v31 }
 0x8b8   : > { %v6577_v42 = vunpack.c.l.b16 %v6347_v24 }
 0x8b9   : > { %v6576_v50 = vunpack.c.l.b16 %v6346_v30  ;;  %v6392_v45 = vunpack.c.l.b16 %v6324_v15 }
 0x8ba   : > { %v6120_v62 = vpop.permute.xlu2 %6119 }
 0x8bb   : > { %v6050_v1 = vpop.permute.xlu1 %6049  ;;  %v6587_v26 = vpack.c.b16 %v6577_v42, %v6576_v50  ;;  %v6289_v5 = vmul.f32 %v6120_v62, %v5905_v35 }
 0x8bc   : > { %v6275_v43 = vmul.f32 %v6050_v1, %v5891_v27  ;;  %v6230_v61 = vpop.permute.xlu0 %6229 }
 0x8bd   : > { %v6311_v20 = vmul.f32 %v6230_v61, %v5927_v28  ;;  %7684 = vmatmul.msk.bf16.gmra.mxu2 %vm2107_vm5, %v6587_v26  ;;  %v6337_v30 = vpack.c.bf16 %v6289_v5, %v6289_v5  ;;  %v5918_v61 = vld [vmem:[#allocation6 + $0xf0] sm:$0xff] }
 0x8be   : > { %v6323_v18 = vpack.c.bf16 %v6275_v43, %v6275_v43 }
 0x8bf   : > { %v6359_v54 = vpack.c.bf16 %v6311_v20, %v6311_v20  ;;  %v6486_v1 = vunpack.c.l.b16 %v6337_v30 }
 0x8c0   : > { %v6391_v7 = vunpack.c.l.b16 %v6323_v18 }
 0x8c1   : > { %v6670_v58 = vunpack.c.l.b16 %v6359_v54  ;;  %v5895_v54 = vld [vmem:[#allocation6 + $0x38] sm:$0xff] }
 0x8c2   : > { %v6401_v46 = vpack.c.b16 %v6391_v7, %v6390_v34  ;;  %v6245_v56 = vpop.permute.xlu2 %6244 }
 0x8c3   : > { %v6175_v38 = vpop.permute.xlu1 %6174  ;;  %v6680_v4 = vpack.c.b16 %v6670_v58, %v6669_v49 }
 0x8c4   : > { %v6300_v0 = vmul.f32 %v6175_v38, %v5916_v21  ;;  %v6110_v14 = vpop.permute.xlu0 %6109  ;;  %7664 = vmatmul.msk.bf16.gmra.mxu0 %vm2107_vm5, %v6401_v46  ;;  %v6314_v21 = vmul.f32 %v6245_v56, %v5930_v60  ;;  %v5894_v46 = vld [vmem:[#allocation6 + $0x30] sm:$0xff]  ;;  %v5931_v38 = vld [vmem:[#allocation6 + $0x158] sm:$0xff] }
 0x8c5   : > { %v6287_v12 = vmul.f32 %v6110_v14, %v5903_v32  ;;  %7694 = vmatmul.msk.bf16.gmra.mxu3 %vm2107_vm5, %v6680_v4  ;;  %v5907_v56 = vld [vmem:[#allocation6 + $0x98] sm:$0xff] }
 0x8c6   : > { %v6348_v3 = vpack.c.bf16 %v6300_v0, %v6300_v0 }
 0x8c7   : > { %v6335_v25 = vpack.c.bf16 %v6287_v12, %v6287_v12  ;;  %v6362_v12 = vpack.c.bf16 %v6314_v21, %v6314_v21 }
 0x8c8   : > { %v6578_v23 = vunpack.c.l.b16 %v6348_v3 }
 0x8c9   : > { %v6484_v2 = vunpack.c.l.b16 %v6335_v25 }
 0x8ca   : > { %v6588_v59 = vpack.c.b16 %v6579_v13, %v6578_v23  ;;  %v6070_v17 = vpop.permute.xlu2 %6069 }
 0x8cb   : > { %v6240_v57 = vpop.permute.xlu1 %6239  ;;  %v6494_v48 = vpack.c.b16 %v6484_v2, %v6483_v40  ;;  %v6279_v63 = vmul.f32 %v6070_v17, %v5895_v54 }
 0x8cc   : > { %v6313_v22 = vmul.f32 %v6240_v57, %v5929_v16  ;;  %v6235_v37 = vpop.permute.xlu0 %6234  ;;  %v6673_v16 = vunpack.c.l.b16 %v6362_v12 }
 0x8cd   : > { %v6312_v47 = vmul.f32 %v6235_v37, %v5928_v36  ;;  %7674 = vmatmul.msk.bf16.gmra.mxu1 %vm2107_vm5, %v6494_v48  ;;  %7685 = vmatmul.msk.bf16.gmra.mxu2 %vm2107_vm5, %v6588_v59  ;;  %v6327_v0 = vpack.c.bf16 %v6279_v63, %v6279_v63  ;;  %v5906_v59 = vld [vmem:[#allocation6 + $0x90] sm:$0xff] }
 0x8ce   : > { %v6361_v55 = vpack.c.bf16 %v6313_v22, %v6313_v22 }
 0x8cf   : > { %v6360_v33 = vpack.c.bf16 %v6312_v47, %v6312_v47  ;;  %v6395_v40 = vunpack.c.l.b16 %v6327_v0  ;;  %v5933_v47 = vld [vmem:[#allocation6 + $0x168] sm:$0xff] }
 0x8d0   : > { %v6672_v11 = vunpack.c.l.b16 %v6361_v55  ;;  %v5920_v55 = vld [vmem:[#allocation6 + $0x100] sm:$0xff] }
 0x8d1   : > { %v6671_v41 = vunpack.c.l.b16 %v6360_v33 }
 0x8d2   : > { %v6195_v53 = vpop.permute.xlu2 %6194 }
 0x8d3   : > { %v6115_v6 = vpop.permute.xlu1 %6114  ;;  %v6681_v24 = vpack.c.b16 %v6672_v11, %v6671_v41  ;;  %v6304_v41 = vmul.f32 %v6195_v53, %v5920_v55  ;;  %v5896_v53 = vld [vmem:[#allocation6 + $0x40] sm:$0xff]  ;;  %v5911_v55 = vld [vmem:[#allocation6 + $0xb8] sm:$0xff] }
 0x8d4   : > { %v6288_v51 = vmul.f32 %v6115_v6, %v5904_v9  ;;  %v6060_v42 = vpop.permute.xlu0 %6059  ;;  %v5921_v6 = vld [vmem:[#allocation6 + $0x108] sm:$0xff] }
 0x8d5   : > { %v6277_v50 = vmul.f32 %v6060_v42, %v5893_v29  ;;  %7695 = vmatmul.msk.bf16.gmra.mxu3 %vm2107_vm5, %v6681_v24  ;;  %v5932_v29 = vld [vmem:[#allocation6 + $0x160] sm:$0xff] }
 0x8d6   : > { %v6336_v27 = vpack.c.bf16 %v6288_v51, %v6288_v51 }
 0x8d7   : > { %v6325_v28 = vpack.c.bf16 %v6277_v50, %v6277_v50  ;;  %v6352_v50 = vpack.c.bf16 %v6304_v41, %v6304_v41 }
 0x8d8   : > { %v6485_v26 = vunpack.c.l.b16 %v6336_v27 }
 0x8d9   : > { %v6393_v43 = vunpack.c.l.b16 %v6325_v28 }
 0x8da   : > { %v6495_v44 = vpack.c.b16 %v6486_v1, %v6485_v26  ;;  %v6260_v3 = vpop.permute.xlu2 %6259 }
 0x8db   : > { %v6190_v62 = vpop.permute.xlu1 %6189  ;;  %v6402_v20 = vpack.c.b16 %v6393_v43, %v6392_v45  ;;  %v6317_v31 = vmul.f32 %v6260_v3, %v5933_v47  ;;  %v6582_v43 = vunpack.c.l.b16 %v6352_v50 }
 0x8dc   : > { %v6303_v8 = vmul.f32 %v6190_v62, %v5919_v52  ;;  %v6185_v18 = vpop.permute.xlu0 %6184 }
 0x8dd   : > { %v6302_v34 = vmul.f32 %v6185_v18, %v5918_v61  ;;  %7665 = vmatmul.msk.bf16.gmra.mxu0 %vm2107_vm5, %v6402_v20  ;;  %7675 = vmatmul.msk.bf16.gmra.mxu1 %vm2107_vm5, %v6495_v44  ;;  %v6365_v51 = vpack.c.bf16 %v6317_v31, %v6317_v31  ;;  %v5897_v44 = vld [vmem:[#allocation6 + $0x48] sm:$0xff] }
 0x8de   : > { %v6351_v7 = vpack.c.bf16 %v6303_v8, %v6303_v8 }
 0x8df   : > { %v6350_v49 = vpack.c.bf16 %v6302_v34, %v6302_v34  ;;  %v6676_v26 = vunpack.c.l.b16 %v6365_v51  ;;  %v5923_v34 = vld [vmem:[#allocation6 + $0x118] sm:$0xff] }
 0x8e0   : > { %v6581_v58 = vunpack.c.l.b16 %v6351_v7  ;;  %v5908_v7 = vld [vmem:[#allocation6 + $0xa0] sm:$0xff] }
 0x8e1   : > { %v6580_v32 = vunpack.c.l.b16 %v6350_v49 }
 0x8e2   : > { %v6135_v5 = vpop.permute.xlu2 %6134 }
 0x8e3   : > { %v6065_v4 = vpop.permute.xlu1 %6064  ;;  %v6589_v39 = vpack.c.b16 %v6581_v58, %v6580_v32  ;;  %v6292_v32 = vmul.f32 %v6135_v5, %v5908_v7  ;;  %v5898_v5 = vld [vmem:[#allocation6 + $0x50] sm:$0xff] }
 0x8e4   : > { %v6278_v14 = vmul.f32 %v6065_v4, %v5894_v46  ;;  %v6250_v19 = vpop.permute.xlu0 %6249  ;;  %v5909_v4 = vld [vmem:[#allocation6 + $0xa8] sm:$0xff] }
 0x8e5   : > { %v6315_v25 = vmul.f32 %v6250_v19, %v5931_v38  ;;  %7686 = vmatmul.msk.bf16.gmra.mxu2 %vm2107_vm5, %v6589_v39  ;;  %v5922_v38 = vld [vmem:[#allocation6 + $0x110] sm:$0xff] }
 0x8e6   : > { %v6326_v13 = vpack.c.bf16 %v6278_v14, %v6278_v14 }
 0x8e7   : > { %v6363_v23 = vpack.c.bf16 %v6315_v25, %v6315_v25  ;;  %v6340_v25 = vpack.c.bf16 %v6292_v32, %v6292_v32 }
 0x8e8   : > { %v6394_v2 = vunpack.c.l.b16 %v6326_v13 }
 0x8e9   : > { %v6674_v36 = vunpack.c.l.b16 %v6363_v23 }
 0x8ea   : > { %v6403_v57 = vpack.c.b16 %v6395_v40, %v6394_v2  ;;  %v6210_v52 = vpop.permute.xlu2 %6209 }
 0x8eb   : > { %v6130_v48 = vpop.permute.xlu1 %6129  ;;  %v6682_v22 = vpack.c.b16 %v6674_v36, %v6673_v16  ;;  %v6307_v58 = vmul.f32 %v6210_v52, %v5923_v34  ;;  %v6489_v36 = vunpack.c.l.b16 %v6340_v25 }
 0x8ec   : > { %v6291_v37 = vmul.f32 %v6130_v48, %v5907_v56  ;;  %v6125_v35 = vpop.permute.xlu0 %6124 }
 0x8ed   : > { %v6290_v10 = vmul.f32 %v6125_v35, %v5906_v59  ;;  %7666 = vmatmul.msk.bf16.gmra.mxu0 %vm2107_vm5, %v6403_v57  ;;  %7696 = vmatmul.msk.bf16.gmra.mxu3 %vm2107_vm5, %v6682_v22  ;;  %v6355_v19 = vpack.c.bf16 %v6307_v58, %v6307_v58  ;;  %v5935_v59 = vld [vmem:[#allocation6 + $0x178] sm:$0xff]  ;;  %v5934_v57 = vld [vmem:[#allocation6 + $0x170] sm:$0xff]  ;;  %v11428_v58 = vld [vmem:[%s11535_s9] ss:$0 sm:$0xff] }
 0x8ee   : > { %v6339_v33 = vpack.c.bf16 %v6291_v37, %v6291_v37 }
 0x8ef   : > { %v6338_v11 = vpack.c.bf16 %v6290_v10, %v6290_v10  ;;  %v6585_v2 = vunpack.c.l.b16 %v6355_v19 }
 0x8f0   : > { %v6488_v17 = vunpack.c.l.b16 %v6339_v33 }
 0x8f1   : > { %v6487_v9 = vunpack.c.l.b16 %v6338_v11 }
 0x8f2   : > { %v6085_v39 = vpop.permute.xlu2 %6084 }
 0x8f3   : > { %v6255_v24 = vpop.permute.xlu1 %6254  ;;  %v6496_v30 = vpack.c.b16 %v6488_v17, %v6487_v9  ;;  %v6282_v9 = vmul.f32 %v6085_v39, %v5898_v5 }
 0x8f4   : > { %v6316_v42 = vmul.f32 %v6255_v24, %v5932_v29  ;;  %v6200_v15 = vpop.permute.xlu0 %6199  ;;  %v5899_v24 = vld [vmem:[#allocation6 + $0x58] sm:$0xff] }
 0x8f5   : > { %v6305_v27 = vmul.f32 %v6200_v15, %v5921_v6  ;;  %7676 = vmatmul.msk.bf16.gmra.mxu1 %vm2107_vm5, %v6496_v30  ;;  %v5910_v6 = vld [vmem:[#allocation6 + $0xb0] sm:$0xff] }
 0x8f6   : > { %v6364_v28 = vpack.c.bf16 %v6316_v42, %v6316_v42 }
 0x8f7   : > { %v6353_v1 = vpack.c.bf16 %v6305_v27, %v6305_v27  ;;  %v6330_v27 = vpack.c.bf16 %v6282_v9, %v6282_v9 }
 0x8f8   : > { %v6675_v45 = vunpack.c.l.b16 %v6364_v28 }
 0x8f9   : > { %v6583_v61 = vunpack.c.l.b16 %v6353_v1  ;;  %v6398_v52 = vunpack.c.l.b16 %v6330_v27 }
 0x8fa   : > { %v6683_v62 = vpack.c.b16 %v6676_v26, %v6675_v45  ;;  %v6150_v10 = vpop.permute.xlu2 %6149 }
 0x8fb   : > { %v6080_v20 = vpop.permute.xlu1 %6079  ;;  %v6590_v8 = vpack.c.b16 %v6583_v61, %v6582_v43  ;;  %v6295_v17 = vmul.f32 %v6150_v10, %v5911_v55 }
 0x8fc   : > { %v6281_v18 = vmul.f32 %v6080_v20, %v5897_v44  ;;  %v6075_v54 = vpop.permute.xlu0 %6074 }
 0x8fd   : > { %v6280_v60 = vmul.f32 %v6075_v54, %v5896_v53  ;;  %7687 = vmatmul.msk.bf16.gmra.mxu2 %vm2107_vm5, %v6590_v8  ;;  %7697 = vmatmul.msk.bf16.gmra.mxu3 %vm2107_vm5, %v6683_v62  ;;  %v6343_v42 = vpack.c.bf16 %v6295_v17, %v6295_v17 }
 0x8fe   : > { %v6329_v49 = vpack.c.bf16 %v6281_v18, %v6281_v18 }
 0x8ff   : > { %v6328_v63 = vpack.c.bf16 %v6280_v60, %v6280_v60  ;;  %v6492_v45 = vunpack.c.l.b16 %v6343_v42 }
 0x900   : > { %v6397_v21 = vunpack.c.l.b16 %v6329_v49 }
 0x901   : > { %v6396_v46 = vunpack.c.l.b16 %v6328_v63 }
 0x903   : > { %v6205_v0 = vpop.permute.xlu1 %6204  ;;  %v6404_v14 = vpack.c.b16 %v6397_v21, %v6396_v46 }
 0x904   : > { %v6306_v12 = vmul.f32 %v6205_v0, %v5922_v38  ;;  %v6140_v3 = vpop.permute.xlu0 %6139 }
 0x905   : > { %v6293_v13 = vmul.f32 %v6140_v3, %v5909_v4  ;;  %7667 = vmatmul.msk.bf16.gmra.mxu0 %vm2107_vm5, %v6404_v14 }
 0x906   : > { %v6354_v23 = vpack.c.bf16 %v6306_v12, %v6306_v12 }
 0x907   : > { %v6341_v40 = vpack.c.bf16 %v6293_v13, %v6293_v13 }
 0x908   : > { %v6584_v16 = vunpack.c.l.b16 %v6354_v23 }
 0x909   : > { %v6490_v56 = vunpack.c.l.b16 %v6341_v40 }
 0x90a   : > { %v6591_v48 = vpack.c.b16 %v6585_v2, %v6584_v16 }
 0x90b   : > { %v6270_v22 = vpop.permute.xlu1 %6269  ;;  %v6497_v37 = vpack.c.b16 %v6490_v56, %v6489_v36 }
 0x90c   : > { %v6319_v35 = vmul.f32 %v6270_v22, %v5935_v59  ;;  %v6265_v47 = vpop.permute.xlu0 %6264 }
 0x90d   : > { %v6318_v33 = vmul.f32 %v6265_v47, %v5934_v57  ;;  %7677 = vmatmul.msk.bf16.gmra.mxu1 %vm2107_vm5, %v6497_v37  ;;  %7688 = vmatmul.msk.bf16.gmra.mxu2 %vm2107_vm5, %v6591_v48 }
 0x90e   : > { %v6367_v11 = vpack.c.bf16 %v6319_v35, %v6319_v35 }
 0x90f   : > { %v6366_v31 = vpack.c.bf16 %v6318_v33, %v6318_v33 }
 0x910   : > { %v6678_v41 = vunpack.c.l.b16 %v6367_v11 }
 0x911   : > { %v6677_v29 = vunpack.c.l.b16 %v6366_v31 }
 0x913   : > { %v6145_v30 = vpop.permute.xlu1 %6144  ;;  %v6684_v51 = vpack.c.b16 %v6678_v41, %v6677_v29 }
 0x914   : > { %v6294_v15 = vmul.f32 %v6145_v30, %v5910_v6  ;;  %v6090_v50 = vpop.permute.xlu0 %6089 }
 0x915   : > { %v6283_v28 = vmul.f32 %v6090_v50, %v5899_v24  ;;  %7698 = vmatmul.msk.bf16.gmra.mxu3 %vm2107_vm5, %v6684_v51 }
 0x916   : > { %v6342_v1 = vpack.c.bf16 %v6294_v15, %v6294_v15 }
 0x917   : > { %v6331_v26 = vpack.c.bf16 %v6283_v28, %v6283_v28 }
 0x918   : > { %v6491_v43 = vunpack.c.l.b16 %v6342_v1 }
 0x919   : > { %v6399_v61 = vunpack.c.l.b16 %v6331_v26 }
 0x91a   : > { %v6498_v44 = vpack.c.b16 %v6492_v45, %v6491_v43 }
 0x91b   : > { %v6405_v53 = vpack.c.b16 %v6399_v61, %v6398_v52 }
 0x91d   : > { %7668 = vmatmul.msk.bf16.gmra.mxu0 %vm2107_vm5, %v6405_v53  ;;  %7678 = vmatmul.msk.bf16.gmra.mxu1 %vm2107_vm5, %v6498_v44 }
 0x92a   : > { %v6439_v62 = vpop.f32.mrf.mxu0 }
 0x92b   : > { %v6749_v54 = vsel %vm6748_vm8, %v6439_v62, 0.0 }
 0x92f   : > { %v6625_v20 = vpop.f32.mrf.mxu2 }
 0x930   : > { %v6752_v60 = vsel %vm6748_vm8, %v6625_v20, 0.0 }
 0x931   : > { %v6532_v8 = vpop.f32.mrf.mxu1 }
 0x932   : > { %v6750_v18 = vsel %vm6748_vm8, %v6532_v8, 0.0  ;;  %v6441_v7 = vpop.f32.mrf.mxu0 }
 0x933   : > { %v6751_v34 = vadd.f32 %v6750_v18, %v6749_v54  ;;  %v6756_v39 = vsel %vm6748_vm8, %v6441_v7, 0.0 }
 0x935   : > { %v6753_v63 = vadd.f32 %v6752_v60, %v6751_v34 }
 0x937   : > { %v6627_v21 = vpop.f32.mrf.mxu2 }
 0x938   : > { %v6718_v49 = vpop.f32.mrf.mxu3  ;;  %v6759_v19 = vsel %vm6748_vm8, %v6627_v21, 0.0 }
 0x939   : > { %v6754_v32 = vsel %vm6748_vm8, %v6718_v49, 0.0  ;;  %v6534_v46 = vpop.f32.mrf.mxu1 }
 0x93a   : > { %v6755_v38 = vadd.f32 %v6754_v32, %v6753_v63  ;;  %v6757_v4 = vsel %vm6748_vm8, %v6534_v46, 0.0 }
 0x93b   : > { %v6758_v14 = vadd.f32 %v6757_v4, %v6756_v39 }
 0x93c   : > { %v6837_v0 = vadd.f32 %v11428_v58, %v6755_v38 }
 0x93d   : > { %v6760_v3 = vadd.f32 %v6759_v19, %v6758_v14 }
 0x93e   : > { %6849 = vst.msk [vmem:[%s8472_s18] sm:$0xff] %vm6748_vm8, %v6837_v0 }
 0x940   : > { %v6720_v12 = vpop.f32.mrf.mxu3  ;;  %v6630_v23 = vpop.f32.mrf.mxu2 }
 0x941   : > { %v6761_v25 = vsel %vm6748_vm8, %v6720_v12, 0.0  ;;  %v6444_v2 = vpop.f32.mrf.mxu0  ;;  %v6766_v48 = vsel %vm6748_vm8, %v6630_v23, 0.0 }
 0x942   : > { %v6762_v13 = vadd.f32 %v6761_v25, %v6760_v3  ;;  %v6763_v56 = vsel %vm6748_vm8, %v6444_v2, 0.0 }
 0x944   : > { %v6838_v40 = vadd.f32 %v11428_v58, %v6762_v13 }
 0x946   : > { %6850 = vst.msk [vmem:[%s8472_s18 + $0x8] sm:$0xff] %vm6748_vm8, %v6838_v40 }
 0x948   : > { %v6723_v16 = vpop.f32.mrf.mxu3  ;;  %v6632_v22 = vpop.f32.mrf.mxu2 }
 0x949   : > { %v6768_v35 = vsel %vm6748_vm8, %v6723_v16, 0.0  ;;  %v6446_v47 = vpop.f32.mrf.mxu0  ;;  %v6773_v41 = vsel %vm6748_vm8, %v6632_v22, 0.0 }
 0x94a   : > { %v6537_v36 = vpop.f32.mrf.mxu1  ;;  %v6770_v11 = vsel %vm6748_vm8, %v6446_v47, 0.0 }
 0x94b   : > { %v6764_v59 = vsel %vm6748_vm8, %v6537_v36, 0.0 }
 0x94c   : > { %v6765_v57 = vadd.f32 %v6764_v59, %v6763_v56 }
 0x94e   : > { %v6767_v37 = vadd.f32 %v6766_v48, %v6765_v57 }
 0x950   : > { %v6769_v10 = vadd.f32 %v6768_v35, %v6767_v37  ;;  %v6725_v55 = vpop.f32.mrf.mxu3  ;;  %v6635_v29 = vpop.f32.mrf.mxu2 }
 0x951   : > { %v6775_v6 = vsel %vm6748_vm8, %v6725_v55, 0.0  ;;  %v6780_v1 = vsel %vm6748_vm8, %v6635_v29, 0.0 }
 0x952   : > { %v6839_v33 = vadd.f32 %v11428_v58, %v6769_v10  ;;  %v6539_v5 = vpop.f32.mrf.mxu1 }
 0x953   : > { %v6771_v31 = vsel %vm6748_vm8, %v6539_v5, 0.0 }
 0x954   : > { %6851 = vst.msk [vmem:[%s8472_s18 + $0x10] sm:$0xff] %vm6748_vm8, %v6839_v33  ;;  %v6772_v17 = vadd.f32 %v6771_v31, %v6770_v11 }
 0x956   : > { %v6774_v9 = vadd.f32 %v6773_v41, %v6772_v17 }
 0x958   : > { %v6776_v24 = vadd.f32 %v6775_v6, %v6774_v9  ;;  %v6728_v30 = vpop.f32.mrf.mxu3  ;;  %v6637_v52 = vpop.f32.mrf.mxu2 }
 0x959   : > { %v6782_v45 = vsel %vm6748_vm8, %v6728_v30, 0.0  ;;  %v6787_v54 = vsel %vm6748_vm8, %v6637_v52, 0.0 }
 0x95a   : > { %v6840_v51 = vadd.f32 %v11428_v58, %v6776_v24  ;;  %v6449_v42 = vpop.f32.mrf.mxu0  ;;  %v6542_v15 = vpop.f32.mrf.mxu1 }
 0x95b   : > { %v6777_v50 = vsel %vm6748_vm8, %v6449_v42, 0.0  ;;  %v6778_v27 = vsel %vm6748_vm8, %v6542_v15, 0.0 }
 0x95c   : > { %6852 = vst.msk [vmem:[%s8472_s18 + $0x18] sm:$0xff] %vm6748_vm8, %v6840_v51  ;;  %v6779_v28 = vadd.f32 %v6778_v27, %v6777_v50 }
 0x95e   : > { %v6781_v26 = vadd.f32 %v6780_v1, %v6779_v28 }
 0x960   : > { %v6783_v43 = vadd.f32 %v6782_v45, %v6781_v26  ;;  %v6730_v8 = vpop.f32.mrf.mxu3 }
 0x961   : > { %v6789_v60 = vsel %vm6748_vm8, %v6730_v8, 0.0 }
 0x962   : > { %v6841_v61 = vadd.f32 %v11428_v58, %v6783_v43  ;;  %v6451_v44 = vpop.f32.mrf.mxu0  ;;  %v6544_v53 = vpop.f32.mrf.mxu1 }
 0x963   : > { %v6784_v62 = vsel %vm6748_vm8, %v6451_v44, 0.0  ;;  %v6785_v20 = vsel %vm6748_vm8, %v6544_v53, 0.0 }
 0x964   : > { %6853 = vst.msk [vmem:[%s8472_s18 + $0x20] sm:$0xff] %vm6748_vm8, %v6841_v61  ;;  %v6786_v18 = vadd.f32 %v6785_v20, %v6784_v62 }
 0x966   : > { %v6788_v34 = vadd.f32 %v6787_v54, %v6786_v18 }
 0x968   : > { %v6790_v7 = vadd.f32 %v6789_v60, %v6788_v34  ;;  %v6640_v21 = vpop.f32.mrf.mxu2 }
 0x969   : > { %v6794_v0 = vsel %vm6748_vm8, %v6640_v21, 0.0 }
 0x96a   : > { %v6842_v49 = vadd.f32 %v11428_v58, %v6790_v7  ;;  %v6454_v63 = vpop.f32.mrf.mxu0 }
 0x96b   : > { %v6791_v38 = vsel %vm6748_vm8, %v6454_v63, 0.0 }
 0x96c   : > { %6854 = vst.msk [vmem:[%s8472_s18 + $0x28] sm:$0xff] %vm6748_vm8, %v6842_v49 }
 0x970   : > { %v6733_v32 = vpop.f32.mrf.mxu3  ;;  %v6642_v25 = vpop.f32.mrf.mxu2 }
 0x971   : > { %v6796_v19 = vsel %vm6748_vm8, %v6733_v32, 0.0  ;;  %v6801_v56 = vsel %vm6748_vm8, %v6642_v25, 0.0 }
 0x972   : > { %v6547_v46 = vpop.f32.mrf.mxu1  ;;  %v6456_v12 = vpop.f32.mrf.mxu0 }
 0x973   : > { %v6792_v4 = vsel %vm6748_vm8, %v6547_v46, 0.0  ;;  %v6798_v40 = vsel %vm6748_vm8, %v6456_v12, 0.0 }
 0x974   : > { %v6793_v39 = vadd.f32 %v6792_v4, %v6791_v38 }
 0x976   : > { %v6795_v14 = vadd.f32 %v6794_v0, %v6793_v39 }
 0x978   : > { %v6797_v3 = vadd.f32 %v6796_v19, %v6795_v14  ;;  %v6735_v16 = vpop.f32.mrf.mxu3 }
 0x979   : > { %v6803_v57 = vsel %vm6748_vm8, %v6735_v16, 0.0 }
 0x97a   : > { %v6843_v13 = vadd.f32 %v11428_v58, %v6797_v3  ;;  %v6549_v23 = vpop.f32.mrf.mxu1 }
 0x97b   : > { %v6799_v2 = vsel %vm6748_vm8, %v6549_v23, 0.0 }
 0x97c   : > { %6855 = vst.msk [vmem:[%s8472_s18 + $0x30] sm:$0xff] %vm6748_vm8, %v6843_v13  ;;  %v6800_v36 = vadd.f32 %v6799_v2, %v6798_v40 }
 0x97e   : > { %v6802_v59 = vadd.f32 %v6801_v56, %v6800_v36 }
 0x980   : > { %v6804_v48 = vadd.f32 %v6803_v57, %v6802_v59  ;;  %v6645_v37 = vpop.f32.mrf.mxu2  ;;  %v6738_v47 = vpop.f32.mrf.mxu3 }
 0x981   : > { %v6808_v11 = vsel %vm6748_vm8, %v6645_v37, 0.0  ;;  %v6810_v41 = vsel %vm6748_vm8, %v6738_v47, 0.0 }
 0x982   : > { %v6844_v22 = vadd.f32 %v11428_v58, %v6804_v48  ;;  %v6459_v35 = vpop.f32.mrf.mxu0 }
 0x983   : > { %v6805_v55 = vsel %vm6748_vm8, %v6459_v35, 0.0 }
 0x984   : > { %6856 = vst.msk [vmem:[%s8472_s18 + $0x38] sm:$0xff] %vm6748_vm8, %v6844_v22 }
 0x988   : > { %v6647_v31 = vpop.f32.mrf.mxu2  ;;  %v6740_v6 = vpop.f32.mrf.mxu3 }
 0x989   : > { %v6815_v50 = vsel %vm6748_vm8, %v6647_v31, 0.0  ;;  %v6817_v28 = vsel %vm6748_vm8, %v6740_v6, 0.0 }
 0x98a   : > { %v6552_v10 = vpop.f32.mrf.mxu1  ;;  %v6461_v9 = vpop.f32.mrf.mxu0 }
 0x98b   : > { %v6806_v33 = vsel %vm6748_vm8, %v6552_v10, 0.0  ;;  %v6812_v51 = vsel %vm6748_vm8, %v6461_v9, 0.0 }
 0x98c   : > { %v6807_v5 = vadd.f32 %v6806_v33, %v6805_v55 }
 0x98e   : > { %v6809_v17 = vadd.f32 %v6808_v11, %v6807_v5 }
 0x990   : > { %v6811_v29 = vadd.f32 %v6810_v41, %v6809_v17  ;;  %v6650_v1 = vpop.f32.mrf.mxu2 }
 0x991   : > { %v6822_v20 = vsel %vm6748_vm8, %v6650_v1, 0.0 }
 0x992   : > { %v6845_v24 = vadd.f32 %v11428_v58, %v6811_v29  ;;  %v6554_v30 = vpop.f32.mrf.mxu1 }
 0x993   : > { %v6813_v42 = vsel %vm6748_vm8, %v6554_v30, 0.0 }
 0x994   : > { %6857 = vst.msk [vmem:[%s8472_s18 + $0x40] sm:$0xff] %vm6748_vm8, %v6845_v24  ;;  %v6814_v15 = vadd.f32 %v6813_v42, %v6812_v51 }
 0x996   : > { %v6816_v27 = vadd.f32 %v6815_v50, %v6814_v15 }
 0x998   : > { %v6818_v26 = vadd.f32 %v6817_v28, %v6816_v27  ;;  %v6743_v45 = vpop.f32.mrf.mxu3  ;;  %v6652_v34 = vpop.f32.mrf.mxu2 }
 0x999   : > { %v6824_v18 = vsel %vm6748_vm8, %v6743_v45, 0.0  ;;  %v6829_v38 = vsel %vm6748_vm8, %v6652_v34, 0.0 }
 0x99a   : > { %v6846_v43 = vadd.f32 %v11428_v58, %v6818_v26  ;;  %v6464_v52 = vpop.f32.mrf.mxu0  ;;  %v6557_v61 = vpop.f32.mrf.mxu1 }
 0x99b   : > { %v6819_v44 = vsel %vm6748_vm8, %v6464_v52, 0.0  ;;  %v6820_v53 = vsel %vm6748_vm8, %v6557_v61, 0.0 }
 0x99c   : > { %6858 = vst.msk [vmem:[%s8472_s18 + $0x48] sm:$0xff] %vm6748_vm8, %v6846_v43  ;;  %v6821_v62 = vadd.f32 %v6820_v53, %v6819_v44 }
 0x99e   : > { %v6823_v8 = vadd.f32 %v6822_v20, %v6821_v62 }
 0x9a0   : > { %v6825_v54 = vadd.f32 %v6824_v18, %v6823_v8  ;;  %v6745_v32 = vpop.f32.mrf.mxu3 }
 0x9a1   : > { %v6831_v39 = vsel %vm6748_vm8, %v6745_v32, 0.0 }
 0x9a2   : > { %v6847_v60 = vadd.f32 %v11428_v58, %v6825_v54  ;;  %v6466_v7 = vpop.f32.mrf.mxu0  ;;  %v6559_v49 = vpop.f32.mrf.mxu1 }
 0x9a3   : > { %v6826_v63 = vsel %vm6748_vm8, %v6466_v7, 0.0  ;;  %v6827_v21 = vsel %vm6748_vm8, %v6559_v49, 0.0 }
 0x9a4   : > { %6859 = vst.msk [vmem:[%s8472_s18 + $0x50] sm:$0xff] %vm6748_vm8, %v6847_v60  ;;  %v6828_v46 = vadd.f32 %v6827_v21, %v6826_v63 }
 0x9a6   : > { %v6830_v4 = vadd.f32 %v6829_v38, %v6828_v46 }
 0x9a8   : > { %v6832_v0 = vadd.f32 %v6831_v39, %v6830_v4 }
 0x9aa   : > { %v6848_v14 = vadd.f32 %v11428_v58, %v6832_v0 }
 0x9ac   : > { %6860 = vst.msk [vmem:[%s8472_s18 + $0x58] sm:$0xff] %vm6748_vm8, %v6848_v14 }
 0x9ad PF: > { %s11955_s12 = sld [smem:[#allocation9_spill]] }
 0x9ae   : > { %s11956_s17 = sld [smem:[#allocation7_spill]] }
 0x9af   : > { %s11957_s18 = sld [smem:[#allocation8_spill]] }
 0x9b0   : > { %s11958_s19 = sld [smem:[#allocation10_spill]] }
 0x9b1   : > { %s11959_s20 = sld [smem:[#allocation11_spill]] }
 0x9b3   : > { %s22_s21 = sadd.s32 1, %s11955_s12  }
 0x9b4   : > { %p19_p9 = scmp.ge.s32.totalorder %s22_s21, 6  }
 0x9b6   :  { %21 = sbr.rel (!%p19_p9) target bundleno = 3 (0x3), region = 113 }

</bundles_post_ra>
